<compile_context>
chip_gen: v6e
topology: v6e:2x2x1
jax: 0.10.0
libtpu: 0.0.40
codegen_flags: <defaults>
</compile_context>

<pallas_src>
from functools import partial

import jax
import jax.numpy as jnp
from jax.experimental import pallas as pl
from jax.experimental.pallas import tpu as pltpu


# --------------------------------------------------------------------------- #
# Kernel A: ConvTranspose2d(2,2) + depth-to-space + GroupNorm + ReLU (fused)
# --------------------------------------------------------------------------- #

def _up_gn_relu_kernel(x_ref, w_ref, b_ref, gamma_ref, beta_ref, bmat_ref,
                       o_ref, *, eps, H, W):
    # x_ref   : (1, H*W, Cin)          one image, flat spatial
    # w_ref   : (2, Cin, 2*C)          [di][cin][dj*C + o]
    # b/gamma/beta : (1, 2*C)          channel params tiled over dj
    # bmat_ref: (2*C, 2*C)             group-average matrix (two-pass GN)
    # o_ref   : (1, H, 2, W, 2*C)      -> reshapes (free) to (2H, 2W, C)
    x = x_ref[0]                                                    # (HW, Cin)

    # one matmul per output-row parity di; columns already hold the dj interleave
    z0 = jnp.dot(x, w_ref[0], preferred_element_type=jnp.float32) + b_ref[...]
    z1 = jnp.dot(x, w_ref[1], preferred_element_type=jnp.float32) + b_ref[...]

    # ---- GroupNorm (two-pass: mean first, then centered sum of squares) ----
    s2 = jnp.sum(z0, axis=0, keepdims=True) + jnp.sum(z1, axis=0, keepdims=True)
    mean2 = jnp.dot(s2, bmat_ref[...], preferred_element_type=jnp.float32)
    d0 = z0 - mean2
    d1 = z1 - mean2
    ss2 = (jnp.sum(d0 * d0, axis=0, keepdims=True)
           + jnp.sum(d1 * d1, axis=0, keepdims=True))
    var2 = jnp.dot(ss2, bmat_ref[...], preferred_element_type=jnp.float32)
    inv2 = jax.lax.rsqrt(var2 + eps)

    g = gamma_ref[...]
    bt = beta_ref[...]
    y0 = jnp.maximum(d0 * inv2 * g + bt, 0.0)
    y1 = jnp.maximum(d1 * inv2 * g + bt, 0.0)

    C2 = y0.shape[1]
    # depth-to-space: (HW, 2C) -> (H, W, 2C) is a lane-preserving reshape; the
    # row-parity interleave is done by the output array layout (B, H, 2, W, 2C).
    o_ref[0, :, 0, :, :] = y0.reshape(H, W, C2).astype(o_ref.dtype)
    o_ref[0, :, 1, :, :] = y1.reshape(H, W, C2).astype(o_ref.dtype)


def up_gn_relu(x_flat, w_up2, b2, gamma2, beta2, bmat2, H, W, eps):
    """x_flat: (B, H*W, Cin).  Returns (B, 2H, 2W, Cout) (free reshape)."""
    B, HW, Cin = x_flat.shape
    C2 = w_up2.shape[2]
    out = pl.pallas_call(
        partial(_up_gn_relu_kernel, eps=eps, H=H, W=W),
        out_shape=jax.ShapeDtypeStruct((B, H, 2, W, C2), jnp.float32),
        grid=(B,),
        in_specs=[pl.BlockSpec((1, HW, Cin), lambda i: (i, 0, 0)),
                  pl.BlockSpec((2, Cin, C2), lambda i: (0, 0, 0)),
                  pl.BlockSpec((1, C2), lambda i: (0, 0)),
                  pl.BlockSpec((1, C2), lambda i: (0, 0)),
                  pl.BlockSpec((1, C2), lambda i: (0, 0)),
                  pl.BlockSpec((C2, C2), lambda i: (0, 0))],
        out_specs=pl.BlockSpec((1, H, 2, W, C2), lambda i: (i, 0, 0, 0, 0)),
        compiler_params=pltpu.CompilerParams(
            dimension_semantics=("parallel",)),
    )(x_flat, w_up2, b2, gamma2, beta2, bmat2)
    return out.reshape(B, 2 * H, 2 * W, C2 // 2)


# --------------------------------------------------------------------------- #
# Kernel B: concat + pad + Conv2d(3x3) + GroupNorm + ReLU (fused)
# --------------------------------------------------------------------------- #

def _conv3x3_gn_relu_kernel(y_ref, s_ref, wa_ref, wb_ref, b_ref, gamma_ref,
                            beta_ref, bmat_ref, o_ref, *, eps, Hh, Wh):
    # y_ref : (1, Hh*Wh, C1) up-path activations (first half of the concat)
    # s_ref : (1, Hh*Wh, C2) skip activations    (second half of the concat)
    # wa/wb : (9, C1/C2, Cout) per-tap weights (tap = kh*3 + kw)
    # b/gamma/beta : (1, Cout);  bmat_ref: (Cout, Cout) group-average matrix
    # o_ref : (1, Hh*Wh, Cout)
    HW = Hh * Wh
    a = y_ref[0]                                                    # (HW, C1)
    sk = s_ref[0]                                                   # (HW, C2)
    Cout = o_ref.shape[2]

    col = jax.lax.broadcasted_iota(jnp.int32, (HW, 1), 0) % Wh      # column of p

    def shift(v, s):
        # zero-extended shift along flat-spatial axis: out[p] = v[p + s] or 0
        if s == 0:
            return v
        pad = jnp.zeros((abs(s), v.shape[1]), v.dtype)
        if s > 0:
            return jnp.concatenate([v[s:, :], pad], axis=0)
        return jnp.concatenate([pad, v[:s, :]], axis=0)

    acc = jnp.zeros((HW, Cout), jnp.float32) + b_ref[...]
    for kh in range(3):
        dh = kh - 1
        for kw in range(3):
            dw = kw - 1
            s = dh * Wh + dw
            av = shift(a, s)
            sv = shift(sk, s)
            if dw != 0:
                # mask columns whose 3x3 source falls outside the row (zero pad)
                m = jnp.logical_and(col + dw >= 0,
                                    col + dw <= Wh - 1).astype(jnp.float32)
                av = av * m
                sv = sv * m
            t = kh * 3 + kw
            acc = acc + jnp.dot(av, wa_ref[t], preferred_element_type=jnp.float32)
            acc = acc + jnp.dot(sv, wb_ref[t], preferred_element_type=jnp.float32)

    # ---- fused GroupNorm (two-pass) + ReLU ----
    sc = jnp.sum(acc, axis=0, keepdims=True)
    mean = jnp.dot(sc, bmat_ref[...], preferred_element_type=jnp.float32)
    d = acc - mean
    var = jnp.dot(jnp.sum(d * d, axis=0, keepdims=True), bmat_ref[...],
                  preferred_element_type=jnp.float32)
    inv = jax.lax.rsqrt(var + eps)
    o_ref[0] = jnp.maximum(d * inv * gamma_ref[...] + beta_ref[...],
                           0.0).astype(o_ref.dtype)


def conv3x3_gn_relu(y, skip, wa, wb, b, gamma, beta, bmat, Hh, Wh, eps):
    """y: (B, Hh*Wh, C1), skip: (B, Hh*Wh, C2).  Returns (B, Hh*Wh, Cout)."""
    B, HW, C1 = y.shape
    C2 = skip.shape[2]
    Cout = wa.shape[2]
    return pl.pallas_call(
        partial(_conv3x3_gn_relu_kernel, eps=eps, Hh=Hh, Wh=Wh),
        out_shape=jax.ShapeDtypeStruct((B, HW, Cout), jnp.float32),
        grid=(B,),
        in_specs=[pl.BlockSpec((1, HW, C1), lambda i: (i, 0, 0)),
                  pl.BlockSpec((1, HW, C2), lambda i: (i, 0, 0)),
                  pl.BlockSpec((9, C1, Cout), lambda i: (0, 0, 0)),
                  pl.BlockSpec((9, C2, Cout), lambda i: (0, 0, 0)),
                  pl.BlockSpec((1, Cout), lambda i: (0, 0)),
                  pl.BlockSpec((1, Cout), lambda i: (0, 0)),
                  pl.BlockSpec((1, Cout), lambda i: (0, 0)),
                  pl.BlockSpec((Cout, Cout), lambda i: (0, 0))],
        out_specs=pl.BlockSpec((1, HW, Cout), lambda i: (i, 0, 0)),
        compiler_params=pltpu.CompilerParams(
            dimension_semantics=("parallel",)),
    )(y, skip, wa, wb, b, gamma, beta, bmat)


# --------------------------------------------------------------------------- #
# Final 1x1 conv as an M-tiled matmul (pipelined)
# --------------------------------------------------------------------------- #

def _matmul_bias_kernel(x_ref, w_ref, b_ref, o_ref):
    acc = jnp.dot(x_ref[...], w_ref[...], preferred_element_type=jnp.float32)
    o_ref[...] = (acc + b_ref[...]).astype(o_ref.dtype)


def matmul_bias(x, w, b, tm=256):
    M, K = x.shape
    N = w.shape[1]
    tm = min(tm, M)
    return pl.pallas_call(
        _matmul_bias_kernel,
        out_shape=jax.ShapeDtypeStruct((M, N), jnp.float32),
        grid=(pl.cdiv(M, tm),),
        in_specs=[pl.BlockSpec((tm, K), lambda i: (i, 0)),
                  pl.BlockSpec((K, N), lambda i: (0, 0)),
                  pl.BlockSpec((1, N), lambda i: (0, 0))],
        out_specs=pl.BlockSpec((tm, N), lambda i: (i, 0)),
        compiler_params=pltpu.CompilerParams(
            dimension_semantics=("parallel",)),
    )(x, w, b.reshape(1, N))


# --------------------------------- wrapper --------------------------------- #

def _group_avg_mat(num_cols, C, cg, n_pos):
    """(num_cols, num_cols) matrix mapping per-column sums to per-column group means."""
    grp = (jnp.arange(num_cols) % C) // cg
    return (grp[:, None] == grp[None, :]).astype(jnp.float32) / float(n_pos * cg)


def block_forward(x1, x2, p, eps=1e-5):
    """ConvDecoder.Block.  x1: (B,H,W,Cin) NHWC, x2: (B,2H,2W,Cskip) NHWC."""
    B, H, W, Cin = x1.shape
    Cout = p["up_b"].shape[0]
    g = Cout // 8                 # static (GroupNorm num_groups = out_channels // 8)
    cg = Cout // g
    Hh, Wh = 2 * H, 2 * W
    n_pos = Hh * Wh

    # ---- up: ConvTranspose2d(2,2) + depth-to-space + GN + ReLU (1 kernel) ----
    C2 = 2 * Cout
    # PyTorch weight (Cin, Cout, 2, 2) -> (di, Cin, dj*Cout + o)
    w_up2 = jnp.transpose(p["up_w"], (2, 0, 3, 1)).reshape(2, Cin, C2)
    b2 = jnp.tile(p["up_b"], 2).reshape(1, C2)
    gamma2 = jnp.tile(p["gamma1"], 2).reshape(1, C2)
    beta2 = jnp.tile(p["beta1"], 2).reshape(1, C2)
    bmat2 = _group_avg_mat(C2, Cout, cg, n_pos)
    y = up_gn_relu(x1.reshape(B, H * W, Cin), w_up2, b2, gamma2, beta2,
                   bmat2, H, W, eps)                       # (B, 2H, 2W, Cout)

    # ---- concat + 3x3 conv + GN + ReLU (1 kernel, no HBM concat/pad) ----
    C1 = Cout
    Cs = x2.shape[3]
    wa = p["conv_w"][:, :, :C1, :].reshape(9, C1, Cout)    # taps on the up path
    wb = p["conv_w"][:, :, C1:, :].reshape(9, Cs, Cout)    # taps on the skip
    bmat = _group_avg_mat(Cout, Cout, cg, n_pos)
    out = conv3x3_gn_relu(y.reshape(B, n_pos, C1), x2.reshape(B, n_pos, Cs),
                          wa, wb, p["conv_b"].reshape(1, Cout),
                          p["gamma2"].reshape(1, Cout), p["beta2"].reshape(1, Cout),
                          bmat, Hh, Wh, eps)
    return out.reshape(B, Hh, Wh, Cout)


@jax.jit
def conv_decoder_forward(x_nchw, skip1_nchw, skip2_nchw, params):
    """x: (B,Cin,H,W); skip2 = x_list[-1]: (B,64,2H,2W); skip1 = x_list[-2]: (B,32,4H,4W)."""
    x = jnp.transpose(x_nchw, (0, 2, 3, 1))
    s1 = jnp.transpose(skip1_nchw, (0, 2, 3, 1))
    s2 = jnp.transpose(skip2_nchw, (0, 2, 3, 1))

    y1 = block_forward(x, s2, params["decoder2"])
    y = block_forward(y1, s1, params["decoder1"])

    B, H, W, C = y.shape
    out = matmul_bias(y.reshape(B * H * W, C), params["conv_w"], params["conv_b"])
    return jnp.transpose(out.reshape(B, H, W, -1), (0, 3, 1, 2))   # back to NCHW


# -------------------------- deterministic init ----------------------------- #

def init_params(key, in_channels, out_channels=32):
    def kaiming(k, shape, fan_out):
        return jax.random.normal(k, shape, jnp.float32) * (2.0 / fan_out) ** 0.5

    def block(ks, cin, cmid, cout):
        return dict(
            up_w=kaiming(ks[0], (cin, cout, 2, 2), cin * 4),      # PT ConvTranspose2d layout
            up_b=jax.random.normal(ks[1], (cout,), jnp.float32) * 0.05,
            conv_w=kaiming(ks[2], (3, 3, cmid, cout), cout * 9),  # HWIO
            conv_b=jax.random.normal(ks[3], (cout,), jnp.float32) * 0.05,
            gamma1=jnp.ones((cout,), jnp.float32),
            beta1=jnp.zeros((cout,), jnp.float32),
            gamma2=jnp.ones((cout,), jnp.float32),
            beta2=jnp.zeros((cout,), jnp.float32),
        )

    ks = jax.random.split(key, 10)
    return dict(
        decoder2=block(ks[0:4], in_channels, 64 + 64, 64),
        decoder1=block(ks[4:8], 64, 32 + 32, 32),
        conv_w=kaiming(ks[8], (32, out_channels), out_channels),
        conv_b=jax.random.normal(ks[9], (out_channels,), jnp.float32) * 0.05,
    )


# ------------------------ pure-JAX reference check ------------------------- #

def _gn_relu_ref(x, gamma, beta, eps=1e-5):
    B, H, W, C = x.shape
    g = C // 8
    cg = C // g
    xg = x.reshape(B, H * W, g, cg)
    mean = xg.mean(axis=(1, 3), keepdims=True)
    var = ((xg - mean) ** 2).mean(axis=(1, 3), keepdims=True)
    y = ((xg - mean) / jnp.sqrt(var + eps)).reshape(B, H, W, C) * gamma + beta
    return jnp.maximum(y, 0.0)


def _block_ref(x1, x2, p):
    B, H, W, Cin = x1.shape
    Cout = p["up_b"].shape[0]
    t = jnp.einsum("bhwc,cofg->bhfwgo", x1, p["up_w"])
    y = t.reshape(B, 2 * H, 2 * W, Cout) + p["up_b"]
    y = _gn_relu_ref(y, p["gamma1"], p["beta1"])
    xc = jnp.concatenate([y, x2], axis=-1)
    y2 = jax.lax.conv_general_dilated(xc, p["conv_w"], (1, 1), "SAME",
                                      dimension_numbers=("NHWC", "HWIO", "NHWC"))
    y2 = y2 + p["conv_b"]
    return _gn_relu_ref(y2, p["gamma2"], p["beta2"])


def conv_decoder_reference(x_nchw, skip1_nchw, skip2_nchw, params):
    x = jnp.transpose(x_nchw, (0, 2, 3, 1))
    s1 = jnp.transpose(skip1_nchw, (0, 2, 3, 1))
    s2 = jnp.transpose(skip2_nchw, (0, 2, 3, 1))
    y1 = _block_ref(x, s2, params["decoder2"])
    y = _block_ref(y1, s1, params["decoder1"])
    out = jnp.einsum("bhwc,cd->bhwd", y, params["conv_w"]) + params["conv_b"]
    return jnp.transpose(out, (0, 3, 1, 2))


# ---------------------------------- main ----------------------------------- #

if __name__ == "__main__":
    key = jax.random.PRNGKey(0)
    kx, k1, k2, kp = jax.random.split(key, 4)

    B, Cin, H, W = 2, 96, 4, 4
    x = jax.random.normal(kx, (B, Cin, H, W), jnp.float32)             # decoder input
    skip1 = jax.random.normal(k1, (B, 32, 4 * H, 4 * W), jnp.float32)  # x_list[-2]
    skip2 = jax.random.normal(k2, (B, 64, 2 * H, 2 * W), jnp.float32)  # x_list[-1]

    params = init_params(kp, Cin, out_channels=32)

    y = jax.block_until_ready(conv_decoder_forward(x, skip1, skip2, params))
    assert y.shape == (B, 32, 4 * H, 4 * W), y.shape

    y_ref = jax.block_until_ready(conv_decoder_reference(x, skip1, skip2, params))
    assert jnp.allclose(y, y_ref, atol=1e-2, rtol=1e-2), \
        float(jnp.max(jnp.abs(y - y_ref)))

    print("KERNEL_OK")
</pallas_src>

<mosaic_0001>
module attributes {stable_mosaic.version = 11 : i64} {
  func.func @_conv3x3_gn_relu_kernel(%arg0: i32, %arg1: memref<1x64x64xf32, #tpu.memory_space<vmem>>, %arg2: memref<1x64x64xf32, #tpu.memory_space<vmem>>, %arg3: memref<9x64x64xf32, #tpu.memory_space<vmem>>, %arg4: memref<9x64x64xf32, #tpu.memory_space<vmem>>, %arg5: memref<1x64xf32, #tpu.memory_space<vmem>>, %arg6: memref<1x64xf32, #tpu.memory_space<vmem>>, %arg7: memref<1x64xf32, #tpu.memory_space<vmem>>, %arg8: memref<64x64xf32, #tpu.memory_space<vmem>>, %arg9: memref<1x64x64xf32, #tpu.memory_space<vmem>>) attributes {dimension_semantics = [#tpu.dimension_semantics<parallel>], iteration_bounds = array<i64: 2>, scalar_prefetch = 0 : i64, scratch_operands = 0 : i64, tpu.core_type = #tpu.core_type<tc>, window_params = [{transform_indices = @transform_0, window_bounds = array<i64: 1, 64, 64>}, {transform_indices = @transform_1, window_bounds = array<i64: 1, 64, 64>}, {pipeline_mode = #tpu.pipeline_mode<synchronous>, transform_indices = @transform_2, window_bounds = array<i64: 9, 64, 64>}, {pipeline_mode = #tpu.pipeline_mode<synchronous>, transform_indices = @transform_3, window_bounds = array<i64: 9, 64, 64>}, {pipeline_mode = #tpu.pipeline_mode<synchronous>, transform_indices = @transform_4, window_bounds = array<i64: 1, 64>}, {pipeline_mode = #tpu.pipeline_mode<synchronous>, transform_indices = @transform_5, window_bounds = array<i64: 1, 64>}, {pipeline_mode = #tpu.pipeline_mode<synchronous>, transform_indices = @transform_6, window_bounds = array<i64: 1, 64>}, {pipeline_mode = #tpu.pipeline_mode<synchronous>, transform_indices = @transform_7, window_bounds = array<i64: 64, 64>}, {transform_indices = @transform_8, window_bounds = array<i64: 1, 64, 64>}]} {
    %c0 = arith.constant 0 : index
    %c0_0 = arith.constant 0 : index
    %c0_1 = arith.constant 0 : index
    %0 = vector.load %arg1[%c0, %c0_0, %c0_1] : memref<1x64x64xf32, #tpu.memory_space<vmem>>, vector<1x64x64xf32>
    %1 = vector.shape_cast %0 : vector<1x64x64xf32> to vector<64x64xf32>
    %c0_2 = arith.constant 0 : index
    %c0_3 = arith.constant 0 : index
    %c0_4 = arith.constant 0 : index
    %2 = vector.load %arg2[%c0_2, %c0_3, %c0_4] : memref<1x64x64xf32, #tpu.memory_space<vmem>>, vector<1x64x64xf32>
    %3 = vector.shape_cast %2 : vector<1x64x64xf32> to vector<64x64xf32>
    %4 = tpu.iota {dimensions = array<i32: 0>} : vector<64x1xi32>
    %c8_i32 = arith.constant 8 : i32
    %c0_i32 = arith.constant 0 : i32
    %5 = arith.cmpi eq, %c8_i32, %c0_i32 : i32
    %c1_i32 = arith.constant 1 : i32
    %6 = arith.select %5, %c1_i32, %c8_i32 : i32
    %7 = vector.broadcast %6 : i32 to vector<64x1xi32>
    %8 = arith.remsi %4, %7 : vector<64x1xi32>
    %c0_i32_5 = arith.constant 0 : i32
    %9 = vector.broadcast %c0_i32_5 : i32 to vector<64x1xi32>
    %10 = arith.cmpi ne, %8, %9 : vector<64x1xi32>
    %c0_i32_6 = arith.constant 0 : i32
    %11 = vector.broadcast %c0_i32_6 : i32 to vector<64x1xi32>
    %12 = arith.cmpi slt, %8, %11 : vector<64x1xi32>
    %c0_i32_7 = arith.constant 0 : i32
    %13 = arith.cmpi slt, %6, %c0_i32_7 : i32
    %14 = vector.broadcast %13 : i1 to vector<64x1xi1>
    %15 = vector.broadcast %14 : vector<64x1xi1> to vector<64x1xi1>
    %16 = arith.xori %12, %15 : vector<64x1xi1>
    %17 = arith.andi %16, %10 : vector<64x1xi1>
    %18 = vector.broadcast %6 : i32 to vector<64x1xi32>
    %19 = arith.addi %8, %18 : vector<64x1xi32>
    %20 = arith.select %17, %19, %8 : vector<64x1xi1>, vector<64x1xi32>
    %cst = arith.constant 0.000000e+00 : f32
    %21 = vector.broadcast %cst : f32 to vector<64x64xf32>
    %c0_8 = arith.constant 0 : index
    %c0_9 = arith.constant 0 : index
    %22 = vector.load %arg5[%c0_8, %c0_9] : memref<1x64xf32, #tpu.memory_space<vmem>>, vector<1x64xf32>
    %23 = vector.broadcast %22 : vector<1x64xf32> to vector<64x64xf32>
    %24 = arith.addf %21, %23 : vector<64x64xf32>
    %cst_10 = arith.constant 0.000000e+00 : f32
    %25 = vector.broadcast %cst_10 : f32 to vector<9x64xf32>
    %26 = vector.extract_strided_slice %1 {offsets = [0, 0], sizes = [55, 64], strides = [1, 1]} : vector<64x64xf32> to vector<55x64xf32>
    %27 = tpu.concatenate %25, %26 in 0 : vector<9x64xf32>, vector<55x64xf32> -> vector<64x64xf32>
    %cst_11 = arith.constant 0.000000e+00 : f32
    %28 = vector.broadcast %cst_11 : f32 to vector<9x64xf32>
    %29 = vector.extract_strided_slice %3 {offsets = [0, 0], sizes = [55, 64], strides = [1, 1]} : vector<64x64xf32> to vector<55x64xf32>
    %30 = tpu.concatenate %28, %29 in 0 : vector<9x64xf32>, vector<55x64xf32> -> vector<64x64xf32>
    %c-1_i32 = arith.constant -1 : i32
    %31 = vector.broadcast %c-1_i32 : i32 to vector<64x1xi32>
    %32 = arith.addi %20, %31 : vector<64x1xi32>
    %c0_i32_12 = arith.constant 0 : i32
    %33 = vector.broadcast %c0_i32_12 : i32 to vector<64x1xi32>
    %34 = arith.cmpi sge, %32, %33 : vector<64x1xi32>
    %c-1_i32_13 = arith.constant -1 : i32
    %35 = vector.broadcast %c-1_i32_13 : i32 to vector<64x1xi32>
    %36 = arith.addi %20, %35 : vector<64x1xi32>
    %c7_i32 = arith.constant 7 : i32
    %37 = vector.broadcast %c7_i32 : i32 to vector<64x1xi32>
    %38 = arith.cmpi sle, %36, %37 : vector<64x1xi32>
    %39 = arith.andi %34, %38 : vector<64x1xi1>
    %40 = arith.extui %39 : vector<64x1xi1> to vector<64x1xi32>
    %41 = arith.sitofp %40 : vector<64x1xi32> to vector<64x1xf32>
    %42 = vector.broadcast %41 : vector<64x1xf32> to vector<64x64xf32>
    %43 = arith.mulf %27, %42 : vector<64x64xf32>
    %44 = vector.broadcast %41 : vector<64x1xf32> to vector<64x64xf32>
    %45 = arith.mulf %30, %44 : vector<64x64xf32>
    %c0_14 = arith.constant 0 : index
    %c0_15 = arith.constant 0 : index
    %c0_16 = arith.constant 0 : index
    %46 = vector.load %arg3[%c0_14, %c0_15, %c0_16] : memref<9x64x64xf32, #tpu.memory_space<vmem>>, vector<1x64x64xf32>
    %47 = vector.shape_cast %46 : vector<1x64x64xf32> to vector<64x64xf32>
    %cst_17 = arith.constant dense<0.000000e+00> : vector<64x64xf32>
    %48 = tpu.matmul %43, %47, %cst_17 {dimension_numbers = #tpu.dot_dimension_numbers<[1], [0], [0], [1], [0, 0, 1, 1], [], []>} : vector<64x64xf32>, vector<64x64xf32>, vector<64x64xf32> -> vector<64x64xf32>
    %49 = arith.addf %24, %48 : vector<64x64xf32>
    %c0_18 = arith.constant 0 : index
    %c0_19 = arith.constant 0 : index
    %c0_20 = arith.constant 0 : index
    %50 = vector.load %arg4[%c0_18, %c0_19, %c0_20] : memref<9x64x64xf32, #tpu.memory_space<vmem>>, vector<1x64x64xf32>
    %51 = vector.shape_cast %50 : vector<1x64x64xf32> to vector<64x64xf32>
    %cst_21 = arith.constant dense<0.000000e+00> : vector<64x64xf32>
    %52 = tpu.matmul %45, %51, %cst_21 {dimension_numbers = #tpu.dot_dimension_numbers<[1], [0], [0], [1], [0, 0, 1, 1], [], []>} : vector<64x64xf32>, vector<64x64xf32>, vector<64x64xf32> -> vector<64x64xf32>
    %53 = arith.addf %49, %52 : vector<64x64xf32>
    %cst_22 = arith.constant 0.000000e+00 : f32
    %54 = vector.broadcast %cst_22 : f32 to vector<8x64xf32>
    %55 = vector.extract_strided_slice %1 {offsets = [0, 0], sizes = [56, 64], strides = [1, 1]} : vector<64x64xf32> to vector<56x64xf32>
    %56 = tpu.concatenate %54, %55 in 0 : vector<8x64xf32>, vector<56x64xf32> -> vector<64x64xf32>
    %cst_23 = arith.constant 0.000000e+00 : f32
    %57 = vector.broadcast %cst_23 : f32 to vector<8x64xf32>
    %58 = vector.extract_strided_slice %3 {offsets = [0, 0], sizes = [56, 64], strides = [1, 1]} : vector<64x64xf32> to vector<56x64xf32>
    %59 = tpu.concatenate %57, %58 in 0 : vector<8x64xf32>, vector<56x64xf32> -> vector<64x64xf32>
    %c1 = arith.constant 1 : index
    %c0_24 = arith.constant 0 : index
    %c0_25 = arith.constant 0 : index
    %60 = vector.load %arg3[%c1, %c0_24, %c0_25] : memref<9x64x64xf32, #tpu.memory_space<vmem>>, vector<1x64x64xf32>
    %61 = vector.shape_cast %60 : vector<1x64x64xf32> to vector<64x64xf32>
    %cst_26 = arith.constant dense<0.000000e+00> : vector<64x64xf32>
    %62 = tpu.matmul %56, %61, %cst_26 {dimension_numbers = #tpu.dot_dimension_numbers<[1], [0], [0], [1], [0, 0, 1, 1], [], []>} : vector<64x64xf32>, vector<64x64xf32>, vector<64x64xf32> -> vector<64x64xf32>
    %63 = arith.addf %53, %62 : vector<64x64xf32>
    %c1_27 = arith.constant 1 : index
    %c0_28 = arith.constant 0 : index
    %c0_29 = arith.constant 0 : index
    %64 = vector.load %arg4[%c1_27, %c0_28, %c0_29] : memref<9x64x64xf32, #tpu.memory_space<vmem>>, vector<1x64x64xf32>
    %65 = vector.shape_cast %64 : vector<1x64x64xf32> to vector<64x64xf32>
    %cst_30 = arith.constant dense<0.000000e+00> : vector<64x64xf32>
    %66 = tpu.matmul %59, %65, %cst_30 {dimension_numbers = #tpu.dot_dimension_numbers<[1], [0], [0], [1], [0, 0, 1, 1], [], []>} : vector<64x64xf32>, vector<64x64xf32>, vector<64x64xf32> -> vector<64x64xf32>
    %67 = arith.addf %63, %66 : vector<64x64xf32>
    %cst_31 = arith.constant 0.000000e+00 : f32
    %68 = vector.broadcast %cst_31 : f32 to vector<7x64xf32>
    %69 = vector.extract_strided_slice %1 {offsets = [0, 0], sizes = [57, 64], strides = [1, 1]} : vector<64x64xf32> to vector<57x64xf32>
    %70 = tpu.concatenate %68, %69 in 0 : vector<7x64xf32>, vector<57x64xf32> -> vector<64x64xf32>
    %cst_32 = arith.constant 0.000000e+00 : f32
    %71 = vector.broadcast %cst_32 : f32 to vector<7x64xf32>
    %72 = vector.extract_strided_slice %3 {offsets = [0, 0], sizes = [57, 64], strides = [1, 1]} : vector<64x64xf32> to vector<57x64xf32>
    %73 = tpu.concatenate %71, %72 in 0 : vector<7x64xf32>, vector<57x64xf32> -> vector<64x64xf32>
    %c1_i32_33 = arith.constant 1 : i32
    %74 = vector.broadcast %c1_i32_33 : i32 to vector<64x1xi32>
    %75 = arith.addi %20, %74 : vector<64x1xi32>
    %c0_i32_34 = arith.constant 0 : i32
    %76 = vector.broadcast %c0_i32_34 : i32 to vector<64x1xi32>
    %77 = arith.cmpi sge, %75, %76 : vector<64x1xi32>
    %c1_i32_35 = arith.constant 1 : i32
    %78 = vector.broadcast %c1_i32_35 : i32 to vector<64x1xi32>
    %79 = arith.addi %20, %78 : vector<64x1xi32>
    %c7_i32_36 = arith.constant 7 : i32
    %80 = vector.broadcast %c7_i32_36 : i32 to vector<64x1xi32>
    %81 = arith.cmpi sle, %79, %80 : vector<64x1xi32>
    %82 = arith.andi %77, %81 : vector<64x1xi1>
    %83 = arith.extui %82 : vector<64x1xi1> to vector<64x1xi32>
    %84 = arith.sitofp %83 : vector<64x1xi32> to vector<64x1xf32>
    %85 = vector.broadcast %84 : vector<64x1xf32> to vector<64x64xf32>
    %86 = arith.mulf %70, %85 : vector<64x64xf32>
    %87 = vector.broadcast %84 : vector<64x1xf32> to vector<64x64xf32>
    %88 = arith.mulf %73, %87 : vector<64x64xf32>
    %c2 = arith.constant 2 : index
    %c0_37 = arith.constant 0 : index
    %c0_38 = arith.constant 0 : index
    %89 = vector.load %arg3[%c2, %c0_37, %c0_38] : memref<9x64x64xf32, #tpu.memory_space<vmem>>, vector<1x64x64xf32>
    %90 = vector.shape_cast %89 : vector<1x64x64xf32> to vector<64x64xf32>
    %cst_39 = arith.constant dense<0.000000e+00> : vector<64x64xf32>
    %91 = tpu.matmul %86, %90, %cst_39 {dimension_numbers = #tpu.dot_dimension_numbers<[1], [0], [0], [1], [0, 0, 1, 1], [], []>} : vector<64x64xf32>, vector<64x64xf32>, vector<64x64xf32> -> vector<64x64xf32>
    %92 = arith.addf %67, %91 : vector<64x64xf32>
    %c2_40 = arith.constant 2 : index
    %c0_41 = arith.constant 0 : index
    %c0_42 = arith.constant 0 : index
    %93 = vector.load %arg4[%c2_40, %c0_41, %c0_42] : memref<9x64x64xf32, #tpu.memory_space<vmem>>, vector<1x64x64xf32>
    %94 = vector.shape_cast %93 : vector<1x64x64xf32> to vector<64x64xf32>
    %cst_43 = arith.constant dense<0.000000e+00> : vector<64x64xf32>
    %95 = tpu.matmul %88, %94, %cst_43 {dimension_numbers = #tpu.dot_dimension_numbers<[1], [0], [0], [1], [0, 0, 1, 1], [], []>} : vector<64x64xf32>, vector<64x64xf32>, vector<64x64xf32> -> vector<64x64xf32>
    %96 = arith.addf %92, %95 : vector<64x64xf32>
    %cst_44 = arith.constant 0.000000e+00 : f32
    %97 = vector.broadcast %cst_44 : f32 to vector<1x64xf32>
    %98 = vector.extract_strided_slice %1 {offsets = [0, 0], sizes = [63, 64], strides = [1, 1]} : vector<64x64xf32> to vector<63x64xf32>
    %99 = tpu.concatenate %97, %98 in 0 : vector<1x64xf32>, vector<63x64xf32> -> vector<64x64xf32>
    %cst_45 = arith.constant 0.000000e+00 : f32
    %100 = vector.broadcast %cst_45 : f32 to vector<1x64xf32>
    %101 = vector.extract_strided_slice %3 {offsets = [0, 0], sizes = [63, 64], strides = [1, 1]} : vector<64x64xf32> to vector<63x64xf32>
    %102 = tpu.concatenate %100, %101 in 0 : vector<1x64xf32>, vector<63x64xf32> -> vector<64x64xf32>
    %c-1_i32_46 = arith.constant -1 : i32
    %103 = vector.broadcast %c-1_i32_46 : i32 to vector<64x1xi32>
    %104 = arith.addi %20, %103 : vector<64x1xi32>
    %c0_i32_47 = arith.constant 0 : i32
    %105 = vector.broadcast %c0_i32_47 : i32 to vector<64x1xi32>
    %106 = arith.cmpi sge, %104, %105 : vector<64x1xi32>
    %c-1_i32_48 = arith.constant -1 : i32
    %107 = vector.broadcast %c-1_i32_48 : i32 to vector<64x1xi32>
    %108 = arith.addi %20, %107 : vector<64x1xi32>
    %c7_i32_49 = arith.constant 7 : i32
    %109 = vector.broadcast %c7_i32_49 : i32 to vector<64x1xi32>
    %110 = arith.cmpi sle, %108, %109 : vector<64x1xi32>
    %111 = arith.andi %106, %110 : vector<64x1xi1>
    %112 = arith.extui %111 : vector<64x1xi1> to vector<64x1xi32>
    %113 = arith.sitofp %112 : vector<64x1xi32> to vector<64x1xf32>
    %114 = vector.broadcast %113 : vector<64x1xf32> to vector<64x64xf32>
    %115 = arith.mulf %99, %114 : vector<64x64xf32>
    %116 = vector.broadcast %113 : vector<64x1xf32> to vector<64x64xf32>
    %117 = arith.mulf %102, %116 : vector<64x64xf32>
    %c3 = arith.constant 3 : index
    %c0_50 = arith.constant 0 : index
    %c0_51 = arith.constant 0 : index
    %118 = vector.load %arg3[%c3, %c0_50, %c0_51] : memref<9x64x64xf32, #tpu.memory_space<vmem>>, vector<1x64x64xf32>
    %119 = vector.shape_cast %118 : vector<1x64x64xf32> to vector<64x64xf32>
    %cst_52 = arith.constant dense<0.000000e+00> : vector<64x64xf32>
    %120 = tpu.matmul %115, %119, %cst_52 {dimension_numbers = #tpu.dot_dimension_numbers<[1], [0], [0], [1], [0, 0, 1, 1], [], []>} : vector<64x64xf32>, vector<64x64xf32>, vector<64x64xf32> -> vector<64x64xf32>
    %121 = arith.addf %96, %120 : vector<64x64xf32>
    %c3_53 = arith.constant 3 : index
    %c0_54 = arith.constant 0 : index
    %c0_55 = arith.constant 0 : index
    %122 = vector.load %arg4[%c3_53, %c0_54, %c0_55] : memref<9x64x64xf32, #tpu.memory_space<vmem>>, vector<1x64x64xf32>
    %123 = vector.shape_cast %122 : vector<1x64x64xf32> to vector<64x64xf32>
    %cst_56 = arith.constant dense<0.000000e+00> : vector<64x64xf32>
    %124 = tpu.matmul %117, %123, %cst_56 {dimension_numbers = #tpu.dot_dimension_numbers<[1], [0], [0], [1], [0, 0, 1, 1], [], []>} : vector<64x64xf32>, vector<64x64xf32>, vector<64x64xf32> -> vector<64x64xf32>
    %125 = arith.addf %121, %124 : vector<64x64xf32>
    %c4 = arith.constant 4 : index
    %c0_57 = arith.constant 0 : index
    %c0_58 = arith.constant 0 : index
    %126 = vector.load %arg3[%c4, %c0_57, %c0_58] : memref<9x64x64xf32, #tpu.memory_space<vmem>>, vector<1x64x64xf32>
    %127 = vector.shape_cast %126 : vector<1x64x64xf32> to vector<64x64xf32>
    %cst_59 = arith.constant dense<0.000000e+00> : vector<64x64xf32>
    %128 = tpu.matmul %1, %127, %cst_59 {dimension_numbers = #tpu.dot_dimension_numbers<[1], [0], [0], [1], [0, 0, 1, 1], [], []>} : vector<64x64xf32>, vector<64x64xf32>, vector<64x64xf32> -> vector<64x64xf32>
    %129 = arith.addf %125, %128 : vector<64x64xf32>
    %c4_60 = arith.constant 4 : index
    %c0_61 = arith.constant 0 : index
    %c0_62 = arith.constant 0 : index
    %130 = vector.load %arg4[%c4_60, %c0_61, %c0_62] : memref<9x64x64xf32, #tpu.memory_space<vmem>>, vector<1x64x64xf32>
    %131 = vector.shape_cast %130 : vector<1x64x64xf32> to vector<64x64xf32>
    %cst_63 = arith.constant dense<0.000000e+00> : vector<64x64xf32>
    %132 = tpu.matmul %3, %131, %cst_63 {dimension_numbers = #tpu.dot_dimension_numbers<[1], [0], [0], [1], [0, 0, 1, 1], [], []>} : vector<64x64xf32>, vector<64x64xf32>, vector<64x64xf32> -> vector<64x64xf32>
    %133 = arith.addf %129, %132 : vector<64x64xf32>
    %cst_64 = arith.constant 0.000000e+00 : f32
    %134 = vector.broadcast %cst_64 : f32 to vector<1x64xf32>
    %135 = vector.extract_strided_slice %1 {offsets = [1, 0], sizes = [63, 64], strides = [1, 1]} : vector<64x64xf32> to vector<63x64xf32>
    %136 = tpu.concatenate %135, %134 in 0 : vector<63x64xf32>, vector<1x64xf32> -> vector<64x64xf32>
    %cst_65 = arith.constant 0.000000e+00 : f32
    %137 = vector.broadcast %cst_65 : f32 to vector<1x64xf32>
    %138 = vector.extract_strided_slice %3 {offsets = [1, 0], sizes = [63, 64], strides = [1, 1]} : vector<64x64xf32> to vector<63x64xf32>
    %139 = tpu.concatenate %138, %137 in 0 : vector<63x64xf32>, vector<1x64xf32> -> vector<64x64xf32>
    %c1_i32_66 = arith.constant 1 : i32
    %140 = vector.broadcast %c1_i32_66 : i32 to vector<64x1xi32>
    %141 = arith.addi %20, %140 : vector<64x1xi32>
    %c0_i32_67 = arith.constant 0 : i32
    %142 = vector.broadcast %c0_i32_67 : i32 to vector<64x1xi32>
    %143 = arith.cmpi sge, %141, %142 : vector<64x1xi32>
    %c1_i32_68 = arith.constant 1 : i32
    %144 = vector.broadcast %c1_i32_68 : i32 to vector<64x1xi32>
    %145 = arith.addi %20, %144 : vector<64x1xi32>
    %c7_i32_69 = arith.constant 7 : i32
    %146 = vector.broadcast %c7_i32_69 : i32 to vector<64x1xi32>
    %147 = arith.cmpi sle, %145, %146 : vector<64x1xi32>
    %148 = arith.andi %143, %147 : vector<64x1xi1>
    %149 = arith.extui %148 : vector<64x1xi1> to vector<64x1xi32>
    %150 = arith.sitofp %149 : vector<64x1xi32> to vector<64x1xf32>
    %151 = vector.broadcast %150 : vector<64x1xf32> to vector<64x64xf32>
    %152 = arith.mulf %136, %151 : vector<64x64xf32>
    %153 = vector.broadcast %150 : vector<64x1xf32> to vector<64x64xf32>
    %154 = arith.mulf %139, %153 : vector<64x64xf32>
    %c5 = arith.constant 5 : index
    %c0_70 = arith.constant 0 : index
    %c0_71 = arith.constant 0 : index
    %155 = vector.load %arg3[%c5, %c0_70, %c0_71] : memref<9x64x64xf32, #tpu.memory_space<vmem>>, vector<1x64x64xf32>
    %156 = vector.shape_cast %155 : vector<1x64x64xf32> to vector<64x64xf32>
    %cst_72 = arith.constant dense<0.000000e+00> : vector<64x64xf32>
    %157 = tpu.matmul %152, %156, %cst_72 {dimension_numbers = #tpu.dot_dimension_numbers<[1], [0], [0], [1], [0, 0, 1, 1], [], []>} : vector<64x64xf32>, vector<64x64xf32>, vector<64x64xf32> -> vector<64x64xf32>
    %158 = arith.addf %133, %157 : vector<64x64xf32>
    %c5_73 = arith.constant 5 : index
    %c0_74 = arith.constant 0 : index
    %c0_75 = arith.constant 0 : index
    %159 = vector.load %arg4[%c5_73, %c0_74, %c0_75] : memref<9x64x64xf32, #tpu.memory_space<vmem>>, vector<1x64x64xf32>
    %160 = vector.shape_cast %159 : vector<1x64x64xf32> to vector<64x64xf32>
    %cst_76 = arith.constant dense<0.000000e+00> : vector<64x64xf32>
    %161 = tpu.matmul %154, %160, %cst_76 {dimension_numbers = #tpu.dot_dimension_numbers<[1], [0], [0], [1], [0, 0, 1, 1], [], []>} : vector<64x64xf32>, vector<64x64xf32>, vector<64x64xf32> -> vector<64x64xf32>
    %162 = arith.addf %158, %161 : vector<64x64xf32>
    %cst_77 = arith.constant 0.000000e+00 : f32
    %163 = vector.broadcast %cst_77 : f32 to vector<7x64xf32>
    %164 = vector.extract_strided_slice %1 {offsets = [7, 0], sizes = [57, 64], strides = [1, 1]} : vector<64x64xf32> to vector<57x64xf32>
    %165 = tpu.concatenate %164, %163 in 0 : vector<57x64xf32>, vector<7x64xf32> -> vector<64x64xf32>
    %cst_78 = arith.constant 0.000000e+00 : f32
    %166 = vector.broadcast %cst_78 : f32 to vector<7x64xf32>
    %167 = vector.extract_strided_slice %3 {offsets = [7, 0], sizes = [57, 64], strides = [1, 1]} : vector<64x64xf32> to vector<57x64xf32>
    %168 = tpu.concatenate %167, %166 in 0 : vector<57x64xf32>, vector<7x64xf32> -> vector<64x64xf32>
    %c-1_i32_79 = arith.constant -1 : i32
    %169 = vector.broadcast %c-1_i32_79 : i32 to vector<64x1xi32>
    %170 = arith.addi %20, %169 : vector<64x1xi32>
    %c0_i32_80 = arith.constant 0 : i32
    %171 = vector.broadcast %c0_i32_80 : i32 to vector<64x1xi32>
    %172 = arith.cmpi sge, %170, %171 : vector<64x1xi32>
    %c-1_i32_81 = arith.constant -1 : i32
    %173 = vector.broadcast %c-1_i32_81 : i32 to vector<64x1xi32>
    %174 = arith.addi %20, %173 : vector<64x1xi32>
    %c7_i32_82 = arith.constant 7 : i32
    %175 = vector.broadcast %c7_i32_82 : i32 to vector<64x1xi32>
    %176 = arith.cmpi sle, %174, %175 : vector<64x1xi32>
    %177 = arith.andi %172, %176 : vector<64x1xi1>
    %178 = arith.extui %177 : vector<64x1xi1> to vector<64x1xi32>
    %179 = arith.sitofp %178 : vector<64x1xi32> to vector<64x1xf32>
    %180 = vector.broadcast %179 : vector<64x1xf32> to vector<64x64xf32>
    %181 = arith.mulf %165, %180 : vector<64x64xf32>
    %182 = vector.broadcast %179 : vector<64x1xf32> to vector<64x64xf32>
    %183 = arith.mulf %168, %182 : vector<64x64xf32>
    %c6 = arith.constant 6 : index
    %c0_83 = arith.constant 0 : index
    %c0_84 = arith.constant 0 : index
    %184 = vector.load %arg3[%c6, %c0_83, %c0_84] : memref<9x64x64xf32, #tpu.memory_space<vmem>>, vector<1x64x64xf32>
    %185 = vector.shape_cast %184 : vector<1x64x64xf32> to vector<64x64xf32>
    %cst_85 = arith.constant dense<0.000000e+00> : vector<64x64xf32>
    %186 = tpu.matmul %181, %185, %cst_85 {dimension_numbers = #tpu.dot_dimension_numbers<[1], [0], [0], [1], [0, 0, 1, 1], [], []>} : vector<64x64xf32>, vector<64x64xf32>, vector<64x64xf32> -> vector<64x64xf32>
    %187 = arith.addf %162, %186 : vector<64x64xf32>
    %c6_86 = arith.constant 6 : index
    %c0_87 = arith.constant 0 : index
    %c0_88 = arith.constant 0 : index
    %188 = vector.load %arg4[%c6_86, %c0_87, %c0_88] : memref<9x64x64xf32, #tpu.memory_space<vmem>>, vector<1x64x64xf32>
    %189 = vector.shape_cast %188 : vector<1x64x64xf32> to vector<64x64xf32>
    %cst_89 = arith.constant dense<0.000000e+00> : vector<64x64xf32>
    %190 = tpu.matmul %183, %189, %cst_89 {dimension_numbers = #tpu.dot_dimension_numbers<[1], [0], [0], [1], [0, 0, 1, 1], [], []>} : vector<64x64xf32>, vector<64x64xf32>, vector<64x64xf32> -> vector<64x64xf32>
    %191 = arith.addf %187, %190 : vector<64x64xf32>
    %cst_90 = arith.constant 0.000000e+00 : f32
    %192 = vector.broadcast %cst_90 : f32 to vector<8x64xf32>
    %193 = vector.extract_strided_slice %1 {offsets = [8, 0], sizes = [56, 64], strides = [1, 1]} : vector<64x64xf32> to vector<56x64xf32>
    %194 = tpu.concatenate %193, %192 in 0 : vector<56x64xf32>, vector<8x64xf32> -> vector<64x64xf32>
    %cst_91 = arith.constant 0.000000e+00 : f32
    %195 = vector.broadcast %cst_91 : f32 to vector<8x64xf32>
    %196 = vector.extract_strided_slice %3 {offsets = [8, 0], sizes = [56, 64], strides = [1, 1]} : vector<64x64xf32> to vector<56x64xf32>
    %197 = tpu.concatenate %196, %195 in 0 : vector<56x64xf32>, vector<8x64xf32> -> vector<64x64xf32>
    %c7 = arith.constant 7 : index
    %c0_92 = arith.constant 0 : index
    %c0_93 = arith.constant 0 : index
    %198 = vector.load %arg3[%c7, %c0_92, %c0_93] : memref<9x64x64xf32, #tpu.memory_space<vmem>>, vector<1x64x64xf32>
    %199 = vector.shape_cast %198 : vector<1x64x64xf32> to vector<64x64xf32>
    %cst_94 = arith.constant dense<0.000000e+00> : vector<64x64xf32>
    %200 = tpu.matmul %194, %199, %cst_94 {dimension_numbers = #tpu.dot_dimension_numbers<[1], [0], [0], [1], [0, 0, 1, 1], [], []>} : vector<64x64xf32>, vector<64x64xf32>, vector<64x64xf32> -> vector<64x64xf32>
    %201 = arith.addf %191, %200 : vector<64x64xf32>
    %c7_95 = arith.constant 7 : index
    %c0_96 = arith.constant 0 : index
    %c0_97 = arith.constant 0 : index
    %202 = vector.load %arg4[%c7_95, %c0_96, %c0_97] : memref<9x64x64xf32, #tpu.memory_space<vmem>>, vector<1x64x64xf32>
    %203 = vector.shape_cast %202 : vector<1x64x64xf32> to vector<64x64xf32>
    %cst_98 = arith.constant dense<0.000000e+00> : vector<64x64xf32>
    %204 = tpu.matmul %197, %203, %cst_98 {dimension_numbers = #tpu.dot_dimension_numbers<[1], [0], [0], [1], [0, 0, 1, 1], [], []>} : vector<64x64xf32>, vector<64x64xf32>, vector<64x64xf32> -> vector<64x64xf32>
    %205 = arith.addf %201, %204 : vector<64x64xf32>
    %cst_99 = arith.constant 0.000000e+00 : f32
    %206 = vector.broadcast %cst_99 : f32 to vector<9x64xf32>
    %207 = vector.extract_strided_slice %1 {offsets = [9, 0], sizes = [55, 64], strides = [1, 1]} : vector<64x64xf32> to vector<55x64xf32>
    %208 = tpu.concatenate %207, %206 in 0 : vector<55x64xf32>, vector<9x64xf32> -> vector<64x64xf32>
    %cst_100 = arith.constant 0.000000e+00 : f32
    %209 = vector.broadcast %cst_100 : f32 to vector<9x64xf32>
    %210 = vector.extract_strided_slice %3 {offsets = [9, 0], sizes = [55, 64], strides = [1, 1]} : vector<64x64xf32> to vector<55x64xf32>
    %211 = tpu.concatenate %210, %209 in 0 : vector<55x64xf32>, vector<9x64xf32> -> vector<64x64xf32>
    %c1_i32_101 = arith.constant 1 : i32
    %212 = vector.broadcast %c1_i32_101 : i32 to vector<64x1xi32>
    %213 = arith.addi %20, %212 : vector<64x1xi32>
    %c0_i32_102 = arith.constant 0 : i32
    %214 = vector.broadcast %c0_i32_102 : i32 to vector<64x1xi32>
    %215 = arith.cmpi sge, %213, %214 : vector<64x1xi32>
    %c1_i32_103 = arith.constant 1 : i32
    %216 = vector.broadcast %c1_i32_103 : i32 to vector<64x1xi32>
    %217 = arith.addi %20, %216 : vector<64x1xi32>
    %c7_i32_104 = arith.constant 7 : i32
    %218 = vector.broadcast %c7_i32_104 : i32 to vector<64x1xi32>
    %219 = arith.cmpi sle, %217, %218 : vector<64x1xi32>
    %220 = arith.andi %215, %219 : vector<64x1xi1>
    %221 = arith.extui %220 : vector<64x1xi1> to vector<64x1xi32>
    %222 = arith.sitofp %221 : vector<64x1xi32> to vector<64x1xf32>
    %223 = vector.broadcast %222 : vector<64x1xf32> to vector<64x64xf32>
    %224 = arith.mulf %208, %223 : vector<64x64xf32>
    %225 = vector.broadcast %222 : vector<64x1xf32> to vector<64x64xf32>
    %226 = arith.mulf %211, %225 : vector<64x64xf32>
    %c8 = arith.constant 8 : index
    %c0_105 = arith.constant 0 : index
    %c0_106 = arith.constant 0 : index
    %227 = vector.load %arg3[%c8, %c0_105, %c0_106] : memref<9x64x64xf32, #tpu.memory_space<vmem>>, vector<1x64x64xf32>
    %228 = vector.shape_cast %227 : vector<1x64x64xf32> to vector<64x64xf32>
    %cst_107 = arith.constant dense<0.000000e+00> : vector<64x64xf32>
    %229 = tpu.matmul %224, %228, %cst_107 {dimension_numbers = #tpu.dot_dimension_numbers<[1], [0], [0], [1], [0, 0, 1, 1], [], []>} : vector<64x64xf32>, vector<64x64xf32>, vector<64x64xf32> -> vector<64x64xf32>
    %230 = arith.addf %205, %229 : vector<64x64xf32>
    %c8_108 = arith.constant 8 : index
    %c0_109 = arith.constant 0 : index
    %c0_110 = arith.constant 0 : index
    %231 = vector.load %arg4[%c8_108, %c0_109, %c0_110] : memref<9x64x64xf32, #tpu.memory_space<vmem>>, vector<1x64x64xf32>
    %232 = vector.shape_cast %231 : vector<1x64x64xf32> to vector<64x64xf32>
    %cst_111 = arith.constant dense<0.000000e+00> : vector<64x64xf32>
    %233 = tpu.matmul %226, %232, %cst_111 {dimension_numbers = #tpu.dot_dimension_numbers<[1], [0], [0], [1], [0, 0, 1, 1], [], []>} : vector<64x64xf32>, vector<64x64xf32>, vector<64x64xf32> -> vector<64x64xf32>
    %234 = arith.addf %230, %233 : vector<64x64xf32>
    %cst_112 = arith.constant dense<0.000000e+00> : vector<64xf32>
    %235 = vector.multi_reduction <add>, %234, %cst_112 [0] : vector<64x64xf32> to vector<64xf32>
    %236 = vector.shape_cast %235 : vector<64xf32> to vector<1x64xf32>
    %c0_113 = arith.constant 0 : index
    %c0_114 = arith.constant 0 : index
    %237 = vector.load %arg8[%c0_113, %c0_114] : memref<64x64xf32, #tpu.memory_space<vmem>>, vector<64x64xf32>
    %cst_115 = arith.constant dense<0.000000e+00> : vector<1x64xf32>
    %238 = tpu.matmul %236, %237, %cst_115 {dimension_numbers = #tpu.dot_dimension_numbers<[1], [0], [0], [1], [0, 0, 1, 1], [], []>} : vector<1x64xf32>, vector<64x64xf32>, vector<1x64xf32> -> vector<1x64xf32>
    %239 = vector.broadcast %238 : vector<1x64xf32> to vector<64x64xf32>
    %240 = arith.subf %234, %239 : vector<64x64xf32>
    %241 = arith.mulf %240, %240 : vector<64x64xf32>
    %cst_116 = arith.constant dense<0.000000e+00> : vector<64xf32>
    %242 = vector.multi_reduction <add>, %241, %cst_116 [0] : vector<64x64xf32> to vector<64xf32>
    %243 = vector.shape_cast %242 : vector<64xf32> to vector<1x64xf32>
    %c0_117 = arith.constant 0 : index
    %c0_118 = arith.constant 0 : index
    %244 = vector.load %arg8[%c0_117, %c0_118] : memref<64x64xf32, #tpu.memory_space<vmem>>, vector<64x64xf32>
    %cst_119 = arith.constant dense<0.000000e+00> : vector<1x64xf32>
    %245 = tpu.matmul %243, %244, %cst_119 {dimension_numbers = #tpu.dot_dimension_numbers<[1], [0], [0], [1], [0, 0, 1, 1], [], []>} : vector<1x64xf32>, vector<64x64xf32>, vector<1x64xf32> -> vector<1x64xf32>
    %cst_120 = arith.constant 9.99999974E-6 : f32
    %246 = vector.broadcast %cst_120 : f32 to vector<1x64xf32>
    %247 = arith.addf %245, %246 : vector<1x64xf32>
    %248 = math.rsqrt %247 : vector<1x64xf32>
    %249 = vector.broadcast %248 : vector<1x64xf32> to vector<64x64xf32>
    %250 = arith.mulf %240, %249 : vector<64x64xf32>
    %c0_121 = arith.constant 0 : index
    %c0_122 = arith.constant 0 : index
    %251 = vector.load %arg6[%c0_121, %c0_122] : memref<1x64xf32, #tpu.memory_space<vmem>>, vector<1x64xf32>
    %252 = vector.broadcast %251 : vector<1x64xf32> to vector<64x64xf32>
    %253 = arith.mulf %250, %252 : vector<64x64xf32>
    %c0_123 = arith.constant 0 : index
    %c0_124 = arith.constant 0 : index
    %254 = vector.load %arg7[%c0_123, %c0_124] : memref<1x64xf32, #tpu.memory_space<vmem>>, vector<1x64xf32>
    %255 = vector.broadcast %254 : vector<1x64xf32> to vector<64x64xf32>
    %256 = arith.addf %253, %255 : vector<64x64xf32>
    %cst_125 = arith.constant 0.000000e+00 : f32
    %257 = vector.broadcast %cst_125 : f32 to vector<64x64xf32>
    %258 = arith.maximumf %256, %257 : vector<64x64xf32>
    %c0_126 = arith.constant 0 : index
    %c0_127 = arith.constant 0 : index
    %c0_128 = arith.constant 0 : index
    %259 = vector.load %arg9[%c0_126, %c0_127, %c0_128] : memref<1x64x64xf32, #tpu.memory_space<vmem>>, vector<1x64x64xf32>
    %260 = vector.shape_cast %259 : vector<1x64x64xf32> to vector<64x64xf32>
    %261 = vector.shape_cast %258 : vector<64x64xf32> to vector<1x64x64xf32>
    tpu.vector_store %arg9[%c0_126, %c0_127, %c0_128], %261 {strides = array<i32>} : memref<1x64x64xf32, #tpu.memory_space<vmem>>, vector<1x64x64xf32>,
    return
  }
  func.func @transform_0(%arg0: i32) -> (i32, i32, i32) {
    %c0_i32 = arith.constant 0 : i32
    %c0_i32_0 = arith.constant 0 : i32
    %c0_i32_1 = arith.constant 0 : i32
    return %arg0, %c0_i32, %c0_i32_0 : i32, i32, i32
  }
  func.func @transform_1(%arg0: i32) -> (i32, i32, i32) {
    %c0_i32 = arith.constant 0 : i32
    %c0_i32_0 = arith.constant 0 : i32
    %c0_i32_1 = arith.constant 0 : i32
    return %arg0, %c0_i32, %c0_i32_0 : i32, i32, i32
  }
  func.func @transform_2(%arg0: i32) -> (i32, i32, i32) {
    %c0_i32 = arith.constant 0 : i32
    %c0_i32_0 = arith.constant 0 : i32
    %c0_i32_1 = arith.constant 0 : i32
    %c0_i32_2 = arith.constant 0 : i32
    return %c0_i32, %c0_i32_0, %c0_i32_1 : i32, i32, i32
  }
  func.func @transform_3(%arg0: i32) -> (i32, i32, i32) {
    %c0_i32 = arith.constant 0 : i32
    %c0_i32_0 = arith.constant 0 : i32
    %c0_i32_1 = arith.constant 0 : i32
    %c0_i32_2 = arith.constant 0 : i32
    return %c0_i32, %c0_i32_0, %c0_i32_1 : i32, i32, i32
  }
  func.func @transform_4(%arg0: i32) -> (i32, i32) {
    %c0_i32 = arith.constant 0 : i32
    %c0_i32_0 = arith.constant 0 : i32
    %c0_i32_1 = arith.constant 0 : i32
    return %c0_i32, %c0_i32_0 : i32, i32
  }
  func.func @transform_5(%arg0: i32) -> (i32, i32) {
    %c0_i32 = arith.constant 0 : i32
    %c0_i32_0 = arith.constant 0 : i32
    %c0_i32_1 = arith.constant 0 : i32
    return %c0_i32, %c0_i32_0 : i32, i32
  }
  func.func @transform_6(%arg0: i32) -> (i32, i32) {
    %c0_i32 = arith.constant 0 : i32
    %c0_i32_0 = arith.constant 0 : i32
    %c0_i32_1 = arith.constant 0 : i32
    return %c0_i32, %c0_i32_0 : i32, i32
  }
  func.func @transform_7(%arg0: i32) -> (i32, i32) {
    %c0_i32 = arith.constant 0 : i32
    %c0_i32_0 = arith.constant 0 : i32
    %c0_i32_1 = arith.constant 0 : i32
    return %c0_i32, %c0_i32_0 : i32, i32
  }
  func.func @transform_8(%arg0: i32) -> (i32, i32, i32) {
    %c0_i32 = arith.constant 0 : i32
    %c0_i32_0 = arith.constant 0 : i32
    %c0_i32_1 = arith.constant 0 : i32
    return %arg0, %c0_i32, %c0_i32_0 : i32, i32, i32
  }
}

module attributes {stable_mosaic.version = 11 : i64} {
  func.func @_up_gn_relu_kernel(%arg0: i32, %arg1: memref<1x16x96xf32, #tpu.memory_space<vmem>>, %arg2: memref<2x96x128xf32, #tpu.memory_space<vmem>>, %arg3: memref<1x128xf32, #tpu.memory_space<vmem>>, %arg4: memref<1x128xf32, #tpu.memory_space<vmem>>, %arg5: memref<1x128xf32, #tpu.memory_space<vmem>>, %arg6: memref<128x128xf32, #tpu.memory_space<vmem>>, %arg7: memref<1x4x2x4x128xf32, #tpu.memory_space<vmem>>) attributes {dimension_semantics = [#tpu.dimension_semantics<parallel>], iteration_bounds = array<i64: 2>, scalar_prefetch = 0 : i64, scratch_operands = 0 : i64, tpu.core_type = #tpu.core_type<tc>, window_params = [{transform_indices = @transform_0, window_bounds = array<i64: 1, 16, 96>}, {pipeline_mode = #tpu.pipeline_mode<synchronous>, transform_indices = @transform_1, window_bounds = array<i64: 2, 96, 128>}, {pipeline_mode = #tpu.pipeline_mode<synchronous>, transform_indices = @transform_2, window_bounds = array<i64: 1, 128>}, {pipeline_mode = #tpu.pipeline_mode<synchronous>, transform_indices = @transform_3, window_bounds = array<i64: 1, 128>}, {pipeline_mode = #tpu.pipeline_mode<synchronous>, transform_indices = @transform_4, window_bounds = array<i64: 1, 128>}, {pipeline_mode = #tpu.pipeline_mode<synchronous>, transform_indices = @transform_5, window_bounds = array<i64: 128, 128>}, {transform_indices = @transform_6, window_bounds = array<i64: 1, 4, 2, 4, 128>}]} {
    %c0 = arith.constant 0 : index
    %c0_0 = arith.constant 0 : index
    %c0_1 = arith.constant 0 : index
    %0 = vector.load %arg1[%c0, %c0_0, %c0_1] : memref<1x16x96xf32, #tpu.memory_space<vmem>>, vector<1x16x96xf32>
    %1 = vector.shape_cast %0 : vector<1x16x96xf32> to vector<16x96xf32>
    %c0_2 = arith.constant 0 : index
    %c0_3 = arith.constant 0 : index
    %c0_4 = arith.constant 0 : index
    %2 = vector.load %arg2[%c0_2, %c0_3, %c0_4] : memref<2x96x128xf32, #tpu.memory_space<vmem>>, vector<1x96x128xf32>
    %3 = vector.shape_cast %2 : vector<1x96x128xf32> to vector<96x128xf32>
    %cst = arith.constant dense<0.000000e+00> : vector<16x128xf32>
    %4 = tpu.matmul %1, %3, %cst {dimension_numbers = #tpu.dot_dimension_numbers<[1], [0], [0], [1], [0, 0, 1, 1], [], []>} : vector<16x96xf32>, vector<96x128xf32>, vector<16x128xf32> -> vector<16x128xf32>
    %c0_5 = arith.constant 0 : index
    %c0_6 = arith.constant 0 : index
    %5 = vector.load %arg3[%c0_5, %c0_6] : memref<1x128xf32, #tpu.memory_space<vmem>>, vector<1x128xf32>
    %6 = vector.broadcast %5 : vector<1x128xf32> to vector<16x128xf32>
    %7 = arith.addf %4, %6 : vector<16x128xf32>
    %c1 = arith.constant 1 : index
    %c0_7 = arith.constant 0 : index
    %c0_8 = arith.constant 0 : index
    %8 = vector.load %arg2[%c1, %c0_7, %c0_8] : memref<2x96x128xf32, #tpu.memory_space<vmem>>, vector<1x96x128xf32>
    %9 = vector.shape_cast %8 : vector<1x96x128xf32> to vector<96x128xf32>
    %cst_9 = arith.constant dense<0.000000e+00> : vector<16x128xf32>
    %10 = tpu.matmul %1, %9, %cst_9 {dimension_numbers = #tpu.dot_dimension_numbers<[1], [0], [0], [1], [0, 0, 1, 1], [], []>} : vector<16x96xf32>, vector<96x128xf32>, vector<16x128xf32> -> vector<16x128xf32>
    %c0_10 = arith.constant 0 : index
    %c0_11 = arith.constant 0 : index
    %11 = vector.load %arg3[%c0_10, %c0_11] : memref<1x128xf32, #tpu.memory_space<vmem>>, vector<1x128xf32>
    %12 = vector.broadcast %11 : vector<1x128xf32> to vector<16x128xf32>
    %13 = arith.addf %10, %12 : vector<16x128xf32>
    %cst_12 = arith.constant dense<0.000000e+00> : vector<128xf32>
    %14 = vector.multi_reduction <add>, %7, %cst_12 [0] : vector<16x128xf32> to vector<128xf32>
    %15 = vector.shape_cast %14 : vector<128xf32> to vector<1x128xf32>
    %cst_13 = arith.constant dense<0.000000e+00> : vector<128xf32>
    %16 = vector.multi_reduction <add>, %13, %cst_13 [0] : vector<16x128xf32> to vector<128xf32>
    %17 = vector.shape_cast %16 : vector<128xf32> to vector<1x128xf32>
    %18 = arith.addf %15, %17 : vector<1x128xf32>
    %c0_14 = arith.constant 0 : index
    %c0_15 = arith.constant 0 : index
    %19 = vector.load %arg6[%c0_14, %c0_15] : memref<128x128xf32, #tpu.memory_space<vmem>>, vector<128x128xf32>
    %cst_16 = arith.constant dense<0.000000e+00> : vector<1x128xf32>
    %20 = tpu.matmul %18, %19, %cst_16 {dimension_numbers = #tpu.dot_dimension_numbers<[1], [0], [0], [1], [0, 0, 1, 1], [], []>} : vector<1x128xf32>, vector<128x128xf32>, vector<1x128xf32> -> vector<1x128xf32>
    %21 = vector.broadcast %20 : vector<1x128xf32> to vector<16x128xf32>
    %22 = arith.subf %7, %21 : vector<16x128xf32>
    %23 = vector.broadcast %20 : vector<1x128xf32> to vector<16x128xf32>
    %24 = arith.subf %13, %23 : vector<16x128xf32>
    %25 = arith.mulf %22, %22 : vector<16x128xf32>
    %cst_17 = arith.constant dense<0.000000e+00> : vector<128xf32>
    %26 = vector.multi_reduction <add>, %25, %cst_17 [0] : vector<16x128xf32> to vector<128xf32>
    %27 = vector.shape_cast %26 : vector<128xf32> to vector<1x128xf32>
    %28 = arith.mulf %24, %24 : vector<16x128xf32>
    %cst_18 = arith.constant dense<0.000000e+00> : vector<128xf32>
    %29 = vector.multi_reduction <add>, %28, %cst_18 [0] : vector<16x128xf32> to vector<128xf32>
    %30 = vector.shape_cast %29 : vector<128xf32> to vector<1x128xf32>
    %31 = arith.addf %27, %30 : vector<1x128xf32>
    %c0_19 = arith.constant 0 : index
    %c0_20 = arith.constant 0 : index
    %32 = vector.load %arg6[%c0_19, %c0_20] : memref<128x128xf32, #tpu.memory_space<vmem>>, vector<128x128xf32>
    %cst_21 = arith.constant dense<0.000000e+00> : vector<1x128xf32>
    %33 = tpu.matmul %31, %32, %cst_21 {dimension_numbers = #tpu.dot_dimension_numbers<[1], [0], [0], [1], [0, 0, 1, 1], [], []>} : vector<1x128xf32>, vector<128x128xf32>, vector<1x128xf32> -> vector<1x128xf32>
    %cst_22 = arith.constant 9.99999974E-6 : f32
    %34 = vector.broadcast %cst_22 : f32 to vector<1x128xf32>
    %35 = arith.addf %33, %34 : vector<1x128xf32>
    %36 = math.rsqrt %35 : vector<1x128xf32>
    %c0_23 = arith.constant 0 : index
    %c0_24 = arith.constant 0 : index
    %37 = vector.load %arg4[%c0_23, %c0_24] : memref<1x128xf32, #tpu.memory_space<vmem>>, vector<1x128xf32>
    %c0_25 = arith.constant 0 : index
    %c0_26 = arith.constant 0 : index
    %38 = vector.load %arg5[%c0_25, %c0_26] : memref<1x128xf32, #tpu.memory_space<vmem>>, vector<1x128xf32>
    %39 = vector.broadcast %36 : vector<1x128xf32> to vector<16x128xf32>
    %40 = arith.mulf %22, %39 : vector<16x128xf32>
    %41 = vector.broadcast %37 : vector<1x128xf32> to vector<16x128xf32>
    %42 = arith.mulf %40, %41 : vector<16x128xf32>
    %43 = vector.broadcast %38 : vector<1x128xf32> to vector<16x128xf32>
    %44 = arith.addf %42, %43 : vector<16x128xf32>
    %cst_27 = arith.constant 0.000000e+00 : f32
    %45 = vector.broadcast %cst_27 : f32 to vector<16x128xf32>
    %46 = arith.maximumf %44, %45 : vector<16x128xf32>
    %47 = vector.broadcast %36 : vector<1x128xf32> to vector<16x128xf32>
    %48 = arith.mulf %24, %47 : vector<16x128xf32>
    %49 = vector.broadcast %37 : vector<1x128xf32> to vector<16x128xf32>
    %50 = arith.mulf %48, %49 : vector<16x128xf32>
    %51 = vector.broadcast %38 : vector<1x128xf32> to vector<16x128xf32>
    %52 = arith.addf %50, %51 : vector<16x128xf32>
    %cst_28 = arith.constant 0.000000e+00 : f32
    %53 = vector.broadcast %cst_28 : f32 to vector<16x128xf32>
    %54 = arith.maximumf %52, %53 : vector<16x128xf32>
    %55 = vector.shape_cast %46 : vector<16x128xf32> to vector<4x4x128xf32>
    %c0_29 = arith.constant 0 : index
    %c0_30 = arith.constant 0 : index
    %c0_31 = arith.constant 0 : index
    %c0_32 = arith.constant 0 : index
    %c0_33 = arith.constant 0 : index
    %56 = vector.load %arg7[%c0_29, %c0_30, %c0_31, %c0_32, %c0_33] : memref<1x4x2x4x128xf32, #tpu.memory_space<vmem>>, vector<1x4x1x4x128xf32>
    %57 = vector.shape_cast %56 : vector<1x4x1x4x128xf32> to vector<4x4x128xf32>
    %58 = vector.shape_cast %55 : vector<4x4x128xf32> to vector<1x4x1x4x128xf32>
    tpu.vector_store %arg7[%c0_29, %c0_30, %c0_31, %c0_32, %c0_33], %58 {strides = array<i32>} : memref<1x4x2x4x128xf32, #tpu.memory_space<vmem>>, vector<1x4x1x4x128xf32>,
    %59 = vector.shape_cast %54 : vector<16x128xf32> to vector<4x4x128xf32>
    %c0_34 = arith.constant 0 : index
    %c0_35 = arith.constant 0 : index
    %c1_36 = arith.constant 1 : index
    %c0_37 = arith.constant 0 : index
    %c0_38 = arith.constant 0 : index
    %60 = vector.load %arg7[%c0_34, %c0_35, %c1_36, %c0_37, %c0_38] : memref<1x4x2x4x128xf32, #tpu.memory_space<vmem>>, vector<1x4x1x4x128xf32>
    %61 = vector.shape_cast %60 : vector<1x4x1x4x128xf32> to vector<4x4x128xf32>
    %62 = vector.shape_cast %59 : vector<4x4x128xf32> to vector<1x4x1x4x128xf32>
    tpu.vector_store %arg7[%c0_34, %c0_35, %c1_36, %c0_37, %c0_38], %62 {strides = array<i32>} : memref<1x4x2x4x128xf32, #tpu.memory_space<vmem>>, vector<1x4x1x4x128xf32>,
    return
  }
  func.func @transform_0(%arg0: i32) -> (i32, i32, i32) {
    %c0_i32 = arith.constant 0 : i32
    %c0_i32_0 = arith.constant 0 : i32
    %c0_i32_1 = arith.constant 0 : i32
    return %arg0, %c0_i32, %c0_i32_0 : i32, i32, i32
  }
  func.func @transform_1(%arg0: i32) -> (i32, i32, i32) {
    %c0_i32 = arith.constant 0 : i32
    %c0_i32_0 = arith.constant 0 : i32
    %c0_i32_1 = arith.constant 0 : i32
    %c0_i32_2 = arith.constant 0 : i32
    return %c0_i32, %c0_i32_0, %c0_i32_1 : i32, i32, i32
  }
  func.func @transform_2(%arg0: i32) -> (i32, i32) {
    %c0_i32 = arith.constant 0 : i32
    %c0_i32_0 = arith.constant 0 : i32
    %c0_i32_1 = arith.constant 0 : i32
    return %c0_i32, %c0_i32_0 : i32, i32
  }
  func.func @transform_3(%arg0: i32) -> (i32, i32) {
    %c0_i32 = arith.constant 0 : i32
    %c0_i32_0 = arith.constant 0 : i32
    %c0_i32_1 = arith.constant 0 : i32
    return %c0_i32, %c0_i32_0 : i32, i32
  }
  func.func @transform_4(%arg0: i32) -> (i32, i32) {
    %c0_i32 = arith.constant 0 : i32
    %c0_i32_0 = arith.constant 0 : i32
    %c0_i32_1 = arith.constant 0 : i32
    return %c0_i32, %c0_i32_0 : i32, i32
  }
  func.func @transform_5(%arg0: i32) -> (i32, i32) {
    %c0_i32 = arith.constant 0 : i32
    %c0_i32_0 = arith.constant 0 : i32
    %c0_i32_1 = arith.constant 0 : i32
    return %c0_i32, %c0_i32_0 : i32, i32
  }
  func.func @transform_6(%arg0: i32) -> (i32, i32, i32, i32, i32) {
    %c0_i32 = arith.constant 0 : i32
    %c0_i32_0 = arith.constant 0 : i32
    %c0_i32_1 = arith.constant 0 : i32
    %c0_i32_2 = arith.constant 0 : i32
    %c0_i32_3 = arith.constant 0 : i32
    return %arg0, %c0_i32, %c0_i32_0, %c0_i32_1, %c0_i32_2 : i32, i32, i32, i32, i32
  }
}

module attributes {stable_mosaic.version = 11 : i64} {
  func.func @_up_gn_relu_kernel(%arg0: i32, %arg1: memref<1x64x64xf32, #tpu.memory_space<vmem>>, %arg2: memref<2x64x64xf32, #tpu.memory_space<vmem>>, %arg3: memref<1x64xf32, #tpu.memory_space<vmem>>, %arg4: memref<1x64xf32, #tpu.memory_space<vmem>>, %arg5: memref<1x64xf32, #tpu.memory_space<vmem>>, %arg6: memref<64x64xf32, #tpu.memory_space<vmem>>, %arg7: memref<1x8x2x8x64xf32, #tpu.memory_space<vmem>>) attributes {dimension_semantics = [#tpu.dimension_semantics<parallel>], iteration_bounds = array<i64: 2>, scalar_prefetch = 0 : i64, scratch_operands = 0 : i64, tpu.core_type = #tpu.core_type<tc>, window_params = [{transform_indices = @transform_0, window_bounds = array<i64: 1, 64, 64>}, {pipeline_mode = #tpu.pipeline_mode<synchronous>, transform_indices = @transform_1, window_bounds = array<i64: 2, 64, 64>}, {pipeline_mode = #tpu.pipeline_mode<synchronous>, transform_indices = @transform_2, window_bounds = array<i64: 1, 64>}, {pipeline_mode = #tpu.pipeline_mode<synchronous>, transform_indices = @transform_3, window_bounds = array<i64: 1, 64>}, {pipeline_mode = #tpu.pipeline_mode<synchronous>, transform_indices = @transform_4, window_bounds = array<i64: 1, 64>}, {pipeline_mode = #tpu.pipeline_mode<synchronous>, transform_indices = @transform_5, window_bounds = array<i64: 64, 64>}, {transform_indices = @transform_6, window_bounds = array<i64: 1, 8, 2, 8, 64>}]} {
    %c0 = arith.constant 0 : index
    %c0_0 = arith.constant 0 : index
    %c0_1 = arith.constant 0 : index
    %0 = vector.load %arg1[%c0, %c0_0, %c0_1] : memref<1x64x64xf32, #tpu.memory_space<vmem>>, vector<1x64x64xf32>
    %1 = vector.shape_cast %0 : vector<1x64x64xf32> to vector<64x64xf32>
    %c0_2 = arith.constant 0 : index
    %c0_3 = arith.constant 0 : index
    %c0_4 = arith.constant 0 : index
    %2 = vector.load %arg2[%c0_2, %c0_3, %c0_4] : memref<2x64x64xf32, #tpu.memory_space<vmem>>, vector<1x64x64xf32>
    %3 = vector.shape_cast %2 : vector<1x64x64xf32> to vector<64x64xf32>
    %cst = arith.constant dense<0.000000e+00> : vector<64x64xf32>
    %4 = tpu.matmul %1, %3, %cst {dimension_numbers = #tpu.dot_dimension_numbers<[1], [0], [0], [1], [0, 0, 1, 1], [], []>} : vector<64x64xf32>, vector<64x64xf32>, vector<64x64xf32> -> vector<64x64xf32>
    %c0_5 = arith.constant 0 : index
    %c0_6 = arith.constant 0 : index
    %5 = vector.load %arg3[%c0_5, %c0_6] : memref<1x64xf32, #tpu.memory_space<vmem>>, vector<1x64xf32>
    %6 = vector.broadcast %5 : vector<1x64xf32> to vector<64x64xf32>
    %7 = arith.addf %4, %6 : vector<64x64xf32>
    %c1 = arith.constant 1 : index
    %c0_7 = arith.constant 0 : index
    %c0_8 = arith.constant 0 : index
    %8 = vector.load %arg2[%c1, %c0_7, %c0_8] : memref<2x64x64xf32, #tpu.memory_space<vmem>>, vector<1x64x64xf32>
    %9 = vector.shape_cast %8 : vector<1x64x64xf32> to vector<64x64xf32>
    %cst_9 = arith.constant dense<0.000000e+00> : vector<64x64xf32>
    %10 = tpu.matmul %1, %9, %cst_9 {dimension_numbers = #tpu.dot_dimension_numbers<[1], [0], [0], [1], [0, 0, 1, 1], [], []>} : vector<64x64xf32>, vector<64x64xf32>, vector<64x64xf32> -> vector<64x64xf32>
    %c0_10 = arith.constant 0 : index
    %c0_11 = arith.constant 0 : index
    %11 = vector.load %arg3[%c0_10, %c0_11] : memref<1x64xf32, #tpu.memory_space<vmem>>, vector<1x64xf32>
    %12 = vector.broadcast %11 : vector<1x64xf32> to vector<64x64xf32>
    %13 = arith.addf %10, %12 : vector<64x64xf32>
    %cst_12 = arith.constant dense<0.000000e+00> : vector<64xf32>
    %14 = vector.multi_reduction <add>, %7, %cst_12 [0] : vector<64x64xf32> to vector<64xf32>
    %15 = vector.shape_cast %14 : vector<64xf32> to vector<1x64xf32>
    %cst_13 = arith.constant dense<0.000000e+00> : vector<64xf32>
    %16 = vector.multi_reduction <add>, %13, %cst_13 [0] : vector<64x64xf32> to vector<64xf32>
    %17 = vector.shape_cast %16 : vector<64xf32> to vector<1x64xf32>
    %18 = arith.addf %15, %17 : vector<1x64xf32>
    %c0_14 = arith.constant 0 : index
    %c0_15 = arith.constant 0 : index
    %19 = vector.load %arg6[%c0_14, %c0_15] : memref<64x64xf32, #tpu.memory_space<vmem>>, vector<64x64xf32>
    %cst_16 = arith.constant dense<0.000000e+00> : vector<1x64xf32>
    %20 = tpu.matmul %18, %19, %cst_16 {dimension_numbers = #tpu.dot_dimension_numbers<[1], [0], [0], [1], [0, 0, 1, 1], [], []>} : vector<1x64xf32>, vector<64x64xf32>, vector<1x64xf32> -> vector<1x64xf32>
    %21 = vector.broadcast %20 : vector<1x64xf32> to vector<64x64xf32>
    %22 = arith.subf %7, %21 : vector<64x64xf32>
    %23 = vector.broadcast %20 : vector<1x64xf32> to vector<64x64xf32>
    %24 = arith.subf %13, %23 : vector<64x64xf32>
    %25 = arith.mulf %22, %22 : vector<64x64xf32>
    %cst_17 = arith.constant dense<0.000000e+00> : vector<64xf32>
    %26 = vector.multi_reduction <add>, %25, %cst_17 [0] : vector<64x64xf32> to vector<64xf32>
    %27 = vector.shape_cast %26 : vector<64xf32> to vector<1x64xf32>
    %28 = arith.mulf %24, %24 : vector<64x64xf32>
    %cst_18 = arith.constant dense<0.000000e+00> : vector<64xf32>
    %29 = vector.multi_reduction <add>, %28, %cst_18 [0] : vector<64x64xf32> to vector<64xf32>
    %30 = vector.shape_cast %29 : vector<64xf32> to vector<1x64xf32>
    %31 = arith.addf %27, %30 : vector<1x64xf32>
    %c0_19 = arith.constant 0 : index
    %c0_20 = arith.constant 0 : index
    %32 = vector.load %arg6[%c0_19, %c0_20] : memref<64x64xf32, #tpu.memory_space<vmem>>, vector<64x64xf32>
    %cst_21 = arith.constant dense<0.000000e+00> : vector<1x64xf32>
    %33 = tpu.matmul %31, %32, %cst_21 {dimension_numbers = #tpu.dot_dimension_numbers<[1], [0], [0], [1], [0, 0, 1, 1], [], []>} : vector<1x64xf32>, vector<64x64xf32>, vector<1x64xf32> -> vector<1x64xf32>
    %cst_22 = arith.constant 9.99999974E-6 : f32
    %34 = vector.broadcast %cst_22 : f32 to vector<1x64xf32>
    %35 = arith.addf %33, %34 : vector<1x64xf32>
    %36 = math.rsqrt %35 : vector<1x64xf32>
    %c0_23 = arith.constant 0 : index
    %c0_24 = arith.constant 0 : index
    %37 = vector.load %arg4[%c0_23, %c0_24] : memref<1x64xf32, #tpu.memory_space<vmem>>, vector<1x64xf32>
    %c0_25 = arith.constant 0 : index
    %c0_26 = arith.constant 0 : index
    %38 = vector.load %arg5[%c0_25, %c0_26] : memref<1x64xf32, #tpu.memory_space<vmem>>, vector<1x64xf32>
    %39 = vector.broadcast %36 : vector<1x64xf32> to vector<64x64xf32>
    %40 = arith.mulf %22, %39 : vector<64x64xf32>
    %41 = vector.broadcast %37 : vector<1x64xf32> to vector<64x64xf32>
    %42 = arith.mulf %40, %41 : vector<64x64xf32>
    %43 = vector.broadcast %38 : vector<1x64xf32> to vector<64x64xf32>
    %44 = arith.addf %42, %43 : vector<64x64xf32>
    %cst_27 = arith.constant 0.000000e+00 : f32
    %45 = vector.broadcast %cst_27 : f32 to vector<64x64xf32>
    %46 = arith.maximumf %44, %45 : vector<64x64xf32>
    %47 = vector.broadcast %36 : vector<1x64xf32> to vector<64x64xf32>
    %48 = arith.mulf %24, %47 : vector<64x64xf32>
    %49 = vector.broadcast %37 : vector<1x64xf32> to vector<64x64xf32>
    %50 = arith.mulf %48, %49 : vector<64x64xf32>
    %51 = vector.broadcast %38 : vector<1x64xf32> to vector<64x64xf32>
    %52 = arith.addf %50, %51 : vector<64x64xf32>
    %cst_28 = arith.constant 0.000000e+00 : f32
    %53 = vector.broadcast %cst_28 : f32 to vector<64x64xf32>
    %54 = arith.maximumf %52, %53 : vector<64x64xf32>
    %55 = vector.shape_cast %46 : vector<64x64xf32> to vector<8x8x64xf32>
    %c0_29 = arith.constant 0 : index
    %c0_30 = arith.constant 0 : index
    %c0_31 = arith.constant 0 : index
    %c0_32 = arith.constant 0 : index
    %c0_33 = arith.constant 0 : index
    %56 = vector.load %arg7[%c0_29, %c0_30, %c0_31, %c0_32, %c0_33] : memref<1x8x2x8x64xf32, #tpu.memory_space<vmem>>, vector<1x8x1x8x64xf32>
    %57 = vector.shape_cast %56 : vector<1x8x1x8x64xf32> to vector<8x8x64xf32>
    %58 = vector.shape_cast %55 : vector<8x8x64xf32> to vector<1x8x1x8x64xf32>
    tpu.vector_store %arg7[%c0_29, %c0_30, %c0_31, %c0_32, %c0_33], %58 {strides = array<i32>} : memref<1x8x2x8x64xf32, #tpu.memory_space<vmem>>, vector<1x8x1x8x64xf32>,
    %59 = vector.shape_cast %54 : vector<64x64xf32> to vector<8x8x64xf32>
    %c0_34 = arith.constant 0 : index
    %c0_35 = arith.constant 0 : index
    %c1_36 = arith.constant 1 : index
    %c0_37 = arith.constant 0 : index
    %c0_38 = arith.constant 0 : index
    %60 = vector.load %arg7[%c0_34, %c0_35, %c1_36, %c0_37, %c0_38] : memref<1x8x2x8x64xf32, #tpu.memory_space<vmem>>, vector<1x8x1x8x64xf32>
    %61 = vector.shape_cast %60 : vector<1x8x1x8x64xf32> to vector<8x8x64xf32>
    %62 = vector.shape_cast %59 : vector<8x8x64xf32> to vector<1x8x1x8x64xf32>
    tpu.vector_store %arg7[%c0_34, %c0_35, %c1_36, %c0_37, %c0_38], %62 {strides = array<i32>} : memref<1x8x2x8x64xf32, #tpu.memory_space<vmem>>, vector<1x8x1x8x64xf32>,
    return
  }
  func.func @transform_0(%arg0: i32) -> (i32, i32, i32) {
    %c0_i32 = arith.constant 0 : i32
    %c0_i32_0 = arith.constant 0 : i32
    %c0_i32_1 = arith.constant 0 : i32
    return %arg0, %c0_i32, %c0_i32_0 : i32, i32, i32
  }
  func.func @transform_1(%arg0: i32) -> (i32, i32, i32) {
    %c0_i32 = arith.constant 0 : i32
    %c0_i32_0 = arith.constant 0 : i32
    %c0_i32_1 = arith.constant 0 : i32
    %c0_i32_2 = arith.constant 0 : i32
    return %c0_i32, %c0_i32_0, %c0_i32_1 : i32, i32, i32
  }
  func.func @transform_2(%arg0: i32) -> (i32, i32) {
    %c0_i32 = arith.constant 0 : i32
    %c0_i32_0 = arith.constant 0 : i32
    %c0_i32_1 = arith.constant 0 : i32
    return %c0_i32, %c0_i32_0 : i32, i32
  }
  func.func @transform_3(%arg0: i32) -> (i32, i32) {
    %c0_i32 = arith.constant 0 : i32
    %c0_i32_0 = arith.constant 0 : i32
    %c0_i32_1 = arith.constant 0 : i32
    return %c0_i32, %c0_i32_0 : i32, i32
  }
  func.func @transform_4(%arg0: i32) -> (i32, i32) {
    %c0_i32 = arith.constant 0 : i32
    %c0_i32_0 = arith.constant 0 : i32
    %c0_i32_1 = arith.constant 0 : i32
    return %c0_i32, %c0_i32_0 : i32, i32
  }
  func.func @transform_5(%arg0: i32) -> (i32, i32) {
    %c0_i32 = arith.constant 0 : i32
    %c0_i32_0 = arith.constant 0 : i32
    %c0_i32_1 = arith.constant 0 : i32
    return %c0_i32, %c0_i32_0 : i32, i32
  }
  func.func @transform_6(%arg0: i32) -> (i32, i32, i32, i32, i32) {
    %c0_i32 = arith.constant 0 : i32
    %c0_i32_0 = arith.constant 0 : i32
    %c0_i32_1 = arith.constant 0 : i32
    %c0_i32_2 = arith.constant 0 : i32
    %c0_i32_3 = arith.constant 0 : i32
    return %arg0, %c0_i32, %c0_i32_0, %c0_i32_1, %c0_i32_2 : i32, i32, i32, i32, i32
  }
}

module attributes {stable_mosaic.version = 11 : i64} {
  func.func @_conv3x3_gn_relu_kernel(%arg0: i32, %arg1: memref<1x256x32xf32, #tpu.memory_space<vmem>>, %arg2: memref<1x256x32xf32, #tpu.memory_space<vmem>>, %arg3: memref<9x32x32xf32, #tpu.memory_space<vmem>>, %arg4: memref<9x32x32xf32, #tpu.memory_space<vmem>>, %arg5: memref<1x32xf32, #tpu.memory_space<vmem>>, %arg6: memref<1x32xf32, #tpu.memory_space<vmem>>, %arg7: memref<1x32xf32, #tpu.memory_space<vmem>>, %arg8: memref<32x32xf32, #tpu.memory_space<vmem>>, %arg9: memref<1x256x32xf32, #tpu.memory_space<vmem>>) attributes {dimension_semantics = [#tpu.dimension_semantics<parallel>], iteration_bounds = array<i64: 2>, scalar_prefetch = 0 : i64, scratch_operands = 0 : i64, tpu.core_type = #tpu.core_type<tc>, window_params = [{transform_indices = @transform_0, window_bounds = array<i64: 1, 256, 32>}, {transform_indices = @transform_1, window_bounds = array<i64: 1, 256, 32>}, {pipeline_mode = #tpu.pipeline_mode<synchronous>, transform_indices = @transform_2, window_bounds = array<i64: 9, 32, 32>}, {pipeline_mode = #tpu.pipeline_mode<synchronous>, transform_indices = @transform_3, window_bounds = array<i64: 9, 32, 32>}, {pipeline_mode = #tpu.pipeline_mode<synchronous>, transform_indices = @transform_4, window_bounds = array<i64: 1, 32>}, {pipeline_mode = #tpu.pipeline_mode<synchronous>, transform_indices = @transform_5, window_bounds = array<i64: 1, 32>}, {pipeline_mode = #tpu.pipeline_mode<synchronous>, transform_indices = @transform_6, window_bounds = array<i64: 1, 32>}, {pipeline_mode = #tpu.pipeline_mode<synchronous>, transform_indices = @transform_7, window_bounds = array<i64: 32, 32>}, {transform_indices = @transform_8, window_bounds = array<i64: 1, 256, 32>}]} {
    %c0 = arith.constant 0 : index
    %c0_0 = arith.constant 0 : index
    %c0_1 = arith.constant 0 : index
    %0 = vector.load %arg1[%c0, %c0_0, %c0_1] : memref<1x256x32xf32, #tpu.memory_space<vmem>>, vector<1x256x32xf32>
    %1 = vector.shape_cast %0 : vector<1x256x32xf32> to vector<256x32xf32>
    %c0_2 = arith.constant 0 : index
    %c0_3 = arith.constant 0 : index
    %c0_4 = arith.constant 0 : index
    %2 = vector.load %arg2[%c0_2, %c0_3, %c0_4] : memref<1x256x32xf32, #tpu.memory_space<vmem>>, vector<1x256x32xf32>
    %3 = vector.shape_cast %2 : vector<1x256x32xf32> to vector<256x32xf32>
    %4 = tpu.iota {dimensions = array<i32: 0>} : vector<256x1xi32>
    %c16_i32 = arith.constant 16 : i32
    %c0_i32 = arith.constant 0 : i32
    %5 = arith.cmpi eq, %c16_i32, %c0_i32 : i32
    %c1_i32 = arith.constant 1 : i32
    %6 = arith.select %5, %c1_i32, %c16_i32 : i32
    %7 = vector.broadcast %6 : i32 to vector<256x1xi32>
    %8 = arith.remsi %4, %7 : vector<256x1xi32>
    %c0_i32_5 = arith.constant 0 : i32
    %9 = vector.broadcast %c0_i32_5 : i32 to vector<256x1xi32>
    %10 = arith.cmpi ne, %8, %9 : vector<256x1xi32>
    %c0_i32_6 = arith.constant 0 : i32
    %11 = vector.broadcast %c0_i32_6 : i32 to vector<256x1xi32>
    %12 = arith.cmpi slt, %8, %11 : vector<256x1xi32>
    %c0_i32_7 = arith.constant 0 : i32
    %13 = arith.cmpi slt, %6, %c0_i32_7 : i32
    %14 = vector.broadcast %13 : i1 to vector<256x1xi1>
    %15 = vector.broadcast %14 : vector<256x1xi1> to vector<256x1xi1>
    %16 = arith.xori %12, %15 : vector<256x1xi1>
    %17 = arith.andi %16, %10 : vector<256x1xi1>
    %18 = vector.broadcast %6 : i32 to vector<256x1xi32>
    %19 = arith.addi %8, %18 : vector<256x1xi32>
    %20 = arith.select %17, %19, %8 : vector<256x1xi1>, vector<256x1xi32>
    %cst = arith.constant 0.000000e+00 : f32
    %21 = vector.broadcast %cst : f32 to vector<256x32xf32>
    %c0_8 = arith.constant 0 : index
    %c0_9 = arith.constant 0 : index
    %22 = vector.load %arg5[%c0_8, %c0_9] : memref<1x32xf32, #tpu.memory_space<vmem>>, vector<1x32xf32>
    %23 = vector.broadcast %22 : vector<1x32xf32> to vector<256x32xf32>
    %24 = arith.addf %21, %23 : vector<256x32xf32>
    %cst_10 = arith.constant 0.000000e+00 : f32
    %25 = vector.broadcast %cst_10 : f32 to vector<17x32xf32>
    %26 = vector.extract_strided_slice %1 {offsets = [0, 0], sizes = [239, 32], strides = [1, 1]} : vector<256x32xf32> to vector<239x32xf32>
    %27 = tpu.concatenate %25, %26 in 0 : vector<17x32xf32>, vector<239x32xf32> -> vector<256x32xf32>
    %cst_11 = arith.constant 0.000000e+00 : f32
    %28 = vector.broadcast %cst_11 : f32 to vector<17x32xf32>
    %29 = vector.extract_strided_slice %3 {offsets = [0, 0], sizes = [239, 32], strides = [1, 1]} : vector<256x32xf32> to vector<239x32xf32>
    %30 = tpu.concatenate %28, %29 in 0 : vector<17x32xf32>, vector<239x32xf32> -> vector<256x32xf32>
    %c-1_i32 = arith.constant -1 : i32
    %31 = vector.broadcast %c-1_i32 : i32 to vector<256x1xi32>
    %32 = arith.addi %20, %31 : vector<256x1xi32>
    %c0_i32_12 = arith.constant 0 : i32
    %33 = vector.broadcast %c0_i32_12 : i32 to vector<256x1xi32>
    %34 = arith.cmpi sge, %32, %33 : vector<256x1xi32>
    %c-1_i32_13 = arith.constant -1 : i32
    %35 = vector.broadcast %c-1_i32_13 : i32 to vector<256x1xi32>
    %36 = arith.addi %20, %35 : vector<256x1xi32>
    %c15_i32 = arith.constant 15 : i32
    %37 = vector.broadcast %c15_i32 : i32 to vector<256x1xi32>
    %38 = arith.cmpi sle, %36, %37 : vector<256x1xi32>
    %39 = arith.andi %34, %38 : vector<256x1xi1>
    %40 = arith.extui %39 : vector<256x1xi1> to vector<256x1xi32>
    %41 = arith.sitofp %40 : vector<256x1xi32> to vector<256x1xf32>
    %42 = vector.broadcast %41 : vector<256x1xf32> to vector<256x32xf32>
    %43 = arith.mulf %27, %42 : vector<256x32xf32>
    %44 = vector.broadcast %41 : vector<256x1xf32> to vector<256x32xf32>
    %45 = arith.mulf %30, %44 : vector<256x32xf32>
    %c0_14 = arith.constant 0 : index
    %c0_15 = arith.constant 0 : index
    %c0_16 = arith.constant 0 : index
    %46 = vector.load %arg3[%c0_14, %c0_15, %c0_16] : memref<9x32x32xf32, #tpu.memory_space<vmem>>, vector<1x32x32xf32>
    %47 = vector.shape_cast %46 : vector<1x32x32xf32> to vector<32x32xf32>
    %cst_17 = arith.constant dense<0.000000e+00> : vector<256x32xf32>
    %48 = tpu.matmul %43, %47, %cst_17 {dimension_numbers = #tpu.dot_dimension_numbers<[1], [0], [0], [1], [0, 0, 1, 1], [], []>} : vector<256x32xf32>, vector<32x32xf32>, vector<256x32xf32> -> vector<256x32xf32>
    %49 = arith.addf %24, %48 : vector<256x32xf32>
    %c0_18 = arith.constant 0 : index
    %c0_19 = arith.constant 0 : index
    %c0_20 = arith.constant 0 : index
    %50 = vector.load %arg4[%c0_18, %c0_19, %c0_20] : memref<9x32x32xf32, #tpu.memory_space<vmem>>, vector<1x32x32xf32>
    %51 = vector.shape_cast %50 : vector<1x32x32xf32> to vector<32x32xf32>
    %cst_21 = arith.constant dense<0.000000e+00> : vector<256x32xf32>
    %52 = tpu.matmul %45, %51, %cst_21 {dimension_numbers = #tpu.dot_dimension_numbers<[1], [0], [0], [1], [0, 0, 1, 1], [], []>} : vector<256x32xf32>, vector<32x32xf32>, vector<256x32xf32> -> vector<256x32xf32>
    %53 = arith.addf %49, %52 : vector<256x32xf32>
    %cst_22 = arith.constant 0.000000e+00 : f32
    %54 = vector.broadcast %cst_22 : f32 to vector<16x32xf32>
    %55 = vector.extract_strided_slice %1 {offsets = [0, 0], sizes = [240, 32], strides = [1, 1]} : vector<256x32xf32> to vector<240x32xf32>
    %56 = tpu.concatenate %54, %55 in 0 : vector<16x32xf32>, vector<240x32xf32> -> vector<256x32xf32>
    %cst_23 = arith.constant 0.000000e+00 : f32
    %57 = vector.broadcast %cst_23 : f32 to vector<16x32xf32>
    %58 = vector.extract_strided_slice %3 {offsets = [0, 0], sizes = [240, 32], strides = [1, 1]} : vector<256x32xf32> to vector<240x32xf32>
    %59 = tpu.concatenate %57, %58 in 0 : vector<16x32xf32>, vector<240x32xf32> -> vector<256x32xf32>
    %c1 = arith.constant 1 : index
    %c0_24 = arith.constant 0 : index
    %c0_25 = arith.constant 0 : index
    %60 = vector.load %arg3[%c1, %c0_24, %c0_25] : memref<9x32x32xf32, #tpu.memory_space<vmem>>, vector<1x32x32xf32>
    %61 = vector.shape_cast %60 : vector<1x32x32xf32> to vector<32x32xf32>
    %cst_26 = arith.constant dense<0.000000e+00> : vector<256x32xf32>
    %62 = tpu.matmul %56, %61, %cst_26 {dimension_numbers = #tpu.dot_dimension_numbers<[1], [0], [0], [1], [0, 0, 1, 1], [], []>} : vector<256x32xf32>, vector<32x32xf32>, vector<256x32xf32> -> vector<256x32xf32>
    %63 = arith.addf %53, %62 : vector<256x32xf32>
    %c1_27 = arith.constant 1 : index
    %c0_28 = arith.constant 0 : index
    %c0_29 = arith.constant 0 : index
    %64 = vector.load %arg4[%c1_27, %c0_28, %c0_29] : memref<9x32x32xf32, #tpu.memory_space<vmem>>, vector<1x32x32xf32>
    %65 = vector.shape_cast %64 : vector<1x32x32xf32> to vector<32x32xf32>
    %cst_30 = arith.constant dense<0.000000e+00> : vector<256x32xf32>
    %66 = tpu.matmul %59, %65, %cst_30 {dimension_numbers = #tpu.dot_dimension_numbers<[1], [0], [0], [1], [0, 0, 1, 1], [], []>} : vector<256x32xf32>, vector<32x32xf32>, vector<256x32xf32> -> vector<256x32xf32>
    %67 = arith.addf %63, %66 : vector<256x32xf32>
    %cst_31 = arith.constant 0.000000e+00 : f32
    %68 = vector.broadcast %cst_31 : f32 to vector<15x32xf32>
    %69 = vector.extract_strided_slice %1 {offsets = [0, 0], sizes = [241, 32], strides = [1, 1]} : vector<256x32xf32> to vector<241x32xf32>
    %70 = tpu.concatenate %68, %69 in 0 : vector<15x32xf32>, vector<241x32xf32> -> vector<256x32xf32>
    %cst_32 = arith.constant 0.000000e+00 : f32
    %71 = vector.broadcast %cst_32 : f32 to vector<15x32xf32>
    %72 = vector.extract_strided_slice %3 {offsets = [0, 0], sizes = [241, 32], strides = [1, 1]} : vector<256x32xf32> to vector<241x32xf32>
    %73 = tpu.concatenate %71, %72 in 0 : vector<15x32xf32>, vector<241x32xf32> -> vector<256x32xf32>
    %c1_i32_33 = arith.constant 1 : i32
    %74 = vector.broadcast %c1_i32_33 : i32 to vector<256x1xi32>
    %75 = arith.addi %20, %74 : vector<256x1xi32>
    %c0_i32_34 = arith.constant 0 : i32
    %76 = vector.broadcast %c0_i32_34 : i32 to vector<256x1xi32>
    %77 = arith.cmpi sge, %75, %76 : vector<256x1xi32>
    %c1_i32_35 = arith.constant 1 : i32
    %78 = vector.broadcast %c1_i32_35 : i32 to vector<256x1xi32>
    %79 = arith.addi %20, %78 : vector<256x1xi32>
    %c15_i32_36 = arith.constant 15 : i32
    %80 = vector.broadcast %c15_i32_36 : i32 to vector<256x1xi32>
    %81 = arith.cmpi sle, %79, %80 : vector<256x1xi32>
    %82 = arith.andi %77, %81 : vector<256x1xi1>
    %83 = arith.extui %82 : vector<256x1xi1> to vector<256x1xi32>
    %84 = arith.sitofp %83 : vector<256x1xi32> to vector<256x1xf32>
    %85 = vector.broadcast %84 : vector<256x1xf32> to vector<256x32xf32>
    %86 = arith.mulf %70, %85 : vector<256x32xf32>
    %87 = vector.broadcast %84 : vector<256x1xf32> to vector<256x32xf32>
    %88 = arith.mulf %73, %87 : vector<256x32xf32>
    %c2 = arith.constant 2 : index
    %c0_37 = arith.constant 0 : index
    %c0_38 = arith.constant 0 : index
    %89 = vector.load %arg3[%c2, %c0_37, %c0_38] : memref<9x32x32xf32, #tpu.memory_space<vmem>>, vector<1x32x32xf32>
    %90 = vector.shape_cast %89 : vector<1x32x32xf32> to vector<32x32xf32>
    %cst_39 = arith.constant dense<0.000000e+00> : vector<256x32xf32>
    %91 = tpu.matmul %86, %90, %cst_39 {dimension_numbers = #tpu.dot_dimension_numbers<[1], [0], [0], [1], [0, 0, 1, 1], [], []>} : vector<256x32xf32>, vector<32x32xf32>, vector<256x32xf32> -> vector<256x32xf32>
    %92 = arith.addf %67, %91 : vector<256x32xf32>
    %c2_40 = arith.constant 2 : index
    %c0_41 = arith.constant 0 : index
    %c0_42 = arith.constant 0 : index
    %93 = vector.load %arg4[%c2_40, %c0_41, %c0_42] : memref<9x32x32xf32, #tpu.memory_space<vmem>>, vector<1x32x32xf32>
    %94 = vector.shape_cast %93 : vector<1x32x32xf32> to vector<32x32xf32>
    %cst_43 = arith.constant dense<0.000000e+00> : vector<256x32xf32>
    %95 = tpu.matmul %88, %94, %cst_43 {dimension_numbers = #tpu.dot_dimension_numbers<[1], [0], [0], [1], [0, 0, 1, 1], [], []>} : vector<256x32xf32>, vector<32x32xf32>, vector<256x32xf32> -> vector<256x32xf32>
    %96 = arith.addf %92, %95 : vector<256x32xf32>
    %cst_44 = arith.constant 0.000000e+00 : f32
    %97 = vector.broadcast %cst_44 : f32 to vector<1x32xf32>
    %98 = vector.extract_strided_slice %1 {offsets = [0, 0], sizes = [255, 32], strides = [1, 1]} : vector<256x32xf32> to vector<255x32xf32>
    %99 = tpu.concatenate %97, %98 in 0 : vector<1x32xf32>, vector<255x32xf32> -> vector<256x32xf32>
    %cst_45 = arith.constant 0.000000e+00 : f32
    %100 = vector.broadcast %cst_45 : f32 to vector<1x32xf32>
    %101 = vector.extract_strided_slice %3 {offsets = [0, 0], sizes = [255, 32], strides = [1, 1]} : vector<256x32xf32> to vector<255x32xf32>
    %102 = tpu.concatenate %100, %101 in 0 : vector<1x32xf32>, vector<255x32xf32> -> vector<256x32xf32>
    %c-1_i32_46 = arith.constant -1 : i32
    %103 = vector.broadcast %c-1_i32_46 : i32 to vector<256x1xi32>
    %104 = arith.addi %20, %103 : vector<256x1xi32>
    %c0_i32_47 = arith.constant 0 : i32
    %105 = vector.broadcast %c0_i32_47 : i32 to vector<256x1xi32>
    %106 = arith.cmpi sge, %104, %105 : vector<256x1xi32>
    %c-1_i32_48 = arith.constant -1 : i32
    %107 = vector.broadcast %c-1_i32_48 : i32 to vector<256x1xi32>
    %108 = arith.addi %20, %107 : vector<256x1xi32>
    %c15_i32_49 = arith.constant 15 : i32
    %109 = vector.broadcast %c15_i32_49 : i32 to vector<256x1xi32>
    %110 = arith.cmpi sle, %108, %109 : vector<256x1xi32>
    %111 = arith.andi %106, %110 : vector<256x1xi1>
    %112 = arith.extui %111 : vector<256x1xi1> to vector<256x1xi32>
    %113 = arith.sitofp %112 : vector<256x1xi32> to vector<256x1xf32>
    %114 = vector.broadcast %113 : vector<256x1xf32> to vector<256x32xf32>
    %115 = arith.mulf %99, %114 : vector<256x32xf32>
    %116 = vector.broadcast %113 : vector<256x1xf32> to vector<256x32xf32>
    %117 = arith.mulf %102, %116 : vector<256x32xf32>
    %c3 = arith.constant 3 : index
    %c0_50 = arith.constant 0 : index
    %c0_51 = arith.constant 0 : index
    %118 = vector.load %arg3[%c3, %c0_50, %c0_51] : memref<9x32x32xf32, #tpu.memory_space<vmem>>, vector<1x32x32xf32>
    %119 = vector.shape_cast %118 : vector<1x32x32xf32> to vector<32x32xf32>
    %cst_52 = arith.constant dense<0.000000e+00> : vector<256x32xf32>
    %120 = tpu.matmul %115, %119, %cst_52 {dimension_numbers = #tpu.dot_dimension_numbers<[1], [0], [0], [1], [0, 0, 1, 1], [], []>} : vector<256x32xf32>, vector<32x32xf32>, vector<256x32xf32> -> vector<256x32xf32>
    %121 = arith.addf %96, %120 : vector<256x32xf32>
    %c3_53 = arith.constant 3 : index
    %c0_54 = arith.constant 0 : index
    %c0_55 = arith.constant 0 : index
    %122 = vector.load %arg4[%c3_53, %c0_54, %c0_55] : memref<9x32x32xf32, #tpu.memory_space<vmem>>, vector<1x32x32xf32>
    %123 = vector.shape_cast %122 : vector<1x32x32xf32> to vector<32x32xf32>
    %cst_56 = arith.constant dense<0.000000e+00> : vector<256x32xf32>
    %124 = tpu.matmul %117, %123, %cst_56 {dimension_numbers = #tpu.dot_dimension_numbers<[1], [0], [0], [1], [0, 0, 1, 1], [], []>} : vector<256x32xf32>, vector<32x32xf32>, vector<256x32xf32> -> vector<256x32xf32>
    %125 = arith.addf %121, %124 : vector<256x32xf32>
    %c4 = arith.constant 4 : index
    %c0_57 = arith.constant 0 : index
    %c0_58 = arith.constant 0 : index
    %126 = vector.load %arg3[%c4, %c0_57, %c0_58] : memref<9x32x32xf32, #tpu.memory_space<vmem>>, vector<1x32x32xf32>
    %127 = vector.shape_cast %126 : vector<1x32x32xf32> to vector<32x32xf32>
    %cst_59 = arith.constant dense<0.000000e+00> : vector<256x32xf32>
    %128 = tpu.matmul %1, %127, %cst_59 {dimension_numbers = #tpu.dot_dimension_numbers<[1], [0], [0], [1], [0, 0, 1, 1], [], []>} : vector<256x32xf32>, vector<32x32xf32>, vector<256x32xf32> -> vector<256x32xf32>
    %129 = arith.addf %125, %128 : vector<256x32xf32>
    %c4_60 = arith.constant 4 : index
    %c0_61 = arith.constant 0 : index
    %c0_62 = arith.constant 0 : index
    %130 = vector.load %arg4[%c4_60, %c0_61, %c0_62] : memref<9x32x32xf32, #tpu.memory_space<vmem>>, vector<1x32x32xf32>
    %131 = vector.shape_cast %130 : vector<1x32x32xf32> to vector<32x32xf32>
    %cst_63 = arith.constant dense<0.000000e+00> : vector<256x32xf32>
    %132 = tpu.matmul %3, %131, %cst_63 {dimension_numbers = #tpu.dot_dimension_numbers<[1], [0], [0], [1], [0, 0, 1, 1], [], []>} : vector<256x32xf32>, vector<32x32xf32>, vector<256x32xf32> -> vector<256x32xf32>
    %133 = arith.addf %129, %132 : vector<256x32xf32>
    %cst_64 = arith.constant 0.000000e+00 : f32
    %134 = vector.broadcast %cst_64 : f32 to vector<1x32xf32>
    %135 = vector.extract_strided_slice %1 {offsets = [1, 0], sizes = [255, 32], strides = [1, 1]} : vector<256x32xf32> to vector<255x32xf32>
    %136 = tpu.concatenate %135, %134 in 0 : vector<255x32xf32>, vector<1x32xf32> -> vector<256x32xf32>
    %cst_65 = arith.constant 0.000000e+00 : f32
    %137 = vector.broadcast %cst_65 : f32 to vector<1x32xf32>
    %138 = vector.extract_strided_slice %3 {offsets = [1, 0], sizes = [255, 32], strides = [1, 1]} : vector<256x32xf32> to vector<255x32xf32>
    %139 = tpu.concatenate %138, %137 in 0 : vector<255x32xf32>, vector<1x32xf32> -> vector<256x32xf32>
    %c1_i32_66 = arith.constant 1 : i32
    %140 = vector.broadcast %c1_i32_66 : i32 to vector<256x1xi32>
    %141 = arith.addi %20, %140 : vector<256x1xi32>
    %c0_i32_67 = arith.constant 0 : i32
    %142 = vector.broadcast %c0_i32_67 : i32 to vector<256x1xi32>
    %143 = arith.cmpi sge, %141, %142 : vector<256x1xi32>
    %c1_i32_68 = arith.constant 1 : i32
    %144 = vector.broadcast %c1_i32_68 : i32 to vector<256x1xi32>
    %145 = arith.addi %20, %144 : vector<256x1xi32>
    %c15_i32_69 = arith.constant 15 : i32
    %146 = vector.broadcast %c15_i32_69 : i32 to vector<256x1xi32>
    %147 = arith.cmpi sle, %145, %146 : vector<256x1xi32>
    %148 = arith.andi %143, %147 : vector<256x1xi1>
    %149 = arith.extui %148 : vector<256x1xi1> to vector<256x1xi32>
    %150 = arith.sitofp %149 : vector<256x1xi32> to vector<256x1xf32>
    %151 = vector.broadcast %150 : vector<256x1xf32> to vector<256x32xf32>
    %152 = arith.mulf %136, %151 : vector<256x32xf32>
    %153 = vector.broadcast %150 : vector<256x1xf32> to vector<256x32xf32>
    %154 = arith.mulf %139, %153 : vector<256x32xf32>
    %c5 = arith.constant 5 : index
    %c0_70 = arith.constant 0 : index
    %c0_71 = arith.constant 0 : index
    %155 = vector.load %arg3[%c5, %c0_70, %c0_71] : memref<9x32x32xf32, #tpu.memory_space<vmem>>, vector<1x32x32xf32>
    %156 = vector.shape_cast %155 : vector<1x32x32xf32> to vector<32x32xf32>
    %cst_72 = arith.constant dense<0.000000e+00> : vector<256x32xf32>
    %157 = tpu.matmul %152, %156, %cst_72 {dimension_numbers = #tpu.dot_dimension_numbers<[1], [0], [0], [1], [0, 0, 1, 1], [], []>} : vector<256x32xf32>, vector<32x32xf32>, vector<256x32xf32> -> vector<256x32xf32>
    %158 = arith.addf %133, %157 : vector<256x32xf32>
    %c5_73 = arith.constant 5 : index
    %c0_74 = arith.constant 0 : index
    %c0_75 = arith.constant 0 : index
    %159 = vector.load %arg4[%c5_73, %c0_74, %c0_75] : memref<9x32x32xf32, #tpu.memory_space<vmem>>, vector<1x32x32xf32>
    %160 = vector.shape_cast %159 : vector<1x32x32xf32> to vector<32x32xf32>
    %cst_76 = arith.constant dense<0.000000e+00> : vector<256x32xf32>
    %161 = tpu.matmul %154, %160, %cst_76 {dimension_numbers = #tpu.dot_dimension_numbers<[1], [0], [0], [1], [0, 0, 1, 1], [], []>} : vector<256x32xf32>, vector<32x32xf32>, vector<256x32xf32> -> vector<256x32xf32>
    %162 = arith.addf %158, %161 : vector<256x32xf32>
    %cst_77 = arith.constant 0.000000e+00 : f32
    %163 = vector.broadcast %cst_77 : f32 to vector<15x32xf32>
    %164 = vector.extract_strided_slice %1 {offsets = [15, 0], sizes = [241, 32], strides = [1, 1]} : vector<256x32xf32> to vector<241x32xf32>
    %165 = tpu.concatenate %164, %163 in 0 : vector<241x32xf32>, vector<15x32xf32> -> vector<256x32xf32>
    %cst_78 = arith.constant 0.000000e+00 : f32
    %166 = vector.broadcast %cst_78 : f32 to vector<15x32xf32>
    %167 = vector.extract_strided_slice %3 {offsets = [15, 0], sizes = [241, 32], strides = [1, 1]} : vector<256x32xf32> to vector<241x32xf32>
    %168 = tpu.concatenate %167, %166 in 0 : vector<241x32xf32>, vector<15x32xf32> -> vector<256x32xf32>
    %c-1_i32_79 = arith.constant -1 : i32
    %169 = vector.broadcast %c-1_i32_79 : i32 to vector<256x1xi32>
    %170 = arith.addi %20, %169 : vector<256x1xi32>
    %c0_i32_80 = arith.constant 0 : i32
    %171 = vector.broadcast %c0_i32_80 : i32 to vector<256x1xi32>
    %172 = arith.cmpi sge, %170, %171 : vector<256x1xi32>
    %c-1_i32_81 = arith.constant -1 : i32
    %173 = vector.broadcast %c-1_i32_81 : i32 to vector<256x1xi32>
    %174 = arith.addi %20, %173 : vector<256x1xi32>
    %c15_i32_82 = arith.constant 15 : i32
    %175 = vector.broadcast %c15_i32_82 : i32 to vector<256x1xi32>
    %176 = arith.cmpi sle, %174, %175 : vector<256x1xi32>
    %177 = arith.andi %172, %176 : vector<256x1xi1>
    %178 = arith.extui %177 : vector<256x1xi1> to vector<256x1xi32>
    %179 = arith.sitofp %178 : vector<256x1xi32> to vector<256x1xf32>
    %180 = vector.broadcast %179 : vector<256x1xf32> to vector<256x32xf32>
    %181 = arith.mulf %165, %180 : vector<256x32xf32>
    %182 = vector.broadcast %179 : vector<256x1xf32> to vector<256x32xf32>
    %183 = arith.mulf %168, %182 : vector<256x32xf32>
    %c6 = arith.constant 6 : index
    %c0_83 = arith.constant 0 : index
    %c0_84 = arith.constant 0 : index
    %184 = vector.load %arg3[%c6, %c0_83, %c0_84] : memref<9x32x32xf32, #tpu.memory_space<vmem>>, vector<1x32x32xf32>
    %185 = vector.shape_cast %184 : vector<1x32x32xf32> to vector<32x32xf32>
    %cst_85 = arith.constant dense<0.000000e+00> : vector<256x32xf32>
    %186 = tpu.matmul %181, %185, %cst_85 {dimension_numbers = #tpu.dot_dimension_numbers<[1], [0], [0], [1], [0, 0, 1, 1], [], []>} : vector<256x32xf32>, vector<32x32xf32>, vector<256x32xf32> -> vector<256x32xf32>
    %187 = arith.addf %162, %186 : vector<256x32xf32>
    %c6_86 = arith.constant 6 : index
    %c0_87 = arith.constant 0 : index
    %c0_88 = arith.constant 0 : index
    %188 = vector.load %arg4[%c6_86, %c0_87, %c0_88] : memref<9x32x32xf32, #tpu.memory_space<vmem>>, vector<1x32x32xf32>
    %189 = vector.shape_cast %188 : vector<1x32x32xf32> to vector<32x32xf32>
    %cst_89 = arith.constant dense<0.000000e+00> : vector<256x32xf32>
    %190 = tpu.matmul %183, %189, %cst_89 {dimension_numbers = #tpu.dot_dimension_numbers<[1], [0], [0], [1], [0, 0, 1, 1], [], []>} : vector<256x32xf32>, vector<32x32xf32>, vector<256x32xf32> -> vector<256x32xf32>
    %191 = arith.addf %187, %190 : vector<256x32xf32>
    %cst_90 = arith.constant 0.000000e+00 : f32
    %192 = vector.broadcast %cst_90 : f32 to vector<16x32xf32>
    %193 = vector.extract_strided_slice %1 {offsets = [16, 0], sizes = [240, 32], strides = [1, 1]} : vector<256x32xf32> to vector<240x32xf32>
    %194 = tpu.concatenate %193, %192 in 0 : vector<240x32xf32>, vector<16x32xf32> -> vector<256x32xf32>
    %cst_91 = arith.constant 0.000000e+00 : f32
    %195 = vector.broadcast %cst_91 : f32 to vector<16x32xf32>
    %196 = vector.extract_strided_slice %3 {offsets = [16, 0], sizes = [240, 32], strides = [1, 1]} : vector<256x32xf32> to vector<240x32xf32>
    %197 = tpu.concatenate %196, %195 in 0 : vector<240x32xf32>, vector<16x32xf32> -> vector<256x32xf32>
    %c7 = arith.constant 7 : index
    %c0_92 = arith.constant 0 : index
    %c0_93 = arith.constant 0 : index
    %198 = vector.load %arg3[%c7, %c0_92, %c0_93] : memref<9x32x32xf32, #tpu.memory_space<vmem>>, vector<1x32x32xf32>
    %199 = vector.shape_cast %198 : vector<1x32x32xf32> to vector<32x32xf32>
    %cst_94 = arith.constant dense<0.000000e+00> : vector<256x32xf32>
    %200 = tpu.matmul %194, %199, %cst_94 {dimension_numbers = #tpu.dot_dimension_numbers<[1], [0], [0], [1], [0, 0, 1, 1], [], []>} : vector<256x32xf32>, vector<32x32xf32>, vector<256x32xf32> -> vector<256x32xf32>
    %201 = arith.addf %191, %200 : vector<256x32xf32>
    %c7_95 = arith.constant 7 : index
    %c0_96 = arith.constant 0 : index
    %c0_97 = arith.constant 0 : index
    %202 = vector.load %arg4[%c7_95, %c0_96, %c0_97] : memref<9x32x32xf32, #tpu.memory_space<vmem>>, vector<1x32x32xf32>
    %203 = vector.shape_cast %202 : vector<1x32x32xf32> to vector<32x32xf32>
    %cst_98 = arith.constant dense<0.000000e+00> : vector<256x32xf32>
    %204 = tpu.matmul %197, %203, %cst_98 {dimension_numbers = #tpu.dot_dimension_numbers<[1], [0], [0], [1], [0, 0, 1, 1], [], []>} : vector<256x32xf32>, vector<32x32xf32>, vector<256x32xf32> -> vector<256x32xf32>
    %205 = arith.addf %201, %204 : vector<256x32xf32>
    %cst_99 = arith.constant 0.000000e+00 : f32
    %206 = vector.broadcast %cst_99 : f32 to vector<17x32xf32>
    %207 = vector.extract_strided_slice %1 {offsets = [17, 0], sizes = [239, 32], strides = [1, 1]} : vector<256x32xf32> to vector<239x32xf32>
    %208 = tpu.concatenate %207, %206 in 0 : vector<239x32xf32>, vector<17x32xf32> -> vector<256x32xf32>
    %cst_100 = arith.constant 0.000000e+00 : f32
    %209 = vector.broadcast %cst_100 : f32 to vector<17x32xf32>
    %210 = vector.extract_strided_slice %3 {offsets = [17, 0], sizes = [239, 32], strides = [1, 1]} : vector<256x32xf32> to vector<239x32xf32>
    %211 = tpu.concatenate %210, %209 in 0 : vector<239x32xf32>, vector<17x32xf32> -> vector<256x32xf32>
    %c1_i32_101 = arith.constant 1 : i32
    %212 = vector.broadcast %c1_i32_101 : i32 to vector<256x1xi32>
    %213 = arith.addi %20, %212 : vector<256x1xi32>
    %c0_i32_102 = arith.constant 0 : i32
    %214 = vector.broadcast %c0_i32_102 : i32 to vector<256x1xi32>
    %215 = arith.cmpi sge, %213, %214 : vector<256x1xi32>
    %c1_i32_103 = arith.constant 1 : i32
    %216 = vector.broadcast %c1_i32_103 : i32 to vector<256x1xi32>
    %217 = arith.addi %20, %216 : vector<256x1xi32>
    %c15_i32_104 = arith.constant 15 : i32
    %218 = vector.broadcast %c15_i32_104 : i32 to vector<256x1xi32>
    %219 = arith.cmpi sle, %217, %218 : vector<256x1xi32>
    %220 = arith.andi %215, %219 : vector<256x1xi1>
    %221 = arith.extui %220 : vector<256x1xi1> to vector<256x1xi32>
    %222 = arith.sitofp %221 : vector<256x1xi32> to vector<256x1xf32>
    %223 = vector.broadcast %222 : vector<256x1xf32> to vector<256x32xf32>
    %224 = arith.mulf %208, %223 : vector<256x32xf32>
    %225 = vector.broadcast %222 : vector<256x1xf32> to vector<256x32xf32>
    %226 = arith.mulf %211, %225 : vector<256x32xf32>
    %c8 = arith.constant 8 : index
    %c0_105 = arith.constant 0 : index
    %c0_106 = arith.constant 0 : index
    %227 = vector.load %arg3[%c8, %c0_105, %c0_106] : memref<9x32x32xf32, #tpu.memory_space<vmem>>, vector<1x32x32xf32>
    %228 = vector.shape_cast %227 : vector<1x32x32xf32> to vector<32x32xf32>
    %cst_107 = arith.constant dense<0.000000e+00> : vector<256x32xf32>
    %229 = tpu.matmul %224, %228, %cst_107 {dimension_numbers = #tpu.dot_dimension_numbers<[1], [0], [0], [1], [0, 0, 1, 1], [], []>} : vector<256x32xf32>, vector<32x32xf32>, vector<256x32xf32> -> vector<256x32xf32>
    %230 = arith.addf %205, %229 : vector<256x32xf32>
    %c8_108 = arith.constant 8 : index
    %c0_109 = arith.constant 0 : index
    %c0_110 = arith.constant 0 : index
    %231 = vector.load %arg4[%c8_108, %c0_109, %c0_110] : memref<9x32x32xf32, #tpu.memory_space<vmem>>, vector<1x32x32xf32>
    %232 = vector.shape_cast %231 : vector<1x32x32xf32> to vector<32x32xf32>
    %cst_111 = arith.constant dense<0.000000e+00> : vector<256x32xf32>
    %233 = tpu.matmul %226, %232, %cst_111 {dimension_numbers = #tpu.dot_dimension_numbers<[1], [0], [0], [1], [0, 0, 1, 1], [], []>} : vector<256x32xf32>, vector<32x32xf32>, vector<256x32xf32> -> vector<256x32xf32>
    %234 = arith.addf %230, %233 : vector<256x32xf32>
    %cst_112 = arith.constant dense<0.000000e+00> : vector<32xf32>
    %235 = vector.multi_reduction <add>, %234, %cst_112 [0] : vector<256x32xf32> to vector<32xf32>
    %236 = vector.shape_cast %235 : vector<32xf32> to vector<1x32xf32>
    %c0_113 = arith.constant 0 : index
    %c0_114 = arith.constant 0 : index
    %237 = vector.load %arg8[%c0_113, %c0_114] : memref<32x32xf32, #tpu.memory_space<vmem>>, vector<32x32xf32>
    %cst_115 = arith.constant dense<0.000000e+00> : vector<1x32xf32>
    %238 = tpu.matmul %236, %237, %cst_115 {dimension_numbers = #tpu.dot_dimension_numbers<[1], [0], [0], [1], [0, 0, 1, 1], [], []>} : vector<1x32xf32>, vector<32x32xf32>, vector<1x32xf32> -> vector<1x32xf32>
    %239 = vector.broadcast %238 : vector<1x32xf32> to vector<256x32xf32>
    %240 = arith.subf %234, %239 : vector<256x32xf32>
    %241 = arith.mulf %240, %240 : vector<256x32xf32>
    %cst_116 = arith.constant dense<0.000000e+00> : vector<32xf32>
    %242 = vector.multi_reduction <add>, %241, %cst_116 [0] : vector<256x32xf32> to vector<32xf32>
    %243 = vector.shape_cast %242 : vector<32xf32> to vector<1x32xf32>
    %c0_117 = arith.constant 0 : index
    %c0_118 = arith.constant 0 : index
    %244 = vector.load %arg8[%c0_117, %c0_118] : memref<32x32xf32, #tpu.memory_space<vmem>>, vector<32x32xf32>
    %cst_119 = arith.constant dense<0.000000e+00> : vector<1x32xf32>
    %245 = tpu.matmul %243, %244, %cst_119 {dimension_numbers = #tpu.dot_dimension_numbers<[1], [0], [0], [1], [0, 0, 1, 1], [], []>} : vector<1x32xf32>, vector<32x32xf32>, vector<1x32xf32> -> vector<1x32xf32>
    %cst_120 = arith.constant 9.99999974E-6 : f32
    %246 = vector.broadcast %cst_120 : f32 to vector<1x32xf32>
    %247 = arith.addf %245, %246 : vector<1x32xf32>
    %248 = math.rsqrt %247 : vector<1x32xf32>
    %249 = vector.broadcast %248 : vector<1x32xf32> to vector<256x32xf32>
    %250 = arith.mulf %240, %249 : vector<256x32xf32>
    %c0_121 = arith.constant 0 : index
    %c0_122 = arith.constant 0 : index
    %251 = vector.load %arg6[%c0_121, %c0_122] : memref<1x32xf32, #tpu.memory_space<vmem>>, vector<1x32xf32>
    %252 = vector.broadcast %251 : vector<1x32xf32> to vector<256x32xf32>
    %253 = arith.mulf %250, %252 : vector<256x32xf32>
    %c0_123 = arith.constant 0 : index
    %c0_124 = arith.constant 0 : index
    %254 = vector.load %arg7[%c0_123, %c0_124] : memref<1x32xf32, #tpu.memory_space<vmem>>, vector<1x32xf32>
    %255 = vector.broadcast %254 : vector<1x32xf32> to vector<256x32xf32>
    %256 = arith.addf %253, %255 : vector<256x32xf32>
    %cst_125 = arith.constant 0.000000e+00 : f32
    %257 = vector.broadcast %cst_125 : f32 to vector<256x32xf32>
    %258 = arith.maximumf %256, %257 : vector<256x32xf32>
    %c0_126 = arith.constant 0 : index
    %c0_127 = arith.constant 0 : index
    %c0_128 = arith.constant 0 : index
    %259 = vector.load %arg9[%c0_126, %c0_127, %c0_128] : memref<1x256x32xf32, #tpu.memory_space<vmem>>, vector<1x256x32xf32>
    %260 = vector.shape_cast %259 : vector<1x256x32xf32> to vector<256x32xf32>
    %261 = vector.shape_cast %258 : vector<256x32xf32> to vector<1x256x32xf32>
    tpu.vector_store %arg9[%c0_126, %c0_127, %c0_128], %261 {strides = array<i32>} : memref<1x256x32xf32, #tpu.memory_space<vmem>>, vector<1x256x32xf32>,
    return
  }
  func.func @transform_0(%arg0: i32) -> (i32, i32, i32) {
    %c0_i32 = arith.constant 0 : i32
    %c0_i32_0 = arith.constant 0 : i32
    %c0_i32_1 = arith.constant 0 : i32
    return %arg0, %c0_i32, %c0_i32_0 : i32, i32, i32
  }
  func.func @transform_1(%arg0: i32) -> (i32, i32, i32) {
    %c0_i32 = arith.constant 0 : i32
    %c0_i32_0 = arith.constant 0 : i32
    %c0_i32_1 = arith.constant 0 : i32
    return %arg0, %c0_i32, %c0_i32_0 : i32, i32, i32
  }
  func.func @transform_2(%arg0: i32) -> (i32, i32, i32) {
    %c0_i32 = arith.constant 0 : i32
    %c0_i32_0 = arith.constant 0 : i32
    %c0_i32_1 = arith.constant 0 : i32
    %c0_i32_2 = arith.constant 0 : i32
    return %c0_i32, %c0_i32_0, %c0_i32_1 : i32, i32, i32
  }
  func.func @transform_3(%arg0: i32) -> (i32, i32, i32) {
    %c0_i32 = arith.constant 0 : i32
    %c0_i32_0 = arith.constant 0 : i32
    %c0_i32_1 = arith.constant 0 : i32
    %c0_i32_2 = arith.constant 0 : i32
    return %c0_i32, %c0_i32_0, %c0_i32_1 : i32, i32, i32
  }
  func.func @transform_4(%arg0: i32) -> (i32, i32) {
    %c0_i32 = arith.constant 0 : i32
    %c0_i32_0 = arith.constant 0 : i32
    %c0_i32_1 = arith.constant 0 : i32
    return %c0_i32, %c0_i32_0 : i32, i32
  }
  func.func @transform_5(%arg0: i32) -> (i32, i32) {
    %c0_i32 = arith.constant 0 : i32
    %c0_i32_0 = arith.constant 0 : i32
    %c0_i32_1 = arith.constant 0 : i32
    return %c0_i32, %c0_i32_0 : i32, i32
  }
  func.func @transform_6(%arg0: i32) -> (i32, i32) {
    %c0_i32 = arith.constant 0 : i32
    %c0_i32_0 = arith.constant 0 : i32
    %c0_i32_1 = arith.constant 0 : i32
    return %c0_i32, %c0_i32_0 : i32, i32
  }
  func.func @transform_7(%arg0: i32) -> (i32, i32) {
    %c0_i32 = arith.constant 0 : i32
    %c0_i32_0 = arith.constant 0 : i32
    %c0_i32_1 = arith.constant 0 : i32
    return %c0_i32, %c0_i32_0 : i32, i32
  }
  func.func @transform_8(%arg0: i32) -> (i32, i32, i32) {
    %c0_i32 = arith.constant 0 : i32
    %c0_i32_0 = arith.constant 0 : i32
    %c0_i32_1 = arith.constant 0 : i32
    return %arg0, %c0_i32, %c0_i32_0 : i32, i32, i32
  }
}

module attributes {stable_mosaic.version = 11 : i64} {
  func.func @_matmul_bias_kernel(%arg0: i32, %arg1: memref<256x32xf32, #tpu.memory_space<vmem>>, %arg2: memref<32x32xf32, #tpu.memory_space<vmem>>, %arg3: memref<1x32xf32, #tpu.memory_space<vmem>>, %arg4: memref<256x32xf32, #tpu.memory_space<vmem>>) attributes {dimension_semantics = [#tpu.dimension_semantics<parallel>], iteration_bounds = array<i64: 2>, scalar_prefetch = 0 : i64, scratch_operands = 0 : i64, tpu.core_type = #tpu.core_type<tc>, window_params = [{transform_indices = @transform_0, window_bounds = array<i64: 256, 32>}, {pipeline_mode = #tpu.pipeline_mode<synchronous>, transform_indices = @transform_1, window_bounds = array<i64: 32, 32>}, {pipeline_mode = #tpu.pipeline_mode<synchronous>, transform_indices = @transform_2, window_bounds = array<i64: 1, 32>}, {transform_indices = @transform_3, window_bounds = array<i64: 256, 32>}]} {
    %c0 = arith.constant 0 : index
    %c0_0 = arith.constant 0 : index
    %0 = vector.load %arg1[%c0, %c0_0] : memref<256x32xf32, #tpu.memory_space<vmem>>, vector<256x32xf32>
    %c0_1 = arith.constant 0 : index
    %c0_2 = arith.constant 0 : index
    %1 = vector.load %arg2[%c0_1, %c0_2] : memref<32x32xf32, #tpu.memory_space<vmem>>, vector<32x32xf32>
    %cst = arith.constant dense<0.000000e+00> : vector<256x32xf32>
    %2 = tpu.matmul %0, %1, %cst {dimension_numbers = #tpu.dot_dimension_numbers<[1], [0], [0], [1], [0, 0, 1, 1], [], []>} : vector<256x32xf32>, vector<32x32xf32>, vector<256x32xf32> -> vector<256x32xf32>
    %c0_3 = arith.constant 0 : index
    %c0_4 = arith.constant 0 : index
    %3 = vector.load %arg3[%c0_3, %c0_4] : memref<1x32xf32, #tpu.memory_space<vmem>>, vector<1x32xf32>
    %4 = vector.broadcast %3 : vector<1x32xf32> to vector<256x32xf32>
    %5 = arith.addf %2, %4 : vector<256x32xf32>
    %c0_5 = arith.constant 0 : index
    %c0_6 = arith.constant 0 : index
    %6 = vector.load %arg4[%c0_5, %c0_6] : memref<256x32xf32, #tpu.memory_space<vmem>>, vector<256x32xf32>
    tpu.vector_store %arg4[%c0_5, %c0_6], %5 {strides = array<i32>} : memref<256x32xf32, #tpu.memory_space<vmem>>, vector<256x32xf32>,
    return
  }
  func.func @transform_0(%arg0: i32) -> (i32, i32) {
    %c0_i32 = arith.constant 0 : i32
    %c0_i32_0 = arith.constant 0 : i32
    return %arg0, %c0_i32 : i32, i32
  }
  func.func @transform_1(%arg0: i32) -> (i32, i32) {
    %c0_i32 = arith.constant 0 : i32
    %c0_i32_0 = arith.constant 0 : i32
    %c0_i32_1 = arith.constant 0 : i32
    return %c0_i32, %c0_i32_0 : i32, i32
  }
  func.func @transform_2(%arg0: i32) -> (i32, i32) {
    %c0_i32 = arith.constant 0 : i32
    %c0_i32_0 = arith.constant 0 : i32
    %c0_i32_1 = arith.constant 0 : i32
    return %c0_i32, %c0_i32_0 : i32, i32
  }
  func.func @transform_3(%arg0: i32) -> (i32, i32) {
    %c0_i32 = arith.constant 0 : i32
    %c0_i32_0 = arith.constant 0 : i32
    return %arg0, %c0_i32 : i32, i32
  }
}

</mosaic_0001>

<bundles_post_ra>
// kernel: tile.33
= control target key start
LH: loop header
LB: loop body
LE: loop exit
PB: predicated region body
PF: predicated region fallthrough
CT: control target
= control target key end

     0   :  { %s22_s0 = inlined_call_operand.vmem [shape: f32[64], index: 0, kind: input, shape index: {}]   ;;  %s23_s1 = inlined_call_operand.vmem [shape: f32[2,64], index: 1, kind: output, shape index: {}]  }
   0x1   :  { %v4_v0 = vld [vmem:[%s22_s0] ss:$0 sm:$0xff] }
   0x2   :  { %5 = vst [vmem:[%s23_s1] sm:$0x3] %v4_v0 }

// kernel: tile.34
= control target key start
LH: loop header
LB: loop body
LE: loop exit
PB: predicated region body
PF: predicated region fallthrough
CT: control target
= control target key end

     0   :  { %vm8_vm0 = vcmask 523264   ;;  %vm14_vm1 = vcmask 1048064   ;;  %s42_s0 = inlined_call_operand.vmem [shape: f32[2,64], index: 0, kind: input, shape index: {}]   ;;  %s43_s1 = inlined_call_operand.vmem [shape: f32[1,128], index: 1, kind: output, shape index: {}]  }
   0x1   :  { %v5_v0 = vld [vmem:[%s42_s0] sm:$0x3]  ;;  %s25_s0 = smov 64  }
   0x2   :  { %6 = vst [vmem:[#allocation1] sm:$0x3] %v5_v0 }
   0x9   :  { %v11_v1 = vld [vmem:[#allocation1 + $0x1] sm:$0x1]   ;;  %v7_v2 = vld [vmem:[#allocation1] sm:$0x1]  }
   0xa   :  { %12 = vrot.lane.b32.xlu0 %v11_v1, %s25_s0  ;;  %9 = vst.msk [vmem:[#allocation0] sm:$0x1] %vm8_vm0, %v7_v2  }
  0x7c   :  { %v13_v3 = vpop.permute.xlu0 %12  }
  0x7d   :  { %15 = vst.msk [vmem:[#allocation0] sm:$0x1] %vm14_vm1, %v13_v3  }
  0x84   :  { %v20_v4 = vld [vmem:[#allocation0] sm:$0x1] }
  0x85   :  { %23 = vst [vmem:[%s43_s1] sm:$0x1] %v20_v4 }

// kernel: tile.48
= control target key start
LH: loop header
LB: loop body
LE: loop exit
PB: predicated region body
PF: predicated region fallthrough
CT: control target
= control target key end

     0   :  { %s22_s0 = inlined_call_operand.vmem [shape: f32[32], index: 0, kind: input, shape index: {}]   ;;  %s23_s1 = inlined_call_operand.vmem [shape: f32[2,32], index: 1, kind: output, shape index: {}]  }
   0x1   :  { %v4_v0 = vld [vmem:[%s22_s0] ss:$0 sm:$0xff] }
   0x2   :  { %5 = vst [vmem:[%s23_s1] sm:$0x3] %v4_v0 }

// kernel: tile.49
= control target key start
LH: loop header
LB: loop body
LE: loop exit
PB: predicated region body
PF: predicated region fallthrough
CT: control target
= control target key end

     0   :  { %vm8_vm0 = vcmask 261120   ;;  %vm14_vm1 = vcmask 523520   ;;  %s42_s0 = inlined_call_operand.vmem [shape: f32[2,32], index: 0, kind: input, shape index: {}]   ;;  %s43_s1 = inlined_call_operand.vmem [shape: f32[1,64], index: 1, kind: output, shape index: {}]  }
   0x1   :  { %v5_v0 = vld [vmem:[%s42_s0] sm:$0x3]  ;;  %s25_s0 = smov 32  }
   0x2   :  { %6 = vst [vmem:[#allocation1] sm:$0x3] %v5_v0 }
   0x9   :  { %v11_v1 = vld [vmem:[#allocation1 + $0x1] sm:$0x1]   ;;  %v7_v2 = vld [vmem:[#allocation1] sm:$0x1]  }
   0xa   :  { %12 = vrot.lane.b32.xlu0 %v11_v1, %s25_s0  ;;  %9 = vst.msk [vmem:[#allocation0] sm:$0x1] %vm8_vm0, %v7_v2  }
  0x7c   :  { %v13_v3 = vpop.permute.xlu0 %12  }
  0x7d   :  { %15 = vst.msk [vmem:[#allocation0] sm:$0x1] %vm14_vm1, %v13_v3  }
  0x84   :  { %v20_v4 = vld [vmem:[#allocation0] sm:$0x1] }
  0x85   :  { %23 = vst [vmem:[%s43_s1] sm:$0x1] %v20_v4 }

// kernel: conv_decoder_forward.5
= control target key start
LH: loop header
LB: loop body
LE: loop exit
PB: predicated region body
PF: predicated region fallthrough
CT: control target
= control target key end

     0   :  { %s1031_s21 = smov 0   ;;  %s1219_s0 = inlined_call_operand.vmem [shape: f32[2,16,96], index: 0, kind: input, shape index: {}]   ;;  %s1220_s1 = inlined_call_operand.vmem [shape: f32[2,96,128], index: 1, kind: input, shape index: {}]   ;;  %s1221_s2 = inlined_call_operand.vmem [shape: f32[1,128], index: 2, kind: input, shape index: {}]   ;;  %s1222_s3 = inlined_call_operand.vmem [shape: f32[1,128], index: 3, kind: input, shape index: {}]   ;;  %s1223_s4 = inlined_call_operand.vmem [shape: f32[1,128], index: 4, kind: input, shape index: {}]   ;;  %s1224_s5 = inlined_call_operand.vmem [shape: f32[128,128], index: 5, kind: input, shape index: {}]   ;;  %s1225_s6 = inlined_call_operand.vmem [shape: f32[2,4,2,4,128], index: 6, kind: output, shape index: {}]  }
   0x1 LB: > { %s752_s22 = sadd.s32 4294967295, %s992_s21   ;;  %p756_p0 = scmp.ge.s32.totalorder %s992_s21, 1  ;;  %s992_s21 = sphi %s1031_s21, %s16_s21  }
   0x2   : > { %p212_p1 = scmp.lt.s32.totalorder %s992_s21, 3 }
   0x4   : > { %p213_p2 = pnand %p756_p0, %p212_p1 }
   0x5   : > { %p242_p3 = scmp.lt.s32.totalorder (!%p213_p2), %s752_s22, 1 }
   0x6   : > { %216 = sbr.rel (%p213_p2) target bundleno = 689 (0x2b1), region = 44 }
   0xb   : > { %v265_v0 = vld [vmem:[%s1220_s1 + $0x58] sm:$0xff]  ;;  %v264_v2 = vld [vmem:[%s1220_s1 + $0x50] sm:$0xff]  ;;  %v263_v4 = vld [vmem:[%s1220_s1 + $0x48] sm:$0xff]  ;;  %s1227_s22 = smov (!%p242_p3, %s752_s22), 1  ;;  %vm273_vm0 = vcmask 785408   ;;  %v994_v27 = vmov 0.0  }
   0xc   : > { %v775_v1 = vld [vmem:[%s1220_s1 + $0xb8] sm:$0xff]  ;;  %850 = vmatprep.subr.mxu0 %v265_v0  ;;  %v774_v3 = vld [vmem:[%s1220_s1 + $0xb0] sm:$0xff]  ;;  %v773_v5 = vld [vmem:[%s1220_s1 + $0xa8] sm:$0xff]  ;;  %s786_s13 = sshll.u32 %s1227_s22, 4  ;;  %vm995_vm1 = vmmov 0   ;;  %s787_s25 = sshll.u32 %s1227_s22, 5 }
   0xd   : > { %877 = vmatprep.subr.mxu1 %v775_v1  ;;  %851 = vmatpush3.msra.mxu0 %v265_v0  ;;  %v262_v6 = vld [vmem:[%s1220_s1 + $0x40] sm:$0xff]  ;;  %v261_v8 = vld [vmem:[%s1220_s1 + $0x38] sm:$0xff]  ;;  %v260_v10 = vld [vmem:[%s1220_s1 + $0x30] sm:$0xff]  ;;  %s246_s26 = scalar_lea.vmem %s1219_s0, %s786_s13  ;;  %s251_s28 = scalar_lea.vmem %s1225_s6, %s787_s25 }
   0xe   : > { %878 = vmatpush3.msra.mxu1 %v775_v1  ;;  %852 = vmatprep.subr.mxu0 %v264_v2  ;;  %v772_v7 = vld [vmem:[%s1220_s1 + $0xa0] sm:$0xff]  ;;  %v771_v9 = vld [vmem:[%s1220_s1 + $0x98] sm:$0xff]  ;;  %v770_v11 = vld [vmem:[%s1220_s1 + $0x90] sm:$0xff] }
   0xf   : > { %879 = vmatprep.subr.mxu1 %v774_v3  ;;  %853 = vmatpush3.msra.mxu0 %v264_v2  ;;  %v259_v12 = vld [vmem:[%s1220_s1 + $0x28] sm:$0xff]  ;;  %v258_v14 = vld [vmem:[%s1220_s1 + $0x20] sm:$0xff]  ;;  %v257_v16 = vld [vmem:[%s1220_s1 + $0x18] sm:$0xff] }
  0x10   : > { %880 = vmatpush3.msra.mxu1 %v774_v3  ;;  %854 = vmatprep.subr.mxu0 %v263_v4  ;;  %v769_v13 = vld [vmem:[%s1220_s1 + $0x88] sm:$0xff]  ;;  %v768_v15 = vld [vmem:[%s1220_s1 + $0x80] sm:$0xff]  ;;  %v767_v17 = vld [vmem:[%s1220_s1 + $0x78] sm:$0xff]  ;;  %v544_v3 = vlaneseq }
  0x11   : > { %881 = vmatprep.subr.mxu1 %v773_v5  ;;  %855 = vmatpush3.msra.mxu0 %v263_v4  ;;  %v256_v18 = vld [vmem:[%s1220_s1 + $0x10] sm:$0xff]  ;;  %v255_v20 = vld [vmem:[%s1220_s1 + $0x8] sm:$0xff]  ;;  %v254_v22 = vld [vmem:[%s1220_s1] sm:$0xff] }
  0x12   : > { %882 = vmatpush3.msra.mxu1 %v773_v5  ;;  %856 = vmatprep.subr.mxu0 %v262_v6  ;;  %v766_v19 = vld [vmem:[%s1220_s1 + $0x70] sm:$0xff]  ;;  %v765_v21 = vld [vmem:[%s1220_s1 + $0x68] sm:$0xff]  ;;  %v764_v23 = vld [vmem:[%s1220_s1 + $0x60] sm:$0xff]  ;;  %v545_v4 = vshrl.u32 %v544_v3, 7 }
  0x13   : > { %883 = vmatprep.subr.mxu1 %v772_v7  ;;  %857 = vmatpush3.msra.mxu0 %v262_v6  ;;  %v252_v24 = vld [vmem:[%s246_s26] sm:$0xff]  ;;  %v253_v25 = vld [vmem:[%s246_s26 + $0x8] sm:$0xff]  ;;  %v473_v26 = vld [vmem:[%s1224_s5 + $0x78] sm:$0xff] }
  0x14   : > { %884 = vmatpush3.msra.mxu1 %v772_v7  ;;  %858 = vmatprep.subr.mxu0 %v261_v8  ;;  %v472_v28 = vld [vmem:[%s1224_s5 + $0x70] sm:$0xff]  ;;  %v471_v29 = vld [vmem:[%s1224_s5 + $0x68] sm:$0xff]  ;;  %v470_v30 = vld [vmem:[%s1224_s5 + $0x60] sm:$0xff]  ;;  %v546_v5 = vsub.s32 0, %v545_v4 }
  0x15   : > { %885 = vmatprep.subr.mxu1 %v771_v9  ;;  %859 = vmatpush3.msra.mxu0 %v261_v8  ;;  %v469_v31 = vld [vmem:[%s1224_s5 + $0x58] sm:$0xff]  ;;  %v468_v32 = vld [vmem:[%s1224_s5 + $0x50] sm:$0xff]  ;;  %v467_v33 = vld [vmem:[%s1224_s5 + $0x48] sm:$0xff] }
  0x16   : > { %886 = vmatpush3.msra.mxu1 %v771_v9  ;;  %860 = vmatprep.subr.mxu0 %v260_v10  ;;  %v466_v34 = vld [vmem:[%s1224_s5 + $0x40] sm:$0xff]  ;;  %v465_v35 = vld [vmem:[%s1224_s5 + $0x38] sm:$0xff]  ;;  %v464_v36 = vld [vmem:[%s1224_s5 + $0x30] sm:$0xff] }
  0x17   : > { %887 = vmatprep.subr.mxu1 %v770_v11  ;;  %861 = vmatpush3.msra.mxu0 %v260_v10  ;;  %v463_v37 = vld [vmem:[%s1224_s5 + $0x28] sm:$0xff]  ;;  %v462_v38 = vld [vmem:[%s1224_s5 + $0x20] sm:$0xff]  ;;  %v461_v39 = vld [vmem:[%s1224_s5 + $0x18] sm:$0xff] }
  0x18   : > { %888 = vmatpush3.msra.mxu1 %v770_v11  ;;  %862 = vmatprep.subr.mxu0 %v259_v12  ;;  %v460_v40 = vld [vmem:[%s1224_s5 + $0x10] sm:$0xff]  ;;  %v459_v41 = vld [vmem:[%s1224_s5 + $0x8] sm:$0xff]  ;;  %v458_v42 = vld [vmem:[%s1224_s5] sm:$0xff] }
  0x19   : > { %889 = vmatprep.subr.mxu1 %v769_v13  ;;  %863 = vmatpush3.msra.mxu0 %v259_v12  ;;  %v761_v44 = vld [vmem:[%s1221_s2] ss:$0 sm:$0xff] }
  0x1a   : > { %890 = vmatpush3.msra.mxu1 %v769_v13  ;;  %864 = vmatprep.subr.mxu0 %v258_v14 }
  0x1b   : > { %891 = vmatprep.subr.mxu1 %v768_v15  ;;  %865 = vmatpush3.msra.mxu0 %v258_v14 }
  0x1c   : > { %892 = vmatpush3.msra.mxu1 %v768_v15  ;;  %866 = vmatprep.subr.mxu0 %v257_v16 }
  0x1d   : > { %893 = vmatprep.subr.mxu1 %v767_v17  ;;  %867 = vmatpush3.msra.mxu0 %v257_v16 }
  0x1e   : > { %894 = vmatpush3.msra.mxu1 %v767_v17  ;;  %868 = vmatprep.subr.mxu0 %v256_v18 }
  0x1f   : > { %895 = vmatprep.subr.mxu1 %v766_v19  ;;  %869 = vmatpush3.msra.mxu0 %v256_v18 }
  0x20   : > { %896 = vmatpush3.msra.mxu1 %v766_v19  ;;  %870 = vmatprep.subr.mxu0 %v255_v20 }
  0x21   : > { %897 = vmatprep.subr.mxu1 %v765_v21  ;;  %871 = vmatpush3.msra.mxu0 %v255_v20 }
  0x22   : > { %898 = vmatpush3.msra.mxu1 %v765_v21  ;;  %872 = vmatprep.subr.mxu0 %v254_v22 }
  0x23   : > { %899 = vmatprep.subr.mxu1 %v764_v23  ;;  %873 = vmatpush3.msra.mxu0 %v254_v22 }
  0x24   : > { %874 = vmatprep.mubr.msk.f32.mxu0 %vm273_vm0, %v252_v24  ;;  %900 = vmatpush3.msra.mxu1 %v764_v23 }
  0x25   : > { %901 = vmatprep.mubr.msk.f32.mxu1 %vm273_vm0, %v252_v24  ;;  %875 = vmatmul.mubr.msk.f32.vlgmr.msra.gmra.mxu0 %vm273_vm0, %v253_v25 }
  0x26   : > { %902 = vmatmul.mubr.msk.f32.vlgmr.msra.gmra.mxu1 %vm273_vm0, %v253_v25  ;;  %904 = vmatprep.subr.mxu0 %v994_v27 }
  0x27   : > { %939 = vmatprep.subr.mxu1 %v994_v27  ;;  %905 = vmatpush3.msra.mxu0 %v473_v26 }
  0x28   : > { %940 = vmatpush3.msra.mxu1 %v473_v26  ;;  %906 = vmatprep.subr.mxu0 %v994_v27 }
  0x29   : > { %941 = vmatprep.subr.mxu1 %v994_v27  ;;  %907 = vmatpush3.msra.mxu0 %v472_v28 }
  0x2a   : > { %942 = vmatpush3.msra.mxu1 %v472_v28  ;;  %908 = vmatprep.subr.mxu0 %v994_v27 }
  0x2b   : > { %943 = vmatprep.subr.mxu1 %v994_v27  ;;  %909 = vmatpush3.msra.mxu0 %v471_v29 }
  0x2c   : > { %944 = vmatpush3.msra.mxu1 %v471_v29  ;;  %910 = vmatprep.subr.mxu0 %v994_v27 }
  0x2d   : > { %945 = vmatprep.subr.mxu1 %v994_v27  ;;  %911 = vmatpush3.msra.mxu0 %v470_v30 }
  0x2e   : > { %946 = vmatpush3.msra.mxu1 %v470_v30  ;;  %912 = vmatprep.subr.mxu0 %v994_v27 }
  0x2f   : > { %947 = vmatprep.subr.mxu1 %v994_v27  ;;  %913 = vmatpush3.msra.mxu0 %v469_v31 }
  0x30   : > { %948 = vmatpush3.msra.mxu1 %v469_v31  ;;  %914 = vmatprep.subr.mxu0 %v994_v27 }
  0x31   : > { %949 = vmatprep.subr.mxu1 %v994_v27  ;;  %915 = vmatpush3.msra.mxu0 %v468_v32 }
  0x32   : > { %950 = vmatpush3.msra.mxu1 %v468_v32  ;;  %916 = vmatprep.subr.mxu0 %v994_v27 }
  0x33   : > { %951 = vmatprep.subr.mxu1 %v994_v27  ;;  %917 = vmatpush3.msra.mxu0 %v467_v33 }
  0x34   : > { %952 = vmatpush3.msra.mxu1 %v467_v33  ;;  %918 = vmatprep.subr.mxu0 %v994_v27 }
  0x35   : > { %953 = vmatprep.subr.mxu1 %v994_v27  ;;  %919 = vmatpush3.msra.mxu0 %v466_v34 }
  0x36   : > { %954 = vmatpush3.msra.mxu1 %v466_v34  ;;  %920 = vmatprep.subr.mxu0 %v994_v27 }
  0x37   : > { %955 = vmatprep.subr.mxu1 %v994_v27  ;;  %921 = vmatpush3.msra.mxu0 %v465_v35 }
  0x38   : > { %956 = vmatpush3.msra.mxu1 %v465_v35  ;;  %922 = vmatprep.subr.mxu0 %v994_v27 }
  0x39   : > { %957 = vmatprep.subr.mxu1 %v994_v27  ;;  %923 = vmatpush3.msra.mxu0 %v464_v36 }
  0x3a   : > { %958 = vmatpush3.msra.mxu1 %v464_v36  ;;  %924 = vmatprep.subr.mxu0 %v994_v27 }
  0x3b   : > { %959 = vmatprep.subr.mxu1 %v994_v27  ;;  %925 = vmatpush3.msra.mxu0 %v463_v37 }
  0x3c   : > { %960 = vmatpush3.msra.mxu1 %v463_v37  ;;  %926 = vmatprep.subr.mxu0 %v994_v27  ;;  %v778_v37 = vld [vmem:[%s1222_s3] ss:$0 sm:$0xff] }
  0x3d   : > { %961 = vmatprep.subr.mxu1 %v994_v27  ;;  %927 = vmatpush3.msra.mxu0 %v462_v38 }
  0x3e   : > { %962 = vmatpush3.msra.mxu1 %v462_v38  ;;  %928 = vmatprep.subr.mxu0 %v994_v27 }
  0x3f   : > { %963 = vmatprep.subr.mxu1 %v994_v27  ;;  %929 = vmatpush3.msra.mxu0 %v461_v39 }
  0x40   : > { %964 = vmatpush3.msra.mxu1 %v461_v39  ;;  %930 = vmatprep.subr.mxu0 %v994_v27 }
  0x41   : > { %965 = vmatprep.subr.mxu1 %v994_v27  ;;  %931 = vmatpush3.msra.mxu0 %v460_v40 }
  0x42   : > { %966 = vmatpush3.msra.mxu1 %v460_v40  ;;  %932 = vmatprep.subr.mxu0 %v994_v27 }
  0x43   : > { %967 = vmatprep.subr.mxu1 %v994_v27  ;;  %933 = vmatpush3.msra.mxu0 %v459_v41 }
  0x44   : > { %936 = vmatprep.mubr.msk.f32.mxu0 %vm995_vm1, %v994_v27  ;;  %934 = vmatprep.subr.mxu0 %v994_v27 }
  0x45   : > { %968 = vmatpush3.msra.mxu1 %v459_v41  ;;  %935 = vmatpush3.msra.mxu0 %v458_v42 }
  0x46   : > { %969 = vmatprep.subr.mxu1 %v994_v27  ;;  %971 = vmatprep.mubr.msk.f32.mxu1 %vm995_vm1, %v994_v27 }
  0x47   : > { %970 = vmatpush3.msra.mxu1 %v458_v42  ;;  %v779_v42 = vld [vmem:[%s1223_s4] ss:$0 sm:$0xff] }
  0xe5   : > { %v876_v43 = vpop.f32.mrf.mxu0 }
  0xe6   : > { %v903_v45 = vpop.f32.mrf.mxu1  ;;  %v352_v48 = vadd.f32 %v876_v43, %v761_v44 }
  0xe7   : > { %v346_v46 = vpop.f32.mrf.mxu0  ;;  %v440_v49 = vadd.f32 %v903_v45, %v761_v44 }
  0xe8   : > { %v434_v47 = vpop.f32.mrf.mxu1  ;;  %v347_v50 = vadd.f32 %v761_v44, %v346_v46 }
  0xe9   : > { %v435_v51 = vadd.f32 %v761_v44, %v434_v47 }
  0xea   : > { %v443_v52 = vadd.f32 %v352_v48, %v347_v50 }
  0xeb   : > { %v450_v53 = vadd.f32 %v440_v49, %v435_v51 }
  0xec   : > { %v444_v54 = vrot.slane %v443_v52, 4 }
  0xed   : > { %v451_v55 = vrot.slane %v450_v53, 4 }
  0xee   : > { %v445_v56 = vadd.f32 %v444_v54, %v443_v52 }
  0xef   : > { %v452_v57 = vadd.f32 %v451_v55, %v450_v53 }
  0xf0   : > { %v446_v58 = vrot.slane %v445_v56, 2 }
  0xf1   : > { %v453_v59 = vrot.slane %v452_v57, 2 }
  0xf2   : > { %v447_v60 = vadd.f32 %v446_v58, %v445_v56 }
  0xf3   : > { %v454_v61 = vadd.f32 %v453_v59, %v452_v57 }
  0xf4   : > { %v448_v62 = vrot.slane %v447_v60, 1 }
  0xf5   : > { %v455_v63 = vrot.slane %v454_v61, 1 }
  0xf6   : > { %v449_v0 = vadd.f32 %v448_v62, %v447_v60 }
  0xf7   : > { %v456_v1 = vadd.f32 %v455_v63, %v454_v61 }
  0xf9   : > { %v457_v2 = vadd.f32 %v456_v1, %v449_v0 }
  0xfb   : > { %937 = vmatmul.mubr.f32.vlgmr.msra.gmra.mxu0 %v457_v2 }
 0x1bb   : > { %v540_v6 = vpop.f32.mrf.mxu0 }
 0x1bc   : > { %v547_v7 = vrot.slane %v540_v6, %v546_v5 }
 0x1bd   : > { %v938_v8 = vpop.f32.mrf.mxu0 }
 0x1be   : > { %v548_v9 = vsub.f32 %v347_v50, %v547_v7  ;;  %v549_v10 = vsub.f32 %v352_v48, %v547_v7  ;;  %v550_v11 = vsub.f32 %v435_v51, %v547_v7  ;;  %v551_v12 = vsub.f32 %v440_v49, %v547_v7 }
 0x1c0   : > { %v552_v13 = vmul.f32 %v548_v9, %v548_v9  ;;  %v553_v14 = vmul.f32 %v549_v10, %v549_v10  ;;  %v561_v15 = vmul.f32 %v550_v11, %v550_v11  ;;  %v562_v16 = vmul.f32 %v551_v12, %v551_v12 }
 0x1c2   : > { %v554_v17 = vadd.f32 %v553_v14, %v552_v13  ;;  %v563_v18 = vadd.f32 %v562_v16, %v561_v15 }
 0x1c4   : > { %v555_v19 = vrot.slane %v554_v17, 4  ;;  %v564_v20 = vrot.slane %v563_v18, 4 }
 0x1c6   : > { %v556_v21 = vadd.f32 %v555_v19, %v554_v17  ;;  %v565_v22 = vadd.f32 %v564_v20, %v563_v18 }
 0x1c8   : > { %v557_v23 = vrot.slane %v556_v21, 2  ;;  %v566_v24 = vrot.slane %v565_v22, 2 }
 0x1ca   : > { %v558_v25 = vadd.f32 %v557_v23, %v556_v21  ;;  %v567_v26 = vadd.f32 %v566_v24, %v565_v22 }
 0x1cc   : > { %v559_v27 = vrot.slane %v558_v25, 1  ;;  %v568_v28 = vrot.slane %v567_v26, 1 }
 0x1ce   : > { %v560_v29 = vadd.f32 %v559_v27, %v558_v25  ;;  %v569_v30 = vadd.f32 %v568_v28, %v567_v26 }
 0x1d0   : > { %v570_v31 = vadd.f32 %v569_v30, %v560_v29 }
 0x1d2   : > { %972 = vmatmul.mubr.f32.vlgmr.msra.gmra.mxu1 %v570_v31 }
 0x292   : > { %v637_v32 = vpop.f32.mrf.mxu1 }
 0x293   : > { %v638_v33 = vadd.f32 1e-05, %v637_v32 }
 0x294   : > { %v973_v34 = vpop.f32.mrf.mxu1 }
 0x295   : > { %984 = vrsqrt.f32 %v638_v33 }
 0x2a2   : > { %v985_v35 = vpop.eup %984 }
 0x2a3   : > { %v647_v36 = vrot.slane %v985_v35, %v546_v5 }
 0x2a5   : > { %v648_v38 = vmul.f32 %v647_v36, %v548_v9  ;;  %v649_v39 = vmul.f32 %v647_v36, %v549_v10  ;;  %v668_v40 = vmul.f32 %v647_v36, %v550_v11  ;;  %v669_v41 = vmul.f32 %v647_v36, %v551_v12 }
 0x2a7   : > { %v656_v43 = vmul.f32 %v778_v37, %v648_v38  ;;  %v657_v44 = vmul.f32 %v778_v37, %v649_v39  ;;  %v670_v45 = vmul.f32 %v778_v37, %v668_v40  ;;  %v671_v46 = vmul.f32 %v778_v37, %v669_v41 }
 0x2a9   : > { %v664_v47 = vadd.f32 %v779_v42, %v656_v43  ;;  %v665_v48 = vadd.f32 %v779_v42, %v657_v44  ;;  %v672_v49 = vadd.f32 %v779_v42, %v670_v45  ;;  %v673_v50 = vadd.f32 %v779_v42, %v671_v46 }
 0x2ab   : > { %v666_v51 = vmax.f32 %v664_v47, 0.0  ;;  %v667_v52 = vmax.f32 %v665_v48, 0.0  ;;  %v674_v53 = vmax.f32 %v672_v49, 0.0  ;;  %v675_v54 = vmax.f32 %v673_v50, 0.0 }
 0x2ad   : > { %v678_v55 = vcombine.high %v666_v51, %v666_v51  ;;  %v679_v56 = vcombine.high %v667_v52, %v667_v52  ;;  %682 = vst [vmem:[%s251_s28] sm:$0xf] %v666_v51  ;;  %684 = vst [vmem:[%s251_s28 + $0x10] sm:$0xf] %v667_v52  ;;  %v688_v57 = vcombine.high %v674_v53, %v674_v53 }
 0x2ae   : > { %v689_v58 = vcombine.high %v675_v54, %v675_v54  ;;  %780 = vst [vmem:[%s251_s28 + $0x4] sm:$0xf] %v674_v53  ;;  %782 = vst [vmem:[%s251_s28 + $0x14] sm:$0xf] %v675_v54 }
 0x2af   : > { %683 = vst [vmem:[%s251_s28 + $0x8] sm:$0xf] %v678_v55  ;;  %685 = vst [vmem:[%s251_s28 + $0x18] sm:$0xf] %v679_v56 }
 0x2b0   : > { %781 = vst [vmem:[%s251_s28 + $0xc] sm:$0xf] %v688_v57  ;;  %783 = vst [vmem:[%s251_s28 + $0x1c] sm:$0xf] %v689_v58 }
 0x2b1 PF: > { %s16_s21 = sadd.s32 1, %s992_s21  }
 0x2b2   : > { %p13_p4 = scmp.ge.s32.totalorder %s16_s21, 4  }
 0x2b4   :  { %15 = sbr.rel (!%p13_p4) target bundleno = 1 (0x1), region = 76 }

// kernel: conv_decoder_forward.7
= control target key start
LH: loop header
LB: loop body
LE: loop exit
PB: predicated region body
PF: predicated region fallthrough
CT: control target
= control target key end

     0   :  { %s1201_s21 = smov 0   ;;  %s1536_s0 = inlined_call_operand.vmem [shape: f32[2,64,64], index: 0, kind: input, shape index: {}]   ;;  %s1537_s1 = inlined_call_operand.vmem [shape: f32[2,64,64], index: 1, kind: input, shape index: {}]   ;;  %s1538_s2 = inlined_call_operand.vmem [shape: f32[1,64], index: 2, kind: input, shape index: {}]   ;;  %s1539_s3 = inlined_call_operand.vmem [shape: f32[1,64], index: 3, kind: input, shape index: {}]   ;;  %s1540_s4 = inlined_call_operand.vmem [shape: f32[1,64], index: 4, kind: input, shape index: {}]   ;;  %s1541_s5 = inlined_call_operand.vmem [shape: f32[64,64], index: 5, kind: input, shape index: {}]   ;;  %s1542_s6 = inlined_call_operand.vmem [shape: f32[2,8,2,8,64], index: 6, kind: output, shape index: {}]  }
   0x1 LB: > { %s950_s22 = sadd.s32 4294967295, %s1162_s21   ;;  %p954_p0 = scmp.ge.s32.totalorder %s1162_s21, 1  ;;  %s1162_s21 = sphi %s1201_s21, %s16_s21  }
   0x2   : > { %p212_p1 = scmp.lt.s32.totalorder %s1162_s21, 3 }
   0x4   : > { %p213_p2 = pnand %p954_p0, %p212_p1 }
   0x5   : > { %p242_p3 = scmp.lt.s32.totalorder (!%p213_p2), %s950_s22, 1 }
   0x6   : > { %216 = sbr.rel (%p213_p2) target bundleno = 721 (0x2d1), region = 44 }
   0xb   : > { %v267_v0 = vld [vmem:[%s1537_s1 + $0x38] sm:$0xff]  ;;  %v266_v2 = vld [vmem:[%s1537_s1 + $0x30] sm:$0xff]  ;;  %v265_v4 = vld [vmem:[%s1537_s1 + $0x28] sm:$0xff]  ;;  %s1544_s22 = smov (!%p242_p3, %s950_s22), 1  ;;  %vm275_vm0 = vcmask 523264   ;;  %v1164_v24 = vmov 0.0  }
   0xc   : > { %v975_v1 = vld [vmem:[%s1537_s1 + $0x78] sm:$0xff]  ;;  %1050 = vmatprep.subr.mxu0 %v267_v0  ;;  %v974_v3 = vld [vmem:[%s1537_s1 + $0x70] sm:$0xff]  ;;  %v973_v5 = vld [vmem:[%s1537_s1 + $0x68] sm:$0xff]  ;;  %s998_s19 = sshll.u32 %s1544_s22, 6  ;;  %vm1165_vm1 = vmmov 0   ;;  %s999_s13 = sshll.u32 %s1544_s22, 7 }
   0xd   : > { %1078 = vmatprep.subr.mxu1 %v975_v1  ;;  %1051 = vmatpush3.msra.mxu0 %v267_v0  ;;  %v264_v6 = vld [vmem:[%s1537_s1 + $0x20] sm:$0xff]  ;;  %v263_v8 = vld [vmem:[%s1537_s1 + $0x18] sm:$0xff]  ;;  %v262_v10 = vld [vmem:[%s1537_s1 + $0x10] sm:$0xff]  ;;  %s1257_s8 = scalar_lea.vmem %s1536_s0, %s998_s19  ;;  %s1491_s16 = scalar_lea.vmem %s1542_s6, %s999_s13 }
   0xe   : > { %1079 = vmatpush3.msra.mxu1 %v975_v1  ;;  %1052 = vmatprep.subr.mxu0 %v266_v2  ;;  %v972_v7 = vld [vmem:[%s1537_s1 + $0x60] sm:$0xff]  ;;  %v971_v9 = vld [vmem:[%s1537_s1 + $0x58] sm:$0xff]  ;;  %v970_v11 = vld [vmem:[%s1537_s1 + $0x50] sm:$0xff] }
   0xf   : > { %1080 = vmatprep.subr.mxu1 %v974_v3  ;;  %1053 = vmatpush3.msra.mxu0 %v266_v2  ;;  %v261_v12 = vld [vmem:[%s1537_s1 + $0x8] sm:$0xff]  ;;  %v260_v14 = vld [vmem:[%s1537_s1] sm:$0xff]  ;;  %v254_v18 = vld [vmem:[%s1257_s8 + $0x10] sm:$0xff] }
  0x10   : > { %1081 = vmatpush3.msra.mxu1 %v974_v3  ;;  %1054 = vmatprep.subr.mxu0 %v265_v4  ;;  %v969_v13 = vld [vmem:[%s1537_s1 + $0x48] sm:$0xff]  ;;  %v968_v15 = vld [vmem:[%s1537_s1 + $0x40] sm:$0xff]  ;;  %v255_v19 = vld [vmem:[%s1257_s8 + $0x18] sm:$0xff] }
  0x11   : > { %1082 = vmatprep.subr.mxu1 %v973_v5  ;;  %1055 = vmatpush3.msra.mxu0 %v265_v4  ;;  %v252_v16 = vld [vmem:[%s1257_s8] sm:$0xff]  ;;  %v253_v17 = vld [vmem:[%s1257_s8 + $0x8] sm:$0xff]  ;;  %v258_v22 = vld [vmem:[%s1257_s8 + $0x30] sm:$0xff] }
  0x12   : > { %1083 = vmatpush3.msra.mxu1 %v973_v5  ;;  %1056 = vmatprep.subr.mxu0 %v264_v6  ;;  %v256_v20 = vld [vmem:[%s1257_s8 + $0x20] sm:$0xff]  ;;  %v257_v21 = vld [vmem:[%s1257_s8 + $0x28] sm:$0xff]  ;;  %v259_v23 = vld [vmem:[%s1257_s8 + $0x38] sm:$0xff] }
  0x13   : > { %1084 = vmatprep.subr.mxu1 %v972_v7  ;;  %1057 = vmatpush3.msra.mxu0 %v264_v6  ;;  %v569_v25 = vld [vmem:[%s1541_s5 + $0x38] sm:$0xff]  ;;  %v568_v26 = vld [vmem:[%s1541_s5 + $0x30] sm:$0xff]  ;;  %v567_v27 = vld [vmem:[%s1541_s5 + $0x28] sm:$0xff] }
  0x14   : > { %1085 = vmatpush3.msra.mxu1 %v972_v7  ;;  %1058 = vmatprep.subr.mxu0 %v263_v8  ;;  %v566_v28 = vld [vmem:[%s1541_s5 + $0x20] sm:$0xff]  ;;  %v565_v29 = vld [vmem:[%s1541_s5 + $0x18] sm:$0xff]  ;;  %v564_v30 = vld [vmem:[%s1541_s5 + $0x10] sm:$0xff] }
  0x15   : > { %1086 = vmatprep.subr.mxu1 %v971_v9  ;;  %1059 = vmatpush3.msra.mxu0 %v263_v8  ;;  %v563_v31 = vld [vmem:[%s1541_s5 + $0x8] sm:$0xff]  ;;  %v562_v32 = vld [vmem:[%s1541_s5] sm:$0xff] }
  0x16   : > { %1087 = vmatpush3.msra.mxu1 %v971_v9  ;;  %1060 = vmatprep.subr.mxu0 %v262_v10  ;;  %v959_v33 = vld [vmem:[%s1538_s2] ss:$0 sm:$0xff] }
  0x17   : > { %1088 = vmatprep.subr.mxu1 %v970_v11  ;;  %1061 = vmatpush3.msra.mxu0 %v262_v10 }
  0x18   : > { %1089 = vmatpush3.msra.mxu1 %v970_v11  ;;  %1062 = vmatprep.subr.mxu0 %v261_v12 }
  0x19   : > { %1090 = vmatprep.subr.mxu1 %v969_v13  ;;  %1063 = vmatpush3.msra.mxu0 %v261_v12 }
  0x1a   : > { %1091 = vmatpush3.msra.mxu1 %v969_v13  ;;  %1064 = vmatprep.subr.mxu0 %v260_v14 }
  0x1b   : > { %1092 = vmatprep.subr.mxu1 %v968_v15  ;;  %1065 = vmatpush3.msra.mxu0 %v260_v14 }
  0x1c   : > { %1066 = vmatprep.mubr.msk.f32.mxu0 %vm275_vm0, %v252_v16  ;;  %1093 = vmatpush3.msra.mxu1 %v968_v15 }
  0x1d   : > { %1094 = vmatprep.mubr.msk.f32.mxu1 %vm275_vm0, %v252_v16  ;;  %1067 = vmatmul.mubr.msk.f32.vlgmr.msra.gmra.mxu0 %vm275_vm0, %v253_v17 }
  0x1e   : > { %1095 = vmatmul.mubr.msk.f32.vlgmr.msra.gmra.mxu1 %vm275_vm0, %v253_v17  ;;  %1069 = vmatprep.mubr.msk.f32.mxu0 %vm275_vm0, %v254_v18 }
  0x1f   : > { %1097 = vmatprep.mubr.msk.f32.mxu1 %vm275_vm0, %v254_v18  ;;  %1106 = vmatprep.subr.mxu0 %v1164_v24 }
  0x20   : > { %1125 = vmatprep.subr.mxu1 %v1164_v24  ;;  %1107 = vmatpush3.msra.mxu0 %v569_v25 }
  0x21   : > { %1070 = vmatmul.mubr.msk.f32.gmra.mxu0 %vm275_vm0, %v255_v19  ;;  %1126 = vmatpush3.msra.mxu1 %v569_v25 }
  0x22   : > { %1098 = vmatmul.mubr.msk.f32.gmra.mxu1 %vm275_vm0, %v255_v19  ;;  %1072 = vmatprep.mubr.msk.f32.mxu0 %vm275_vm0, %v256_v20 }
  0x23   : > { %1100 = vmatprep.mubr.msk.f32.mxu1 %vm275_vm0, %v256_v20  ;;  %1108 = vmatprep.subr.mxu0 %v1164_v24 }
  0x24   : > { %1127 = vmatprep.subr.mxu1 %v1164_v24  ;;  %1109 = vmatpush3.msra.mxu0 %v568_v26 }
  0x25   : > { %1073 = vmatmul.mubr.msk.f32.gmra.mxu0 %vm275_vm0, %v257_v21  ;;  %1128 = vmatpush3.msra.mxu1 %v568_v26 }
  0x26   : > { %1101 = vmatmul.mubr.msk.f32.gmra.mxu1 %vm275_vm0, %v257_v21  ;;  %1075 = vmatprep.mubr.msk.f32.mxu0 %vm275_vm0, %v258_v22 }
  0x27   : > { %1103 = vmatprep.mubr.msk.f32.mxu1 %vm275_vm0, %v258_v22  ;;  %1110 = vmatprep.subr.mxu0 %v1164_v24 }
  0x28   : > { %1129 = vmatprep.subr.mxu1 %v1164_v24  ;;  %1111 = vmatpush3.msra.mxu0 %v567_v27 }
  0x29   : > { %1076 = vmatmul.mubr.msk.f32.gmra.mxu0 %vm275_vm0, %v259_v23  ;;  %1130 = vmatpush3.msra.mxu1 %v567_v27 }
  0x2a   : > { %1104 = vmatmul.mubr.msk.f32.gmra.mxu1 %vm275_vm0, %v259_v23  ;;  %1112 = vmatprep.subr.mxu0 %v1164_v24 }
  0x2b   : > { %1131 = vmatprep.subr.mxu1 %v1164_v24  ;;  %1113 = vmatpush3.msra.mxu0 %v566_v28 }
  0x2c   : > { %1132 = vmatpush3.msra.mxu1 %v566_v28  ;;  %1114 = vmatprep.subr.mxu0 %v1164_v24 }
  0x2d   : > { %1133 = vmatprep.subr.mxu1 %v1164_v24  ;;  %1115 = vmatpush3.msra.mxu0 %v565_v29 }
  0x2e   : > { %1134 = vmatpush3.msra.mxu1 %v565_v29  ;;  %1116 = vmatprep.subr.mxu0 %v1164_v24 }
  0x2f   : > { %1135 = vmatprep.subr.mxu1 %v1164_v24  ;;  %1117 = vmatpush3.msra.mxu0 %v564_v30 }
  0x30   : > { %1136 = vmatpush3.msra.mxu1 %v564_v30  ;;  %1118 = vmatprep.subr.mxu0 %v1164_v24 }
  0x31   : > { %1137 = vmatprep.subr.mxu1 %v1164_v24  ;;  %1119 = vmatpush3.msra.mxu0 %v563_v31 }
  0x32   : > { %1138 = vmatpush3.msra.mxu1 %v563_v31  ;;  %1120 = vmatprep.subr.mxu0 %v1164_v24 }
  0x33   : > { %1139 = vmatprep.subr.mxu1 %v1164_v24  ;;  %1121 = vmatpush3.msra.mxu0 %v562_v32 }
  0x34   : > { %1122 = vmatprep.mubr.msk.f32.mxu0 %vm1165_vm1, %v1164_v24  ;;  %1140 = vmatpush3.msra.mxu1 %v562_v32 }
  0x35   : > { %1141 = vmatprep.mubr.msk.f32.mxu1 %vm1165_vm1, %v1164_v24 }
  0xdd   : > { %v1068_v34 = vpop.f32.mrf.mxu0 }
  0xde   : > { %v1096_v35 = vpop.f32.mrf.mxu1  ;;  %v1316_v36 = vadd.f32 %v1068_v34, %v959_v33 }
  0xdf   : > { %v1318_v37 = vadd.f32 %v1096_v35, %v959_v33  ;;  %v366_v38 = vpop.f32.mrf.mxu0 }
  0xe0   : > { %v480_v39 = vpop.f32.mrf.mxu1  ;;  %v1320_v40 = vadd.f32 %v959_v33, %v366_v38  ;;  %v520_v46 = vsel %vm275_vm0, %v1316_v36, 0.0 }
  0xe1   : > { %v1322_v41 = vadd.f32 %v959_v33, %v480_v39  ;;  %v1071_v42 = vpop.f32.mrf.mxu0  ;;  %v541_v47 = vsel %vm275_vm0, %v1318_v37, 0.0 }
  0xe2   : > { %v1099_v43 = vpop.f32.mrf.mxu1  ;;  %v519_v44 = vsel %vm275_vm0, %v1320_v40, 0.0  ;;  %v1332_v50 = vadd.f32 %v1071_v42, %v959_v33 }
  0xe3   : > { %v540_v45 = vsel %vm275_vm0, %v1322_v41, 0.0  ;;  %v376_v48 = vpop.f32.mrf.mxu0  ;;  %v1334_v51 = vadd.f32 %v1099_v43, %v959_v33  ;;  %v521_v54 = vadd.f32 %v520_v46, %v519_v44 }
  0xe4   : > { %v490_v49 = vpop.f32.mrf.mxu1  ;;  %v1336_v52 = vadd.f32 %v959_v33, %v376_v48  ;;  %v542_v55 = vadd.f32 %v541_v47, %v540_v45  ;;  %v524_v2 = vsel %vm275_vm0, %v1332_v50, 0.0 }
  0xe5   : > { %v1338_v53 = vadd.f32 %v959_v33, %v490_v49  ;;  %v1074_v56 = vpop.f32.mrf.mxu0  ;;  %v545_v3 = vsel %vm275_vm0, %v1334_v51, 0.0  ;;  %v643_v49 = vlaneseq }
  0xe6   : > { %v1102_v57 = vpop.f32.mrf.mxu1  ;;  %v522_v58 = vsel %vm275_vm0, %v1336_v52, 0.0  ;;  %v1344_v62 = vadd.f32 %v1074_v56, %v959_v33 }
  0xe7   : > { %v543_v59 = vsel %vm275_vm0, %v1338_v53, 0.0  ;;  %v523_v60 = vadd.f32 %v522_v58, %v521_v54  ;;  %v1346_v63 = vadd.f32 %v1102_v57, %v959_v33  ;;  %v386_v0 = vpop.f32.mrf.mxu0  ;;  %v1372_v54 = vshrl.u32 %v643_v49, 7 }
  0xe8   : > { %v544_v61 = vadd.f32 %v543_v59, %v542_v55  ;;  %v500_v1 = vpop.f32.mrf.mxu1  ;;  %v387_v4 = vadd.f32 %v959_v33, %v386_v0  ;;  %v528_v12 = vsel %vm275_vm0, %v1344_v62, 0.0 }
  0xe9   : > { %v1352_v5 = vadd.f32 %v959_v33, %v500_v1  ;;  %v525_v6 = vadd.f32 %v524_v2, %v523_v60  ;;  %v1077_v8 = vpop.f32.mrf.mxu0  ;;  %v549_v13 = vsel %vm275_vm0, %v1346_v63, 0.0  ;;  %v645_v55 = vsub.s32 0, %v1372_v54 }
  0xea   : > { %v546_v7 = vadd.f32 %v545_v3, %v544_v61  ;;  %v1105_v9 = vpop.f32.mrf.mxu1  ;;  %v526_v10 = vsel %vm275_vm0, %v387_v4, 0.0  ;;  %v402_v18 = vadd.f32 %v1077_v8, %v959_v33 }
  0xeb   : > { %v547_v11 = vsel %vm275_vm0, %v1352_v5, 0.0  ;;  %v527_v14 = vadd.f32 %v526_v10, %v525_v6  ;;  %v396_v16 = vpop.f32.mrf.mxu0  ;;  %v1361_v19 = vadd.f32 %v1105_v9, %v959_v33 }
  0xec   : > { %v548_v15 = vadd.f32 %v547_v11, %v546_v7  ;;  %v510_v17 = vpop.f32.mrf.mxu1  ;;  %v397_v20 = vadd.f32 %v959_v33, %v396_v16  ;;  %v532_v28 = vsel %vm275_vm0, %v402_v18, 0.0 }
  0xed   : > { %v1363_v21 = vadd.f32 %v959_v33, %v510_v17  ;;  %v529_v22 = vadd.f32 %v528_v12, %v527_v14  ;;  %v553_v29 = vsel %vm275_vm0, %v1361_v19, 0.0 }
  0xee   : > { %v550_v23 = vadd.f32 %v549_v13, %v548_v15  ;;  %v530_v24 = vsel %vm275_vm0, %v397_v20, 0.0 }
  0xef   : > { %v551_v25 = vsel %vm275_vm0, %v1363_v21, 0.0  ;;  %v531_v26 = vadd.f32 %v530_v24, %v529_v22 }
  0xf0   : > { %v552_v27 = vadd.f32 %v551_v25, %v550_v23 }
  0xf1   : > { %v533_v30 = vadd.f32 %v532_v28, %v531_v26 }
  0xf2   : > { %v554_v31 = vadd.f32 %v553_v29, %v552_v27 }
  0xf3   : > { %v534_v32 = vrot.slane %v533_v30, 4 }
  0xf4   : > { %v555_v34 = vrot.slane %v554_v31, 4 }
  0xf5   : > { %v535_v33 = vadd.f32 %v534_v32, %v533_v30 }
  0xf6   : > { %v556_v35 = vadd.f32 %v555_v34, %v554_v31 }
  0xf7   : > { %v536_v38 = vrot.slane %v535_v33, 2 }
  0xf8   : > { %v557_v39 = vrot.slane %v556_v35, 2 }
  0xf9   : > { %v537_v42 = vadd.f32 %v536_v38, %v535_v33 }
  0xfa   : > { %v558_v43 = vadd.f32 %v557_v39, %v556_v35 }
  0xfb   : > { %v538_v44 = vrot.slane %v537_v42, 1 }
  0xfc   : > { %v559_v45 = vrot.slane %v558_v43, 1 }
  0xfd   : > { %v539_v46 = vadd.f32 %v538_v44, %v537_v42 }
  0xfe   : > { %v560_v47 = vadd.f32 %v559_v45, %v558_v43 }
 0x100   : > { %v561_v48 = vadd.f32 %v560_v47, %v539_v46 }
 0x102   : > { %1123 = vmatmul.mubr.msk.f32.vlgmr.msra.gmra.mxu0 %vm275_vm0, %v561_v48 }
 0x1c2   : > { %v639_v56 = vpop.f32.mrf.mxu0 }
 0x1c3   : > { %v646_v57 = vrot.slane %v639_v56, %v645_v55 }
 0x1c4   : > { %v1124_v58 = vpop.f32.mrf.mxu0 }
 0x1c5   : > { %v1378_v59 = vsub.f32 %v1320_v40, %v646_v57  ;;  %v1381_v60 = vsub.f32 %v1316_v36, %v646_v57  ;;  %v1384_v61 = vsub.f32 %v1336_v52, %v646_v57  ;;  %v1387_v0 = vsub.f32 %v1332_v50, %v646_v57 }
 0x1c6   : > { %v1389_v1 = vsub.f32 %v387_v4, %v646_v57  ;;  %v1392_v2 = vsub.f32 %v1322_v41, %v646_v57  ;;  %v1395_v3 = vsub.f32 %v1318_v37, %v646_v57  ;;  %v1398_v40 = vsub.f32 %v1338_v53, %v646_v57 }
 0x1c7   : > { %v663_v36 = vmul.f32 %v1378_v59, %v1378_v59  ;;  %v664_v52 = vmul.f32 %v1381_v60, %v1381_v60  ;;  %v665_v50 = vmul.f32 %v1384_v61, %v1384_v61  ;;  %v1407_v4 = vsub.f32 %v1344_v62, %v646_v57 }
 0x1c8   : > { %v1410_v41 = vsub.f32 %v1334_v51, %v646_v57  ;;  %v666_v37 = vmul.f32 %v1387_v0, %v1387_v0  ;;  %v1416_v7 = vsub.f32 %v397_v20, %v646_v57  ;;  %v1419_v8 = vsub.f32 %v1352_v5, %v646_v57 }
 0x1c9   : > { %v671_v53 = vsel %vm275_vm0, %v663_v36, 0.0  ;;  %v672_v6 = vsel %vm275_vm0, %v664_v52, 0.0  ;;  %v667_v9 = vmul.f32 %v1389_v1, %v1389_v1  ;;  %v674_v10 = vsel %vm275_vm0, %v665_v50, 0.0 }
 0x1ca   : > { %v673_v62 = vadd.f32 %v672_v6, %v671_v53  ;;  %v692_v51 = vmul.f32 %v1392_v2, %v1392_v2  ;;  %v693_v11 = vmul.f32 %v1395_v3, %v1395_v3  ;;  %v694_v12 = vmul.f32 %v1398_v40, %v1398_v40 }
 0x1cb   : > { %v1430_v13 = vsub.f32 %v402_v18, %v646_v57  ;;  %v1433_v5 = vsub.f32 %v1346_v63, %v646_v57  ;;  %v668_v14 = vmul.f32 %v1407_v4, %v1407_v4  ;;  %v676_v16 = vsel %vm275_vm0, %v666_v37, 0.0 }
 0x1cc   : > { %v675_v15 = vadd.f32 %v674_v10, %v673_v62  ;;  %v695_v17 = vmul.f32 %v1410_v41, %v1410_v41  ;;  %v700_v20 = vsel %vm275_vm0, %v692_v51, 0.0  ;;  %v701_v22 = vsel %vm275_vm0, %v693_v11, 0.0 }
 0x1cd   : > { %v1443_v23 = vsub.f32 %v1363_v21, %v646_v57  ;;  %v702_v24 = vadd.f32 %v701_v22, %v700_v20  ;;  %v669_v63 = vmul.f32 %v1416_v7, %v1416_v7  ;;  %v678_v25 = vsel %vm275_vm0, %v667_v9, 0.0 }
 0x1ce   : > { %v677_v18 = vadd.f32 %v676_v16, %v675_v15  ;;  %v696_v26 = vmul.f32 %v1419_v8, %v1419_v8  ;;  %v703_v27 = vsel %vm275_vm0, %v694_v12, 0.0  ;;  %v1452_v28 = vsub.f32 %v1361_v19, %v646_v57 }
 0x1cf   : > { %v704_v30 = vadd.f32 %v703_v27, %v702_v24  ;;  %v670_v21 = vmul.f32 %v1430_v13, %v1430_v13  ;;  %v680_v31 = vsel %vm275_vm0, %v668_v14, 0.0  ;;  %v697_v32 = vmul.f32 %v1433_v5, %v1433_v5  ;;  %v987_v27 = vld [vmem:[%s1540_s4] ss:$0 sm:$0xff] }
 0x1d0   : > { %v679_v29 = vadd.f32 %v678_v25, %v677_v18  ;;  %v705_v34 = vsel %vm275_vm0, %v695_v17, 0.0  ;;  %v682_v38 = vsel %vm275_vm0, %v669_v63, 0.0  ;;  %v698_v19 = vmul.f32 %v1443_v23, %v1443_v23  ;;  %v986_v18 = vld [vmem:[%s1539_s3] ss:$0 sm:$0xff] }
 0x1d1   : > { %v706_v35 = vadd.f32 %v705_v34, %v704_v30  ;;  %v707_v39 = vsel %vm275_vm0, %v696_v26, 0.0  ;;  %v684_v44 = vsel %vm275_vm0, %v670_v21, 0.0  ;;  %v699_v45 = vmul.f32 %v1452_v28, %v1452_v28 }
 0x1d2   : > { %v681_v33 = vadd.f32 %v680_v31, %v679_v29  ;;  %v709_v46 = vsel %vm275_vm0, %v697_v32, 0.0  ;;  %v711_v49 = vsel %vm275_vm0, %v698_v19, 0.0 }
 0x1d3   : > { %v708_v43 = vadd.f32 %v707_v39, %v706_v35  ;;  %v713_v58 = vsel %vm275_vm0, %v699_v45, 0.0 }
 0x1d4   : > { %v683_v42 = vadd.f32 %v682_v38, %v681_v33 }
 0x1d5   : > { %v710_v48 = vadd.f32 %v709_v46, %v708_v43 }
 0x1d6   : > { %v685_v47 = vadd.f32 %v684_v44, %v683_v42 }
 0x1d7   : > { %v712_v57 = vadd.f32 %v711_v49, %v710_v48 }
 0x1d8   : > { %v686_v56 = vrot.slane %v685_v47, 4 }
 0x1d9   : > { %v714_v52 = vadd.f32 %v713_v58, %v712_v57 }
 0x1da   : > { %v687_v36 = vadd.f32 %v686_v56, %v685_v47 }
 0x1db   : > { %v715_v37 = vrot.slane %v714_v52, 4 }
 0x1dc   : > { %v688_v50 = vrot.slane %v687_v36, 2 }
 0x1dd   : > { %v716_v6 = vadd.f32 %v715_v37, %v714_v52 }
 0x1de   : > { %v689_v53 = vadd.f32 %v688_v50, %v687_v36 }
 0x1df   : > { %v717_v62 = vrot.slane %v716_v6, 2 }
 0x1e0   : > { %v690_v9 = vrot.slane %v689_v53, 1 }
 0x1e1   : > { %v718_v10 = vadd.f32 %v717_v62, %v716_v6 }
 0x1e2   : > { %v691_v51 = vadd.f32 %v690_v9, %v689_v53 }
 0x1e3   : > { %v719_v11 = vrot.slane %v718_v10, 1 }
 0x1e5   : > { %v720_v12 = vadd.f32 %v719_v11, %v718_v10 }
 0x1e7   : > { %v721_v14 = vadd.f32 %v720_v12, %v691_v51 }
 0x1e9   : > { %1142 = vmatmul.mubr.msk.f32.vlgmr.msra.gmra.mxu1 %vm275_vm0, %v721_v14 }
 0x2a9   : > { %v791_v15 = vpop.f32.mrf.mxu1 }
 0x2aa   : > { %v792_v16 = vadd.f32 1e-05, %v791_v15 }
 0x2ab   : > { %v1143_v17 = vpop.f32.mrf.mxu1 }
 0x2ac   : > { %1154 = vrsqrt.f32 %v792_v16 }
 0x2b9   : > { %v1155_v20 = vpop.eup %1154 }
 0x2ba   : > { %v801_v22 = vrot.slane %v1155_v20, %v645_v55 }
 0x2bc   : > { %v802_v24 = vmul.f32 %v801_v22, %v1378_v59  ;;  %v803_v63 = vmul.f32 %v801_v22, %v1381_v60  ;;  %v804_v25 = vmul.f32 %v801_v22, %v1384_v61  ;;  %v805_v26 = vmul.f32 %v801_v22, %v1387_v0 }
 0x2bd   : > { %v806_v29 = vmul.f32 %v801_v22, %v1389_v1  ;;  %v807_v54 = vmul.f32 %v801_v22, %v1407_v4  ;;  %v808_v55 = vmul.f32 %v801_v22, %v1416_v7  ;;  %v809_v30 = vmul.f32 %v801_v22, %v1430_v13 }
 0x2be   : > { %v816_v59 = vmul.f32 %v986_v18, %v802_v24  ;;  %v817_v21 = vmul.f32 %v986_v18, %v803_v63  ;;  %v818_v60 = vmul.f32 %v986_v18, %v804_v25  ;;  %v819_v31 = vmul.f32 %v986_v18, %v805_v26 }
 0x2bf   : > { %v820_v61 = vmul.f32 %v986_v18, %v806_v29  ;;  %v821_v32 = vmul.f32 %v986_v18, %v807_v54  ;;  %v822_v0 = vmul.f32 %v986_v18, %v808_v55  ;;  %v823_v34 = vmul.f32 %v986_v18, %v809_v30 }
 0x2c0   : > { %v830_v33 = vadd.f32 %v987_v27, %v816_v59  ;;  %v831_v35 = vadd.f32 %v987_v27, %v817_v21  ;;  %v832_v38 = vadd.f32 %v987_v27, %v818_v60  ;;  %v833_v19 = vadd.f32 %v987_v27, %v819_v31 }
 0x2c1   : > { %v834_v1 = vadd.f32 %v987_v27, %v820_v61  ;;  %v835_v4 = vadd.f32 %v987_v27, %v821_v32  ;;  %v836_v7 = vadd.f32 %v987_v27, %v822_v0  ;;  %v837_v13 = vadd.f32 %v987_v27, %v823_v34 }
 0x2c2   : > { %v838_v39 = vmax.f32 %v830_v33, 0.0  ;;  %v839_v42 = vmax.f32 %v831_v35, 0.0  ;;  %v840_v43 = vmax.f32 %v832_v38, 0.0  ;;  %v841_v44 = vmax.f32 %v833_v19, 0.0 }
 0x2c3   : > { %v842_v45 = vmax.f32 %v834_v1, 0.0  ;;  %v843_v46 = vmax.f32 %v835_v4, 0.0  ;;  %v844_v47 = vmax.f32 %v836_v7, 0.0  ;;  %v845_v48 = vmax.f32 %v837_v13, 0.0 }
 0x2c4   : > { %v846_v49 = vmul.f32 %v801_v22, %v1392_v2  ;;  %v847_v56 = vmul.f32 %v801_v22, %v1395_v3  ;;  %v848_v57 = vmul.f32 %v801_v22, %v1398_v40  ;;  %v849_v58 = vmul.f32 %v801_v22, %v1410_v41  ;;  %878 = vst.msk [vmem:[%s1491_s16] sm:$0xff] %vm275_vm0, %v838_v39 }
 0x2c5   : > { %879 = vst.msk [vmem:[%s1491_s16 + $0x10] sm:$0xff] %vm275_vm0, %v839_v42  ;;  %880 = vst.msk [vmem:[%s1491_s16 + $0x20] sm:$0xff] %vm275_vm0, %v840_v43  ;;  %v850_v36 = vmul.f32 %v801_v22, %v1419_v8  ;;  %v851_v52 = vmul.f32 %v801_v22, %v1433_v5  ;;  %v852_v2 = vmul.f32 %v801_v22, %v1443_v23 }
 0x2c6   : > { %881 = vst.msk [vmem:[%s1491_s16 + $0x30] sm:$0xff] %vm275_vm0, %v841_v44  ;;  %v853_v3 = vmul.f32 %v801_v22, %v1452_v28  ;;  %882 = vst.msk [vmem:[%s1491_s16 + $0x40] sm:$0xff] %vm275_vm0, %v842_v45  ;;  %v854_v40 = vmul.f32 %v986_v18, %v846_v49  ;;  %v855_v41 = vmul.f32 %v986_v18, %v847_v56 }
 0x2c7   : > { %883 = vst.msk [vmem:[%s1491_s16 + $0x50] sm:$0xff] %vm275_vm0, %v843_v46  ;;  %884 = vst.msk [vmem:[%s1491_s16 + $0x60] sm:$0xff] %vm275_vm0, %v844_v47  ;;  %v856_v50 = vmul.f32 %v986_v18, %v848_v57  ;;  %v857_v37 = vmul.f32 %v986_v18, %v849_v58  ;;  %v858_v53 = vmul.f32 %v986_v18, %v850_v36 }
 0x2c8   : > { %885 = vst.msk [vmem:[%s1491_s16 + $0x70] sm:$0xff] %vm275_vm0, %v845_v48  ;;  %v859_v8 = vmul.f32 %v986_v18, %v851_v52  ;;  %v860_v6 = vmul.f32 %v986_v18, %v852_v2  ;;  %v861_v5 = vmul.f32 %v986_v18, %v853_v3  ;;  %v862_v9 = vadd.f32 %v987_v27, %v854_v40 }
 0x2c9   : > { %v863_v23 = vadd.f32 %v987_v27, %v855_v41  ;;  %v864_v28 = vadd.f32 %v987_v27, %v856_v50  ;;  %v865_v62 = vadd.f32 %v987_v27, %v857_v37  ;;  %v866_v10 = vadd.f32 %v987_v27, %v858_v53 }
 0x2ca   : > { %v867_v51 = vadd.f32 %v987_v27, %v859_v8  ;;  %v868_v11 = vadd.f32 %v987_v27, %v860_v6  ;;  %v869_v12 = vadd.f32 %v987_v27, %v861_v5  ;;  %v870_v14 = vmax.f32 %v862_v9, 0.0 }
 0x2cb   : > { %v871_v15 = vmax.f32 %v863_v23, 0.0  ;;  %v872_v16 = vmax.f32 %v864_v28, 0.0  ;;  %v873_v17 = vmax.f32 %v865_v62, 0.0  ;;  %v874_v20 = vmax.f32 %v866_v10, 0.0 }
 0x2cc   : > { %v875_v22 = vmax.f32 %v867_v51, 0.0  ;;  %v876_v18 = vmax.f32 %v868_v11, 0.0  ;;  %v877_v24 = vmax.f32 %v869_v12, 0.0  ;;  %988 = vst.msk [vmem:[%s1491_s16 + $0x8] sm:$0xff] %vm275_vm0, %v870_v14 }
 0x2cd   : > { %989 = vst.msk [vmem:[%s1491_s16 + $0x18] sm:$0xff] %vm275_vm0, %v871_v15  ;;  %990 = vst.msk [vmem:[%s1491_s16 + $0x28] sm:$0xff] %vm275_vm0, %v872_v16 }
 0x2ce   : > { %991 = vst.msk [vmem:[%s1491_s16 + $0x38] sm:$0xff] %vm275_vm0, %v873_v17  ;;  %992 = vst.msk [vmem:[%s1491_s16 + $0x48] sm:$0xff] %vm275_vm0, %v874_v20 }
 0x2cf   : > { %993 = vst.msk [vmem:[%s1491_s16 + $0x58] sm:$0xff] %vm275_vm0, %v875_v22  ;;  %994 = vst.msk [vmem:[%s1491_s16 + $0x68] sm:$0xff] %vm275_vm0, %v876_v18 }
 0x2d0   : > { %995 = vst.msk [vmem:[%s1491_s16 + $0x78] sm:$0xff] %vm275_vm0, %v877_v24 }
 0x2d1 PF: > { %s16_s21 = sadd.s32 1, %s1162_s21  }
 0x2d2   : > { %p13_p4 = scmp.ge.s32.totalorder %s16_s21, 4  }
 0x2d4   :  { %15 = sbr.rel (!%p13_p4) target bundleno = 1 (0x1), region = 76 }

// kernel: conv_decoder_forward.9
= control target key start
LH: loop header
LB: loop body
LE: loop exit
PB: predicated region body
PF: predicated region fallthrough
CT: control target
= control target key end

     0   :  { %8 = vsyncpa [#allocation3], 0  ;;  %s1204_s0 = inlined_call_operand.vmem [shape: f32[512,32], index: 0, kind: input, shape index: {}]   ;;  %s1205_s1 = inlined_call_operand.vmem [shape: f32[32,32], index: 1, kind: input, shape index: {}]   ;;  %s1206_s2 = inlined_call_operand.vmem [shape: f32[1,32], index: 2, kind: input, shape index: {}]   ;;  %s1207_s3 = inlined_call_operand.hbm [shape: f32[512,32], index: 3, kind: output, shape index: {}]  }
   0x1   :  { %10 = vsyncpa [#allocation3 + $0x1], 0  ;;  %s917_s12 = smov 0   ;;  %s919_s13 = smov 0  }
   0x2   :  { %s921_s14 = smov 0   ;;  %s923_s15 = smov 0  }
   0x3 LB: > { %s938_s16 = sadd.s32 4294967295, %s892_s15   ;;  %s645_s17 = sadd.s32 4294967294, %s892_s15   ;;  %s892_s15 = sphi %s923_s15, %s1213_s15   ;;  %s888_s14 = sphi %s921_s14, %s1212_s14   ;;  %s884_s13 = sphi %s919_s13, %s1211_s13   ;;  %s880_s12 = sphi %s917_s12, %s1210_s12  }
   0x4   : > { %s942_s18 = sadd.s32 1, %s892_s15   ;;  %s91_s19 = sadd.s32 1, %s888_s14 }
   0x5   : > { %s88_s20 = ssub.s32 %s892_s15, %s942_s18  ;;  %p101_p0 = scmp.ne.s32.totalorder %s888_s14, %s884_s13 }
   0x6   : > { %p89_p1 = scmp.eq.s32.totalorder %s88_s20, 0  ;;  %p102_p2 = scmp.eq.s32.totalorder %s938_s16, 1 }
   0x7   : > { %p107_p3 = scmp.ne.s32.totalorder %s884_s13, %s880_s12  ;;  %p108_p4 = scmp.eq.s32.totalorder %s645_s17, 1 }
   0x8   : > { %s953_s21 = scalar_select %p89_p1, %s888_s14, %s91_s19  }
   0x9   : > { %p955_p5 = por %p102_p2, %p101_p0  ;;  %p959_p6 = por %p108_p4, %p107_p3 }
   0xa   : > { %p648_p7 = scmp.ge.s32.totalorder %s892_s15, 1  ;;  %p141_p8 = scmp.lt.s32.totalorder %s892_s15, 3 }
   0xc   : > { %p142_p9 = pnand %p648_p7, %p141_p8 }
   0xd   : > { %s650_s28 = sshll.u32 (!%p142_p9), %s938_s16, 5  ;;  %s162_s10 = sand.u32 (!%p142_p9), 1, %s884_s13  }
   0xe   : > { %145 = sbr.rel (%p142_p9) target bundleno = 268 (0x10c), region = 32  ;;  %p166_p10 = scmp.lt.s32.totalorder (!%p142_p9), %s650_s28, 63 }
   0xf   : > { %s649_s11 = sshll.u32 (!%p142_p9), %s162_s10, 8  ;;  %s690_s24 = sshll.u32 (!%p142_p9), %s938_s16, 12 }
  0x10   : > { %s1057_s20 = scalar_lea.vmem (!%p142_p9), [#allocation2], %s649_s11  ;;  %s1148_s16 = scalar_lea.hbm (!%p142_p9), %s1207_s3, %s690_s24 }
  0x11   : > { %s583_s25 = sshll.u32 (!%p142_p9), %s1057_s20, 4  ;;  %s894_s30 = smov (!%p142_p9), [#allocation2]   ;;  %s1150_s25 = int_to_ptr.vmem [resolvable:$true] %s583_s25 }
  0x12   : > { %s832_s29 = scalar_lea.vmem (!%p142_p9), %s1150_s25, 4096  ;;  %s836_s4 = sshll.u32 (!%p142_p9), %s894_s30, 4  ;;  %s837_s4 = int_to_ptr.vmem [resolvable:$false] %s836_s4 }
  0x13   : > { %v207_v0 = vld [vmem:[%s1205_s1 + $0x18] sm:$0xff]  ;;  %v206_v1 = vld [vmem:[%s1205_s1 + $0x10] sm:$0xff]  ;;  %v205_v2 = vld [vmem:[%s1205_s1 + $0x8] sm:$0xff]  ;;  %s1215_s28 = smov (!%p166_p10, %s650_s28), 63  ;;  %vm215_vm0 = vcmask 261120   ;;  %p833_p11 = scmp.ne.s32.totalorder %s1150_s25, %s832_s29 }
  0x14   : > { %727 = vmatprep.subr.mxu0 %v207_v0  ;;  %783 = vmatprep.subr.mxu1 %v207_v0  ;;  %v204_v3 = vld [vmem:[%s1205_s1] sm:$0xff]  ;;  %s651_s6 = sshll.u32 %s1215_s28, 3  ;;  %s1164_s28 = scalar_lea.sflag [#allocation3], %s162_s10 }
  0x15   : > { %728 = vmatpush3.msra.mxu0 %v207_v0  ;;  %787 = vmatpush3.msra.mxu1 %v207_v0  ;;  %s981_s9 = scalar_lea.vmem %s1204_s0, %s651_s6  ;;  %v1053_v36 = vld [vmem:[%s1206_s2] ss:$0 sm:$0xff]  ;;  %p834_p12 = pnand %p833_p11, %p955_p5 }
  0x16   : > { %729 = vmatprep.subr.mxu0 %v206_v1  ;;  %784 = vmatprep.subr.mxu1 %v206_v1  ;;  %v172_v4 = vld [vmem:[%s981_s9] sm:$0xff]  ;;  %v173_v6 = vld [vmem:[%s981_s9 + $0x8] sm:$0xff]  ;;  %v174_v8 = vld [vmem:[%s981_s9 + $0x10] sm:$0xff]  ;;  %s838_s5 = scalar_lea.vmem %s837_s4, 8192  ;;  %p839_p0 = scmp.lt.s32.totalorder %s1150_s25, %s837_s4 }
  0x17   : > { %730 = vmatpush3.msra.mxu0 %v206_v1  ;;  %788 = vmatpush3.msra.mxu1 %v206_v1  ;;  %v188_v5 = vld [vmem:[%s981_s9 + $0x80] sm:$0xff]  ;;  %v189_v7 = vld [vmem:[%s981_s9 + $0x88] sm:$0xff]  ;;  %v190_v9 = vld [vmem:[%s981_s9 + $0x90] sm:$0xff]  ;;  %p835_p13 = pneg %p834_p12  ;;  %p840_p1 = scmp.lt.s32.totalorder %s838_s5, %s832_s29 }
  0x18   : > { %731 = vmatprep.subr.mxu0 %v205_v2  ;;  %785 = vmatprep.subr.mxu1 %v205_v2  ;;  %v175_v10 = vld [vmem:[%s981_s9 + $0x18] sm:$0xff]  ;;  %v176_v12 = vld [vmem:[%s981_s9 + $0x20] sm:$0xff]  ;;  %v177_v14 = vld [vmem:[%s981_s9 + $0x28] sm:$0xff] }
  0x19   : > { %732 = vmatpush3.msra.mxu0 %v205_v2  ;;  %789 = vmatpush3.msra.mxu1 %v205_v2  ;;  %v191_v11 = vld [vmem:[%s981_s9 + $0x98] sm:$0xff]  ;;  %v192_v13 = vld [vmem:[%s981_s9 + $0xa0] sm:$0xff]  ;;  %v193_v15 = vld [vmem:[%s981_s9 + $0xa8] sm:$0xff]  ;;  %p841_p2 = por %p840_p1, %p839_p0 }
  0x1a   : > { %733 = vmatprep.subr.mxu0 %v204_v3  ;;  %786 = vmatprep.subr.mxu1 %v204_v3  ;;  %v178_v16 = vld [vmem:[%s981_s9 + $0x30] sm:$0xff]  ;;  %v179_v18 = vld [vmem:[%s981_s9 + $0x38] sm:$0xff]  ;;  %v180_v20 = vld [vmem:[%s981_s9 + $0x40] sm:$0xff] }
  0x1b   : > { %734 = vmatpush3.msra.mxu0 %v204_v3  ;;  %790 = vmatpush3.msra.mxu1 %v204_v3  ;;  %v194_v17 = vld [vmem:[%s981_s9 + $0xb0] sm:$0xff]  ;;  %v195_v19 = vld [vmem:[%s981_s9 + $0xb8] sm:$0xff]  ;;  %v196_v21 = vld [vmem:[%s981_s9 + $0xc0] sm:$0xff]  ;;  %p842_p3 = pnand %p841_p2, %p835_p13 }
  0x1c   : > { %735 = vmatprep.mubr.msk.f32.mxu0 %vm215_vm0, %v172_v4  ;;  %759 = vmatprep.mubr.msk.f32.mxu1 %vm215_vm0, %v188_v5  ;;  %v181_v22 = vld [vmem:[%s981_s9 + $0x48] sm:$0xff]  ;;  %v182_v24 = vld [vmem:[%s981_s9 + $0x50] sm:$0xff]  ;;  %v183_v26 = vld [vmem:[%s981_s9 + $0x58] sm:$0xff] }
  0x1d   : > { %736 = vmatmul.mubr.msk.f32.vlgmr.msra.gmra.mxu0 %vm215_vm0, %v173_v6  ;;  %760 = vmatmul.mubr.msk.f32.vlgmr.msra.gmra.mxu1 %vm215_vm0, %v189_v7  ;;  %v197_v23 = vld [vmem:[%s981_s9 + $0xc8] sm:$0xff]  ;;  %v198_v25 = vld [vmem:[%s981_s9 + $0xd0] sm:$0xff]  ;;  %v199_v27 = vld [vmem:[%s981_s9 + $0xd8] sm:$0xff] }
  0x1e   : > { %738 = vmatprep.mubr.msk.f32.mxu0 %vm215_vm0, %v174_v8  ;;  %762 = vmatprep.mubr.msk.f32.mxu1 %vm215_vm0, %v190_v9  ;;  %v184_v28 = vld [vmem:[%s981_s9 + $0x60] sm:$0xff]  ;;  %v185_v30 = vld [vmem:[%s981_s9 + $0x68] sm:$0xff]  ;;  %v186_v32 = vld [vmem:[%s981_s9 + $0x70] sm:$0xff] }
  0x1f   : > { %v200_v29 = vld [vmem:[%s981_s9 + $0xe0] sm:$0xff]  ;;  %v201_v31 = vld [vmem:[%s981_s9 + $0xe8] sm:$0xff]  ;;  %v202_v33 = vld [vmem:[%s981_s9 + $0xf0] sm:$0xff] }
  0x20   : > { %v187_v34 = vld [vmem:[%s981_s9 + $0x78] sm:$0xff] }
  0x21   : > { %739 = vmatmul.mubr.msk.f32.gmra.mxu0 %vm215_vm0, %v175_v10  ;;  %763 = vmatmul.mubr.msk.f32.gmra.mxu1 %vm215_vm0, %v191_v11  ;;  %v203_v35 = vld [vmem:[%s981_s9 + $0xf8] sm:$0xff] }
  0x22   : > { %741 = vmatprep.mubr.msk.f32.mxu0 %vm215_vm0, %v176_v12  ;;  %765 = vmatprep.mubr.msk.f32.mxu1 %vm215_vm0, %v192_v13 }
  0x25   : > { %742 = vmatmul.mubr.msk.f32.gmra.mxu0 %vm215_vm0, %v177_v14  ;;  %766 = vmatmul.mubr.msk.f32.gmra.mxu1 %vm215_vm0, %v193_v15 }
  0x26   : > { %744 = vmatprep.mubr.msk.f32.mxu0 %vm215_vm0, %v178_v16  ;;  %768 = vmatprep.mubr.msk.f32.mxu1 %vm215_vm0, %v194_v17 }
  0x29   : > { %745 = vmatmul.mubr.msk.f32.gmra.mxu0 %vm215_vm0, %v179_v18  ;;  %769 = vmatmul.mubr.msk.f32.gmra.mxu1 %vm215_vm0, %v195_v19 }
  0x2a   : > { %747 = vmatprep.mubr.msk.f32.mxu0 %vm215_vm0, %v180_v20  ;;  %771 = vmatprep.mubr.msk.f32.mxu1 %vm215_vm0, %v196_v21 }
  0x2d   : > { %748 = vmatmul.mubr.msk.f32.gmra.mxu0 %vm215_vm0, %v181_v22  ;;  %772 = vmatmul.mubr.msk.f32.gmra.mxu1 %vm215_vm0, %v197_v23 }
  0x2e   : > { %750 = vmatprep.mubr.msk.f32.mxu0 %vm215_vm0, %v182_v24  ;;  %774 = vmatprep.mubr.msk.f32.mxu1 %vm215_vm0, %v198_v25 }
  0x31   : > { %751 = vmatmul.mubr.msk.f32.gmra.mxu0 %vm215_vm0, %v183_v26  ;;  %775 = vmatmul.mubr.msk.f32.gmra.mxu1 %vm215_vm0, %v199_v27 }
  0x32   : > { %753 = vmatprep.mubr.msk.f32.mxu0 %vm215_vm0, %v184_v28  ;;  %777 = vmatprep.mubr.msk.f32.mxu1 %vm215_vm0, %v200_v29 }
  0x35   : > { %754 = vmatmul.mubr.msk.f32.gmra.mxu0 %vm215_vm0, %v185_v30  ;;  %778 = vmatmul.mubr.msk.f32.gmra.mxu1 %vm215_vm0, %v201_v31 }
  0x36   : > { %756 = vmatprep.mubr.msk.f32.mxu0 %vm215_vm0, %v186_v32  ;;  %780 = vmatprep.mubr.msk.f32.mxu1 %vm215_vm0, %v202_v33 }
  0x39   : > { %757 = vmatmul.mubr.msk.f32.gmra.mxu0 %vm215_vm0, %v187_v34  ;;  %781 = vmatmul.mubr.msk.f32.gmra.mxu1 %vm215_vm0, %v203_v35 }
  0xdd   : > { %v737_v37 = vpop.f32.mrf.mxu0  ;;  %v761_v38 = vpop.f32.mrf.mxu1 }
  0xde   : > { %v384_v39 = vadd.f32 %v737_v37, %v1053_v36  ;;  %v464_v40 = vadd.f32 %v761_v38, %v1053_v36 }
  0xdf   : > { %v378_v41 = vpop.f32.mrf.mxu0  ;;  %v458_v42 = vpop.f32.mrf.mxu1 }
  0xe0   : > { %538 = vst.msk [vmem:[%s1057_s20 + $0x8] sm:$0xff] %vm215_vm0, %v384_v39  ;;  %554 = vst.msk [vmem:[%s1057_s20 + $0x88] sm:$0xff] %vm215_vm0, %v464_v40  ;;  %v379_v43 = vadd.f32 %v1053_v36, %v378_v41  ;;  %v459_v44 = vadd.f32 %v1053_v36, %v458_v42 }
  0xe1   : > { %v740_v45 = vpop.f32.mrf.mxu0  ;;  %v764_v46 = vpop.f32.mrf.mxu1 }
  0xe2   : > { %537 = vst.msk [vmem:[%s1057_s20] sm:$0xff] %vm215_vm0, %v379_v43  ;;  %553 = vst.msk [vmem:[%s1057_s20 + $0x80] sm:$0xff] %vm215_vm0, %v459_v44  ;;  %v394_v47 = vadd.f32 %v740_v45, %v1053_v36  ;;  %v474_v48 = vadd.f32 %v764_v46, %v1053_v36 }
  0xe3   : > { %v388_v49 = vpop.f32.mrf.mxu0  ;;  %v468_v50 = vpop.f32.mrf.mxu1 }
  0xe4   : > { %540 = vst.msk [vmem:[%s1057_s20 + $0x18] sm:$0xff] %vm215_vm0, %v394_v47  ;;  %556 = vst.msk [vmem:[%s1057_s20 + $0x98] sm:$0xff] %vm215_vm0, %v474_v48  ;;  %v389_v51 = vadd.f32 %v1053_v36, %v388_v49  ;;  %v469_v52 = vadd.f32 %v1053_v36, %v468_v50 }
  0xe5   : > { %v743_v53 = vpop.f32.mrf.mxu0  ;;  %v767_v54 = vpop.f32.mrf.mxu1 }
  0xe6   : > { %539 = vst.msk [vmem:[%s1057_s20 + $0x10] sm:$0xff] %vm215_vm0, %v389_v51  ;;  %555 = vst.msk [vmem:[%s1057_s20 + $0x90] sm:$0xff] %vm215_vm0, %v469_v52  ;;  %v404_v55 = vadd.f32 %v743_v53, %v1053_v36  ;;  %v484_v56 = vadd.f32 %v767_v54, %v1053_v36 }
  0xe7   : > { %v398_v57 = vpop.f32.mrf.mxu0  ;;  %v478_v58 = vpop.f32.mrf.mxu1 }
  0xe8   : > { %542 = vst.msk [vmem:[%s1057_s20 + $0x28] sm:$0xff] %vm215_vm0, %v404_v55  ;;  %558 = vst.msk [vmem:[%s1057_s20 + $0xa8] sm:$0xff] %vm215_vm0, %v484_v56  ;;  %v399_v59 = vadd.f32 %v1053_v36, %v398_v57  ;;  %v479_v60 = vadd.f32 %v1053_v36, %v478_v58 }
  0xe9   : > { %v746_v61 = vpop.f32.mrf.mxu0  ;;  %v770_v62 = vpop.f32.mrf.mxu1 }
  0xea   : > { %541 = vst.msk [vmem:[%s1057_s20 + $0x20] sm:$0xff] %vm215_vm0, %v399_v59  ;;  %557 = vst.msk [vmem:[%s1057_s20 + $0xa0] sm:$0xff] %vm215_vm0, %v479_v60  ;;  %v414_v63 = vadd.f32 %v746_v61, %v1053_v36  ;;  %v494_v0 = vadd.f32 %v770_v62, %v1053_v36 }
  0xeb   : > { %v408_v1 = vpop.f32.mrf.mxu0  ;;  %v488_v2 = vpop.f32.mrf.mxu1 }
  0xec   : > { %544 = vst.msk [vmem:[%s1057_s20 + $0x38] sm:$0xff] %vm215_vm0, %v414_v63  ;;  %560 = vst.msk [vmem:[%s1057_s20 + $0xb8] sm:$0xff] %vm215_vm0, %v494_v0  ;;  %v409_v3 = vadd.f32 %v1053_v36, %v408_v1  ;;  %v489_v4 = vadd.f32 %v1053_v36, %v488_v2 }
  0xed   : > { %v749_v5 = vpop.f32.mrf.mxu0  ;;  %v773_v6 = vpop.f32.mrf.mxu1 }
  0xee   : > { %543 = vst.msk [vmem:[%s1057_s20 + $0x30] sm:$0xff] %vm215_vm0, %v409_v3  ;;  %559 = vst.msk [vmem:[%s1057_s20 + $0xb0] sm:$0xff] %vm215_vm0, %v489_v4  ;;  %v424_v7 = vadd.f32 %v749_v5, %v1053_v36  ;;  %v504_v8 = vadd.f32 %v773_v6, %v1053_v36 }
  0xef   : > { %v418_v9 = vpop.f32.mrf.mxu0  ;;  %v498_v10 = vpop.f32.mrf.mxu1 }
  0xf0   : > { %546 = vst.msk [vmem:[%s1057_s20 + $0x48] sm:$0xff] %vm215_vm0, %v424_v7  ;;  %562 = vst.msk [vmem:[%s1057_s20 + $0xc8] sm:$0xff] %vm215_vm0, %v504_v8  ;;  %v419_v11 = vadd.f32 %v1053_v36, %v418_v9  ;;  %v499_v12 = vadd.f32 %v1053_v36, %v498_v10 }
  0xf1   : > { %v752_v13 = vpop.f32.mrf.mxu0  ;;  %v776_v14 = vpop.f32.mrf.mxu1 }
  0xf2   : > { %545 = vst.msk [vmem:[%s1057_s20 + $0x40] sm:$0xff] %vm215_vm0, %v419_v11  ;;  %561 = vst.msk [vmem:[%s1057_s20 + $0xc0] sm:$0xff] %vm215_vm0, %v499_v12  ;;  %v434_v15 = vadd.f32 %v752_v13, %v1053_v36  ;;  %v514_v16 = vadd.f32 %v776_v14, %v1053_v36 }
  0xf3   : > { %v428_v17 = vpop.f32.mrf.mxu0  ;;  %v508_v18 = vpop.f32.mrf.mxu1 }
  0xf4   : > { %548 = vst.msk [vmem:[%s1057_s20 + $0x58] sm:$0xff] %vm215_vm0, %v434_v15  ;;  %564 = vst.msk [vmem:[%s1057_s20 + $0xd8] sm:$0xff] %vm215_vm0, %v514_v16  ;;  %v429_v19 = vadd.f32 %v1053_v36, %v428_v17  ;;  %v509_v20 = vadd.f32 %v1053_v36, %v508_v18 }
  0xf5   : > { %v755_v21 = vpop.f32.mrf.mxu0  ;;  %v779_v22 = vpop.f32.mrf.mxu1 }
  0xf6   : > { %547 = vst.msk [vmem:[%s1057_s20 + $0x50] sm:$0xff] %vm215_vm0, %v429_v19  ;;  %563 = vst.msk [vmem:[%s1057_s20 + $0xd0] sm:$0xff] %vm215_vm0, %v509_v20  ;;  %v444_v23 = vadd.f32 %v755_v21, %v1053_v36  ;;  %v524_v24 = vadd.f32 %v779_v22, %v1053_v36 }
  0xf7   : > { %v438_v25 = vpop.f32.mrf.mxu0  ;;  %v518_v26 = vpop.f32.mrf.mxu1 }
  0xf8   : > { %550 = vst.msk [vmem:[%s1057_s20 + $0x68] sm:$0xff] %vm215_vm0, %v444_v23  ;;  %566 = vst.msk [vmem:[%s1057_s20 + $0xe8] sm:$0xff] %vm215_vm0, %v524_v24  ;;  %v439_v27 = vadd.f32 %v1053_v36, %v438_v25  ;;  %v519_v28 = vadd.f32 %v1053_v36, %v518_v26 }
  0xf9   : > { %v758_v29 = vpop.f32.mrf.mxu0  ;;  %v782_v30 = vpop.f32.mrf.mxu1 }
  0xfa   : > { %549 = vst.msk [vmem:[%s1057_s20 + $0x60] sm:$0xff] %vm215_vm0, %v439_v27  ;;  %565 = vst.msk [vmem:[%s1057_s20 + $0xe0] sm:$0xff] %vm215_vm0, %v519_v28  ;;  %v454_v31 = vadd.f32 %v758_v29, %v1053_v36  ;;  %v534_v32 = vadd.f32 %v782_v30, %v1053_v36 }
  0xfb   : > { %v448_v33 = vpop.f32.mrf.mxu0  ;;  %v528_v34 = vpop.f32.mrf.mxu1 }
  0xfc   : > { %552 = vst.msk [vmem:[%s1057_s20 + $0x78] sm:$0xff] %vm215_vm0, %v454_v31  ;;  %568 = vst.msk [vmem:[%s1057_s20 + $0xf8] sm:$0xff] %vm215_vm0, %v534_v32  ;;  %v449_v35 = vadd.f32 %v1053_v36, %v448_v33  ;;  %v529_v37 = vadd.f32 %v1053_v36, %v528_v34 }
  0xfe   : > { %551 = vst.msk [vmem:[%s1057_s20 + $0x70] sm:$0xff] %vm215_vm0, %v449_v35  ;;  %567 = vst.msk [vmem:[%s1057_s20 + $0xf0] sm:$0xff] %vm215_vm0, %v529_v37 }
  0xff   : > { %845 = shalt.err (!%p842_p3)
}
 0x100   : > { %s846_s6 = scalar_lea.hbm %s1148_s16, 4096  ;;  %s850_s9 = scalar_lea.hbm %s1207_s3, 8192 }
 0x101   : > { %p847_p4 = scmp.ne.s32.totalorder %s1148_s16, %s846_s6  ;;  %p851_p9 = scmp.lt.s32.totalorder %s1148_s16, %s1207_s3 }
 0x102   : > { %p852_p10 = scmp.lt.s32.totalorder %s850_s9, %s846_s6 }
 0x103   : > { %p848_p7 = pnand %p847_p4, %p955_p5 }
 0x104   : > { %p853_p11 = por %p852_p10, %p851_p9 }
 0x105   : > { %p849_p8 = pneg %p848_p7 }
 0x107   : > { %p854_p12 = pnand %p853_p11, %p849_p8 }
 0x109   : > { %857 = shalt.err (!%p854_p12)
}
 0x10a   : > { %s895_s17 = smov 128   ;;  %s896_s19 = smov 8  }
 0x10b   : > { %791 = dma.vmem_to_hbm [thread:$0]  (%p955_p5), %s1150_s25, 4096, %s1148_s16, %s1164_s28, %s895_s17, %s895_s17, %s896_s19  }
 0x10c PF: > { %p797_p13 = scmp.ge.s32.totalorder %s892_s15, 2  ;;  %s598_s20 = sand.u32 1, %s880_s12  }
 0x10d   : > { %s599_s24 = scalar_lea.sflag [#allocation3], %s598_s20 }
 0x10e   : > { %p794_p0 = pnand %p797_p13, %p959_p6 }
 0x110   : > { %p795_p1 = pneg %p794_p0 }
 0x112   : > { %875 = dma.done.wait (%p795_p1), %s599_s24, 4096  }
 0x113   : > { %877 = vsyncadd (%p795_p1), %s599_s24, 4294963200  ;;  %p13_p2 = scmp.ge.s32.totalorder %s942_s18, 4   ;;  %s1210_s12 = smov %s884_s13 }
 0x114   : > { %s1211_s13 = smov %s888_s14  ;;  %s1212_s14 = smov %s953_s21 }
 0x115   : > { %s1213_s15 = smov %s942_s18  ;;  %15 = sbr.rel (!%p13_p2) target bundleno = 3 (0x3), region = 67 }
 0x11a   :  { %604 = vsyncpa [#allocation3], 1 }
 0x11b   :  { %606 = vsyncpa [#allocation3 + $0x1], 1 }

// kernel: conv_decoder_forward.6
= control target key start
LH: loop header
LB: loop body
LE: loop exit
PB: predicated region body
PF: predicated region fallthrough
CT: control target
= control target key end

     0   :  { %s4857_s27 = smov 0   ;;  %s6423_s0 = inlined_call_operand.vmem [shape: f32[2,64,64], index: 0, kind: input, shape index: {}]   ;;  %s6424_s1 = inlined_call_operand.vmem [shape: f32[2,64,64], index: 1, kind: input, shape index: {}]   ;;  %s6425_s2 = inlined_call_operand.vmem [shape: f32[9,64,64], index: 2, kind: input, shape index: {}]   ;;  %s6426_s3 = inlined_call_operand.vmem [shape: f32[9,64,64], index: 3, kind: input, shape index: {}]   ;;  %s6427_s4 = inlined_call_operand.vmem [shape: f32[1,64], index: 4, kind: input, shape index: {}]   ;;  %s6428_s5 = inlined_call_operand.vmem [shape: f32[1,64], index: 5, kind: input, shape index: {}]   ;;  %s6429_s6 = inlined_call_operand.vmem [shape: f32[1,64], index: 6, kind: input, shape index: {}]   ;;  %s6430_s7 = inlined_call_operand.vmem [shape: f32[64,64], index: 7, kind: input, shape index: {}]   ;;  %s6431_s8 = inlined_call_operand.vmem [shape: f32[2,64,64], index: 8, kind: output, shape index: {}]  }
   0x1 LB: > { %s3621_s28 = sadd.s32 4294967295, %s4808_s27   ;;  %p3625_p0 = scmp.ge.s32.totalorder %s4808_s27, 1  ;;  %s4808_s27 = sphi %s4857_s27, %s18_s27  }
   0x2   : > { %p272_p1 = scmp.lt.s32.totalorder %s4808_s27, 3 }
   0x4   : > { %p273_p2 = pnand %p3625_p0, %p272_p1 }
   0x6   : > { %276 = sbr.rel (%p273_p2) target bundleno = 900 (0x384), region = 52 }
   0xb   : > { %v582_v0 = vld [vmem:[%s6425_s2 + $0x38] sm:$0xff]  ;;  %v581_v2 = vld [vmem:[%s6425_s2 + $0x30] sm:$0xff]  ;;  %v342_v3 = vlaneseq  ;;  %p311_p3 = scmp.lt.s32.totalorder %s3621_s28, 1  ;;  %v580_v5 = vld [vmem:[%s6425_s2 + $0x28] sm:$0xff]  ;;  %vm462_vm0 = vcmask 1040384   ;;  %v6437_v29 = vmov 0.0  }
   0xc   : > { %v728_v1 = vld [vmem:[%s6426_s3 + $0x38] sm:$0xff]  ;;  %4232 = vmatprep.subr.mxu0 %v582_v0  ;;  %v727_v4 = vld [vmem:[%s6426_s3 + $0x30] sm:$0xff]  ;;  %v726_v6 = vld [vmem:[%s6426_s3 + $0x28] sm:$0xff]  ;;  %vm583_vm2 = vcmask 523264   ;;  %vm1139_vm11 = vcmask 1046528  }
   0xd   : > { %4260 = vmatprep.subr.mxu1 %v728_v1  ;;  %4233 = vmatpush3.msra.mxu0 %v582_v0  ;;  %v4883_v7 = vshrl.u32 %v342_v3, 7  ;;  %s6576_s28 = smov (!%p311_p3, %s3621_s28), 1  ;;  %v579_v8 = vld [vmem:[%s6425_s2 + $0x20] sm:$0xff]  ;;  %v578_v12 = vld [vmem:[%s6425_s2 + $0x18] sm:$0xff]  ;;  %v577_v23 = vld [vmem:[%s6425_s2 + $0x10] sm:$0xff] }
   0xe   : > { %4261 = vmatpush3.msra.mxu1 %v728_v1  ;;  %4234 = vmatprep.subr.mxu0 %v581_v2  ;;  %v725_v9 = vld [vmem:[%s6426_s3 + $0x20] sm:$0xff]  ;;  %s4892_s23 = sshll.u32 %s6576_s28, 6  ;;  %v724_v14 = vld [vmem:[%s6426_s3 + $0x18] sm:$0xff]  ;;  %v723_v24 = vld [vmem:[%s6426_s3 + $0x10] sm:$0xff] }
   0xf   : > { %6459 = vst [vmem:[#allocation2_spill] sm:$0xff] %v4883_v7  ;;  %4262 = vmatprep.subr.mxu1 %v727_v4  ;;  %4235 = vmatpush3.msra.mxu0 %v581_v2  ;;  %v355_v10 = vand.u32 7, %v4883_v7  ;;  %v4895_v11 = vadd.s32 8, %v4883_v7  ;;  %s4904_s30 = scalar_lea.vmem %s6423_s0, %s4892_s23  ;;  %v4907_v13 = vadd.s32 16, %v4883_v7  ;;  %s4922_s12 = scalar_lea.vmem %s6424_s1, %s4892_s23  ;;  %v4942_v26 = vadd.s32 24, %v4883_v7  ;;  %v576_v27 = vld [vmem:[%s6425_s2 + $0x8] sm:$0xff] }
  0x10   : > { %4263 = vmatpush3.msra.mxu1 %v727_v4  ;;  %4236 = vmatprep.subr.mxu0 %v580_v5  ;;  %v4915_v16 = vld [vmem:[%s4904_s30] sm:$0xff]  ;;  %v4925_v18 = vld [vmem:[%s4904_s30 + $0x8] sm:$0xff]  ;;  %v4958_v33 = vld [vmem:[%s4904_s30 + $0x10] sm:$0xff]  ;;  %v4967_v36 = vadd.s32 32, %v4883_v7  ;;  %v5015_v59 = vadd.s32 40, %v4883_v7  ;;  %s325_s13 = scalar_lea.vmem %s6431_s8, %s4892_s23 }
  0x11   : > { %4264 = vmatprep.subr.mxu1 %v726_v6  ;;  %4237 = vmatpush3.msra.mxu0 %v580_v5  ;;  %v512_v15 = vadd.s32 4294967295, %v355_v10  ;;  %6460 = vst [vmem:[#allocation3_spill] sm:$0xff] %v4915_v16  ;;  %v362_v17 = vand.u32 7, %v4895_v11  ;;  %v463_v19 = vrot.slane %v4915_v16, 7  ;;  %v4929_v20 = vld [vmem:[%s4922_s12] sm:$0xff]  ;;  %v369_v21 = vand.u32 7, %v4907_v13 }
  0x12   : > { %4265 = vmatpush3.msra.mxu1 %v726_v6  ;;  %4238 = vmatprep.subr.mxu0 %v579_v8  ;;  %6461 = vst [vmem:[#allocation4_spill] sm:$0xff] %v4929_v20  ;;  %v464_v22 = vrot.slane %v4925_v18, 7  ;;  %v722_v28 = vld [vmem:[%s6426_s3 + $0x8] sm:$0xff]  ;;  %v491_v32 = vrot.slane %v4929_v20, 7  ;;  %6462 = vst [vmem:[#allocation5_spill] sm:$0xff] %v4958_v33  ;;  %v4964_v35 = vld [vmem:[%s4922_s12 + $0x10] sm:$0xff] }
  0x13   : > { %4266 = vmatprep.subr.mxu1 %v725_v9  ;;  %4239 = vmatpush3.msra.mxu0 %v579_v8  ;;  %vm520_vm1 = vcmp.ge.s32.totalorder %v512_v15, 0  ;;  %v513_v25 = vadd.s32 4294967295, %v362_v17  ;;  %v4954_v31 = vsel %vm462_vm0, 0.0, %v463_v19  ;;  %v4961_v34 = vld [vmem:[%s4922_s12 + $0x8] sm:$0xff]  ;;  %6464 = vst [vmem:[#allocation7_spill] sm:$0xff] %v4964_v35  ;;  %v514_v40 = vadd.s32 4294967295, %v369_v21 }
  0x14   : > { %4267 = vmatpush3.msra.mxu1 %v725_v9  ;;  %4240 = vmatprep.subr.mxu0 %v578_v12  ;;  %v4951_v30 = vsel %vm520_vm1, 1.0, %v6437_v29  ;;  %6463 = vst [vmem:[#allocation6_spill] sm:$0xff] %v4961_v34  ;;  %v4972_v39 = vsel %vm462_vm0, %v463_v19, %v464_v22  ;;  %v4977_v41 = vld [vmem:[%s4904_s30 + $0x18] sm:$0xff]  ;;  %v575_v42 = vld [vmem:[%s6425_s2] sm:$0xff]  ;;  %v4984_v44 = vsel %vm462_vm0, 0.0, %v491_v32  ;;  %v376_v46 = vand.u32 7, %v4942_v26 }
  0x15   : > { %4268 = vmatprep.subr.mxu1 %v724_v14  ;;  %4241 = vmatpush3.msra.mxu0 %v578_v12  ;;  %vm521_vm3 = vcmp.ge.s32.totalorder %v513_v25, 0  ;;  %v560_v37 = vmul.f32 0.0, %v4951_v30  ;;  %6465 = vst [vmem:[#allocation8_spill] sm:$0xff] %v4977_v41  ;;  %v721_v47 = vld [vmem:[%s6426_s3] sm:$0xff]  ;;  %vm522_vm4 = vcmp.ge.s32.totalorder %v514_v40, 0  ;;  %v466_v48 = vrot.slane %v4958_v33, 7 }
  0x16   : > { %4269 = vmatpush3.msra.mxu1 %v724_v14  ;;  %4242 = vmatprep.subr.mxu0 %v577_v23  ;;  %v3634_v38 = vsel %vm521_vm3, 1.0, %v6437_v29  ;;  %v492_v49 = vrot.slane %v4961_v34, 7  ;;  %v494_v50 = vrot.slane %v4964_v35, 7  ;;  %v4997_v51 = vsel %vm522_vm4, 1.0, %v6437_v29  ;;  %v3664_v55 = vld [vmem:[%s6425_s2 + $0x78] sm:$0xff]  ;;  %v5024_v62 = vld [vmem:[%s4904_s30 + $0x20] sm:$0xff] }
  0x17   : > { %4270 = vmatprep.subr.mxu1 %v723_v24  ;;  %4243 = vmatpush3.msra.mxu0 %v577_v23  ;;  %v561_v43 = vmul.f32 %v3634_v38, %v4954_v31  ;;  %v4987_v45 = vmul.f32 %v3634_v38, %v4972_v39  ;;  %v515_v52 = vadd.s32 4294967295, %v376_v46  ;;  %v6439_v53 = vand.u32 7, %v4967_v36  ;;  %6469 = vst [vmem:[#allocation12_spill] sm:$0xff] %v5024_v62  ;;  %v5027_v63 = vld [vmem:[%s4922_s12 + $0x18] sm:$0xff]  ;;  %v3663_v1 = vld [vmem:[%s6425_s2 + $0x70] sm:$0xff]  ;;  %v5049_v6 = vld [vmem:[%s4922_s12 + $0x20] sm:$0xff] }
  0x18   : > { %4271 = vmatpush3.msra.mxu1 %v723_v24  ;;  %4244 = vmatprep.subr.mxu0 %v576_v27  ;;  %v468_v54 = vrot.slane %v4977_v41, 7  ;;  %v568_v56 = vmul.f32 %v3634_v38, %v4984_v44  ;;  %v5009_v57 = vsel %vm462_vm0, %v464_v22, %v466_v48  ;;  %v5012_v58 = vsel %vm462_vm0, %v491_v32, %v492_v49  ;;  %v3679_v0 = vld [vmem:[%s6426_s3 + $0x78] sm:$0xff]  ;;  %v5062_v15 = vld [vmem:[%s4904_s30 + $0x28] sm:$0xff]  ;;  %v3678_v19 = vld [vmem:[%s6426_s3 + $0x70] sm:$0xff] }
  0x19   : > { %6466 = vst [vmem:[#allocation9_spill] sm:$0xff] %v4987_v45  ;;  %4272 = vmatprep.subr.mxu1 %v722_v28  ;;  %4245 = vmatpush3.msra.mxu0 %v576_v27  ;;  %vm523_vm5 = vcmp.ge.s32.totalorder %v515_v52, 0  ;;  %v5018_v60 = vmul.f32 %v3634_v38, %v5009_v57  ;;  %v5021_v61 = vmul.f32 %v3634_v38, %v5012_v58  ;;  %v516_v5 = vadd.s32 4294967295, %v6439_v53 }
  0x1a   : > { %4273 = vmatpush3.msra.mxu1 %v722_v28  ;;  %4246 = vmatprep.subr.mxu0 %v575_v42  ;;  %v562_v2 = vmul.f32 %v4997_v51, %v4972_v39  ;;  %v5039_v3 = vsel %vm523_vm5, 1.0, %v6437_v29  ;;  %v5044_v4 = vsel %vm462_vm0, %v492_v49, %v494_v50  ;;  %v569_v8 = vmul.f32 %v4997_v51, %v5012_v58 }
  0x1b   : > { %4248 = vmatprep.mubr.msk.f32.mxu0 %vm583_vm2, %v560_v37  ;;  %4247 = vmatpush3.msra.mxu0 %v575_v42  ;;  %6467 = vst [vmem:[#allocation10_spill] sm:$0xff] %v5018_v60  ;;  %6468 = vst [vmem:[#allocation11_spill] sm:$0xff] %v5021_v61  ;;  %v5055_v9 = vmul.f32 %v3634_v38, %v5044_v4  ;;  %v5058_v12 = vsel %vm462_vm0, %v466_v48, %v468_v54  ;;  %v6433_v14 = vand.u32 7, %v5015_v59  ;;  %v5089_v42 = vld [vmem:[%s4904_s30 + $0x30] sm:$0xff]  ;;  %v6480_v61 = vmov 0.0  }
  0x1c   : > { %4274 = vmatprep.subr.mxu1 %v721_v47  ;;  %4249 = vmatmul.mubr.msk.f32.vlgmr.msra.gmra.mxu0 %vm583_vm2, %v561_v43  ;;  %v563_v22 = vmul.f32 %v5039_v3, %v5009_v57  ;;  %vm524_vm6 = vcmp.ge.s32.totalorder %v516_v5, 0  ;;  %v470_v23 = vrot.slane %v5024_v62, 7  ;;  %v496_v24 = vrot.slane %v5027_v63, 7 }
  0x1d   : > { %4275 = vmatpush3.msra.mxu1 %v721_v47  ;;  %4276 = vmatprep.mubr.msk.f32.mxu1 %vm583_vm2, %v560_v37  ;;  %6470 = vst [vmem:[#allocation13_spill] sm:$0xff] %v5055_v9  ;;  %v5073_v25 = vsel %vm524_vm6, 1.0, %v6437_v29  ;;  %v517_v27 = vadd.s32 4294967295, %v6433_v14  ;;  %v498_v28 = vrot.slane %v5049_v6, 7  ;;  %v5079_v32 = vadd.s32 48, %v4883_v7  ;;  %v3662_v37 = vld [vmem:[%s6425_s2 + $0x68] sm:$0xff] }
  0x1e   : > { %4288 = vmatprep.subr.mxu0 %v3664_v55  ;;  %4277 = vmatmul.mubr.msk.f32.vlgmr.msra.gmra.mxu1 %vm583_vm2, %v568_v56  ;;  %v570_v38 = vmul.f32 %v5039_v3, %v5044_v4  ;;  %v472_v40 = vrot.slane %v5062_v15, 7  ;;  %v5092_v43 = vadd.s32 56, %v4883_v7  ;;  %v5095_v47 = vld [vmem:[%s4922_s12 + $0x28] sm:$0xff]  ;;  %v5098_v48 = vsel %vm462_vm0, %v468_v54, %v470_v23  ;;  %v3661_v56 = vld [vmem:[%s6425_s2 + $0x60] sm:$0xff] }
  0x1f   : > { %4289 = vmatpush3.msra.mxu0 %v3664_v55  ;;  %4316 = vmatprep.subr.mxu1 %v3679_v0  ;;  %6471 = vst [vmem:[#allocation14_spill] sm:$0xff] %v5095_v47  ;;  %vm525_vm7 = vcmp.ge.s32.totalorder %v517_v27, 0  ;;  %v5103_v49 = vsel %vm462_vm0, %v494_v50, %v496_v24  ;;  %v6432_v52 = vand.u32 7, %v5079_v32  ;;  %v1190_v55 = vadd.s32 1, %v362_v17  ;;  %v3677_v54 = vld [vmem:[%s6426_s3 + $0x68] sm:$0xff]  ;;  %v5123_v17 = vld [vmem:[%s4922_s12 + $0x30] sm:$0xff] }
  0x20   : > { %4290 = vmatprep.subr.mxu0 %v3663_v1  ;;  %4317 = vmatpush3.msra.mxu1 %v3679_v0  ;;  %v564_v50 = vmul.f32 %v5073_v25, %v5058_v12  ;;  %v5119_v0 = vsel %vm525_vm7, 1.0, %v6437_v29  ;;  %v6434_v11 = vand.u32 7, %v5092_v43  ;;  %v6435_v5 = vrot.slane %v5089_v42, 7  ;;  %v3658_v7 = vld [vmem:[%s6425_s2 + $0x48] sm:$0xff] }
  0x21   : > { %4251 = vmatprep.mubr.msk.f32.mxu0 %vm583_vm2, %v562_v2  ;;  %4291 = vmatpush3.msra.mxu0 %v3663_v1  ;;  %v5126_v1 = vsel %vm462_vm0, %v496_v24, %v498_v28  ;;  %v518_v2 = vadd.s32 4294967295, %v6432_v52  ;;  %v571_v24 = vmul.f32 %v5073_v25, %v5103_v49  ;;  %v5143_v52 = vsel %vm462_vm0, %v470_v23, %v472_v40 }
  0x22   : > { %4318 = vmatprep.subr.mxu1 %v3678_v19  ;;  %4252 = vmatmul.mubr.msk.f32.gmra.mxu0 %vm583_vm2, %v563_v22  ;;  %v3676_v22 = vld [vmem:[%s6426_s3 + $0x60] sm:$0xff]  ;;  %v519_v27 = vadd.s32 4294967295, %v6434_v11  ;;  %vm1206_vm9 = vcmp.le.s32.totalorder %v1190_v55, 7  ;;  %v572_v14 = vmul.f32 %v5119_v0, %v5126_v1  ;;  %v5158_v23 = vsel %vm462_vm0, %v472_v40, %v6435_v5  ;;  %v3659_v40 = vld [vmem:[%s6425_s2 + $0x50] sm:$0xff] }
  0x23   : > { %4279 = vmatprep.mubr.msk.f32.mxu1 %vm583_vm2, %v569_v8  ;;  %4292 = vmatprep.subr.mxu0 %v3662_v37  ;;  %v500_v8 = vrot.slane %v5095_v47, 7  ;;  %vm526_vm8 = vcmp.ge.s32.totalorder %v518_v2, 0  ;;  %v1189_v2 = vadd.s32 1, %v355_v10  ;;  %v3674_v55 = vld [vmem:[%s6426_s3 + $0x50] sm:$0xff]  ;;  %v1168_v53 = vrot.slane %v4964_v35, 1 }
  0x24   : > { %4319 = vmatpush3.msra.mxu1 %v3678_v19  ;;  %4293 = vmatpush3.msra.mxu0 %v3662_v37  ;;  %v565_v19 = vmul.f32 %v5119_v0, %v5098_v48  ;;  %v6436_v37 = vrot.slane %v5123_v17, 7  ;;  %v5153_v11 = vsel %vm526_vm8, 1.0, %v6437_v29  ;;  %vm527_vm10 = vcmp.ge.s32.totalorder %v519_v27, 0 }
  0x25   : > { %4280 = vmatmul.mubr.msk.f32.gmra.mxu1 %vm583_vm2, %v570_v38  ;;  %4320 = vmatprep.subr.mxu1 %v3677_v54  ;;  %v3660_v38 = vld [vmem:[%s6425_s2 + $0x58] sm:$0xff]  ;;  %v566_v27 = vmul.f32 %v5153_v11, %v5143_v52  ;;  %vm1205_vm12 = vcmp.le.s32.totalorder %v1189_v2, 7  ;;  %v6483_v2 = vrot.slane %v4929_v20, 1  ;;  %v1151_v45 = vrot.slane %v5089_v42, 1 }
  0x26   : > { %4294 = vmatprep.subr.mxu0 %v3661_v56  ;;  %4321 = vmatpush3.msra.mxu1 %v3677_v54  ;;  %v5161_v54 = vsel %vm527_vm10, 1.0, %v6437_v29  ;;  %v5185_v10 = vsel %vm462_vm0, %v500_v8, %v6436_v37  ;;  %v1145_v37 = vrot.slane %v4977_v41, 1 }
  0x27   : > { %4254 = vmatprep.mubr.msk.f32.mxu0 %vm583_vm2, %v564_v50  ;;  %4295 = vmatpush3.msra.mxu0 %v3661_v56  ;;  %v5164_v50 = vsel %vm462_vm0, %v498_v28, %v500_v8  ;;  %v3675_v56 = vld [vmem:[%s6426_s3 + $0x58] sm:$0xff]  ;;  %v5180_v28 = vsel %vm1206_vm9, 1.0, %v6437_v29  ;;  %v567_v5 = vmul.f32 %v5161_v54, %v5158_v23  ;;  %v1166_v8 = vrot.slane %v4961_v34, 1 }
  0x28   : > { %4322 = vmatprep.subr.mxu1 %v3676_v22  ;;  %4255 = vmatmul.mubr.msk.f32.gmra.mxu0 %vm583_vm2, %v565_v19  ;;  %6472 = vst [vmem:[#allocation15_spill] sm:$0xff] %v5180_v28  ;;  %v1141_v19 = vrot.slane %v4925_v18, 1  ;;  %v574_v9 = vmul.f32 %v5161_v54, %v5185_v10 }
  0x29   : > { %4282 = vmatprep.mubr.msk.f32.mxu1 %vm583_vm2, %v571_v24  ;;  %4296 = vmatprep.subr.mxu0 %v3660_v38  ;;  %v1143_v24 = vrot.slane %v4958_v33, 1  ;;  %v5225_v26 = vsel %vm1139_vm11, %v1166_v8, %v1168_v53 }
  0x2a   : > { %4323 = vmatpush3.msra.mxu1 %v3676_v22  ;;  %4297 = vmatpush3.msra.mxu0 %v3660_v38  ;;  %v573_v22 = vmul.f32 %v5153_v11, %v5164_v50  ;;  %v1192_v38 = vadd.s32 1, %v376_v46  ;;  %6476 = vst [vmem:[#allocation19_spill] sm:$0xff] %v5225_v26  ;;  %v3673_v46 = vld [vmem:[%s6426_s3 + $0x48] sm:$0xff] }
  0x2b   : > { %4283 = vmatmul.mubr.msk.f32.gmra.mxu1 %vm583_vm2, %v572_v14  ;;  %4324 = vmatprep.subr.mxu1 %v3675_v56  ;;  %v5200_v29 = vsel %vm1139_vm11, %v1141_v19, %v1143_v24  ;;  %v1191_v14 = vadd.s32 1, %v369_v21  ;;  %v5218_v13 = vsel %vm1139_vm11, %v1143_v24, %v1145_v37  ;;  %v5239_v24 = vmul.f32 %v5180_v28, %v5225_v26 }
  0x2c   : > { %4298 = vmatprep.subr.mxu0 %v3659_v40  ;;  %6473 = vst [vmem:[#allocation16_spill] sm:$0xff] %v5200_v29  ;;  %4325 = vmatpush3.msra.mxu1 %v3675_v56  ;;  %v5215_v60 = vmul.f32 %v5180_v28, %v5200_v29  ;;  %v5222_v21 = vmul.f32 %v5180_v28, %v5218_v13  ;;  %v3657_v56 = vld [vmem:[%s6425_s2 + $0x40] sm:$0xff]  ;;  %vm1208_vm14 = vcmp.le.s32.totalorder %v1192_v38, 7  ;;  %v3718_v38 = vld [vmem:[%s6426_s3 + $0xb8] sm:$0xff]  ;;  %v6486_v26 = vand.u32 7, %v5079_v32  ;;  %v3717_v32 = vld [vmem:[%s6426_s3 + $0xb0] sm:$0xff] }
  0x2d   : > { %4257 = vmatprep.mubr.msk.f32.mxu0 %vm583_vm2, %v566_v27  ;;  %4299 = vmatpush3.msra.mxu0 %v3659_v40  ;;  %6477 = vst [vmem:[#allocation20_spill] sm:$0xff] %v5239_v24  ;;  %vm1207_vm13 = vcmp.le.s32.totalorder %v1191_v14, 7  ;;  %v3672_v27 = vld [vmem:[%s6426_s3 + $0x40] sm:$0xff]  ;;  %v1147_v24 = vrot.slane %v5024_v62, 1  ;;  %v1174_v14 = vrot.slane %v5095_v47, 1 }
  0x2e   : > { %6474 = vst [vmem:[#allocation17_spill] sm:$0xff] %v5215_v60  ;;  %4326 = vmatprep.subr.mxu1 %v3674_v55  ;;  %6475 = vst [vmem:[#allocation18_spill] sm:$0xff] %v5222_v21  ;;  %4258 = vmatmul.mubr.msk.f32.gmra.mxu0 %vm583_vm2, %v567_v5  ;;  %v1170_v5 = vrot.slane %v5027_v63, 1  ;;  %v5307_v29 = vadd.s32 1, %v6486_v26 }
  0x2f   : > { %4285 = vmatprep.mubr.msk.f32.mxu1 %vm583_vm2, %v573_v22  ;;  %4300 = vmatprep.subr.mxu0 %v3658_v7  ;;  %v6478_v22 = vand.u32 7, %v4967_v36  ;;  %v5256_v36 = vsel %vm1205_vm12, 1.0, %v6480_v61 }
  0x30   : > { %4327 = vmatpush3.msra.mxu1 %v3674_v55  ;;  %4301 = vmatpush3.msra.mxu0 %v3658_v7  ;;  %v5249_v40 = vsel %vm1139_vm11, %v1168_v53, %v1170_v5  ;;  %v6479_v55 = vand.u32 7, %v5015_v59  ;;  %v3702_v53 = vld [vmem:[%s6425_s2 + $0xb8] sm:$0xff]  ;;  %vm1211_vm3 = vcmp.le.s32.totalorder %v5307_v29, 7 }
  0x31   : > { %v1193_v21 = vadd.s32 1, %v6478_v22  ;;  %4286 = vmatmul.mubr.msk.f32.gmra.mxu1 %vm583_vm2, %v574_v9  ;;  %4328 = vmatprep.subr.mxu1 %v3673_v46  ;;  %v5260_v7 = vmul.f32 %v5180_v28, %v5249_v40  ;;  %v6482_v9 = vrot.slane %v4915_v16, 1  ;;  %v5273_v22 = vsel %vm1139_vm11, %v6483_v2, %v1166_v8  ;;  %v3714_v29 = vld [vmem:[%s6426_s3 + $0x98] sm:$0xff] }
  0x32   : > { %v1194_v60 = vadd.s32 1, %v6479_v55  ;;  %4302 = vmatprep.subr.mxu0 %v3657_v56  ;;  %4329 = vmatpush3.msra.mxu1 %v3673_v46  ;;  %v5277_v55 = vsel %vm1207_vm13, 1.0, %v6480_v61  ;;  %v5281_v46 = vsel %vm1208_vm14, 1.0, %v6480_v61  ;;  %v1172_v8 = vrot.slane %v5049_v6, 1 }
  0x33   : > { %6481 = vst [vmem:[#allocation21_spill] sm:$0xff] %v5260_v7  ;;  %4303 = vmatpush3.msra.mxu0 %v3657_v56  ;;  %v5268_v59 = vsel %vm1139_vm11, %v6482_v9, %v1141_v19  ;;  %v5284_v56 = vld [vmem:[%s4904_s30 + $0x38] sm:$0xff]  ;;  %4304 = vmatprep.mubr.f32.mxu0 %v6480_v61  ;;  %vm1209_vm15 = vcmp.le.s32.totalorder %v1193_v21, 7  ;;  %v1149_v19 = vrot.slane %v5062_v15, 1  ;;  %v3701_v9 = vld [vmem:[%s6425_s2 + $0xb0] sm:$0xff]  ;;  %v5302_v2 = vsel %vm1139_vm11, %v1145_v37, %v1147_v24 }
  0x34   : > { %6484 = vst [vmem:[#allocation22_spill] sm:$0xff] %v5284_v56  ;;  %v5287_v7 = vld [vmem:[%s4922_s12 + $0x38] sm:$0xff]  ;;  %4330 = vmatprep.subr.mxu1 %v3672_v27  ;;  %4305 = vmatmul.mubr.msk.f32.vlgmr.msra.gmra.mxu0 %vm583_vm2, %v4915_v16  ;;  %vm1210_vm1 = vcmp.le.s32.totalorder %v1194_v60, 7  ;;  %v6487_v28 = vand.u32 7, %v5092_v43  ;;  %v1176_v16 = vrot.slane %v5123_v17, 1  ;;  %v5324_v26 = vsel %vm1209_vm15, 1.0, %v6480_v61 }
  0x35   : > { %6485 = vst [vmem:[#allocation23_spill] sm:$0xff] %v5287_v7  ;;  %4331 = vmatpush3.msra.mxu1 %v3672_v27  ;;  %4332 = vmatprep.mubr.f32.mxu1 %v6480_v61  ;;  %v1153_v27 = vrot.slane %v5284_v56, 1  ;;  %v1178_v37 = vrot.slane %v5287_v7, 1  ;;  %v5328_v43 = vmul.f32 %v4951_v30, %v4954_v31  ;;  %v5343_v21 = vsel %vm1210_vm1, 1.0, %v6480_v61 }
  0x36   : > { %4344 = vmatprep.subr.mxu0 %v3702_v53  ;;  %v5313_v47 = vadd.s32 1, %v6487_v28  ;;  %4333 = vmatmul.mubr.msk.f32.vlgmr.msra.gmra.mxu1 %vm583_vm2, %v4929_v20  ;;  %v5332_v28 = vmul.f32 %v4951_v30, %v4984_v44  ;;  %v5336_v20 = vmul.f32 %v4997_v51, %v5009_v57  ;;  %v5346_v31 = vsel %vm1139_vm11, %v1170_v5, %v1172_v8  ;;  %v3700_v44 = vld [vmem:[%s6425_s2 + $0xa8] sm:$0xff] }
  0x37   : > { %4345 = vmatpush3.msra.mxu0 %v3702_v53  ;;  %6488 = vst [vmem:[#allocation24_spill] sm:$0xff] %v5328_v43  ;;  %4372 = vmatprep.subr.mxu1 %v3718_v38  ;;  %v5339_v53 = vsel %vm1139_vm11, %v1147_v24, %v1149_v19  ;;  %v5349_v43 = vsel %vm1139_vm11, %v1172_v8, %v1174_v14 }
  0x38   : > { %4346 = vmatprep.subr.mxu0 %v3701_v9  ;;  %4373 = vmatpush3.msra.mxu1 %v3718_v38  ;;  %v5357_v57 = vsel %vm1139_vm11, %v1149_v19, %v1151_v45  ;;  %v5361_v60 = vsel %vm1139_vm11, %v1151_v45, %v1153_v27  ;;  %vm1212_vm4 = vcmp.le.s32.totalorder %v5313_v47, 7  ;;  %v5365_v24 = vsel %vm1139_vm11, %v1174_v14, %v1176_v16  ;;  %v3716_v45 = vld [vmem:[%s6426_s3 + $0xa8] sm:$0xff] }
  0x39   : > { %4307 = vmatprep.mubr.msk.f32.mxu0 %vm583_vm2, %v4925_v18  ;;  %4347 = vmatpush3.msra.mxu0 %v3701_v9  ;;  %v5368_v18 = vsel %vm1139_vm11, %v1176_v16, %v1178_v37  ;;  %v5372_v5 = vmul.f32 %v5039_v3, %v5058_v12  ;;  %v1545_v19 = vrot.slane %v5284_v56, 7  ;;  %v3699_v16 = vld [vmem:[%s6425_s2 + $0xa0] sm:$0xff]  ;;  %v5387_v8 = vmul.f32 %v4997_v51, %v5044_v4 }
  0x3a   : > { %4374 = vmatprep.subr.mxu1 %v3717_v32  ;;  %4308 = vmatmul.mubr.msk.f32.gmra.mxu0 %vm583_vm2, %v4958_v33  ;;  %v5391_v14 = vmul.f32 %v5039_v3, %v5103_v49  ;;  %v5395_v38 = vmul.f32 %v5073_v25, %v5098_v48  ;;  %v1548_v9 = vrot.slane %v5287_v7, 7  ;;  %v5400_v56 = vmul.f32 %v5119_v0, %v5143_v52 }
  0x3b   : > { %4335 = vmatprep.mubr.msk.f32.mxu1 %vm583_vm2, %v4961_v34  ;;  %4348 = vmatprep.subr.mxu0 %v3700_v44  ;;  %v5404_v4 = vmul.f32 %v5073_v25, %v5126_v1  ;;  %v5408_v33 = vmul.f32 %v5119_v0, %v5164_v50  ;;  %v5411_v34 = vsel %vm1139_vm11, %v1153_v27, 0.0  ;;  %v5420_v7 = vmul.f32 %v5153_v11, %v5158_v23 }
  0x3c   : > { %6489 = vst [vmem:[#allocation25_spill] sm:$0xff] %v5395_v38  ;;  %4375 = vmatpush3.msra.mxu1 %v3717_v32  ;;  %6490 = vst [vmem:[#allocation26_spill] sm:$0xff] %v5400_v56  ;;  %4349 = vmatpush3.msra.mxu0 %v3700_v44  ;;  %v3715_v32 = vld [vmem:[%s6426_s3 + $0xa0] sm:$0xff]  ;;  %v5429_v27 = vmul.f32 %v5153_v11, %v5185_v10  ;;  %v2420_v38 = vsel %vm462_vm0, %v1545_v19, 0.0 }
  0x3d   : > { %6491 = vst [vmem:[#allocation27_spill] sm:$0xff] %v5404_v4  ;;  %6492 = vst [vmem:[#allocation28_spill] sm:$0xff] %v5408_v33  ;;  %4336 = vmatmul.mubr.msk.f32.gmra.mxu1 %vm583_vm2, %v4964_v35  ;;  %v6494_v4 = vrot.slane %v5089_v42, 7  ;;  %v5432_v35 = vsel %vm1139_vm11, %v1178_v37, 0.0  ;;  %4376 = vmatprep.subr.mxu1 %v3716_v45  ;;  %v3698_v37 = vld [vmem:[%s6425_s2 + $0x98] sm:$0xff] }
  0x3e   : > { %6493 = vst [vmem:[#allocation29_spill] sm:$0xff] %v5420_v7  ;;  %6495 = vst [vmem:[#allocation30_spill] sm:$0xff] %v5429_v27  ;;  %4350 = vmatprep.subr.mxu0 %v3699_v16  ;;  %v6496_v7 = vrot.slane %v5123_v17, 7  ;;  %4377 = vmatpush3.msra.mxu1 %v3716_v45  ;;  %v5466_v45 = vsel %vm1211_vm3, 1.0, %v6480_v61 }
  0x3f   : > { %v5425_v56 = vsel %vm462_vm0, %v6494_v4, %v1545_v19  ;;  %v5443_v4 = vmul.f32 %v5256_v36, %v5268_v59  ;;  %4310 = vmatprep.mubr.msk.f32.mxu0 %vm583_vm2, %v4977_v41  ;;  %v2422_v19 = vsel %vm462_vm0, %v1548_v9, 0.0  ;;  %4351 = vmatpush3.msra.mxu0 %v3699_v16  ;;  %v5470_v41 = vmul.f32 %v5281_v46, %v5302_v2  ;;  %v3697_v16 = vld [vmem:[%s6425_s2 + $0x90] sm:$0xff] }
  0x40   : > { %v5436_v44 = vmul.f32 %v5161_v54, %v5425_v56  ;;  %v1549_v33 = vsel %vm462_vm0, %v6496_v7, %v1548_v9  ;;  %v5456_v7 = vmul.f32 %v5256_v36, %v5273_v22  ;;  %4378 = vmatprep.subr.mxu1 %v3715_v32  ;;  %4311 = vmatmul.mubr.msk.f32.gmra.mxu0 %vm583_vm2, %v5024_v62  ;;  %v5493_v9 = vsel %vm1212_vm4, 1.0, %v6480_v61 }
  0x41   : > { %6497 = vst [vmem:[#allocation31_spill] sm:$0xff] %v5443_v4  ;;  %v5452_v27 = vmul.f32 %v5161_v54, %v1549_v33  ;;  %v5460_v4 = vmul.f32 %v5277_v55, %v5218_v13  ;;  %6500 = vst [vmem:[#allocation34_spill] sm:$0xff] %v5470_v41  ;;  %4338 = vmatprep.mubr.msk.f32.mxu1 %vm583_vm2, %v5027_v63  ;;  %v5505_v41 = vmul.f32 %v5324_v26, %v5349_v43  ;;  %vm4811_vm0 = vmmov 0  }
  0x42   : > { %6498 = vst [vmem:[#allocation32_spill] sm:$0xff] %v5456_v7  ;;  %v5474_v7 = vmul.f32 %v5277_v55, %v5249_v40  ;;  %4352 = vmatprep.subr.mxu0 %v3698_v37  ;;  %4379 = vmatpush3.msra.mxu1 %v3715_v32  ;;  %v5509_v62 = vmul.f32 %v5343_v21, %v5365_v24  ;;  %v3713_v32 = vld [vmem:[%s6426_s3 + $0x90] sm:$0xff] }
  0x43   : > { %6499 = vst [vmem:[#allocation33_spill] sm:$0xff] %v5460_v4  ;;  %v5478_v4 = vmul.f32 %v5281_v46, %v5346_v31  ;;  %6503 = vst [vmem:[#allocation37_spill] sm:$0xff] %v5505_v41  ;;  %v5513_v47 = vmul.f32 %v5466_v45, %v5361_v60  ;;  %v5517_v61 = vmul.f32 %v5493_v9, %v5411_v34  ;;  %4339 = vmatmul.mubr.msk.f32.gmra.mxu1 %vm583_vm2, %v5049_v6 }
  0x44   : > { %6501 = vst [vmem:[#allocation35_spill] sm:$0xff] %v5474_v7  ;;  %v5501_v7 = vmul.f32 %v5343_v21, %v5357_v57  ;;  %6504 = vst [vmem:[#allocation38_spill] sm:$0xff] %v5509_v62  ;;  %4353 = vmatpush3.msra.mxu0 %v3698_v37  ;;  %v5526_v41 = vmul.f32 %v5466_v45, %v5368_v18  ;;  %v5530_v62 = vmul.f32 %v5493_v9, %v5432_v35 }
  0x45   : > { %6502 = vst [vmem:[#allocation36_spill] sm:$0xff] %v5478_v4  ;;  %v5497_v4 = vmul.f32 %v5324_v26, %v5339_v53  ;;  %6505 = vst [vmem:[#allocation39_spill] sm:$0xff] %v5513_v47  ;;  %v5534_v47 = vmul.f32 %v4951_v30, %v4972_v39  ;;  %4380 = vmatprep.subr.mxu1 %v3714_v29  ;;  %4354 = vmatprep.subr.mxu0 %v3697_v16  ;;  %v3696_v39 = vld [vmem:[%s6425_s2 + $0x88] sm:$0xff] }
  0x46   : > { %6506 = vst [vmem:[#allocation40_spill] sm:$0xff] %v5517_v61  ;;  %6507 = vst [vmem:[#allocation41_spill] sm:$0xff] %v5526_v41  ;;  %v5538_v37 = vmul.f32 %v4951_v30, %v5012_v58  ;;  %v5542_v61 = vmul.f32 %v4997_v51, %v5058_v12  ;;  %v5546_v41 = vmul.f32 %v5039_v3, %v5098_v48  ;;  %4381 = vmatpush3.msra.mxu1 %v3714_v29 }
  0x47   : > { %6508 = vst [vmem:[#allocation42_spill] sm:$0xff] %v5530_v62  ;;  %6509 = vst [vmem:[#allocation43_spill] sm:$0xff] %v5534_v47  ;;  %4313 = vmatprep.mubr.msk.f32.mxu0 %vm583_vm2, %v5062_v15  ;;  %v6510_v47 = vld [vmem:[#allocation3_spill] sm:$0xff]  ;;  %v5558_v58 = vmul.f32 %v4997_v51, %v5103_v49  ;;  %v5562_v12 = vmul.f32 %v5039_v3, %v5126_v1  ;;  %v5566_v48 = vmul.f32 %v5073_v25, %v5143_v52  ;;  %v6512_v3 = vld [vmem:[#allocation14_spill] sm:$0xff] }
  0x48   : > { %v6511_v62 = vrot.slane %v6510_v47, 1  ;;  %4355 = vmatpush3.msra.mxu0 %v3697_v16  ;;  %4382 = vmatprep.subr.mxu1 %v3713_v32  ;;  %v5570_v29 = vmul.f32 %v5119_v0, %v5158_v23  ;;  %v5578_v51 = vmul.f32 %v5119_v0, %v5185_v10  ;;  %v3712_v49 = vld [vmem:[%s6426_s3 + $0x88] sm:$0xff]  ;;  %v3695_v52 = vld [vmem:[%s6425_s2 + $0x80] sm:$0xff]  ;;  %v5595_v0 = vmul.f32 %v5153_v11, %v5425_v56 }
  0x49   : > { %4314 = vmatmul.mubr.msk.f32.gmra.mxu0 %vm583_vm2, %v5089_v42  ;;  %4341 = vmatprep.mubr.msk.f32.mxu1 %vm583_vm2, %v6512_v3  ;;  %v5601_v10 = vmul.f32 %v5153_v11, %v1549_v33  ;;  %v5605_v47 = vmul.f32 %v5161_v54, %v2422_v19  ;;  %v6515_v56 = vld [vmem:[#allocation15_spill] sm:$0xff]  ;;  %v3733_v19 = vld [vmem:[%s6425_s2 + $0xf0] sm:$0xff] }
  0x4a   : > { %v1163_v30 = vsel %vm1139_vm11, 0.0, %v6511_v62  ;;  %v5574_v62 = vmul.f32 %v5073_v25, %v5164_v50  ;;  %v6513_v25 = vld [vmem:[#allocation4_spill] sm:$0xff]  ;;  %v5598_v50 = vmul.f32 %v5161_v54, %v2420_v38  ;;  %4356 = vmatprep.subr.mxu0 %v3696_v39  ;;  %4383 = vmatpush3.msra.mxu1 %v3713_v32  ;;  %v3711_v38 = vld [vmem:[%s6426_s3 + $0x80] sm:$0xff]  ;;  %v1246_v11 = vmul.f32 %v6515_v56, %v5273_v22  ;;  %v3734_v54 = vld [vmem:[%s6425_s2 + $0xf8] sm:$0xff] }
  0x4b   : > { %v6514_v1 = vrot.slane %v6513_v25, 1  ;;  %v1237_v16 = vmul.f32 %v5256_v36, %v1163_v30  ;;  %4342 = vmatmul.mubr.msk.f32.gmra.mxu1 %vm583_vm2, %v5123_v17  ;;  %4357 = vmatpush3.msra.mxu0 %v3696_v39  ;;  %v1238_v25 = vmul.f32 %v6515_v56, %v5268_v59  ;;  %v3750_v59 = vld [vmem:[%s6426_s3 + $0xf8] sm:$0xff]  ;;  %v6516_v32 = vld [vmem:[#allocation16_spill] sm:$0xff]  ;;  %v1240_v30 = vmul.f32 %v5281_v46, %v5218_v13  ;;  %v3748_v13 = vld [vmem:[%s6426_s3 + $0xe8] sm:$0xff] }
  0x4c   : > { %4384 = vmatprep.subr.mxu1 %v3712_v49  ;;  %4358 = vmatprep.subr.mxu0 %v3695_v52  ;;  %v1239_v22 = vmul.f32 %v5277_v55, %v6516_v32  ;;  %v3749_v39 = vld [vmem:[%s6426_s3 + $0xf0] sm:$0xff]  ;;  %v1241_v56 = vmul.f32 %v5324_v26, %v5302_v2 }
  0x4d   : > { %v1188_v23 = vsel %vm1139_vm11, 0.0, %v6514_v1  ;;  %4385 = vmatpush3.msra.mxu1 %v3712_v49  ;;  %4359 = vmatpush3.msra.mxu0 %v3695_v52  ;;  %v6517_v49 = vld [vmem:[#allocation19_spill] sm:$0xff] }
  0x4e   : > { %v1245_v33 = vmul.f32 %v5256_v36, %v1188_v23  ;;  %4360 = vmatprep.mubr.msk.f32.mxu0 %vm583_vm2, %v1237_v16  ;;  %4386 = vmatprep.subr.mxu1 %v3711_v38  ;;  %v1247_v52 = vmul.f32 %v5277_v55, %v6517_v49  ;;  %v3732_v1 = vld [vmem:[%s6425_s2 + $0xe8] sm:$0xff]  ;;  %v1248_v23 = vmul.f32 %v5281_v46, %v5249_v40  ;;  %v3731_v16 = vld [vmem:[%s6425_s2 + $0xe0] sm:$0xff] }
  0x4f   : > { %4361 = vmatmul.mubr.msk.f32.vlgmr.msra.gmra.mxu0 %vm583_vm2, %v1238_v25  ;;  %4387 = vmatpush3.msra.mxu1 %v3711_v38  ;;  %v3747_v40 = vld [vmem:[%s6426_s3 + $0xe0] sm:$0xff]  ;;  %v1242_v25 = vmul.f32 %v5343_v21, %v5339_v53  ;;  %v1249_v38 = vmul.f32 %v5324_v26, %v5346_v31 }
  0x50   : > { %4388 = vmatprep.mubr.msk.f32.mxu1 %vm583_vm2, %v1245_v33  ;;  %4400 = vmatprep.subr.mxu0 %v3734_v54  ;;  %v3730_v33 = vld [vmem:[%s6425_s2 + $0xd8] sm:$0xff] }
  0x51   : > { %4389 = vmatmul.mubr.msk.f32.vlgmr.msra.gmra.mxu1 %vm583_vm2, %v1246_v11  ;;  %4401 = vmatpush3.msra.mxu0 %v3734_v54  ;;  %v1250_v11 = vmul.f32 %v5343_v21, %v5349_v43  ;;  %v3746_v54 = vld [vmem:[%s6426_s3 + $0xd8] sm:$0xff] }
  0x52   : > { %4428 = vmatprep.subr.mxu1 %v3750_v59  ;;  %4402 = vmatprep.subr.mxu0 %v3733_v19 }
  0x53   : > { %4429 = vmatpush3.msra.mxu1 %v3750_v59  ;;  %4363 = vmatprep.mubr.msk.f32.mxu0 %vm583_vm2, %v1239_v22  ;;  %v3729_v59 = vld [vmem:[%s6425_s2 + $0xd0] sm:$0xff]  ;;  %v1251_v22 = vmul.f32 %v5466_v45, %v5365_v24 }
  0x54   : > { %4403 = vmatpush3.msra.mxu0 %v3733_v19  ;;  %4430 = vmatprep.subr.mxu1 %v3749_v39  ;;  %v1243_v19 = vmul.f32 %v5466_v45, %v5357_v57 }
  0x55   : > { %4364 = vmatmul.mubr.msk.f32.gmra.mxu0 %vm583_vm2, %v1240_v30  ;;  %4391 = vmatprep.mubr.msk.f32.mxu1 %vm583_vm2, %v1247_v52  ;;  %v1244_v30 = vmul.f32 %v5493_v9, %v5361_v60  ;;  %v5689_v52 = vmul.f32 %v5256_v36, %v6516_v32  ;;  %v3727_v32 = vld [vmem:[%s6425_s2 + $0xc0] sm:$0xff] }
  0x56   : > { %4404 = vmatprep.subr.mxu0 %v3732_v1  ;;  %4431 = vmatpush3.msra.mxu1 %v3749_v39  ;;  %v3745_v39 = vld [vmem:[%s6426_s3 + $0xd0] sm:$0xff] }
  0x57   : > { %4392 = vmatmul.mubr.msk.f32.gmra.mxu1 %vm583_vm2, %v1248_v23  ;;  %4405 = vmatpush3.msra.mxu0 %v3732_v1  ;;  %v5693_v1 = vmul.f32 %v5256_v36, %v6517_v49  ;;  %v3728_v23 = vld [vmem:[%s6425_s2 + $0xc8] sm:$0xff]  ;;  %v5711_v49 = vmul.f32 %v5277_v55, %v5302_v2  ;;  %v5727_v2 = vmul.f32 %v5281_v46, %v5349_v43  ;;  %v6519_v43 = vld [vmem:[#allocation9_spill] sm:$0xff] }
  0x58   : > { %4432 = vmatprep.subr.mxu1 %v3748_v13  ;;  %4406 = vmatprep.subr.mxu0 %v3731_v16  ;;  %v3744_v36 = vld [vmem:[%s6426_s3 + $0xc8] sm:$0xff] }
  0x59   : > { %4433 = vmatpush3.msra.mxu1 %v3748_v13  ;;  %4366 = vmatprep.mubr.msk.f32.mxu0 %vm583_vm2, %v1241_v56  ;;  %v1252_v13 = vmul.f32 %v5493_v9, %v5368_v18  ;;  %v5719_v56 = vmul.f32 %v5277_v55, %v5346_v31  ;;  %v3766_v55 = vld [vmem:[%s6425_s2 + $0x138] sm:$0xff]  ;;  %v5738_v31 = vmul.f32 %v5343_v21, %v5361_v60  ;;  %v3765_v60 = vld [vmem:[%s6425_s2 + $0x130] sm:$0xff] }
  0x5a   : > { %4407 = vmatpush3.msra.mxu0 %v3731_v16  ;;  %4434 = vmatprep.subr.mxu1 %v3747_v40  ;;  %v5715_v16 = vmul.f32 %v5281_v46, %v5339_v53  ;;  %v5734_v53 = vmul.f32 %v5324_v26, %v5357_v57  ;;  %v5744_v46 = vmul.f32 %v5324_v26, %v5365_v24  ;;  %v3782_v57 = vld [vmem:[%s6426_s3 + $0x138] sm:$0xff]  ;;  %v6520_v26 = vld [vmem:[#allocation11_spill] sm:$0xff]  ;;  %v3781_v24 = vld [vmem:[%s6426_s3 + $0x130] sm:$0xff] }
  0x5b   : > { %4367 = vmatmul.mubr.msk.f32.gmra.mxu0 %vm583_vm2, %v1242_v25  ;;  %4394 = vmatprep.mubr.msk.f32.mxu1 %vm583_vm2, %v1249_v38  ;;  %v6518_v25 = vld [vmem:[#allocation24_spill] sm:$0xff]  ;;  %v5756_v38 = vmul.f32 %v5343_v21, %v5368_v18  ;;  %v5771_v21 = vmul.f32 %v5466_v45, %v5432_v35  ;;  %v3779_v35 = vld [vmem:[%s6426_s3 + $0x120] sm:$0xff]  ;;  %v6521_v18 = vld [vmem:[#allocation25_spill] sm:$0xff] }
  0x5c   : > { %4408 = vmatprep.subr.mxu0 %v3730_v33  ;;  %4435 = vmatpush3.msra.mxu1 %v3747_v40  ;;  %v3743_v40 = vld [vmem:[%s6426_s3 + $0xc0] sm:$0xff] }
  0x5d   : > { %4395 = vmatmul.mubr.msk.f32.gmra.mxu1 %vm583_vm2, %v1250_v11  ;;  %4409 = vmatpush3.msra.mxu0 %v3730_v33  ;;  %v5767_v33 = vmul.f32 %v5466_v45, %v5411_v34  ;;  %v3780_v34 = vld [vmem:[%s6426_s3 + $0x128] sm:$0xff]  ;;  %v3778_v45 = vld [vmem:[%s6426_s3 + $0x118] sm:$0xff]  ;;  %v3761_v11 = vld [vmem:[%s6425_s2 + $0x110] sm:$0xff] }
  0x5e   : > { %4436 = vmatprep.subr.mxu1 %v3746_v54  ;;  %4410 = vmatprep.subr.mxu0 %v3729_v59 }
  0x5f   : > { %4437 = vmatpush3.msra.mxu1 %v3746_v54  ;;  %4369 = vmatprep.mubr.msk.f32.mxu0 %vm583_vm2, %v1243_v19  ;;  %v6524_v54 = vld [vmem:[#allocation28_spill] sm:$0xff]  ;;  %v6525_v19 = vld [vmem:[#allocation29_spill] sm:$0xff] }
  0x60   : > { %4411 = vmatpush3.msra.mxu0 %v3729_v59  ;;  %4438 = vmatprep.subr.mxu1 %v3745_v39  ;;  %v3777_v59 = vld [vmem:[%s6426_s3 + $0x110] sm:$0xff] }
  0x61   : > { %4370 = vmatmul.mubr.msk.f32.gmra.mxu0 %vm583_vm2, %v1244_v30  ;;  %4397 = vmatprep.mubr.msk.f32.mxu1 %vm583_vm2, %v1251_v22  ;;  %v3760_v22 = vld [vmem:[%s6425_s2 + $0x108] sm:$0xff] }
  0x62   : > { %4412 = vmatprep.subr.mxu0 %v3728_v23  ;;  %4439 = vmatpush3.msra.mxu1 %v3745_v39  ;;  %v6526_v39 = vld [vmem:[#allocation30_spill] sm:$0xff]  ;;  %v3776_v30 = vld [vmem:[%s6426_s3 + $0x108] sm:$0xff] }
  0x63   : > { %4398 = vmatmul.mubr.msk.f32.gmra.mxu1 %vm583_vm2, %v1252_v13  ;;  %4413 = vmatpush3.msra.mxu0 %v3728_v23  ;;  %v3759_v23 = vld [vmem:[%s6425_s2 + $0x100] sm:$0xff]  ;;  %v3798_v13 = vld [vmem:[%s6425_s2 + $0x178] sm:$0xff] }
  0x64   : > { %4440 = vmatprep.subr.mxu1 %v3744_v36  ;;  %4414 = vmatprep.subr.mxu0 %v3727_v32 }
  0x65   : > { %4441 = vmatpush3.msra.mxu1 %v3744_v36  ;;  %4415 = vmatpush3.msra.mxu0 %v3727_v32  ;;  %v4786_v36 = vld [vmem:[%s4904_s30] sm:$0xff]  ;;  %v5839_v32 = vld [vmem:[%s4904_s30 + $0x8] sm:$0xff] }
  0x66   : > { %4416 = vmatprep.mubr.msk.f32.mxu0 %vm583_vm2, %v6518_v25  ;;  %4442 = vmatprep.subr.mxu1 %v3743_v40  ;;  %v6527_v25 = vld [vmem:[#allocation6_spill] sm:$0xff] }
  0x67   : > { %4417 = vmatmul.mubr.msk.f32.vlgmr.msra.gmra.mxu0 %vm583_vm2, %v6519_v43  ;;  %4443 = vmatpush3.msra.mxu1 %v3743_v40  ;;  %v3797_v40 = vld [vmem:[%s6425_s2 + $0x170] sm:$0xff] }
  0x68   : > { %4444 = vmatprep.mubr.msk.f32.mxu1 %vm583_vm2, %v5332_v28  ;;  %4456 = vmatprep.subr.mxu0 %v3766_v55  ;;  %v3764_v28 = vld [vmem:[%s6425_s2 + $0x128] sm:$0xff]  ;;  %v3813_v43 = vld [vmem:[%s6426_s3 + $0x170] sm:$0xff] }
  0x69   : > { %4445 = vmatmul.mubr.msk.f32.vlgmr.msra.gmra.mxu1 %vm583_vm2, %v6520_v26  ;;  %4457 = vmatpush3.msra.mxu0 %v3766_v55  ;;  %v4788_v55 = vld [vmem:[%s4922_s12] sm:$0xff]  ;;  %v6529_v26 = vld [vmem:[#allocation8_spill] sm:$0xff] }
  0x6a   : > { %4484 = vmatprep.subr.mxu1 %v3782_v57  ;;  %4458 = vmatprep.subr.mxu0 %v3765_v60 }
  0x6b   : > { %4485 = vmatpush3.msra.mxu1 %v3782_v57  ;;  %4419 = vmatprep.mubr.msk.f32.mxu0 %vm583_vm2, %v5336_v20  ;;  %v3763_v20 = vld [vmem:[%s6425_s2 + $0x120] sm:$0xff]  ;;  %v6528_v57 = vld [vmem:[#allocation5_spill] sm:$0xff] }
  0x6c   : > { %4459 = vmatpush3.msra.mxu0 %v3765_v60  ;;  %4486 = vmatprep.subr.mxu1 %v3781_v24  ;;  %v3796_v60 = vld [vmem:[%s6425_s2 + $0x168] sm:$0xff] }
  0x6d   : > { %4420 = vmatmul.mubr.msk.f32.gmra.mxu0 %vm583_vm2, %v5372_v5  ;;  %4447 = vmatprep.mubr.msk.f32.mxu1 %vm583_vm2, %v5387_v8  ;;  %v3762_v5 = vld [vmem:[%s6425_s2 + $0x118] sm:$0xff]  ;;  %v6522_v8 = vld [vmem:[#allocation26_spill] sm:$0xff] }
  0x6e   : > { %4460 = vmatprep.subr.mxu0 %v3764_v28  ;;  %4487 = vmatpush3.msra.mxu1 %v3781_v24  ;;  %v6530_v24 = vld [vmem:[#allocation7_spill] sm:$0xff] }
  0x6f   : > { %4448 = vmatmul.mubr.msk.f32.gmra.mxu1 %vm583_vm2, %v5391_v14  ;;  %4461 = vmatpush3.msra.mxu0 %v3764_v28  ;;  %v6523_v14 = vld [vmem:[#allocation27_spill] sm:$0xff] }
  0x70   : > { %4488 = vmatprep.subr.mxu1 %v3780_v34  ;;  %4462 = vmatprep.subr.mxu0 %v3763_v20  ;;  %v3812_v28 = vld [vmem:[%s6426_s3 + $0x168] sm:$0xff] }
  0x71   : > { %4489 = vmatpush3.msra.mxu1 %v3780_v34  ;;  %4422 = vmatprep.mubr.msk.f32.mxu0 %vm583_vm2, %v6521_v18  ;;  %v3795_v34 = vld [vmem:[%s6425_s2 + $0x160] sm:$0xff]  ;;  %v3794_v18 = vld [vmem:[%s6425_s2 + $0x158] sm:$0xff] }
  0x72   : > { %4463 = vmatpush3.msra.mxu0 %v3763_v20  ;;  %4490 = vmatprep.subr.mxu1 %v3779_v35  ;;  %v3811_v20 = vld [vmem:[%s6426_s3 + $0x160] sm:$0xff] }
  0x73   : > { %4423 = vmatmul.mubr.msk.f32.gmra.mxu0 %vm583_vm2, %v6522_v8  ;;  %4450 = vmatprep.mubr.msk.f32.mxu1 %vm583_vm2, %v6523_v14  ;;  %v6532_v8 = vld [vmem:[#allocation22_spill] sm:$0xff]  ;;  %v6533_v14 = vld [vmem:[#allocation23_spill] sm:$0xff] }
  0x74   : > { %4464 = vmatprep.subr.mxu0 %v3762_v5  ;;  %4491 = vmatpush3.msra.mxu1 %v3779_v35  ;;  %v6531_v35 = vld [vmem:[#allocation12_spill] sm:$0xff] }
  0x75   : > { %4451 = vmatmul.mubr.msk.f32.gmra.mxu1 %vm583_vm2, %v6524_v54  ;;  %4465 = vmatpush3.msra.mxu0 %v3762_v5  ;;  %v3793_v5 = vld [vmem:[%s6425_s2 + $0x150] sm:$0xff]  ;;  %v6535_v54 = vld [vmem:[#allocation17_spill] sm:$0xff] }
  0x76   : > { %4492 = vmatprep.subr.mxu1 %v3778_v45  ;;  %4466 = vmatprep.subr.mxu0 %v3761_v11 }
  0x77   : > { %4493 = vmatpush3.msra.mxu1 %v3778_v45  ;;  %4425 = vmatprep.mubr.msk.f32.mxu0 %vm583_vm2, %v6525_v19  ;;  %v3807_v45 = vld [vmem:[%s6426_s3 + $0x140] sm:$0xff]  ;;  %v3829_v19 = vld [vmem:[%s6425_s2 + $0x1b0] sm:$0xff] }
  0x78   : > { %4467 = vmatpush3.msra.mxu0 %v3761_v11  ;;  %4494 = vmatprep.subr.mxu1 %v3777_v59  ;;  %v6534_v11 = vld [vmem:[#allocation31_spill] sm:$0xff] }
  0x79   : > { %4426 = vmatmul.mubr.msk.f32.gmra.mxu0 %vm583_vm2, %v5436_v44  ;;  %4453 = vmatprep.mubr.msk.f32.mxu1 %vm583_vm2, %v6526_v39  ;;  %v3775_v44 = vld [vmem:[%s6426_s3 + $0x100] sm:$0xff]  ;;  %v6537_v39 = vld [vmem:[#allocation20_spill] sm:$0xff] }
  0x7a   : > { %4468 = vmatprep.subr.mxu0 %v3760_v22  ;;  %4495 = vmatpush3.msra.mxu1 %v3777_v59  ;;  %v3846_v59 = vld [vmem:[%s6426_s3 + $0x1b8] sm:$0xff] }
  0x7b   : > { %4454 = vmatmul.mubr.msk.f32.gmra.mxu1 %vm583_vm2, %v5452_v27  ;;  %4469 = vmatpush3.msra.mxu0 %v3760_v22  ;;  %v3814_v27 = vld [vmem:[%s6426_s3 + $0x178] sm:$0xff]  ;;  %v6536_v22 = vld [vmem:[#allocation32_spill] sm:$0xff] }
  0x7c   : > { %4496 = vmatprep.subr.mxu1 %v3776_v30  ;;  %4470 = vmatprep.subr.mxu0 %v3759_v23 }
  0x7d   : > { %4497 = vmatpush3.msra.mxu1 %v3776_v30  ;;  %4471 = vmatpush3.msra.mxu0 %v3759_v23  ;;  %v3845_v30 = vld [vmem:[%s6426_s3 + $0x1b0] sm:$0xff]  ;;  %v6538_v23 = vld [vmem:[#allocation33_spill] sm:$0xff] }
  0x7e   : > { %4472 = vmatprep.mubr.msk.f32.mxu0 %vm583_vm2, %v4786_v36  ;;  %4498 = vmatprep.subr.mxu1 %v3775_v44  ;;  %v6540_v36 = vld [vmem:[#allocation35_spill] sm:$0xff] }
  0x7f   : > { %4473 = vmatmul.mubr.msk.f32.vlgmr.msra.gmra.mxu0 %vm583_vm2, %v5839_v32  ;;  %4499 = vmatpush3.msra.mxu1 %v3775_v44  ;;  %v3828_v44 = vld [vmem:[%s6425_s2 + $0x1a8] sm:$0xff] }
  0x80   : > { %4500 = vmatprep.mubr.msk.f32.mxu1 %vm583_vm2, %v4788_v55  ;;  %4512 = vmatprep.subr.mxu0 %v3798_v13  ;;  %v6541_v55 = vld [vmem:[#allocation36_spill] sm:$0xff] }
  0x81   : > { %4501 = vmatmul.mubr.msk.f32.vlgmr.msra.gmra.mxu1 %vm583_vm2, %v6527_v25  ;;  %4513 = vmatpush3.msra.mxu0 %v3798_v13  ;;  %v6539_v13 = vld [vmem:[#allocation34_spill] sm:$0xff] }
  0x82   : > { %4540 = vmatprep.subr.mxu1 %v3814_v27  ;;  %4514 = vmatprep.subr.mxu0 %v3797_v40  ;;  %v3843_v25 = vld [vmem:[%s6426_s3 + $0x1a0] sm:$0xff] }
  0x83   : > { %4541 = vmatpush3.msra.mxu1 %v3814_v27  ;;  %4475 = vmatprep.mubr.msk.f32.mxu0 %vm583_vm2, %v6528_v57  ;;  %v3844_v27 = vld [vmem:[%s6426_s3 + $0x1a8] sm:$0xff]  ;;  %v6542_v57 = vld [vmem:[#allocation37_spill] sm:$0xff] }
  0x84   : > { %4515 = vmatpush3.msra.mxu0 %v3797_v40  ;;  %4542 = vmatprep.subr.mxu1 %v3813_v43  ;;  %v3827_v40 = vld [vmem:[%s6425_s2 + $0x1a0] sm:$0xff] }
  0x85   : > { %4476 = vmatmul.mubr.msk.f32.gmra.mxu0 %vm583_vm2, %v6529_v26  ;;  %4503 = vmatprep.mubr.msk.f32.mxu1 %vm583_vm2, %v6530_v24  ;;  %v6543_v26 = vld [vmem:[#allocation38_spill] sm:$0xff]  ;;  %v6544_v24 = vld [vmem:[#allocation39_spill] sm:$0xff] }
  0x86   : > { %4516 = vmatprep.subr.mxu0 %v3796_v60  ;;  %4543 = vmatpush3.msra.mxu1 %v3813_v43  ;;  %v3826_v43 = vld [vmem:[%s6425_s2 + $0x198] sm:$0xff] }
  0x87   : > { %4504 = vmatmul.mubr.msk.f32.gmra.mxu1 %vm583_vm2, %v5027_v63  ;;  %4517 = vmatpush3.msra.mxu0 %v3796_v60  ;;  %v3810_v63 = vld [vmem:[%s6426_s3 + $0x158] sm:$0xff] }
  0x88   : > { %4544 = vmatprep.subr.mxu1 %v3812_v28  ;;  %4518 = vmatprep.subr.mxu0 %v3795_v34  ;;  %v3842_v60 = vld [vmem:[%s6426_s3 + $0x198] sm:$0xff] }
  0x89   : > { %4545 = vmatpush3.msra.mxu1 %v3812_v28  ;;  %4478 = vmatprep.mubr.msk.f32.mxu0 %vm583_vm2, %v6531_v35  ;;  %v3824_v28 = vld [vmem:[%s6425_s2 + $0x188] sm:$0xff] }
  0x8a   : > { %4519 = vmatpush3.msra.mxu0 %v3795_v34  ;;  %4546 = vmatprep.subr.mxu1 %v3811_v20  ;;  %v6545_v34 = vld [vmem:[#allocation40_spill] sm:$0xff]  ;;  %v3840_v35 = vld [vmem:[%s6426_s3 + $0x188] sm:$0xff] }
  0x8b   : > { %4479 = vmatmul.mubr.msk.f32.gmra.mxu0 %vm583_vm2, %v5062_v15  ;;  %4506 = vmatprep.mubr.msk.f32.mxu1 %vm583_vm2, %v5049_v6  ;;  %v3809_v15 = vld [vmem:[%s6426_s3 + $0x150] sm:$0xff]  ;;  %v3792_v6 = vld [vmem:[%s6425_s2 + $0x148] sm:$0xff] }
  0x8c   : > { %4520 = vmatprep.subr.mxu0 %v3794_v18  ;;  %4547 = vmatpush3.msra.mxu1 %v3811_v20  ;;  %v6546_v20 = vld [vmem:[#allocation41_spill] sm:$0xff] }
  0x8d   : > { %4507 = vmatmul.mubr.msk.f32.gmra.mxu1 %vm583_vm2, %v6512_v3  ;;  %4521 = vmatpush3.msra.mxu0 %v3794_v18  ;;  %v3808_v3 = vld [vmem:[%s6426_s3 + $0x148] sm:$0xff]  ;;  %v3823_v18 = vld [vmem:[%s6425_s2 + $0x180] sm:$0xff] }
  0x8e   : > { %4548 = vmatprep.subr.mxu1 %v3810_v63  ;;  %4522 = vmatprep.subr.mxu0 %v3793_v5 }
  0x8f   : > { %4549 = vmatpush3.msra.mxu1 %v3810_v63  ;;  %4481 = vmatprep.mubr.msk.f32.mxu0 %vm583_vm2, %v5089_v42  ;;  %v3791_v42 = vld [vmem:[%s6425_s2 + $0x140] sm:$0xff] }
  0x90   : > { %4523 = vmatpush3.msra.mxu0 %v3793_v5  ;;  %4550 = vmatprep.subr.mxu1 %v3809_v15  ;;  %v6547_v63 = vld [vmem:[#allocation42_spill] sm:$0xff] }
  0x91   : > { %4482 = vmatmul.mubr.msk.f32.gmra.mxu0 %vm583_vm2, %v6532_v8  ;;  %4509 = vmatprep.mubr.msk.f32.mxu1 %vm583_vm2, %v5123_v17  ;;  %v3830_v17 = vld [vmem:[%s6425_s2 + $0x1b8] sm:$0xff]  ;;  %v3839_v5 = vld [vmem:[%s6426_s3 + $0x180] sm:$0xff] }
  0x92   : > { %4524 = vmatprep.subr.mxu0 %v3792_v6  ;;  %4551 = vmatpush3.msra.mxu1 %v3809_v15  ;;  %v3862_v15 = vld [vmem:[%s6425_s2 + $0x1f8] sm:$0xff]  ;;  %v6549_v8 = vld [vmem:[#allocation10_spill] sm:$0xff] }
  0x93   : > { %4510 = vmatmul.mubr.msk.f32.gmra.mxu1 %vm583_vm2, %v6533_v14  ;;  %4525 = vmatpush3.msra.mxu0 %v3792_v6  ;;  %v6548_v6 = vld [vmem:[#allocation43_spill] sm:$0xff]  ;;  %v6550_v14 = vld [vmem:[#allocation13_spill] sm:$0xff] }
  0x94   : > { %4552 = vmatprep.subr.mxu1 %v3808_v3  ;;  %4526 = vmatprep.subr.mxu0 %v3791_v42 }
  0x95   : > { %4553 = vmatpush3.msra.mxu1 %v3808_v3  ;;  %4527 = vmatpush3.msra.mxu0 %v3791_v42  ;;  %v3877_v3 = vld [vmem:[%s6426_s3 + $0x1f8] sm:$0xff]  ;;  %v3861_v42 = vld [vmem:[%s6425_s2 + $0x1f0] sm:$0xff] }
  0x96   : > { %4528 = vmatprep.mubr.msk.f32.mxu0 %vm583_vm2, %v6534_v11  ;;  %4554 = vmatprep.subr.mxu1 %v3807_v45  ;;  %v3908_v11 = vld [vmem:[%s6426_s3 + $0x238] sm:$0xff] }
  0x97   : > { %4529 = vmatmul.mubr.msk.f32.vlgmr.msra.gmra.mxu0 %vm583_vm2, %v6535_v54  ;;  %4555 = vmatpush3.msra.mxu1 %v3807_v45  ;;  %v3876_v45 = vld [vmem:[%s6426_s3 + $0x1f0] sm:$0xff] }
  0x98   : > { %4556 = vmatprep.mubr.msk.f32.mxu1 %vm583_vm2, %v6536_v22  ;;  %4568 = vmatprep.subr.mxu0 %v3830_v17  ;;  %v3891_v54 = vld [vmem:[%s6425_s2 + $0x230] sm:$0xff]  ;;  %v4792_v22 = vld [vmem:[%s4904_s30 + $0x18] sm:$0xff] }
  0x99   : > { %4557 = vmatmul.mubr.msk.f32.vlgmr.msra.gmra.mxu1 %vm583_vm2, %v6537_v39  ;;  %4569 = vmatpush3.msra.mxu0 %v3830_v17  ;;  %v3860_v17 = vld [vmem:[%s6425_s2 + $0x1e8] sm:$0xff] }
  0x9a   : > { %4596 = vmatprep.subr.mxu1 %v3846_v59  ;;  %4570 = vmatprep.subr.mxu0 %v3829_v19  ;;  %v3890_v39 = vld [vmem:[%s6425_s2 + $0x228] sm:$0xff] }
  0x9b   : > { %4597 = vmatpush3.msra.mxu1 %v3846_v59  ;;  %4531 = vmatprep.mubr.msk.f32.mxu0 %vm583_vm2, %v6538_v23  ;;  %v4790_v59 = vld [vmem:[%s4922_s12 + $0x8] sm:$0xff]  ;;  %v4794_v23 = vld [vmem:[%s4922_s12 + $0x18] sm:$0xff] }
  0x9c   : > { %4571 = vmatpush3.msra.mxu0 %v3829_v19  ;;  %4598 = vmatprep.subr.mxu1 %v3845_v30  ;;  %v3907_v19 = vld [vmem:[%s6426_s3 + $0x230] sm:$0xff] }
  0x9d   : > { %4532 = vmatmul.mubr.msk.f32.gmra.mxu0 %vm583_vm2, %v6539_v13  ;;  %4559 = vmatprep.mubr.msk.f32.mxu1 %vm583_vm2, %v6540_v36  ;;  %v3889_v13 = vld [vmem:[%s6425_s2 + $0x220] sm:$0xff] }
  0x9e   : > { %4572 = vmatprep.subr.mxu0 %v3828_v44  ;;  %4599 = vmatpush3.msra.mxu1 %v3845_v30  ;;  %v4793_v30 = vld [vmem:[%s4904_s30 + $0x20] sm:$0xff] }
  0x9f   : > { %4560 = vmatmul.mubr.msk.f32.gmra.mxu1 %vm583_vm2, %v6541_v55  ;;  %4573 = vmatpush3.msra.mxu0 %v3828_v44  ;;  %v3906_v44 = vld [vmem:[%s6426_s3 + $0x228] sm:$0xff]  ;;  %v4795_v36 = vld [vmem:[%s4922_s12 + $0x20] sm:$0xff]  ;;  %v3888_v55 = vld [vmem:[%s6425_s2 + $0x218] sm:$0xff] }
  0xa0   : > { %4600 = vmatprep.subr.mxu1 %v3844_v27  ;;  %4574 = vmatprep.subr.mxu0 %v3827_v40 }
  0xa1   : > { %4601 = vmatpush3.msra.mxu1 %v3844_v27  ;;  %4534 = vmatprep.mubr.msk.f32.mxu0 %vm583_vm2, %v5497_v4  ;;  %v3825_v4 = vld [vmem:[%s6425_s2 + $0x190] sm:$0xff]  ;;  %v3905_v27 = vld [vmem:[%s6426_s3 + $0x220] sm:$0xff] }
  0xa2   : > { %4575 = vmatpush3.msra.mxu0 %v3827_v40  ;;  %4602 = vmatprep.subr.mxu1 %v3843_v25  ;;  %v4796_v40 = vld [vmem:[%s4904_s30 + $0x28] sm:$0xff] }
  0xa3   : > { %4535 = vmatmul.mubr.msk.f32.gmra.mxu0 %vm583_vm2, %v5501_v7  ;;  %4562 = vmatprep.mubr.msk.f32.mxu1 %vm583_vm2, %v6542_v57  ;;  %v3841_v7 = vld [vmem:[%s6426_s3 + $0x190] sm:$0xff]  ;;  %v3904_v57 = vld [vmem:[%s6426_s3 + $0x218] sm:$0xff] }
  0xa4   : > { %4576 = vmatprep.subr.mxu0 %v3826_v43  ;;  %4603 = vmatpush3.msra.mxu1 %v3843_v25  ;;  %v4797_v25 = vld [vmem:[%s4904_s30 + $0x30] sm:$0xff] }
  0xa5   : > { %4563 = vmatmul.mubr.msk.f32.gmra.mxu1 %vm583_vm2, %v6543_v26  ;;  %4577 = vmatpush3.msra.mxu0 %v3826_v43  ;;  %v4798_v43 = vld [vmem:[%s4922_s12 + $0x28] sm:$0xff]  ;;  %v3903_v26 = vld [vmem:[%s6426_s3 + $0x210] sm:$0xff] }
  0xa6   : > { %4604 = vmatprep.subr.mxu1 %v3842_v60  ;;  %4578 = vmatprep.subr.mxu0 %v3825_v4 }
  0xa7   : > { %4605 = vmatpush3.msra.mxu1 %v3842_v60  ;;  %4537 = vmatprep.mubr.msk.f32.mxu0 %vm583_vm2, %v6544_v24  ;;  %v3887_v60 = vld [vmem:[%s6425_s2 + $0x210] sm:$0xff]  ;;  %v3886_v24 = vld [vmem:[%s6425_s2 + $0x208] sm:$0xff] }
  0xa8   : > { %4579 = vmatpush3.msra.mxu0 %v3825_v4  ;;  %4606 = vmatprep.subr.mxu1 %v3841_v7  ;;  %v4799_v4 = vld [vmem:[%s4922_s12 + $0x30] sm:$0xff] }
  0xa9   : > { %4538 = vmatmul.mubr.msk.f32.gmra.mxu0 %vm583_vm2, %v6545_v34  ;;  %4565 = vmatprep.mubr.msk.f32.mxu1 %vm583_vm2, %v6546_v20  ;;  %v4801_v34 = vld [vmem:[%s4922_s12 + $0x38] sm:$0xff]  ;;  %v3902_v20 = vld [vmem:[%s6426_s3 + $0x208] sm:$0xff] }
  0xaa   : > { %4580 = vmatprep.subr.mxu0 %v3824_v28  ;;  %4607 = vmatpush3.msra.mxu1 %v3841_v7  ;;  %v4800_v7 = vld [vmem:[%s4904_s30 + $0x38] sm:$0xff] }
  0xab   : > { %4566 = vmatmul.mubr.msk.f32.gmra.mxu1 %vm583_vm2, %v6547_v63  ;;  %4581 = vmatpush3.msra.mxu0 %v3824_v28  ;;  %v6551_v28 = vmov 0.0   ;;  %v3632_v63 = vld [vmem:[%s6427_s4] ss:$0 sm:$0xff] }
  0xac   : > { %4608 = vmatprep.subr.mxu1 %v3840_v35  ;;  %4582 = vmatprep.subr.mxu0 %v3823_v18 }
  0xad   : > { %4609 = vmatpush3.msra.mxu1 %v3840_v35  ;;  %4583 = vmatpush3.msra.mxu0 %v3823_v18  ;;  %v3885_v35 = vld [vmem:[%s6425_s2 + $0x200] sm:$0xff] }
  0xae   : > { %4584 = vmatprep.mubr.msk.f32.mxu0 %vm583_vm2, %v6548_v6  ;;  %4610 = vmatprep.subr.mxu1 %v3839_v5  ;;  %v3901_v18 = vld [vmem:[%s6426_s3 + $0x200] sm:$0xff] }
  0xaf   : > { %4585 = vmatmul.mubr.msk.f32.vlgmr.msra.gmra.mxu0 %vm583_vm2, %v6549_v8  ;;  %4611 = vmatpush3.msra.mxu1 %v3839_v5  ;;  %v6552_v5 = vld [vmem:[#allocation18_spill] sm:$0xff]  ;;  %v6553_v8 = vld [vmem:[#allocation21_spill] sm:$0xff] }
  0xb0   : > { %4612 = vmatprep.mubr.msk.f32.mxu1 %vm583_vm2, %v5538_v37  ;;  %4624 = vmatprep.subr.mxu0 %v3862_v15  ;;  %v3875_v37 = vld [vmem:[%s6426_s3 + $0x1e8] sm:$0xff] }
  0xb1   : > { %4613 = vmatmul.mubr.msk.f32.vlgmr.msra.gmra.mxu1 %vm583_vm2, %v6550_v14  ;;  %4625 = vmatpush3.msra.mxu0 %v3862_v15 }
  0xb2   : > { %4652 = vmatprep.subr.mxu1 %v3877_v3  ;;  %4626 = vmatprep.subr.mxu0 %v3861_v42 }
  0xb3   : > { %4653 = vmatpush3.msra.mxu1 %v3877_v3  ;;  %4587 = vmatprep.mubr.msk.f32.mxu0 %vm583_vm2, %v5542_v61  ;;  %v3859_v61 = vld [vmem:[%s6425_s2 + $0x1e0] sm:$0xff] }
  0xb4   : > { %4627 = vmatpush3.msra.mxu0 %v3861_v42  ;;  %4654 = vmatprep.subr.mxu1 %v3876_v45 }
  0xb5   : > { %4588 = vmatmul.mubr.msk.f32.gmra.mxu0 %vm583_vm2, %v5546_v41  ;;  %4615 = vmatprep.mubr.msk.f32.mxu1 %vm583_vm2, %v5558_v58  ;;  %v3874_v41 = vld [vmem:[%s6426_s3 + $0x1e0] sm:$0xff]  ;;  %v3858_v58 = vld [vmem:[%s6425_s2 + $0x1d8] sm:$0xff] }
  0xb6   : > { %4628 = vmatprep.subr.mxu0 %v3860_v17  ;;  %4655 = vmatpush3.msra.mxu1 %v3876_v45 }
  0xb7   : > { %4616 = vmatmul.mubr.msk.f32.gmra.mxu1 %vm583_vm2, %v5562_v12  ;;  %4629 = vmatpush3.msra.mxu0 %v3860_v17  ;;  %v3873_v12 = vld [vmem:[%s6426_s3 + $0x1d8] sm:$0xff]  ;;  %v2982_v17 = vmul.f32 0.0, %v5493_v9 }
  0xb8   : > { %4656 = vmatprep.subr.mxu1 %v3875_v37  ;;  %4630 = vmatprep.subr.mxu0 %v3859_v61 }
  0xb9   : > { %4657 = vmatpush3.msra.mxu1 %v3875_v37  ;;  %4590 = vmatprep.mubr.msk.f32.mxu0 %vm583_vm2, %v5566_v48  ;;  %v3857_v48 = vld [vmem:[%s6425_s2 + $0x1d0] sm:$0xff] }
  0xba   : > { %4631 = vmatpush3.msra.mxu0 %v3859_v61  ;;  %4658 = vmatprep.subr.mxu1 %v3874_v41 }
  0xbb   : > { %4591 = vmatmul.mubr.msk.f32.gmra.mxu0 %vm583_vm2, %v5570_v29  ;;  %4618 = vmatprep.mubr.msk.f32.mxu1 %vm583_vm2, %v5574_v62  ;;  %v3872_v29 = vld [vmem:[%s6426_s3 + $0x1d0] sm:$0xff]  ;;  %v3856_v62 = vld [vmem:[%s6425_s2 + $0x1c8] sm:$0xff] }
  0xbc   : > { %4632 = vmatprep.subr.mxu0 %v3858_v58  ;;  %4659 = vmatpush3.msra.mxu1 %v3874_v41 }
  0xbd   : > { %4619 = vmatmul.mubr.msk.f32.gmra.mxu1 %vm583_vm2, %v5578_v51  ;;  %4633 = vmatpush3.msra.mxu0 %v3858_v58  ;;  %v3871_v51 = vld [vmem:[%s6426_s3 + $0x1c8] sm:$0xff] }
  0xbe   : > { %4660 = vmatprep.subr.mxu1 %v3873_v12  ;;  %4634 = vmatprep.subr.mxu0 %v3857_v48 }
  0xbf   : > { %4661 = vmatpush3.msra.mxu1 %v3873_v12  ;;  %4593 = vmatprep.mubr.msk.f32.mxu0 %vm583_vm2, %v5595_v0  ;;  %v3855_v0 = vld [vmem:[%s6425_s2 + $0x1c0] sm:$0xff] }
  0xc0   : > { %4635 = vmatpush3.msra.mxu0 %v3857_v48  ;;  %4662 = vmatprep.subr.mxu1 %v3872_v29 }
  0xc1   : > { %4594 = vmatmul.mubr.msk.f32.gmra.mxu0 %vm583_vm2, %v5598_v50  ;;  %4621 = vmatprep.mubr.msk.f32.mxu1 %vm583_vm2, %v5601_v10  ;;  %v3870_v50 = vld [vmem:[%s6426_s3 + $0x1c0] sm:$0xff]  ;;  %v3892_v10 = vld [vmem:[%s6425_s2 + $0x238] sm:$0xff] }
  0xc2   : > { %4636 = vmatprep.subr.mxu0 %v3856_v62  ;;  %4663 = vmatpush3.msra.mxu1 %v3872_v29 }
  0xc3   : > { %4622 = vmatmul.mubr.msk.f32.gmra.mxu1 %vm583_vm2, %v5605_v47  ;;  %4637 = vmatpush3.msra.mxu0 %v3856_v62  ;;  %v4789_v47 = vld [vmem:[%s4904_s30 + $0x10] sm:$0xff] }
  0xc4   : > { %4664 = vmatprep.subr.mxu1 %v3871_v51  ;;  %4638 = vmatprep.subr.mxu0 %v3855_v0 }
  0xc5   : > { %4665 = vmatpush3.msra.mxu1 %v3871_v51  ;;  %4639 = vmatpush3.msra.mxu0 %v3855_v0 }
  0xc6   : > { %4640 = vmatprep.mubr.msk.f32.mxu0 %vm583_vm2, %v5839_v32  ;;  %4666 = vmatprep.subr.mxu1 %v3870_v50  ;;  %v4791_v32 = vld [vmem:[%s4922_s12 + $0x10] sm:$0xff] }
  0xc7   : > { %4641 = vmatmul.mubr.msk.f32.vlgmr.msra.gmra.mxu0 %vm583_vm2, %v4789_v47  ;;  %4667 = vmatpush3.msra.mxu1 %v3870_v50 }
  0xc8   : > { %4668 = vmatprep.mubr.msk.f32.mxu1 %vm583_vm2, %v4790_v59  ;;  %4680 = vmatprep.subr.mxu0 %v3892_v10 }
  0xc9   : > { %4669 = vmatmul.mubr.msk.f32.vlgmr.msra.gmra.mxu1 %vm583_vm2, %v4791_v32  ;;  %4681 = vmatpush3.msra.mxu0 %v3892_v10 }
  0xca   : > { %4708 = vmatprep.subr.mxu1 %v3908_v11  ;;  %4682 = vmatprep.subr.mxu0 %v3891_v54 }
  0xcb   : > { %4709 = vmatpush3.msra.mxu1 %v3908_v11  ;;  %4643 = vmatprep.mubr.msk.f32.mxu0 %vm583_vm2, %v4792_v22 }
  0xcc   : > { %4683 = vmatpush3.msra.mxu0 %v3891_v54  ;;  %4710 = vmatprep.subr.mxu1 %v3907_v19 }
  0xcd   : > { %4644 = vmatmul.mubr.msk.f32.gmra.mxu0 %vm583_vm2, %v4793_v30  ;;  %4671 = vmatprep.mubr.msk.f32.mxu1 %vm583_vm2, %v4794_v23 }
  0xce   : > { %4684 = vmatprep.subr.mxu0 %v3890_v39  ;;  %4711 = vmatpush3.msra.mxu1 %v3907_v19 }
  0xcf   : > { %4672 = vmatmul.mubr.msk.f32.gmra.mxu1 %vm583_vm2, %v4795_v36  ;;  %4685 = vmatpush3.msra.mxu0 %v3890_v39 }
  0xd0   : > { %4712 = vmatprep.subr.mxu1 %v3906_v44  ;;  %4686 = vmatprep.subr.mxu0 %v3889_v13 }
  0xd1   : > { %4713 = vmatpush3.msra.mxu1 %v3906_v44  ;;  %4646 = vmatprep.mubr.msk.f32.mxu0 %vm583_vm2, %v4796_v40 }
  0xd2   : > { %4687 = vmatpush3.msra.mxu0 %v3889_v13  ;;  %4714 = vmatprep.subr.mxu1 %v3905_v27 }
  0xd3   : > { %4647 = vmatmul.mubr.msk.f32.gmra.mxu0 %vm583_vm2, %v4797_v25  ;;  %4674 = vmatprep.mubr.msk.f32.mxu1 %vm583_vm2, %v4798_v43 }
  0xd4   : > { %4688 = vmatprep.subr.mxu0 %v3888_v55  ;;  %4715 = vmatpush3.msra.mxu1 %v3905_v27 }
  0xd5   : > { %4675 = vmatmul.mubr.msk.f32.gmra.mxu1 %vm583_vm2, %v4799_v4  ;;  %4689 = vmatpush3.msra.mxu0 %v3888_v55 }
  0xd6   : > { %4716 = vmatprep.subr.mxu1 %v3904_v57  ;;  %4690 = vmatprep.subr.mxu0 %v3887_v60 }
  0xd7   : > { %4717 = vmatpush3.msra.mxu1 %v3904_v57  ;;  %4649 = vmatprep.mubr.msk.f32.mxu0 %vm583_vm2, %v4800_v7 }
  0xd8   : > { %4691 = vmatpush3.msra.mxu0 %v3887_v60  ;;  %4718 = vmatprep.subr.mxu1 %v3903_v26 }
  0xd9   : > { %4650 = vmatmul.mubr.f32.gmra.mxu0 %v6551_v28  ;;  %4677 = vmatprep.mubr.msk.f32.mxu1 %vm583_vm2, %v4801_v34 }
  0xda   : > { %4692 = vmatprep.subr.mxu0 %v3886_v24  ;;  %4719 = vmatpush3.msra.mxu1 %v3903_v26 }
  0xdb   : > { %4678 = vmatmul.mubr.f32.gmra.mxu1 %v6551_v28  ;;  %4693 = vmatpush3.msra.mxu0 %v3886_v24 }
  0xdc   : > { %4720 = vmatprep.subr.mxu1 %v3902_v20  ;;  %4694 = vmatprep.subr.mxu0 %v3885_v35  ;;  %v4250_v15 = vpop.f32.mrf.mxu0 }
  0xdd   : > { %4721 = vmatpush3.msra.mxu1 %v3902_v20  ;;  %4695 = vmatpush3.msra.mxu0 %v3885_v35  ;;  %v714_v6 = vadd.f32 %v4250_v15, %v3632_v63 }
  0xde   : > { %4696 = vmatprep.mubr.msk.f32.mxu0 %vm583_vm2, %v5689_v52  ;;  %4722 = vmatprep.subr.mxu1 %v3901_v18  ;;  %v4278_v3 = vpop.f32.mrf.mxu1  ;;  %v674_v42 = vpop.f32.mrf.mxu0 }
  0xdf   : > { %4697 = vmatmul.mubr.msk.f32.vlgmr.msra.gmra.mxu0 %vm583_vm2, %v6552_v5  ;;  %4723 = vmatpush3.msra.mxu1 %v3901_v18  ;;  %v856_v52 = vadd.f32 %v4278_v3, %v714_v6  ;;  %v713_v14 = vadd.f32 %v3632_v63, %v674_v42 }
  0xe0   : > { %4724 = vmatprep.mubr.msk.f32.mxu1 %vm583_vm2, %v5693_v1  ;;  %4699 = vmatprep.mubr.msk.f32.mxu0 %vm583_vm2, %v5711_v49  ;;  %v816_v1 = vpop.f32.mrf.mxu1 }
  0xe1   : > { %4725 = vmatmul.mubr.msk.f32.vlgmr.msra.gmra.mxu1 %vm583_vm2, %v6553_v8  ;;  %4736 = vmatprep.subr.mxu0 %v6551_v28  ;;  %v855_v49 = vadd.f32 %v816_v1, %v713_v14 }
  0xe2   : > { %4727 = vmatprep.mubr.msk.f32.mxu1 %vm583_vm2, %v5719_v56  ;;  %4755 = vmatprep.subr.mxu1 %v6551_v28  ;;  %v4253_v45 = vpop.f32.mrf.mxu0 }
  0xe3   : > { %4700 = vmatmul.mubr.msk.f32.gmra.mxu0 %vm583_vm2, %v5715_v16  ;;  %v716_v56 = vadd.f32 %v4253_v45, %v3632_v63 }
  0xe4   : > { %4702 = vmatprep.mubr.msk.f32.mxu0 %vm583_vm2, %v5734_v53  ;;  %v684_v16 = vpop.f32.mrf.mxu0 }
  0xe5   : > { %4728 = vmatmul.mubr.msk.f32.gmra.mxu1 %vm583_vm2, %v5727_v2  ;;  %v4281_v37 = vpop.f32.mrf.mxu1  ;;  %v715_v61 = vadd.f32 %v3632_v63, %v684_v16 }
  0xe6   : > { %4730 = vmatprep.mubr.msk.f32.mxu1 %vm583_vm2, %v5744_v46  ;;  %v858_v53 = vadd.f32 %v4281_v37, %v716_v56 }
  0xe7   : > { %4703 = vmatmul.mubr.msk.f32.gmra.mxu0 %vm583_vm2, %v5738_v31  ;;  %v826_v2 = vpop.f32.mrf.mxu1 }
  0xe8   : > { %4705 = vmatprep.mubr.msk.f32.mxu0 %vm583_vm2, %v5767_v33  ;;  %v857_v46 = vadd.f32 %v826_v2, %v715_v61  ;;  %v4256_v31 = vpop.f32.mrf.mxu0 }
  0xe9   : > { %4731 = vmatmul.mubr.msk.f32.gmra.mxu1 %vm583_vm2, %v5756_v38  ;;  %v718_v41 = vadd.f32 %v4256_v31, %v3632_v63 }
  0xea   : > { %4733 = vmatprep.mubr.msk.f32.mxu1 %vm583_vm2, %v5771_v21  ;;  %v694_v58 = vpop.f32.mrf.mxu0 }
  0xeb   : > { %4706 = vmatmul.mubr.msk.f32.gmra.mxu0 %vm583_vm2, %v2982_v17  ;;  %v4284_v9 = vpop.f32.mrf.mxu1  ;;  %v717_v33 = vadd.f32 %v3632_v63, %v694_v58 }
  0xec   : > { %v860_v12 = vadd.f32 %v4284_v9, %v718_v41  ;;  %4752 = vmatprep.mubr.msk.f32.mxu0 %vm4811_vm0, %v6551_v28 }
  0xed   : > { %4734 = vmatmul.mubr.msk.f32.gmra.mxu1 %vm583_vm2, %v2982_v17  ;;  %v836_v48 = vpop.f32.mrf.mxu1 }
  0xee   : > { %v859_v29 = vadd.f32 %v836_v48, %v717_v33  ;;  %v4259_v62 = vpop.f32.mrf.mxu0  ;;  %4771 = vmatprep.mubr.msk.f32.mxu1 %vm4811_vm0, %v6551_v28 }
  0xef   : > { %v720_v51 = vadd.f32 %v4259_v62, %v3632_v63 }
  0xf0   : > { %v704_v0 = vpop.f32.mrf.mxu0 }
  0xf1   : > { %v4287_v38 = vpop.f32.mrf.mxu1  ;;  %v719_v10 = vadd.f32 %v3632_v63, %v704_v0 }
  0xf2   : > { %v862_v50 = vadd.f32 %v4287_v38, %v720_v51 }
  0xf3   : > { %v846_v21 = vpop.f32.mrf.mxu1 }
  0xf4   : > { %v861_v47 = vadd.f32 %v846_v21, %v719_v10  ;;  %v4306_v11 = vpop.f32.mrf.mxu0 }
  0xf5   : > { %v995_v54 = vadd.f32 %v4306_v11, %v856_v52 }
  0xf6   : > { %v4334_v59 = vpop.f32.mrf.mxu1  ;;  %v955_v32 = vpop.f32.mrf.mxu0 }
  0xf7   : > { %v1131_v19 = vadd.f32 %v4334_v59, %v995_v54  ;;  %v994_v22 = vadd.f32 %v955_v32, %v855_v49 }
  0xf8   : > { %v1091_v39 = vpop.f32.mrf.mxu1 }
  0xf9   : > { %v1130_v30 = vadd.f32 %v1091_v39, %v994_v22 }
  0xfa   : > { %v4309_v23 = vpop.f32.mrf.mxu0 }
  0xfb   : > { %v997_v44 = vadd.f32 %v4309_v23, %v858_v53 }
  0xfc   : > { %v965_v36 = vpop.f32.mrf.mxu0 }
  0xfd   : > { %v4337_v13 = vpop.f32.mrf.mxu1  ;;  %v996_v40 = vadd.f32 %v965_v36, %v857_v46 }
  0xfe   : > { %v1133_v27 = vadd.f32 %v4337_v13, %v997_v44 }
  0xff   : > { %v1101_v55 = vpop.f32.mrf.mxu1 }
 0x100   : > { %v1132_v25 = vadd.f32 %v1101_v55, %v996_v40  ;;  %v4312_v43 = vpop.f32.mrf.mxu0 }
 0x101   : > { %v999_v57 = vadd.f32 %v4312_v43, %v860_v12 }
 0x102   : > { %v975_v4 = vpop.f32.mrf.mxu0 }
 0x103   : > { %v4340_v60 = vpop.f32.mrf.mxu1  ;;  %v998_v7 = vadd.f32 %v975_v4, %v859_v29 }
 0x104   : > { %v1135_v26 = vadd.f32 %v4340_v60, %v999_v57  ;;  %v3307_v57 = vld [vmem:[%s6430_s7 + $0x38] sm:$0xff] }
 0x105   : > { %v1111_v24 = vpop.f32.mrf.mxu1  ;;  %4737 = vmatpush3.msra.mxu0 %v3307_v57  ;;  %4756 = vmatpush3.msra.mxu1 %v3307_v57 }
 0x106   : > { %v1134_v34 = vadd.f32 %v1111_v24, %v998_v7  ;;  %4738 = vmatprep.subr.mxu0 %v6551_v28  ;;  %4757 = vmatprep.subr.mxu1 %v6551_v28  ;;  %v3305_v24 = vld [vmem:[%s6430_s7 + $0x28] sm:$0xff] }
 0x109   : > { %v4315_v20 = vpop.f32.mrf.mxu0 }
 0x10a   : > { %v1001_v35 = vadd.f32 %v4315_v20, %v862_v50 }
 0x10b   : > { %v4343_v18 = vpop.f32.mrf.mxu1  ;;  %v985_v63 = vpop.f32.mrf.mxu0 }
 0x10c   : > { %v1137_v5 = vadd.f32 %v4343_v18, %v1001_v35  ;;  %v1000_v15 = vadd.f32 %v985_v63, %v861_v47  ;;  %v3304_v18 = vld [vmem:[%s6430_s7 + $0x20] sm:$0xff] }
 0x10d   : > { %v1121_v6 = vpop.f32.mrf.mxu1 }
 0x10e   : > { %v1136_v8 = vadd.f32 %v1121_v6, %v1000_v15  ;;  %v3303_v15 = vld [vmem:[%s6430_s7 + $0x18] sm:$0xff] }
 0x10f   : > { %v4362_v3 = vpop.f32.mrf.mxu0 }
 0x110   : > { %v1392_v42 = vadd.f32 %v4362_v3, %v1131_v19 }
 0x111   : > { %v4390_v52 = vpop.f32.mrf.mxu1  ;;  %v1352_v14 = vpop.f32.mrf.mxu0 }
 0x112   : > { %v1538_v1 = vadd.f32 %v4390_v52, %v1392_v42  ;;  %v1391_v49 = vadd.f32 %v1352_v14, %v1130_v30  ;;  %v3301_v52 = vld [vmem:[%s6430_s7 + $0x8] sm:$0xff]  ;;  %v3300_v14 = vld [vmem:[%s6430_s7] sm:$0xff] }
 0x113   : > { %v1498_v45 = vpop.f32.mrf.mxu1 }
 0x114   : > { %v6190_v56 = vadd.f32 %v1498_v45, %v1391_v49 }
 0x115   : > { %v4365_v17 = vpop.f32.mrf.mxu0 }
 0x116   : > { %v1394_v37 = vadd.f32 %v4365_v17, %v1133_v27 }
 0x117   : > { %v4393_v16 = vpop.f32.mrf.mxu1  ;;  %v1362_v53 = vpop.f32.mrf.mxu0 }
 0x118   : > { %v1540_v61 = vadd.f32 %v4393_v16, %v1394_v37  ;;  %v1393_v2 = vadd.f32 %v1362_v53, %v1132_v25 }
 0x119   : > { %v1508_v46 = vpop.f32.mrf.mxu1 }
 0x11a   : > { %v6192_v31 = vadd.f32 %v1508_v46, %v1393_v2 }
 0x11b   : > { %v4368_v41 = vpop.f32.mrf.mxu0 }
 0x11c   : > { %v1396_v9 = vadd.f32 %v4368_v41, %v1135_v26  ;;  %v3306_v26 = vld [vmem:[%s6430_s7 + $0x30] sm:$0xff] }
 0x11d   : > { %v4396_v58 = vpop.f32.mrf.mxu1  ;;  %v1372_v12 = vpop.f32.mrf.mxu0  ;;  %4739 = vmatpush3.msra.mxu0 %v3306_v26  ;;  %4758 = vmatpush3.msra.mxu1 %v3306_v26 }
 0x11e   : > { %v1542_v33 = vadd.f32 %v4396_v58, %v1396_v9  ;;  %v1395_v48 = vadd.f32 %v1372_v12, %v1134_v34  ;;  %4740 = vmatprep.subr.mxu0 %v6551_v28  ;;  %4759 = vmatprep.subr.mxu1 %v6551_v28 }
 0x11f   : > { %v1518_v29 = vpop.f32.mrf.mxu1  ;;  %4741 = vmatpush3.msra.mxu0 %v3305_v24  ;;  %4760 = vmatpush3.msra.mxu1 %v3305_v24 }
 0x120   : > { %v6194_v62 = vadd.f32 %v1518_v29, %v1395_v48  ;;  %4742 = vmatprep.subr.mxu0 %v6551_v28  ;;  %4761 = vmatprep.subr.mxu1 %v6551_v28 }
 0x121   : > { %v4371_v51 = vpop.f32.mrf.mxu0  ;;  %4743 = vmatpush3.msra.mxu0 %v3304_v18  ;;  %4762 = vmatpush3.msra.mxu1 %v3304_v18 }
 0x122   : > { %v1398_v38 = vadd.f32 %v4371_v51, %v1137_v5  ;;  %4744 = vmatprep.subr.mxu0 %v6551_v28  ;;  %4763 = vmatprep.subr.mxu1 %v6551_v28 }
 0x123   : > { %v4399_v0 = vpop.f32.mrf.mxu1  ;;  %v1382_v50 = vpop.f32.mrf.mxu0  ;;  %4745 = vmatpush3.msra.mxu0 %v3303_v15  ;;  %4764 = vmatpush3.msra.mxu1 %v3303_v15 }
 0x124   : > { %v1544_v10 = vadd.f32 %v4399_v0, %v1398_v38  ;;  %v1397_v21 = vadd.f32 %v1382_v50, %v1136_v8  ;;  %4746 = vmatprep.subr.mxu0 %v6551_v28  ;;  %v3302_v8 = vld [vmem:[%s6430_s7 + $0x10] sm:$0xff]  ;;  %4765 = vmatprep.subr.mxu1 %v6551_v28 }
 0x125   : > { %v1528_v47 = vpop.f32.mrf.mxu1  ;;  %4747 = vmatpush3.msra.mxu0 %v3302_v8  ;;  %4766 = vmatpush3.msra.mxu1 %v3302_v8 }
 0x126   : > { %v6196_v11 = vadd.f32 %v1528_v47, %v1397_v21  ;;  %4748 = vmatprep.subr.mxu0 %v6551_v28  ;;  %4767 = vmatprep.subr.mxu1 %v6551_v28 }
 0x127   : > { %v4418_v54 = vpop.f32.mrf.mxu0  ;;  %4749 = vmatpush3.msra.mxu0 %v3301_v52  ;;  %4768 = vmatpush3.msra.mxu1 %v3301_v52 }
 0x128   : > { %v1706_v59 = vadd.f32 %v4418_v54, %v1538_v1  ;;  %4750 = vmatprep.subr.mxu0 %v6551_v28  ;;  %4769 = vmatprep.subr.mxu1 %v6551_v28 }
 0x129   : > { %v4446_v32 = vpop.f32.mrf.mxu1  ;;  %v6198_v19 = vpop.f32.mrf.mxu0  ;;  %4751 = vmatpush3.msra.mxu0 %v3300_v14  ;;  %4770 = vmatpush3.msra.mxu1 %v3300_v14 }
 0x12a   : > { %v6200_v22 = vadd.f32 %v4446_v32, %v1706_v59  ;;  %v1705_v14 = vadd.f32 %v6198_v19, %v6190_v56 }
 0x12b   : > { %v6202_v39 = vpop.f32.mrf.mxu1 }
 0x12d   : > { %v4421_v30 = vpop.f32.mrf.mxu0 }
 0x12e   : > { %v1708_v23 = vadd.f32 %v4421_v30, %v1540_v61 }
 0x12f   : > { %v4449_v44 = vpop.f32.mrf.mxu1  ;;  %v6204_v13 = vpop.f32.mrf.mxu0 }
 0x130   : > { %v6206_v36 = vadd.f32 %v4449_v44, %v1708_v23 }
 0x131   : > { %v6208_v27 = vpop.f32.mrf.mxu1 }
 0x133   : > { %v4424_v40 = vpop.f32.mrf.mxu0 }
 0x134   : > { %v1710_v55 = vadd.f32 %v4424_v40, %v1542_v33 }
 0x135   : > { %v4452_v25 = vpop.f32.mrf.mxu1  ;;  %v6210_v43 = vpop.f32.mrf.mxu0 }
 0x136   : > { %v6215_v60 = vadd.f32 %v4452_v25, %v1710_v55 }
 0x137   : > { %v6217_v4 = vpop.f32.mrf.mxu1 }
 0x139   : > { %v4427_v7 = vpop.f32.mrf.mxu0 }
 0x13a   : > { %v1712_v34 = vadd.f32 %v4427_v7, %v1544_v10 }
 0x13b   : > { %v4455_v20 = vpop.f32.mrf.mxu1  ;;  %v6229_v35 = vpop.f32.mrf.mxu0 }
 0x13c   : > { %v6236_v63 = vadd.f32 %v4455_v20, %v1712_v34 }
 0x13d   : > { %v6238_v5 = vpop.f32.mrf.mxu1 }
 0x13f   : > { %v6245_v6 = vpop.f32.mrf.mxu0 }
 0x141   : > { %v6252_v3 = vpop.f32.mrf.mxu1  ;;  %v6254_v42 = vpop.f32.mrf.mxu0 }
 0x143   : > { %v6265_v1 = vpop.f32.mrf.mxu1 }
 0x145   : > { %v4477_v49 = vpop.f32.mrf.mxu0 }
 0x147   : > { %v6270_v45 = vpop.f32.mrf.mxu1  ;;  %v1946_v17 = vpop.f32.mrf.mxu0 }
 0x149   : > { %v6272_v37 = vpop.f32.mrf.mxu1 }
 0x14b   : > { %v4480_v16 = vpop.f32.mrf.mxu0 }
 0x14d   : > { %v6274_v53 = vpop.f32.mrf.mxu1  ;;  %v1956_v61 = vpop.f32.mrf.mxu0 }
 0x14f   : > { %v6276_v2 = vpop.f32.mrf.mxu1 }
 0x151   : > { %v6278_v46 = vpop.f32.mrf.mxu0 }
 0x153   : > { %v6280_v41 = vpop.f32.mrf.mxu1  ;;  %v6282_v9 = vpop.f32.mrf.mxu0 }
 0x155   : > { %v6284_v58 = vpop.f32.mrf.mxu1 }
 0x157   : > { %v4530_v28 = vpop.f32.mrf.mxu0 }
 0x159   : > { %v4558_v12 = vpop.f32.mrf.mxu1  ;;  %v2226_v33 = vpop.f32.mrf.mxu0 }
 0x15b   : > { %v2372_v48 = vpop.f32.mrf.mxu1 }
 0x15d   : > { %v4533_v29 = vpop.f32.mrf.mxu0 }
 0x15f   : > { %v6286_v51 = vpop.f32.mrf.mxu1  ;;  %v2236_v38 = vpop.f32.mrf.mxu0 }
 0x161   : > { %v6288_v0 = vpop.f32.mrf.mxu1 }
 0x163   : > { %v6290_v50 = vpop.f32.mrf.mxu0 }
 0x165   : > { %v6292_v10 = vpop.f32.mrf.mxu1  ;;  %v6294_v21 = vpop.f32.mrf.mxu0 }
 0x167   : > { %v6296_v47 = vpop.f32.mrf.mxu1 }
 0x169   : > { %v6298_v54 = vpop.f32.mrf.mxu0 }
 0x16b   : > { %v6300_v59 = vpop.f32.mrf.mxu1  ;;  %v6302_v32 = vpop.f32.mrf.mxu0 }
 0x16c   : > { %6554 = vst [vmem:[#allocation3_spill] sm:$0xff] %v6300_v59  ;;  %v1851_v59 = vadd.f32 %v6202_v39, %v1705_v14  ;;  %v1978_v39 = vadd.f32 %v4477_v49, %v6206_v36 }
 0x16d   : > { %v6304_v30 = vpop.f32.mrf.mxu1 }
 0x16e   : > { %6555 = vst [vmem:[#allocation14_spill] sm:$0xff] %v6304_v30 }
 0x16f   : > { %v4586_v23 = vpop.f32.mrf.mxu0 }
 0x171   : > { %v4614_v44 = vpop.f32.mrf.mxu1  ;;  %v2538_v40 = vpop.f32.mrf.mxu0 }
 0x173   : > { %v6306_v55 = vpop.f32.mrf.mxu1 }
 0x175   : > { %v4589_v25 = vpop.f32.mrf.mxu0 }
 0x177   : > { %v6308_v57 = vpop.f32.mrf.mxu1  ;;  %v6310_v26 = vpop.f32.mrf.mxu0 }
 0x179   : > { %v6312_v7 = vpop.f32.mrf.mxu1 }
 0x17a   : > { %6556 = vst [vmem:[#allocation4_spill] sm:$0xff] %v6312_v7 }
 0x17b   : > { %v6314_v24 = vpop.f32.mrf.mxu0 }
 0x17c   : > { %6557 = vst [vmem:[#allocation15_spill] sm:$0xff] %v6314_v24 }
 0x17d   : > { %v6316_v34 = vpop.f32.mrf.mxu1  ;;  %v6318_v20 = vpop.f32.mrf.mxu0 }
 0x17e   : > { %6558 = vst [vmem:[#allocation16_spill] sm:$0xff] %v6316_v34  ;;  %6559 = vst [vmem:[#allocation19_spill] sm:$0xff] %v6318_v20  ;;  %v1707_v34 = vadd.f32 %v6204_v13, %v6192_v31 }
 0x17f   : > { %v6320_v18 = vpop.f32.mrf.mxu1 }
 0x180   : > { %6560 = vst [vmem:[#allocation24_spill] sm:$0xff] %v6320_v18  ;;  %v1976_v18 = vadd.f32 %v6245_v6, %v6200_v22  ;;  %v1853_v56 = vadd.f32 %v6208_v27, %v1707_v34  ;;  %v1980_v27 = vadd.f32 %v4480_v16, %v6215_v60 }
 0x181   : > { %v6322_v15 = vpop.f32.mrf.mxu0 }
 0x182   : > { %6561 = vst [vmem:[#allocation9_spill] sm:$0xff] %v6322_v15  ;;  %v2100_v19 = vadd.f32 %v6252_v3, %v1976_v18  ;;  %v1977_v13 = vadd.f32 %v1946_v17, %v1853_v56 }
 0x183   : > { %v6324_v8 = vpop.f32.mrf.mxu1  ;;  %v6326_v52 = vpop.f32.mrf.mxu0 }
 0x184   : > { %6562 = vst [vmem:[#allocation11_spill] sm:$0xff] %v6324_v8  ;;  %6563 = vst [vmem:[#allocation25_spill] sm:$0xff] %v6326_v52  ;;  %v1975_v8 = vadd.f32 %v6254_v42, %v1851_v59  ;;  %v1709_v52 = vadd.f32 %v6210_v43, %v6194_v62  ;;  %v2266_v22 = vadd.f32 %v4530_v28, %v2100_v19 }
 0x185   : > { %v6330_v30 = vpop.f32.mrf.mxu1  ;;  %v1711_v42 = vadd.f32 %v6229_v35, %v6196_v11  ;;  %v2102_v43 = vadd.f32 %v6270_v45, %v1978_v39  ;;  %v2101_v36 = vadd.f32 %v6272_v37, %v1977_v13  ;;  %v2104_v11 = vadd.f32 %v6274_v53, %v1980_v27  ;;  %v6570_v27 = vld [vmem:[#allocation16_spill] sm:$0xff] }
 0x186   : > { %v2099_v31 = vadd.f32 %v6265_v1, %v1975_v8  ;;  %v1855_v6 = vadd.f32 %v6217_v4, %v1709_v52  ;;  %v2412_v49 = vadd.f32 %v4558_v12, %v2266_v22  ;;  %v1982_v4 = vadd.f32 %v6278_v46, %v6236_v63 }
 0x187   : > { %v4642_v7 = vpop.f32.mrf.mxu0  ;;  %v2268_v1 = vadd.f32 %v4533_v29, %v2102_v43  ;;  %v1857_v17 = vadd.f32 %v6238_v5, %v1711_v42  ;;  %v2267_v8 = vadd.f32 %v2236_v38, %v2101_v36  ;;  %v2270_v12 = vadd.f32 %v6290_v50, %v2104_v11  ;;  %v6571_v36 = vld [vmem:[#allocation24_spill] sm:$0xff] }
 0x188   : > { %v2265_v34 = vadd.f32 %v2226_v33, %v2099_v31  ;;  %v1979_v3 = vadd.f32 %v1956_v61, %v1855_v6  ;;  %v2578_v45 = vadd.f32 %v4586_v23, %v2412_v49  ;;  %v2106_v29 = vadd.f32 %v6280_v41, %v1982_v4  ;;  %v6566_v31 = vld [vmem:[#allocation19_spill] sm:$0xff]  ;;  %v6568_v6 = vld [vmem:[#allocation14_spill] sm:$0xff] }
 0x189   : > { %v4670_v20 = vpop.f32.mrf.mxu1  ;;  %v2806_v15 = vpop.f32.mrf.mxu0  ;;  %v1981_v16 = vadd.f32 %v6282_v9, %v1857_v17  ;;  %v2414_v37 = vadd.f32 %v6286_v51, %v2268_v1  ;;  %v2413_v53 = vadd.f32 %v6288_v0, %v2267_v8  ;;  %v2416_v52 = vadd.f32 %v6292_v10, %v2270_v12  ;;  %v6569_v42 = vld [vmem:[#allocation9_spill] sm:$0xff] }
 0x18a   : > { %v2411_v35 = vadd.f32 %v2372_v48, %v2265_v34  ;;  %v2103_v60 = vadd.f32 %v6276_v2, %v1979_v3  ;;  %v2724_v48 = vadd.f32 %v4614_v44, %v2578_v45  ;;  %v2272_v9 = vadd.f32 %v6298_v54, %v2106_v29  ;;  %v6565_v54 = vld [vmem:[#allocation3_spill] sm:$0xff] }
 0x18b   : > { %v6340_v24 = vpop.f32.mrf.mxu1  ;;  %v2580_v38 = vadd.f32 %v4589_v25, %v2414_v37  ;;  %v2105_v2 = vadd.f32 %v6284_v58, %v1981_v16  ;;  %v2579_v50 = vadd.f32 %v6310_v26, %v2413_v53  ;;  %v6564_v25 = vld [vmem:[#allocation15_spill] sm:$0xff]  ;;  %v6572_v1 = vld [vmem:[#allocation25_spill] sm:$0xff] }
 0x18c   : > { %v2577_v5 = vadd.f32 %v2538_v40, %v2411_v35  ;;  %v2269_v63 = vadd.f32 %v6294_v21, %v2103_v60  ;;  %v2846_v40 = vadd.f32 %v4642_v7, %v2724_v48  ;;  %v2582_v58 = vadd.f32 %v6564_v25, %v2416_v52  ;;  %v6573_v8 = vld [vmem:[#allocation11_spill] sm:$0xff] }
 0x18d   : > { %v4645_v14 = vpop.f32.mrf.mxu0  ;;  %v2271_v21 = vadd.f32 %v6302_v32, %v2105_v2  ;;  %v2726_v44 = vadd.f32 %v6308_v57, %v2580_v38  ;;  %v2418_v39 = vadd.f32 %v6565_v54, %v2272_v9 }
 0x18e   : > { %v2723_v51 = vadd.f32 %v6306_v55, %v2577_v5  ;;  %v2415_v41 = vadd.f32 %v6296_v47, %v2269_v63  ;;  %v6567_v55 = vld [vmem:[#allocation4_spill] sm:$0xff]  ;;  %v2968_v26 = vadd.f32 %v4670_v20, %v2846_v40  ;;  %v2728_v34 = vadd.f32 %v6570_v27, %v2582_v58 }
 0x18f   : > { %v4673_v59 = vpop.f32.mrf.mxu1  ;;  %v2816_v62 = vpop.f32.mrf.mxu0  ;;  %v2725_v22 = vadd.f32 %v6567_v55, %v2579_v50  ;;  %v2848_v7 = vadd.f32 %v4645_v14, %v2726_v44  ;;  %v2417_v47 = vadd.f32 %v6568_v6, %v2271_v21  ;;  %v2584_v32 = vadd.f32 %v6569_v42, %v2418_v39 }
 0x190   : > { %v2845_v19 = vadd.f32 %v2806_v15, %v2723_v51  ;;  %v2581_v10 = vadd.f32 %v6566_v31, %v2415_v41 }
 0x191   : > { %v2938_v18 = vpop.f32.mrf.mxu1  ;;  %v2847_v3 = vadd.f32 %v2816_v62, %v2725_v22  ;;  %v2583_v17 = vadd.f32 %v6572_v1, %v2417_v47  ;;  %v2970_v35 = vadd.f32 %v4673_v59, %v2848_v7  ;;  %v2730_v45 = vadd.f32 %v6573_v8, %v2584_v32 }
 0x192   : > { %v2967_v57 = vadd.f32 %v6340_v24, %v2845_v19  ;;  %v2727_v49 = vadd.f32 %v6571_v36, %v2581_v10 }
 0x193   : > { %v4648_v28 = vpop.f32.mrf.mxu0  ;;  %v2969_v12 = vadd.f32 %v2938_v18, %v2847_v3  ;;  %v2729_v62 = vadd.f32 %v6330_v30, %v2583_v17 }
 0x194   : > { %v2850_v20 = vadd.f32 %v4648_v28, %v2728_v34 }
 0x195   : > { %v4676_v61 = vpop.f32.mrf.mxu1  ;;  %v2826_v33 = vpop.f32.mrf.mxu0 }
 0x196   : > { %v2849_v60 = vadd.f32 %v2826_v33, %v2727_v49  ;;  %v2972_v48 = vadd.f32 %v4676_v61, %v2850_v20 }
 0x197   : > { %v2948_v46 = vpop.f32.mrf.mxu1 }
 0x198   : > { %v2971_v28 = vadd.f32 %v2948_v46, %v2849_v60 }
 0x199   : > { %v4651_v23 = vpop.f32.mrf.mxu0 }
 0x19a   : > { %v2852_v38 = vadd.f32 %v4651_v23, %v2730_v45 }
 0x19b   : > { %v4679_v56 = vpop.f32.mrf.mxu1  ;;  %v2836_v0 = vpop.f32.mrf.mxu0 }
 0x19c   : > { %v2851_v9 = vadd.f32 %v2836_v0, %v2729_v62  ;;  %v2974_v30 = vadd.f32 %v4679_v56, %v2852_v38 }
 0x19d   : > { %v2958_v13 = vpop.f32.mrf.mxu1 }
 0x19e   : > { %v2973_v23 = vadd.f32 %v2958_v13, %v2851_v9 }
 0x19f   : > { %v4698_v43 = vpop.f32.mrf.mxu0 }
 0x1a0   : > { %v3129_v15 = vadd.f32 %v4698_v43, %v2968_v26 }
 0x1a1   : > { %v4726_v4 = vpop.f32.mrf.mxu1  ;;  %v3089_v11 = vpop.f32.mrf.mxu0 }
 0x1a2   : > { %v3128_v14 = vadd.f32 %v3089_v11, %v2967_v57  ;;  %v3272_v5 = vadd.f32 %v4726_v4, %v3129_v15  ;;  %v6574_v4 = vld [vmem:[#allocation2_spill] sm:$0xff] }
 0x1a3   : > { %v3232_v16 = vpop.f32.mrf.mxu1  ;;  %v4701_v37 = vpop.f32.mrf.mxu0  ;;  %v3383_v11 = vsub.s32 0, %v6574_v4 }
 0x1a4   : > { %v3271_v29 = vadd.f32 %v3232_v16, %v3128_v14  ;;  %v3131_v24 = vadd.f32 %v4701_v37, %v2970_v35  ;;  %v3280_v33 = vsel %vm583_vm2, %v3272_v5, 0.0 }
 0x1a5   : > { %v4729_v63 = vpop.f32.mrf.mxu1  ;;  %v3099_v53 = vpop.f32.mrf.mxu0 }
 0x1a6   : > { %v3279_v2 = vsel %vm583_vm2, %v3271_v29, 0.0  ;;  %v3130_v59 = vadd.f32 %v3099_v53, %v2969_v12  ;;  %v3274_v50 = vadd.f32 %v4729_v63, %v3131_v24 }
 0x1a7   : > { %v3242_v52 = vpop.f32.mrf.mxu1  ;;  %v4704_v51 = vpop.f32.mrf.mxu0  ;;  %v3281_v41 = vadd.f32 %v3280_v33, %v3279_v2 }
 0x1a8   : > { %v3273_v18 = vadd.f32 %v3242_v52, %v3130_v59  ;;  %v3133_v40 = vadd.f32 %v4704_v51, %v2972_v48  ;;  %v3284_v46 = vsel %vm583_vm2, %v3274_v50, 0.0 }
 0x1a9   : > { %v4732_v21 = vpop.f32.mrf.mxu1  ;;  %v3109_v44 = vpop.f32.mrf.mxu0 }
 0x1aa   : > { %v3282_v25 = vsel %vm583_vm2, %v3273_v18, 0.0  ;;  %v3132_v61 = vadd.f32 %v3109_v44, %v2971_v28  ;;  %v3276_v0 = vadd.f32 %v4732_v21, %v3133_v40 }
 0x1ab   : > { %v3283_v58 = vadd.f32 %v3282_v25, %v3281_v41  ;;  %v3252_v19 = vpop.f32.mrf.mxu1  ;;  %v4707_v54 = vpop.f32.mrf.mxu0 }
 0x1ac   : > { %v3275_v39 = vadd.f32 %v3252_v19, %v3132_v61  ;;  %v3135_v31 = vadd.f32 %v4707_v54, %v2974_v30  ;;  %v3288_v47 = vsel %vm583_vm2, %v3276_v0, 0.0 }
 0x1ad   : > { %v3285_v10 = vadd.f32 %v3284_v46, %v3283_v58  ;;  %v4735_v55 = vpop.f32.mrf.mxu1  ;;  %v3119_v22 = vpop.f32.mrf.mxu0 }
 0x1ae   : > { %v3286_v26 = vsel %vm583_vm2, %v3275_v39, 0.0  ;;  %v3134_v7 = vadd.f32 %v3119_v22, %v2973_v23  ;;  %v3278_v42 = vadd.f32 %v4735_v55, %v3135_v31 }
 0x1af   : > { %v3287_v6 = vadd.f32 %v3286_v26, %v3285_v10  ;;  %v3262_v56 = vpop.f32.mrf.mxu1 }
 0x1b0   : > { %v3277_v13 = vadd.f32 %v3262_v56, %v3134_v7  ;;  %v3292_v34 = vsel %vm583_vm2, %v3278_v42, 0.0  ;;  %v3919_v7 = vld [vmem:[%s6428_s5] ss:$0 sm:$0xff] }
 0x1b1   : > { %v3289_v32 = vadd.f32 %v3288_v47, %v3287_v6 }
 0x1b2   : > { %v3290_v43 = vsel %vm583_vm2, %v3277_v13, 0.0 }
 0x1b3   : > { %v3291_v27 = vadd.f32 %v3290_v43, %v3289_v32 }
 0x1b5   : > { %v3293_v57 = vadd.f32 %v3292_v34, %v3291_v27  ;;  %v3920_v34 = vld [vmem:[%s6429_s6] ss:$0 sm:$0xff] }
 0x1b7   : > { %v3294_v3 = vrot.slane %v3293_v57, 4 }
 0x1b9   : > { %v3295_v15 = vadd.f32 %v3294_v3, %v3293_v57 }
 0x1bb   : > { %v3296_v36 = vrot.slane %v3295_v15, 2 }
 0x1bd   : > { %v3297_v49 = vadd.f32 %v3296_v36, %v3295_v15 }
 0x1bf   : > { %v3298_v1 = vrot.slane %v3297_v49, 1 }
 0x1c1   : > { %v3299_v17 = vadd.f32 %v3298_v1, %v3297_v49 }
 0x1c3   : > { %4753 = vmatmul.mubr.msk.f32.vlgmr.msra.gmra.mxu0 %vm583_vm2, %v3299_v17 }
 0x283   : > { %v3377_v35 = vpop.f32.mrf.mxu0 }
 0x284   : > { %v3384_v20 = vrot.slane %v3377_v35, %v3383_v11 }
 0x285   : > { %v4754_v14 = vpop.f32.mrf.mxu0 }
 0x286   : > { %v3385_v8 = vsub.f32 %v3271_v29, %v3384_v20  ;;  %v3386_v45 = vsub.f32 %v3272_v5, %v3384_v20  ;;  %v3387_v60 = vsub.f32 %v3273_v18, %v3384_v20  ;;  %v3388_v16 = vsub.f32 %v3274_v50, %v3384_v20 }
 0x287   : > { %v3389_v37 = vsub.f32 %v3275_v39, %v3384_v20  ;;  %v3390_v63 = vsub.f32 %v3276_v0, %v3384_v20  ;;  %v3391_v59 = vsub.f32 %v3277_v13, %v3384_v20  ;;  %v3392_v29 = vsub.f32 %v3278_v42, %v3384_v20 }
 0x288   : > { %v3393_v12 = vmul.f32 %v3385_v8, %v3385_v8  ;;  %v3394_v24 = vmul.f32 %v3386_v45, %v3386_v45  ;;  %v3395_v62 = vmul.f32 %v3387_v60, %v3387_v60  ;;  %v3396_v53 = vmul.f32 %v3388_v16, %v3388_v16 }
 0x289   : > { %v3397_v28 = vmul.f32 %v3389_v37, %v3389_v37  ;;  %v3398_v5 = vmul.f32 %v3390_v63, %v3390_v63  ;;  %v3399_v50 = vmul.f32 %v3391_v59, %v3391_v59  ;;  %v3400_v41 = vmul.f32 %v3392_v29, %v3392_v29 }
 0x28a   : > { %v3401_v48 = vsel %vm583_vm2, %v3393_v12, 0.0  ;;  %v3402_v38 = vsel %vm583_vm2, %v3394_v24, 0.0  ;;  %v3404_v9 = vsel %vm583_vm2, %v3395_v62, 0.0  ;;  %v3406_v51 = vsel %vm583_vm2, %v3396_v53, 0.0 }
 0x28b   : > { %v3403_v2 = vadd.f32 %v3402_v38, %v3401_v48  ;;  %v3408_v18 = vsel %vm583_vm2, %v3397_v28, 0.0  ;;  %v3410_v21 = vsel %vm583_vm2, %v3398_v5, 0.0  ;;  %v3412_v30 = vsel %vm583_vm2, %v3399_v50, 0.0 }
 0x28c   : > { %v3414_v61 = vsel %vm583_vm2, %v3400_v41, 0.0 }
 0x28d   : > { %v3405_v52 = vadd.f32 %v3404_v9, %v3403_v2 }
 0x28f   : > { %v3407_v33 = vadd.f32 %v3406_v51, %v3405_v52 }
 0x291   : > { %v3409_v40 = vadd.f32 %v3408_v18, %v3407_v33 }
 0x293   : > { %v3411_v44 = vadd.f32 %v3410_v21, %v3409_v40 }
 0x295   : > { %v3413_v25 = vadd.f32 %v3412_v30, %v3411_v44 }
 0x297   : > { %v3415_v23 = vadd.f32 %v3414_v61, %v3413_v25 }
 0x299   : > { %v3416_v58 = vrot.slane %v3415_v23, 4 }
 0x29b   : > { %v3417_v19 = vadd.f32 %v3416_v58, %v3415_v23 }
 0x29d   : > { %v3418_v54 = vrot.slane %v3417_v19, 2 }
 0x29f   : > { %v3419_v46 = vadd.f32 %v3418_v54, %v3417_v19 }
 0x2a1   : > { %v3420_v0 = vrot.slane %v3419_v46, 1 }
 0x2a3   : > { %v3421_v39 = vadd.f32 %v3420_v0, %v3419_v46 }
 0x2a5   : > { %4772 = vmatmul.mubr.msk.f32.vlgmr.msra.gmra.mxu1 %vm583_vm2, %v3421_v39 }
 0x365   : > { %v3491_v31 = vpop.f32.mrf.mxu1 }
 0x366   : > { %v3492_v10 = vadd.f32 1e-05, %v3491_v31 }
 0x367   : > { %v4773_v55 = vpop.f32.mrf.mxu1 }
 0x368   : > { %4784 = vrsqrt.f32 %v3492_v10 }
 0x375   : > { %v4785_v22 = vpop.eup %4784 }
 0x376   : > { %v3499_v26 = vrot.slane %v4785_v22, %v3383_v11 }
 0x378   : > { %v3500_v6 = vmul.f32 %v3499_v26, %v3385_v8  ;;  %v3501_v56 = vmul.f32 %v3499_v26, %v3386_v45  ;;  %v3502_v47 = vmul.f32 %v3499_v26, %v3387_v60  ;;  %v3503_v42 = vmul.f32 %v3499_v26, %v3388_v16 }
 0x379   : > { %v3504_v13 = vmul.f32 %v3499_v26, %v3389_v37  ;;  %v3505_v32 = vmul.f32 %v3499_v26, %v3390_v63  ;;  %v3506_v43 = vmul.f32 %v3499_v26, %v3391_v59  ;;  %v3507_v27 = vmul.f32 %v3499_v26, %v3392_v29 }
 0x37a   : > { %v3515_v57 = vmul.f32 %v3919_v7, %v3500_v6  ;;  %v3516_v3 = vmul.f32 %v3919_v7, %v3501_v56  ;;  %v3517_v15 = vmul.f32 %v3919_v7, %v3502_v47  ;;  %v3518_v36 = vmul.f32 %v3919_v7, %v3503_v42 }
 0x37b   : > { %v3519_v49 = vmul.f32 %v3919_v7, %v3504_v13  ;;  %v3520_v1 = vmul.f32 %v3919_v7, %v3505_v32  ;;  %v3521_v17 = vmul.f32 %v3919_v7, %v3506_v43  ;;  %v3522_v4 = vmul.f32 %v3919_v7, %v3507_v27 }
 0x37c   : > { %v3530_v11 = vadd.f32 %v3920_v34, %v3515_v57  ;;  %v3531_v35 = vadd.f32 %v3920_v34, %v3516_v3  ;;  %v3532_v20 = vadd.f32 %v3920_v34, %v3517_v15  ;;  %v3533_v14 = vadd.f32 %v3920_v34, %v3518_v36 }
 0x37d   : > { %v3534_v8 = vadd.f32 %v3920_v34, %v3519_v49  ;;  %v3535_v45 = vadd.f32 %v3920_v34, %v3520_v1  ;;  %v3536_v60 = vadd.f32 %v3920_v34, %v3521_v17  ;;  %v3537_v16 = vadd.f32 %v3920_v34, %v3522_v4 }
 0x37e   : > { %v3538_v37 = vmax.f32 %v3530_v11, 0.0  ;;  %v3539_v12 = vmax.f32 %v3531_v35, 0.0  ;;  %v3540_v24 = vmax.f32 %v3532_v20, 0.0  ;;  %v3541_v62 = vmax.f32 %v3533_v14, 0.0 }
 0x37f   : > { %v3542_v63 = vmax.f32 %v3534_v8, 0.0  ;;  %v3543_v53 = vmax.f32 %v3535_v45, 0.0  ;;  %v3544_v48 = vmax.f32 %v3536_v60, 0.0  ;;  %v3545_v38 = vmax.f32 %v3537_v16, 0.0 }
 0x380   : > { %3546 = vst.msk [vmem:[%s325_s13] sm:$0xff] %vm583_vm2, %v3538_v37  ;;  %3547 = vst.msk [vmem:[%s325_s13 + $0x8] sm:$0xff] %vm583_vm2, %v3539_v12 }
 0x381   : > { %3548 = vst.msk [vmem:[%s325_s13 + $0x10] sm:$0xff] %vm583_vm2, %v3540_v24  ;;  %3549 = vst.msk [vmem:[%s325_s13 + $0x18] sm:$0xff] %vm583_vm2, %v3541_v62 }
 0x382   : > { %3550 = vst.msk [vmem:[%s325_s13 + $0x20] sm:$0xff] %vm583_vm2, %v3542_v63  ;;  %3551 = vst.msk [vmem:[%s325_s13 + $0x28] sm:$0xff] %vm583_vm2, %v3543_v53 }
 0x383   : > { %3552 = vst.msk [vmem:[%s325_s13 + $0x30] sm:$0xff] %vm583_vm2, %v3544_v48  ;;  %3553 = vst.msk [vmem:[%s325_s13 + $0x38] sm:$0xff] %vm583_vm2, %v3545_v38 }
 0x384 PF: > { %s18_s27 = sadd.s32 1, %s4808_s27  }
 0x385   : > { %p15_p4 = scmp.ge.s32.totalorder %s18_s27, 4  }
 0x387   :  { %17 = sbr.rel (!%p15_p4) target bundleno = 1 (0x1), region = 101 }

// kernel: conv_decoder_forward.8
= control target key start
LH: loop header
LB: loop body
LE: loop exit
PB: predicated region body
PF: predicated region fallthrough
CT: control target
= control target key end

     0   :  { %s11169_s27 = smov 0   ;;  %s15073_s0 = inlined_call_operand.vmem [shape: f32[2,256,32], index: 0, kind: input, shape index: {}]   ;;  %s15074_s1 = inlined_call_operand.vmem [shape: f32[2,256,32], index: 1, kind: input, shape index: {}]   ;;  %s15075_s2 = inlined_call_operand.vmem [shape: f32[9,32,32], index: 2, kind: input, shape index: {}]   ;;  %s15076_s3 = inlined_call_operand.vmem [shape: f32[9,32,32], index: 3, kind: input, shape index: {}]   ;;  %s15077_s4 = inlined_call_operand.vmem [shape: f32[1,32], index: 4, kind: input, shape index: {}]   ;;  %s15078_s5 = inlined_call_operand.vmem [shape: f32[1,32], index: 5, kind: input, shape index: {}]   ;;  %s15079_s6 = inlined_call_operand.vmem [shape: f32[1,32], index: 6, kind: input, shape index: {}]   ;;  %s15080_s7 = inlined_call_operand.vmem [shape: f32[32,32], index: 7, kind: input, shape index: {}]   ;;  %s15081_s8 = inlined_call_operand.vmem [shape: f32[2,256,32], index: 8, kind: output, shape index: {}]  }
   0x1 LB: > { %s8617_s28 = sadd.s32 4294967295, %s11120_s27   ;;  %p8621_p0 = scmp.ge.s32.totalorder %s11120_s27, 1  ;;  %s11120_s27 = sphi %s11169_s27, %s18_s27  }
   0x2   : > { %p272_p1 = scmp.lt.s32.totalorder %s11120_s27, 3 }
   0x4   : > { %p273_p2 = pnand %p8621_p0, %p272_p1 }
   0x6   : > { %276 = sbr.rel (%p273_p2) target bundleno = 1339 (0x53b), region = 52 }
   0xb   : > { %v1313_v0 = vld [vmem:[%s15075_s2 + $0x18] sm:$0xff]  ;;  %v1312_v2 = vld [vmem:[%s15075_s2 + $0x10] sm:$0xff]  ;;  %v390_v3 = vlaneseq  ;;  %p311_p3 = scmp.lt.s32.totalorder %s8617_s28, 1  ;;  %v1311_v5 = vld [vmem:[%s15075_s2 + $0x8] sm:$0xff]  ;;  %vm1314_vm0 = vcmask 261120   ;;  %vm845_vm1 = vcmask 1040384  }
   0xc   : > { %v1671_v1 = vld [vmem:[%s15076_s3 + $0x18] sm:$0xff]  ;;  %9952 = vmatprep.subr.mxu0 %v1313_v0  ;;  %v1670_v4 = vld [vmem:[%s15076_s3 + $0x10] sm:$0xff]  ;;  %v1669_v6 = vld [vmem:[%s15076_s3 + $0x8] sm:$0xff]  ;;  %v15082_v31 = vmov 0.0  }
   0xd   : > { %10008 = vmatprep.subr.mxu1 %v1671_v1  ;;  %9953 = vmatpush3.msra.mxu0 %v1313_v0  ;;  %v11195_v7 = vshrl.u32 %v390_v3, 7  ;;  %s15998_s28 = smov (!%p311_p3, %s8617_s28), 1  ;;  %v1310_v8 = vld [vmem:[%s15075_s2] sm:$0xff]  ;;  %v8710_v13 = vld [vmem:[%s15075_s2 + $0x38] sm:$0xff]  ;;  %v8709_v51 = vld [vmem:[%s15075_s2 + $0x30] sm:$0xff] }
   0xe   : > { %10009 = vmatpush3.msra.mxu1 %v1671_v1  ;;  %9954 = vmatprep.subr.mxu0 %v1312_v2  ;;  %v1668_v9 = vld [vmem:[%s15076_s3] sm:$0xff]  ;;  %s11204_s23 = sshll.u32 %s15998_s28, 8  ;;  %v8744_v14 = vld [vmem:[%s15076_s3 + $0x38] sm:$0xff]  ;;  %v8743_v57 = vld [vmem:[%s15076_s3 + $0x30] sm:$0xff] }
   0xf   : > { %15452 = vst [vmem:[#allocation2_spill] sm:$0xff] %v11195_v7  ;;  %10010 = vmatprep.subr.mxu1 %v1670_v4  ;;  %9955 = vmatpush3.msra.mxu0 %v1312_v2  ;;  %v427_v10 = vand.u32 15, %v11195_v7  ;;  %v393_v11 = vadd.s32 16, %v11195_v7  ;;  %v395_v12 = vadd.s32 32, %v11195_v7  ;;  %s11218_s9 = scalar_lea.vmem %s15073_s0, %s11204_s23  ;;  %s11227_s12 = scalar_lea.vmem %s15074_s1, %s11204_s23  ;;  %v11236_v20 = vadd.s32 48, %v11195_v7 }
  0x10   : > { %10011 = vmatpush3.msra.mxu1 %v1670_v4  ;;  %9956 = vmatprep.subr.mxu0 %v1311_v5  ;;  %v11221_v16 = vld [vmem:[%s11218_s9] sm:$0xff]  ;;  %v11230_v18 = vld [vmem:[%s11218_s9 + $0x8] sm:$0xff]  ;;  %v11233_v19 = vld [vmem:[%s11218_s9 + $0x10] sm:$0xff]  ;;  %v11252_v30 = vadd.s32 64, %v11195_v7  ;;  %v11268_v37 = vadd.s32 80, %v11195_v7  ;;  %v11278_v41 = vadd.s32 96, %v11195_v7  ;;  %s14984_s26 = scalar_lea.vmem %s15081_s8, %s11204_s23 }
  0x11   : > { %10012 = vmatprep.subr.mxu1 %v1669_v6  ;;  %9957 = vmatpush3.msra.mxu0 %v1311_v5  ;;  %v1056_v15 = vadd.s32 4294967295, %v427_v10  ;;  %v441_v17 = vand.u32 15, %v393_v11  ;;  %v846_v21 = vrot.slane %v11221_v16, 7  ;;  %v11240_v22 = vld [vmem:[%s11227_s12] sm:$0xff]  ;;  %v847_v23 = vrot.slane %v11230_v18, 7  ;;  %v11244_v24 = vld [vmem:[%s11227_s12 + $0x8] sm:$0xff] }
  0x12   : > { %10013 = vmatpush3.msra.mxu1 %v1669_v6  ;;  %9958 = vmatprep.subr.mxu0 %v1310_v8  ;;  %v455_v25 = vand.u32 15, %v395_v12  ;;  %v849_v26 = vrot.slane %v11233_v19, 7  ;;  %v966_v28 = vrot.slane %v11240_v22, 7  ;;  %v11249_v29 = vld [vmem:[%s11227_s12 + $0x10] sm:$0xff]  ;;  %v967_v34 = vrot.slane %v11244_v24, 7  ;;  %v11262_v35 = vld [vmem:[%s11218_s9 + $0x18] sm:$0xff] }
  0x13   : > { %10014 = vmatprep.subr.mxu1 %v1668_v9  ;;  %9959 = vmatpush3.msra.mxu0 %v1310_v8  ;;  %vm1088_vm2 = vcmp.ge.s32.totalorder %v1056_v15, 0  ;;  %v1058_v27 = vadd.s32 4294967295, %v441_v17  ;;  %v11258_v33 = vsel %vm845_vm1, 0.0, %v846_v21  ;;  %v11265_v36 = vld [vmem:[%s11227_s12 + $0x18] sm:$0xff]  ;;  %v11275_v40 = vld [vmem:[%s11218_s9 + $0x20] sm:$0xff]  ;;  %v969_v45 = vrot.slane %v11249_v29, 7 }
  0x14   : > { %10015 = vmatpush3.msra.mxu1 %v1668_v9  ;;  %v11255_v32 = vsel %vm1088_vm2, 1.0, %v15082_v31  ;;  %10064 = vmatprep.subr.mxu0 %v8710_v13  ;;  %15454 = vst [vmem:[#allocation4_spill] sm:$0xff] %v11258_v33  ;;  %v11272_v39 = vsel %vm845_vm1, 0.0, %v966_v28  ;;  %v11286_v43 = vsel %vm845_vm1, %v847_v23, %v849_v26  ;;  %v1060_v44 = vadd.s32 4294967295, %v455_v25  ;;  %v11290_v46 = vld [vmem:[%s11227_s12 + $0x20] sm:$0xff]  ;;  %v11311_v55 = vld [vmem:[%s11218_s9 + $0x28] sm:$0xff] }
  0x15   : > { %15453 = vst [vmem:[#allocation3_spill] sm:$0xff] %v11255_v32  ;;  %10120 = vmatprep.subr.mxu1 %v8744_v14  ;;  %v1248_v38 = vmul.f32 0.0, %v11255_v32  ;;  %vm1090_vm3 = vcmp.ge.s32.totalorder %v1058_v27, 0  ;;  %15455 = vst [vmem:[#allocation5_spill] sm:$0xff] %v11272_v39  ;;  %v851_v49 = vrot.slane %v11262_v35, 7  ;;  %v971_v50 = vrot.slane %v11265_v36, 7 }
  0x16   : > { %v11281_v42 = vsel %vm1090_vm3, 1.0, %v15082_v31  ;;  %15457 = vst [vmem:[#allocation7_spill] sm:$0xff] %v11286_v43  ;;  %vm1092_vm4 = vcmp.ge.s32.totalorder %v1060_v44, 0  ;;  %v11306_v52 = vsel %vm845_vm1, %v967_v34, %v969_v45  ;;  %v469_v53 = vand.u32 15, %v11236_v20  ;;  %v11314_v56 = vld [vmem:[%s11227_s12 + $0x28] sm:$0xff]  ;;  %v11330_v62 = vld [vmem:[%s11218_s9 + $0x30] sm:$0xff] }
  0x17   : > { %15456 = vst [vmem:[#allocation6_spill] sm:$0xff] %v11281_v42  ;;  %9960 = vmatprep.mubr.msk.f32.mxu0 %vm1314_vm0, %v1248_v38  ;;  %10016 = vmatprep.mubr.msk.f32.mxu1 %vm1314_vm0, %v1248_v38  ;;  %v1250_v47 = vmul.f32 %v11281_v42, %v11258_v33  ;;  %v1280_v48 = vmul.f32 %v11281_v42, %v11272_v39  ;;  %15458 = vst [vmem:[#allocation8_spill] sm:$0xff] %v11306_v52  ;;  %v853_v54 = vrot.slane %v11275_v40, 7  ;;  %v11333_v63 = vld [vmem:[%s11227_s12 + $0x30] sm:$0xff]  ;;  %v11345_v4 = vld [vmem:[%s11218_s9 + $0x38] sm:$0xff] }
  0x18   : > { %9961 = vmatmul.mubr.f32.vlgmr.msra.gmra.mxu0 %v15082_v31  ;;  %10017 = vmatmul.mubr.f32.vlgmr.msra.gmra.mxu1 %v15082_v31  ;;  %v11320_v58 = vsel %vm845_vm1, %v846_v21, %v847_v23  ;;  %v11323_v59 = vsel %vm845_vm1, %v966_v28, %v967_v34  ;;  %v11326_v60 = vsel %vm1092_vm4, 1.0, %v15082_v31  ;;  %v973_v61 = vrot.slane %v11290_v46, 7  ;;  %v11380_v23 = vld [vmem:[%s11218_s9 + $0x40] sm:$0xff]  ;;  %v11611_v39 = vld [vmem:[%s11227_s12 + $0x90] sm:$0xff] }
  0x19   : > { %10065 = vmatpush3.msra.mxu0 %v8710_v13  ;;  %10121 = vmatpush3.msra.mxu1 %v8744_v14  ;;  %15459 = vst [vmem:[#allocation9_spill] sm:$0xff] %v11320_v58  ;;  %15460 = vst [vmem:[#allocation10_spill] sm:$0xff] %v11323_v59  ;;  %v1252_v0 = vmul.f32 %v11326_v60, %v11286_v43  ;;  %v1282_v1 = vmul.f32 %v11326_v60, %v11306_v52  ;;  %v1062_v3 = vadd.s32 4294967295, %v469_v53  ;;  %v11365_v13 = vld [vmem:[%s11227_s12 + $0x38] sm:$0xff]  ;;  %v8708_v14 = vld [vmem:[%s15075_s2 + $0x28] sm:$0xff]  ;;  %vm2667_vm4 = vcmask 1046528  }
  0x1a   : > { %15461 = vst [vmem:[#allocation11_spill] sm:$0xff] %v11326_v60  ;;  %9963 = vmatprep.mubr.msk.f32.mxu0 %vm1314_vm0, %v1250_v47  ;;  %10019 = vmatprep.mubr.msk.f32.mxu1 %vm1314_vm0, %v1280_v48  ;;  %v11342_v2 = vsel %vm845_vm1, %v851_v49, %v853_v54  ;;  %v11348_v5 = vsel %vm845_vm1, %v971_v50, %v973_v61  ;;  %v855_v6 = vrot.slane %v11311_v55, 7  ;;  %v975_v8 = vrot.slane %v11314_v56, 7  ;;  %v11383_v25 = vld [vmem:[%s11227_s12 + $0x40] sm:$0xff]  ;;  %v11404_v47 = vld [vmem:[%s11227_s12 + $0x48] sm:$0xff]  ;;  %v11608_v43 = vld [vmem:[%s11218_s9 + $0x90] sm:$0xff] }
  0x1b   : > { %15462 = vst [vmem:[#allocation12_spill] sm:$0xff] %v11342_v2  ;;  %15463 = vst [vmem:[#allocation13_spill] sm:$0xff] %v11348_v5  ;;  %v483_v9 = vand.u32 15, %v11252_v30  ;;  %10066 = vmatprep.subr.mxu0 %v8709_v51  ;;  %10122 = vmatprep.subr.mxu1 %v8743_v57  ;;  %v11360_v10 = vsel %vm845_vm1, %v849_v26, %v851_v49  ;;  %vm1094_vm5 = vcmp.ge.s32.totalorder %v1062_v3, 0  ;;  %v857_v11 = vrot.slane %v11330_v62, 7  ;;  %v11386_v26 = vld [vmem:[%s11218_s9 + $0x48] sm:$0xff] }
  0x1c   : > { %9964 = vmatmul.mubr.msk.f32.gmra.mxu0 %vm1314_vm0, %v11320_v58  ;;  %10020 = vmatmul.mubr.msk.f32.gmra.mxu1 %vm1314_vm0, %v11323_v59  ;;  %15464 = vst [vmem:[#allocation14_spill] sm:$0xff] %v11360_v10  ;;  %v977_v12 = vrot.slane %v11333_v63, 7  ;;  %v11373_v15 = vsel %vm845_vm1, %v969_v45, %v971_v50  ;;  %v11376_v17 = vsel %vm1094_vm5, 1.0, %v15082_v31  ;;  %v859_v21 = vrot.slane %v11345_v4, 7  ;;  %v8742_v48 = vld [vmem:[%s15076_s3 + $0x28] sm:$0xff]  ;;  %v8707_v49 = vld [vmem:[%s15075_s2 + $0x20] sm:$0xff] }
  0x1d   : > { %9966 = vmatprep.mubr.msk.f32.mxu0 %vm1314_vm0, %v1252_v0  ;;  %10022 = vmatprep.mubr.msk.f32.mxu1 %vm1314_vm0, %v1282_v1  ;;  %15465 = vst [vmem:[#allocation15_spill] sm:$0xff] %v11373_v15  ;;  %15466 = vst [vmem:[#allocation16_spill] sm:$0xff] %v11376_v17  ;;  %v1064_v20 = vadd.s32 4294967295, %v483_v9  ;;  %v1254_v27 = vmul.f32 %v11376_v17, %v11342_v2  ;;  %v1284_v28 = vmul.f32 %v11376_v17, %v11348_v5  ;;  %v11474_v17 = vld [vmem:[%s11218_s9 + $0x60] sm:$0xff]  ;;  %v11561_v2 = vld [vmem:[%s11227_s12 + $0x78] sm:$0xff] }
  0x1e   : > { %v11393_v30 = vsel %vm845_vm1, %v855_v6, %v857_v11  ;;  %v11396_v34 = vsel %vm845_vm1, %v975_v8, %v977_v12  ;;  %10067 = vmatpush3.msra.mxu0 %v8709_v51  ;;  %v11399_v38 = vsel %vm845_vm1, %v853_v54, %v855_v6  ;;  %v979_v44 = vrot.slane %v11365_v13, 7  ;;  %10123 = vmatpush3.msra.mxu1 %v8743_v57  ;;  %v11423_v54 = vld [vmem:[%s11218_s9 + $0x50] sm:$0xff]  ;;  %v11549_v60 = vld [vmem:[%s11218_s9 + $0x80] sm:$0xff] }
  0x1f   : > { %15467 = vst [vmem:[#allocation17_spill] sm:$0xff] %v11393_v30  ;;  %15468 = vst [vmem:[#allocation18_spill] sm:$0xff] %v11396_v34  ;;  %vm1096_vm6 = vcmp.ge.s32.totalorder %v1064_v20, 0  ;;  %v497_v45 = vand.u32 15, %v11268_v37  ;;  %10068 = vmatprep.subr.mxu0 %v8708_v14  ;;  %v861_v50 = vrot.slane %v11380_v23, 7  ;;  %v981_v51 = vrot.slane %v11383_v25, 7  ;;  %10124 = vmatprep.subr.mxu1 %v8742_v48 }
  0x20   : > { %15469 = vst [vmem:[#allocation19_spill] sm:$0xff] %v11399_v38  ;;  %9967 = vmatmul.mubr.msk.f32.gmra.mxu0 %vm1314_vm0, %v11360_v10  ;;  %10023 = vmatmul.mubr.msk.f32.gmra.mxu1 %vm1314_vm0, %v11373_v15  ;;  %v11417_v37 = vsel %vm1096_vm6, 1.0, %v15082_v31  ;;  %v863_v53 = vrot.slane %v11386_v26, 7  ;;  %v11426_v57 = vld [vmem:[%s11227_s12 + $0x50] sm:$0xff]  ;;  %v11431_v0 = vsel %vm845_vm1, %v973_v61, %v975_v8  ;;  %v405_v61 = vadd.s32 112, %v11195_v7  ;;  %v11499_v15 = vld [vmem:[%s11227_s12 + $0x68] sm:$0xff] }
  0x21   : > { %15470 = vst [vmem:[#allocation20_spill] sm:$0xff] %v11417_v37  ;;  %9969 = vmatprep.mubr.msk.f32.mxu0 %vm1314_vm0, %v1254_v27  ;;  %10025 = vmatprep.mubr.msk.f32.mxu1 %vm1314_vm0, %v1284_v28  ;;  %15471 = vst [vmem:[#allocation21_spill] sm:$0xff] %v11431_v0  ;;  %v1256_v1 = vmul.f32 %v11417_v37, %v11393_v30  ;;  %v1286_v3 = vmul.f32 %v11417_v37, %v11396_v34  ;;  %v1066_v6 = vadd.s32 4294967295, %v497_v45  ;;  %v11445_v28 = vld [vmem:[%s11218_s9 + $0x58] sm:$0xff]  ;;  %v8741_v34 = vld [vmem:[%s15076_s3 + $0x20] sm:$0xff] }
  0x22   : > { %v11438_v9 = vsel %vm845_vm1, %v859_v21, %v861_v50  ;;  %v11441_v20 = vsel %vm845_vm1, %v979_v44, %v981_v51  ;;  %v983_v27 = vrot.slane %v11404_v47, 7  ;;  %10069 = vmatpush3.msra.mxu0 %v8708_v14  ;;  %v511_v8 = vand.u32 15, %v11278_v41  ;;  %v11452_v37 = vld [vmem:[%s11227_s12 + $0x58] sm:$0xff]  ;;  %10125 = vmatpush3.msra.mxu1 %v8742_v48  ;;  %v11477_v30 = vld [vmem:[%s11227_s12 + $0x60] sm:$0xff]  ;;  %15486 = vst [vmem:[#allocation34_spill] sm:$0xff] %v11549_v60 }
  0x23   : > { %15472 = vst [vmem:[#allocation22_spill] sm:$0xff] %v11438_v9  ;;  %15473 = vst [vmem:[#allocation23_spill] sm:$0xff] %v11441_v20  ;;  %vm1098_vm7 = vcmp.ge.s32.totalorder %v1066_v6, 0  ;;  %v865_v45 = vrot.slane %v11423_v54, 7  ;;  %10070 = vmatprep.subr.mxu0 %v8707_v49  ;;  %v11462_v41 = vsel %vm845_vm1, %v857_v11, %v859_v21  ;;  %v11465_v14 = vsel %vm845_vm1, %v977_v12, %v979_v44  ;;  %v11541_v10 = vld [vmem:[%s11218_s9 + $0x78] sm:$0xff]  ;;  %v11564_v59 = vld [vmem:[%s11227_s12 + $0x80] sm:$0xff] }
  0x24   : > { %9970 = vmatmul.mubr.msk.f32.gmra.mxu0 %vm1314_vm0, %v11399_v38  ;;  %10026 = vmatmul.mubr.msk.f32.gmra.mxu1 %vm1314_vm0, %v11431_v0  ;;  %15474 = vst [vmem:[#allocation24_spill] sm:$0xff] %v11462_v41  ;;  %15475 = vst [vmem:[#allocation25_spill] sm:$0xff] %v11465_v14  ;;  %v15476_v6 = vmov 0.0   ;;  %v11471_v31 = vsel %vm845_vm1, %v861_v50, %v863_v53  ;;  %v1068_v21 = vadd.s32 4294967295, %v511_v8  ;;  %v867_v44 = vrot.slane %v11445_v28, 7  ;;  %v11487_v50 = vld [vmem:[%s11218_s9 + $0x68] sm:$0xff] }
  0x25   : > { %v11468_v48 = vsel %vm1098_vm7, 1.0, %v15476_v6  ;;  %15478 = vst [vmem:[#allocation27_spill] sm:$0xff] %v11471_v31  ;;  %9972 = vmatprep.mubr.msk.f32.mxu0 %vm1314_vm0, %v1256_v1  ;;  %10028 = vmatprep.mubr.msk.f32.mxu1 %vm1314_vm0, %v1286_v3  ;;  %v11490_v0 = vsel %vm845_vm1, %v863_v53, %v865_v45  ;;  %v15480_v38 = vrot.slane %v11426_v57, 7  ;;  %v987_v3 = vrot.slane %v11452_v37, 7  ;;  %15489 = vst [vmem:[#allocation37_spill] sm:$0xff] %v11561_v2 }
  0x26   : > { %15477 = vst [vmem:[#allocation26_spill] sm:$0xff] %v11468_v48  ;;  %v1258_v11 = vmul.f32 %v11468_v48, %v11438_v9  ;;  %v1288_v12 = vmul.f32 %v11468_v48, %v11441_v20  ;;  %15479 = vst [vmem:[#allocation28_spill] sm:$0xff] %v11490_v0  ;;  %v525_v9 = vand.u32 15, %v405_v61  ;;  %10071 = vmatpush3.msra.mxu0 %v8707_v49  ;;  %10126 = vmatprep.subr.mxu1 %v8741_v34  ;;  %v11507_v20 = vld [vmem:[%s11218_s9 + $0x70] sm:$0xff]  ;;  %v11517_v49 = vld [vmem:[%s15076_s3 + $0x58] sm:$0xff] }
  0x27   : > { %v11495_v1 = vsel %vm845_vm1, %v983_v27, %v15480_v38  ;;  %v11502_v8 = vsel %vm845_vm1, %v981_v51, %v983_v27  ;;  %vm1100_vm8 = vcmp.ge.s32.totalorder %v1068_v21, 0  ;;  %v869_v53 = vrot.slane %v11474_v17, 7  ;;  %10127 = vmatpush3.msra.mxu1 %v8741_v34  ;;  %v11512_v38 = vld [vmem:[%s15075_s2 + $0x58] sm:$0xff]  ;;  %v11529_v21 = vld [vmem:[%s11227_s12 + $0x70] sm:$0xff]  ;;  %15490 = vst [vmem:[#allocation38_spill] sm:$0xff] %v11564_v59  ;;  %15499 = vst [vmem:[#allocation46_spill] sm:$0xff] %v11608_v43 }
  0x28   : > { %15481 = vst [vmem:[#allocation29_spill] sm:$0xff] %v11495_v1  ;;  %15482 = vst [vmem:[#allocation30_spill] sm:$0xff] %v11502_v8  ;;  %v989_v48 = vrot.slane %v11477_v30, 7  ;;  %9973 = vmatmul.mubr.msk.f32.gmra.mxu0 %vm1314_vm0, %v11462_v41  ;;  %10029 = vmatmul.mubr.msk.f32.gmra.mxu1 %vm1314_vm0, %v11465_v14  ;;  %v11524_v51 = vsel %vm1100_vm8, 1.0, %v15476_v6  ;;  %v1070_v34 = vadd.s32 4294967295, %v525_v9  ;;  %v871_v27 = vrot.slane %v11487_v50, 7 }
  0x29   : > { %15483 = vst [vmem:[#allocation31_spill] sm:$0xff] %v11524_v51  ;;  %v407_v61 = vadd.s32 128, %v11195_v7  ;;  %9975 = vmatprep.mubr.msk.f32.mxu0 %vm1314_vm0, %v1258_v11  ;;  %10031 = vmatprep.mubr.msk.f32.mxu1 %vm1314_vm0, %v1288_v12  ;;  %v1260_v41 = vmul.f32 %v11524_v51, %v11490_v0  ;;  %v1290_v14 = vmul.f32 %v11524_v51, %v11495_v1  ;;  %v991_v11 = vrot.slane %v11499_v15, 7 }
  0x2a   : > { %v11538_v9 = vsel %vm845_vm1, %v867_v44, %v869_v53  ;;  %vm1102_vm9 = vcmp.ge.s32.totalorder %v1070_v34, 0  ;;  %v11544_v5 = vsel %vm845_vm1, %v987_v3, %v989_v48  ;;  %v873_v12 = vrot.slane %v11507_v20, 7  ;;  %10176 = vmatprep.subr.mxu0 %v11512_v38  ;;  %10232 = vmatprep.subr.mxu1 %v11517_v49  ;;  %15500 = vst [vmem:[#allocation47_spill] sm:$0xff] %v11611_v39 }
  0x2b   : > { %15484 = vst [vmem:[#allocation32_spill] sm:$0xff] %v11538_v9  ;;  %15485 = vst [vmem:[#allocation33_spill] sm:$0xff] %v11544_v5  ;;  %v11554_v51 = vsel %vm845_vm1, %v865_v45, %v867_v44  ;;  %v11557_v1 = vsel %vm1102_vm9, 1.0, %v15476_v6  ;;  %v539_v34 = vand.u32 15, %v407_v61  ;;  %v993_v0 = vrot.slane %v11529_v21, 7 }
  0x2c   : > { %15487 = vst [vmem:[#allocation35_spill] sm:$0xff] %v11554_v51  ;;  %15488 = vst [vmem:[#allocation36_spill] sm:$0xff] %v11557_v1  ;;  %9976 = vmatmul.mubr.msk.f32.gmra.mxu0 %vm1314_vm0, %v11471_v31  ;;  %10032 = vmatmul.mubr.msk.f32.gmra.mxu1 %vm1314_vm0, %v11502_v8  ;;  %v15491_v45 = vrot.slane %v11426_v57, 7  ;;  %v1262_v61 = vmul.f32 %v11557_v1, %v11538_v9  ;;  %v11578_v58 = vsel %vm845_vm1, %v869_v53, %v871_v27  ;;  %v11588_v9 = vld [vmem:[%s11218_s9 + $0x88] sm:$0xff] }
  0x2d   : > { %15493 = vst [vmem:[#allocation40_spill] sm:$0xff] %v11578_v58  ;;  %v875_v52 = vrot.slane %v11541_v10, 7  ;;  %9978 = vmatprep.mubr.msk.f32.mxu0 %vm1314_vm0, %v1260_v41  ;;  %10034 = vmatprep.mubr.msk.f32.mxu1 %vm1314_vm0, %v1290_v14  ;;  %v1292_v8 = vmul.f32 %v11557_v1, %v11544_v5  ;;  %v1072_v31 = vadd.s32 4294967295, %v539_v34  ;;  %15494 = vst [vmem:[#allocation41_spill] sm:$0xff] %v11588_v9  ;;  %v995_v41 = vrot.slane %v11561_v2, 7  ;;  %v11599_v1 = vld [vmem:[%s11227_s12 + $0x88] sm:$0xff] }
  0x2e   : > { %v11573_v44 = vsel %vm845_vm1, %v15491_v45, %v987_v3  ;;  %v409_v3 = vadd.s32 144, %v11195_v7  ;;  %v877_v45 = vrot.slane %v11549_v60, 7  ;;  %v11591_v53 = vsel %vm845_vm1, %v871_v27, %v873_v12 }
  0x2f   : > { %15492 = vst [vmem:[#allocation39_spill] sm:$0xff] %v11573_v44  ;;  %15495 = vst [vmem:[#allocation42_spill] sm:$0xff] %v11591_v53  ;;  %v11594_v42 = vsel %vm845_vm1, %v991_v11, %v993_v0  ;;  %v997_v14 = vrot.slane %v11564_v59, 7  ;;  %v11602_v34 = vsel %vm845_vm1, %v989_v48, %v991_v11  ;;  %vm1104_vm10 = vcmp.ge.s32.totalorder %v1072_v31, 0 }
  0x30   : > { %15496 = vst [vmem:[#allocation43_spill] sm:$0xff] %v11594_v42  ;;  %15497 = vst [vmem:[#allocation44_spill] sm:$0xff] %v11602_v34  ;;  %v11605_v5 = vsel %vm845_vm1, %v873_v12, %v875_v52  ;;  %v553_v27 = vand.u32 15, %v409_v3  ;;  %9979 = vmatmul.mubr.msk.f32.gmra.mxu0 %vm1314_vm0, %v11554_v51  ;;  %10035 = vmatmul.mubr.msk.f32.gmra.mxu1 %vm1314_vm0, %v11573_v44  ;;  %v11618_v32 = vsel %vm1104_vm10, 1.0, %v15476_v6  ;;  %v879_v48 = vrot.slane %v11588_v9, 7  ;;  %v11626_v12 = vld [vmem:[%s11218_s9 + $0x98] sm:$0xff] }
  0x31   : > { %15498 = vst [vmem:[#allocation45_spill] sm:$0xff] %v11605_v5  ;;  %15501 = vst [vmem:[#allocation48_spill] sm:$0xff] %v11618_v32  ;;  %v11621_v31 = vsel %vm845_vm1, %v875_v52, %v877_v45  ;;  %v411_v11 = vadd.s32 160, %v11195_v7  ;;  %v11629_v3 = vld [vmem:[%s11218_s9 + $0xa0] sm:$0xff]  ;;  %9981 = vmatprep.mubr.msk.f32.mxu0 %vm1314_vm0, %v1262_v61  ;;  %10037 = vmatprep.mubr.msk.f32.mxu1 %vm1314_vm0, %v1292_v8  ;;  %v1264_v44 = vmul.f32 %v11618_v32, %v11591_v53  ;;  %v11639_v9 = vld [vmem:[%s11227_s12 + $0x98] sm:$0xff] }
  0x32   : > { %15502 = vst [vmem:[#allocation49_spill] sm:$0xff] %v11621_v31  ;;  %15503 = vst [vmem:[#allocation50_spill] sm:$0xff] %v11626_v12  ;;  %v1294_v52 = vmul.f32 %v11618_v32, %v11594_v42  ;;  %v1074_v51 = vadd.s32 4294967295, %v553_v27  ;;  %v999_v33 = vrot.slane %v11599_v1, 7  ;;  %v11642_v59 = vsel %vm845_vm1, %v995_v41, %v997_v14  ;;  %v11650_v32 = vld [vmem:[%s11227_s12 + $0xa0] sm:$0xff] }
  0x33   : > { %15504 = vst [vmem:[#allocation51_spill] sm:$0xff] %v11629_v3  ;;  %15505 = vst [vmem:[#allocation52_spill] sm:$0xff] %v11639_v9  ;;  %v567_v60 = vand.u32 15, %v411_v11  ;;  %v881_v2 = vrot.slane %v11608_v43, 7  ;;  %v1001_v61 = vrot.slane %v11611_v39, 7  ;;  %v883_v8 = vrot.slane %v11626_v12, 7 }
  0x34   : > { %15506 = vst [vmem:[#allocation53_spill] sm:$0xff] %v11642_v59  ;;  %vm1106_vm11 = vcmp.ge.s32.totalorder %v1074_v51, 0  ;;  %v413_v53 = vadd.s32 176, %v11195_v7  ;;  %15507 = vst [vmem:[#allocation54_spill] sm:$0xff] %v11650_v32  ;;  %9982 = vmatmul.mubr.msk.f32.gmra.mxu0 %vm1314_vm0, %v11578_v58  ;;  %10038 = vmatmul.mubr.msk.f32.gmra.mxu1 %vm1314_vm0, %v11602_v34  ;;  %v11657_v11 = vsel %vm845_vm1, %v993_v0, %v995_v41  ;;  %v1003_v12 = vrot.slane %v11639_v9, 7  ;;  %v11673_v58 = vld [vmem:[%s11218_s9 + $0xa8] sm:$0xff] }
  0x35   : > { %15508 = vst [vmem:[#allocation55_spill] sm:$0xff] %v11657_v11  ;;  %v11660_v51 = vsel %vm1106_vm11, 1.0, %v15476_v6  ;;  %v1076_v42 = vadd.s32 4294967295, %v567_v60  ;;  %9984 = vmatprep.mubr.msk.f32.mxu0 %vm1314_vm0, %v1264_v44  ;;  %10040 = vmatprep.mubr.msk.f32.mxu1 %vm1314_vm0, %v1294_v52  ;;  %v11670_v0 = vsel %vm845_vm1, %v879_v48, %v881_v2  ;;  %15511 = vst [vmem:[#allocation58_spill] sm:$0xff] %v11673_v58  ;;  %v11676_v60 = vld [vmem:[%s11227_s12 + $0xa8] sm:$0xff]  ;;  %v1005_v52 = vrot.slane %v11650_v32, 7 }
  0x36   : > { %15509 = vst [vmem:[#allocation56_spill] sm:$0xff] %v11660_v51  ;;  %v1266_v27 = vmul.f32 %v11660_v51, %v11621_v31  ;;  %v1296_v34 = vmul.f32 %v11660_v51, %v11642_v59  ;;  %15510 = vst [vmem:[#allocation57_spill] sm:$0xff] %v11670_v0  ;;  %v581_v41 = vand.u32 15, %v413_v53  ;;  %v11679_v9 = vsel %vm845_vm1, %v877_v45, %v879_v48  ;;  %v11686_v31 = vld [vmem:[%s11218_s9 + $0xb0] sm:$0xff]  ;;  %v11727_v43 = vld [vmem:[%s11227_s12 + $0xb8] sm:$0xff] }
  0x37   : > { %15512 = vst [vmem:[#allocation59_spill] sm:$0xff] %v11676_v60  ;;  %15513 = vst [vmem:[#allocation60_spill] sm:$0xff] %v11679_v9  ;;  %vm1108_vm12 = vcmp.ge.s32.totalorder %v1076_v42, 0  ;;  %v11682_v44 = vsel %vm845_vm1, %v999_v33, %v1001_v61  ;;  %v11689_v51 = vsel %vm845_vm1, %v997_v14, %v999_v33  ;;  %v15518_v59 = vrot.slane %v11629_v3, 7  ;;  %v11700_v42 = vld [vmem:[%s11227_s12 + $0xb0] sm:$0xff] }
  0x38   : > { %15514 = vst [vmem:[#allocation61_spill] sm:$0xff] %v11682_v44  ;;  %15515 = vst [vmem:[#allocation62_spill] sm:$0xff] %v11686_v31  ;;  %v11692_v53 = vsel %vm1108_vm12, 1.0, %v15476_v6  ;;  %v1078_v48 = vadd.s32 4294967295, %v581_v41  ;;  %9985 = vmatmul.mubr.msk.f32.gmra.mxu0 %vm1314_vm0, %v11605_v5  ;;  %10041 = vmatmul.mubr.msk.f32.gmra.mxu1 %vm1314_vm0, %v11657_v11  ;;  %v887_v14 = vrot.slane %v11673_v58, 7  ;;  %v1007_v32 = vrot.slane %v11676_v60, 7 }
  0x39   : > { %15516 = vst [vmem:[#allocation63_spill] sm:$0xff] %v11689_v51  ;;  %15517 = vst [vmem:[#allocation64_spill] sm:$0xff] %v11692_v53  ;;  %v11697_v45 = vsel %vm845_vm1, %v883_v8, %v15518_v59  ;;  %v1268_v33 = vmul.f32 %v11692_v53, %v11670_v0  ;;  %v415_v59 = vadd.s32 192, %v11195_v7  ;;  %v11712_v41 = vld [vmem:[%s11218_s9 + $0xb8] sm:$0xff]  ;;  %9987 = vmatprep.mubr.msk.f32.mxu0 %vm1314_vm0, %v1266_v27  ;;  %10043 = vmatprep.mubr.msk.f32.mxu1 %vm1314_vm0, %v1296_v34  ;;  %v11730_v27 = vld [vmem:[%s11218_s9 + $0xc0] sm:$0xff] }
  0x3a   : > { %15519 = vst [vmem:[#allocation65_spill] sm:$0xff] %v11697_v45  ;;  %15520 = vst [vmem:[#allocation66_spill] sm:$0xff] %v11700_v42  ;;  %v1298_v11 = vmul.f32 %v11692_v53, %v11682_v44  ;;  %vm1110_vm13 = vcmp.ge.s32.totalorder %v1078_v48, 0  ;;  %v11719_v5 = vsel %vm845_vm1, %v1003_v12, %v1005_v52  ;;  %v889_v0 = vrot.slane %v11686_v31, 7  ;;  %v11740_v44 = vld [vmem:[%s11227_s12 + $0xc0] sm:$0xff] }
  0x3b   : > { %15521 = vst [vmem:[#allocation67_spill] sm:$0xff] %v11712_v41  ;;  %15522 = vst [vmem:[#allocation68_spill] sm:$0xff] %v11719_v5  ;;  %v11723_v60 = vsel %vm1110_vm13, 1.0, %v15476_v6  ;;  %v595_v58 = vand.u32 15, %v415_v59  ;;  %v1009_v39 = vrot.slane %v11700_v42, 7  ;;  %v11733_v34 = vsel %vm845_vm1, %v881_v2, %v883_v8 }
  0x3c   : > { %15523 = vst [vmem:[#allocation69_spill] sm:$0xff] %v11723_v60  ;;  %15524 = vst [vmem:[#allocation70_spill] sm:$0xff] %v11727_v43  ;;  %v11736_v48 = vsel %vm845_vm1, %v1001_v61, %v1003_v12  ;;  %v891_v53 = vrot.slane %v11712_v41, 7  ;;  %9988 = vmatmul.mubr.msk.f32.gmra.mxu0 %vm1314_vm0, %v11679_v9  ;;  %10044 = vmatmul.mubr.msk.f32.gmra.mxu1 %vm1314_vm0, %v11689_v51  ;;  %v1270_v2 = vmul.f32 %v11723_v60, %v11697_v45  ;;  %v11762_v41 = vld [vmem:[%s11218_s9 + $0xc8] sm:$0xff] }
  0x3d   : > { %15525 = vst [vmem:[#allocation71_spill] sm:$0xff] %v11730_v27  ;;  %15526 = vst [vmem:[#allocation72_spill] sm:$0xff] %v11733_v34  ;;  %v1300_v8 = vmul.f32 %v11723_v60, %v11719_v5  ;;  %v1080_v12 = vadd.s32 4294967295, %v595_v58  ;;  %v417_v61 = vadd.s32 208, %v11195_v7  ;;  %9990 = vmatprep.mubr.msk.f32.mxu0 %vm1314_vm0, %v1268_v33  ;;  %10046 = vmatprep.mubr.msk.f32.mxu1 %vm1314_vm0, %v1298_v11  ;;  %v1011_v9 = vrot.slane %v11727_v43, 7  ;;  %v11765_v58 = vld [vmem:[%s11227_s12 + $0xc8] sm:$0xff] }
  0x3e   : > { %15527 = vst [vmem:[#allocation73_spill] sm:$0xff] %v11736_v48  ;;  %15528 = vst [vmem:[#allocation74_spill] sm:$0xff] %v11740_v44  ;;  %v11754_v59 = vsel %vm845_vm1, %v887_v14, %v889_v0  ;;  %v11757_v51 = vsel %vm845_vm1, %v1007_v32, %v1009_v39  ;;  %v893_v45 = vrot.slane %v11730_v27, 7  ;;  %v1013_v33 = vrot.slane %v11740_v44, 7  ;;  %v11769_v5 = vld [vmem:[%s11218_s9 + $0xd0] sm:$0xff] }
  0x3f   : > { %15529 = vst [vmem:[#allocation75_spill] sm:$0xff] %v11754_v59  ;;  %15530 = vst [vmem:[#allocation76_spill] sm:$0xff] %v11757_v51  ;;  %vm1112_vm14 = vcmp.ge.s32.totalorder %v1080_v12, 0  ;;  %v609_v60 = vand.u32 15, %v417_v61  ;;  %v419_v11 = vadd.s32 224, %v11195_v7  ;;  %v15534_v42 = vrot.slane %v11629_v3, 7 }
  0x40   : > { %15531 = vst [vmem:[#allocation77_spill] sm:$0xff] %v11762_v41  ;;  %15532 = vst [vmem:[#allocation78_spill] sm:$0xff] %v11765_v58  ;;  %v11778_v27 = vsel %vm845_vm1, %v1005_v52, %v1007_v32  ;;  %v11781_v43 = vsel %vm1112_vm14, 1.0, %v15476_v6  ;;  %v11784_v12 = vld [vmem:[%s11227_s12 + $0xd0] sm:$0xff]  ;;  %9991 = vmatmul.mubr.msk.f32.gmra.mxu0 %vm1314_vm0, %v11733_v34  ;;  %10047 = vmatmul.mubr.msk.f32.gmra.mxu1 %vm1314_vm0, %v11736_v48  ;;  %v895_v32 = vrot.slane %v11762_v41, 7  ;;  %v1015_v52 = vrot.slane %v11765_v58, 7 }
  0x41   : > { %15533 = vst [vmem:[#allocation79_spill] sm:$0xff] %v11769_v5  ;;  %v11775_v31 = vsel %vm845_vm1, %v15534_v42, %v887_v14  ;;  %15536 = vst [vmem:[#allocation81_spill] sm:$0xff] %v11778_v27  ;;  %v11791_v42 = vsel %vm845_vm1, %v891_v53, %v893_v45  ;;  %v1082_v14 = vadd.s32 4294967295, %v609_v60  ;;  %9993 = vmatprep.mubr.msk.f32.mxu0 %vm1314_vm0, %v1270_v2  ;;  %10049 = vmatprep.mubr.msk.f32.mxu1 %vm1314_vm0, %v1300_v8  ;;  %v11803_v3 = vld [vmem:[%s11218_s9 + $0xd8] sm:$0xff]  ;;  %v11809_v41 = vld [vmem:[%s11218_s9 + $0xe0] sm:$0xff] }
  0x42   : > { %15535 = vst [vmem:[#allocation80_spill] sm:$0xff] %v11775_v31  ;;  %15537 = vst [vmem:[#allocation82_spill] sm:$0xff] %v11781_v43  ;;  %v1272_v61 = vmul.f32 %v11781_v43, %v11754_v59  ;;  %v1302_v34 = vmul.f32 %v11781_v43, %v11757_v51  ;;  %v623_v48 = vand.u32 15, %v419_v11  ;;  %v897_v44 = vrot.slane %v11769_v5, 7  ;;  %v11806_v60 = vld [vmem:[%s11227_s12 + $0xd8] sm:$0xff]  ;;  %v11826_v5 = vld [vmem:[%s11227_s12 + $0xe0] sm:$0xff] }
  0x43   : > { %15538 = vst [vmem:[#allocation83_spill] sm:$0xff] %v11784_v12  ;;  %15539 = vst [vmem:[#allocation84_spill] sm:$0xff] %v11791_v42  ;;  %vm1114_vm15 = vcmp.ge.s32.totalorder %v1082_v14, 0  ;;  %v11812_v2 = vsel %vm845_vm1, %v1011_v9, %v1013_v33  ;;  %v1017_v8 = vrot.slane %v11784_v12, 7  ;;  %v421_v59 = vadd.s32 240, %v11195_v7 }
  0x44   : > { %15540 = vst [vmem:[#allocation85_spill] sm:$0xff] %v11803_v3  ;;  %15541 = vst [vmem:[#allocation86_spill] sm:$0xff] %v11806_v60  ;;  %v11817_v58 = vsel %vm845_vm1, %v889_v0, %v891_v53  ;;  %v11820_v11 = vsel %vm845_vm1, %v1009_v39, %v1011_v9  ;;  %v11823_v43 = vsel %vm1114_vm15, 1.0, %v15476_v6  ;;  %v1084_v51 = vadd.s32 4294967295, %v623_v48  ;;  %9994 = vmatmul.mubr.msk.f32.gmra.mxu0 %vm1314_vm0, %v11775_v31 }
  0x45   : > { %15542 = vst [vmem:[#allocation87_spill] sm:$0xff] %v11812_v2  ;;  %15543 = vst [vmem:[#allocation88_spill] sm:$0xff] %v11817_v58  ;;  %10050 = vmatmul.mubr.msk.f32.gmra.mxu1 %vm1314_vm0, %v11778_v27  ;;  %v899_v14 = vrot.slane %v11803_v3, 7  ;;  %v1019_v0 = vrot.slane %v11806_v60, 7  ;;  %v637_v53 = vand.u32 15, %v421_v59  ;;  %v901_v39 = vrot.slane %v11809_v41, 7  ;;  %9996 = vmatprep.mubr.msk.f32.mxu0 %vm1314_vm0, %v1272_v61 }
  0x46   : > { %15544 = vst [vmem:[#allocation89_spill] sm:$0xff] %v11820_v11  ;;  %15545 = vst [vmem:[#allocation90_spill] sm:$0xff] %v11823_v43  ;;  %10052 = vmatprep.mubr.msk.f32.mxu1 %vm1314_vm0, %v1302_v34  ;;  %v1274_v9 = vmul.f32 %v11823_v43, %v11791_v42  ;;  %v1304_v48 = vmul.f32 %v11823_v43, %v11812_v2  ;;  %v11842_v31 = vsel %vm845_vm1, %v895_v32, %v897_v44  ;;  %v11869_v2 = vld [vmem:[%s11218_s9 + $0xe8] sm:$0xff] }
  0x47   : > { %15546 = vst [vmem:[#allocation91_spill] sm:$0xff] %v11826_v5  ;;  %15547 = vst [vmem:[#allocation92_spill] sm:$0xff] %v11842_v31  ;;  %vm1116_vm2 = vcmp.ge.s32.totalorder %v1084_v51, 0  ;;  %v11848_v27 = vsel %vm845_vm1, %v1015_v52, %v1017_v8  ;;  %v1086_v61 = vadd.s32 4294967295, %v637_v53  ;;  %v1021_v34 = vrot.slane %v11826_v5, 7 }
  0x48   : > { %v11845_v59 = vsel %vm1116_vm2, 1.0, %v15476_v6  ;;  %15549 = vst [vmem:[#allocation94_spill] sm:$0xff] %v11848_v27  ;;  %v392_v42 = vadd.s32 8, %v11195_v7  ;;  %9997 = vmatmul.mubr.msk.f32.gmra.mxu0 %vm1314_vm0, %v11817_v58  ;;  %v11857_v51 = vsel %vm845_vm1, %v893_v45, %v895_v32  ;;  %v11862_v53 = vsel %vm845_vm1, %v1013_v33, %v1015_v52  ;;  %15552 = vst [vmem:[#allocation97_spill] sm:$0xff] %v11869_v2 }
  0x49   : > { %15548 = vst [vmem:[#allocation93_spill] sm:$0xff] %v11845_v59  ;;  %10053 = vmatmul.mubr.msk.f32.gmra.mxu1 %vm1314_vm0, %v11820_v11  ;;  %15550 = vst [vmem:[#allocation95_spill] sm:$0xff] %v11857_v51  ;;  %vm1118_vm3 = vcmp.ge.s32.totalorder %v1086_v61, 0  ;;  %9999 = vmatprep.mubr.msk.f32.mxu0 %vm1314_vm0, %v1274_v9  ;;  %v1276_v43 = vmul.f32 %v11845_v59, %v11842_v31  ;;  %v1306_v58 = vmul.f32 %v11845_v59, %v11848_v27  ;;  %v11872_v11 = vld [vmem:[%s11227_s12 + $0xe8] sm:$0xff] }
  0x4a   : > { %10055 = vmatprep.mubr.msk.f32.mxu1 %vm1314_vm0, %v1304_v48  ;;  %15551 = vst [vmem:[#allocation96_spill] sm:$0xff] %v11862_v53  ;;  %15553 = vst [vmem:[#allocation98_spill] sm:$0xff] %v11872_v11  ;;  %v434_v45 = vand.u32 15, %v392_v42  ;;  %v11875_v32 = vsel %vm845_vm1, %v899_v14, %v901_v39  ;;  %v11878_v9 = vsel %vm1118_vm3, 1.0, %v15476_v6  ;;  %v11881_v33 = vsel %vm845_vm1, %v1019_v0, %v1021_v34 }
  0x4b   : > { %15554 = vst [vmem:[#allocation99_spill] sm:$0xff] %v11875_v32  ;;  %15555 = vst [vmem:[#allocation100_spill] sm:$0xff] %v11878_v9  ;;  %v15256_v59 = vrot.slane %v11233_v19, 1  ;;  %v11892_v42 = vsel %vm845_vm1, %v897_v44, %v899_v14  ;;  %v11895_v31 = vsel %vm845_vm1, %v1017_v8, %v1019_v0  ;;  %v15257_v61 = vrot.slane %v11872_v11, 7 }
  0x4c   : > { %15556 = vst [vmem:[#allocation101_spill] sm:$0xff] %v11881_v33  ;;  %v2856_v48 = vadd.s32 1, %v434_v45  ;;  %10000 = vmatmul.mubr.msk.f32.gmra.mxu0 %vm1314_vm0, %v11857_v51  ;;  %15557 = vst [vmem:[#allocation102_spill] sm:$0xff] %v11892_v42  ;;  %v15258_v45 = vrot.slane %v11869_v2, 7  ;;  %v1278_v27 = vmul.f32 %v11878_v9, %v11875_v32  ;;  %v1308_v52 = vmul.f32 %v11878_v9, %v11881_v33  ;;  %v15578_v9 = vld [vmem:[#allocation59_spill] sm:$0xff] }
  0x4d   : > { %10056 = vmatmul.mubr.msk.f32.gmra.mxu1 %vm1314_vm0, %v11862_v53  ;;  %15558 = vst [vmem:[#allocation103_spill] sm:$0xff] %v11895_v31  ;;  %10002 = vmatprep.mubr.msk.f32.mxu0 %vm1314_vm0, %v1276_v43  ;;  %v15560_v8 = vrot.slane %v11230_v18, 1  ;;  %v15563_v0 = vrot.slane %v11244_v24, 1  ;;  %v394_v33 = vadd.s32 24, %v11195_v7  ;;  %v15581_v32 = vld [vmem:[#allocation67_spill] sm:$0xff]  ;;  %v15582_v53 = vld [vmem:[#allocation70_spill] sm:$0xff] }
  0x4e   : > { %10058 = vmatprep.mubr.msk.f32.mxu1 %vm1314_vm0, %v1306_v58  ;;  %vm2920_vm5 = vcmp.le.s32.totalorder %v2856_v48, 15  ;;  %v15562_v58 = vrot.slane %v11249_v29, 1  ;;  %v15583_v51 = vld [vmem:[#allocation71_spill] sm:$0xff] }
  0x4f   : > { %v11906_v44 = vsel %vm2920_vm5, 1.0, %v15476_v6  ;;  %v11913_v14 = vsel %vm2667_vm4, %v15560_v8, %v15256_v59  ;;  %v11939_v59 = vsel %vm845_vm1, %v901_v39, %v15258_v45  ;;  %v8828_v39 = vld [vmem:[%s15076_s3 + $0x50] sm:$0xff]  ;;  %v15573_v45 = vld [vmem:[#allocation50_spill] sm:$0xff] }
  0x50   : > { %15559 = vst [vmem:[#allocation104_spill] sm:$0xff] %v11906_v44  ;;  %v11917_v43 = vmul.f32 %v11906_v44, %v11913_v14  ;;  %v11924_v48 = vsel %vm2667_vm4, %v15563_v0, %v15562_v58  ;;  %10003 = vmatmul.mubr.msk.f32.gmra.mxu0 %vm1314_vm0, %v11892_v42  ;;  %15565 = vst [vmem:[#allocation107_spill] sm:$0xff] %v11939_v59  ;;  %v11944_v58 = vsel %vm845_vm1, %v1021_v34, %v15257_v61  ;;  %v8791_v34 = vld [vmem:[%s15075_s2 + $0x40] sm:$0xff]  ;;  %v12001_v0 = vld [vmem:[%s15075_s2 + $0x78] sm:$0xff] }
  0x51   : > { %10059 = vmatmul.mubr.msk.f32.gmra.mxu1 %vm1314_vm0, %v11895_v31  ;;  %v11932_v8 = vmul.f32 %v11906_v44, %v11924_v48  ;;  %10005 = vmatprep.mubr.msk.f32.mxu0 %vm1314_vm0, %v1278_v27  ;;  %15566 = vst [vmem:[#allocation108_spill] sm:$0xff] %v11944_v58  ;;  %v8793_v27 = vld [vmem:[%s15075_s2 + $0x50] sm:$0xff]  ;;  %v15572_v61 = vld [vmem:[#allocation47_spill] sm:$0xff]  ;;  %v15579_v31 = vld [vmem:[#allocation62_spill] sm:$0xff] }
  0x52   : > { %15561 = vst [vmem:[#allocation105_spill] sm:$0xff] %v11917_v43  ;;  %10061 = vmatprep.mubr.msk.f32.mxu1 %vm1314_vm0, %v1308_v52  ;;  %v8826_v52 = vld [vmem:[%s15076_s3 + $0x40] sm:$0xff]  ;;  %v15575_v43 = vld [vmem:[#allocation51_spill] sm:$0xff] }
  0x53   : > { %15564 = vst [vmem:[#allocation106_spill] sm:$0xff] %v11932_v8  ;;  %v15574_v8 = vld [vmem:[#allocation52_spill] sm:$0xff]  ;;  %v15580_v42 = vld [vmem:[#allocation66_spill] sm:$0xff] }
  0x54   : > { %10006 = vmatmul.mubr.msk.f32.gmra.mxu0 %vm1314_vm0, %v11939_v59  ;;  %v15577_v59 = vld [vmem:[#allocation58_spill] sm:$0xff] }
  0x55   : > { %10062 = vmatmul.mubr.msk.f32.gmra.mxu1 %vm1314_vm0, %v11944_v58  ;;  %10072 = vmatprep.mubr.f32.mxu0 %v15476_v6  ;;  %v15576_v58 = vld [vmem:[#allocation54_spill] sm:$0xff] }
  0x56   : > { %10128 = vmatprep.mubr.f32.mxu1 %v15476_v6 }
  0x58   : > { %10073 = vmatmul.mubr.f32.vlgmr.msra.gmra.mxu0 %v15476_v6 }
  0x59   : > { %10129 = vmatmul.mubr.f32.vlgmr.msra.gmra.mxu1 %v15476_v6  ;;  %10177 = vmatpush3.msra.mxu0 %v11512_v38  ;;  %v8792_v38 = vld [vmem:[%s15075_s2 + $0x48] sm:$0xff] }
  0x5a   : > { %10233 = vmatpush3.msra.mxu1 %v11517_v49  ;;  %10075 = vmatprep.mubr.msk.f32.mxu0 %vm1314_vm0, %v11221_v16  ;;  %v8827_v49 = vld [vmem:[%s15076_s3 + $0x48] sm:$0xff] }
  0x5b   : > { %10131 = vmatprep.mubr.msk.f32.mxu1 %vm1314_vm0, %v11240_v22  ;;  %10178 = vmatprep.subr.mxu0 %v8793_v27 }
  0x5c   : > { %10234 = vmatprep.subr.mxu1 %v8828_v39  ;;  %10076 = vmatmul.mubr.msk.f32.gmra.mxu0 %vm1314_vm0, %v11230_v18 }
  0x5d   : > { %10132 = vmatmul.mubr.msk.f32.gmra.mxu1 %vm1314_vm0, %v11244_v24  ;;  %10078 = vmatprep.mubr.msk.f32.mxu0 %vm1314_vm0, %v11233_v19 }
  0x5e   : > { %10134 = vmatprep.mubr.msk.f32.mxu1 %vm1314_vm0, %v11249_v29  ;;  %10179 = vmatpush3.msra.mxu0 %v8793_v27  ;;  %v12006_v27 = vld [vmem:[%s15076_s3 + $0x78] sm:$0xff] }
  0x5f   : > { %10235 = vmatpush3.msra.mxu1 %v8828_v39  ;;  %10180 = vmatprep.subr.mxu0 %v8792_v38  ;;  %v15567_v39 = vld [vmem:[#allocation37_spill] sm:$0xff] }
  0x60   : > { %10236 = vmatprep.subr.mxu1 %v8827_v49  ;;  %10079 = vmatmul.mubr.msk.f32.gmra.mxu0 %vm1314_vm0, %v11262_v35 }
  0x61   : > { %10135 = vmatmul.mubr.msk.f32.gmra.mxu1 %vm1314_vm0, %v11265_v36  ;;  %10081 = vmatprep.mubr.msk.f32.mxu0 %vm1314_vm0, %v11275_v40 }
  0x62   : > { %10137 = vmatprep.mubr.msk.f32.mxu1 %vm1314_vm0, %v11290_v46  ;;  %10181 = vmatpush3.msra.mxu0 %v8792_v38  ;;  %v15568_v38 = vld [vmem:[#allocation34_spill] sm:$0xff] }
  0x63   : > { %10237 = vmatpush3.msra.mxu1 %v8827_v49  ;;  %10182 = vmatprep.subr.mxu0 %v8791_v34  ;;  %v15569_v49 = vld [vmem:[#allocation38_spill] sm:$0xff] }
  0x64   : > { %10238 = vmatprep.subr.mxu1 %v8826_v52  ;;  %10082 = vmatmul.mubr.msk.f32.gmra.mxu0 %vm1314_vm0, %v11311_v55 }
  0x65   : > { %10138 = vmatmul.mubr.msk.f32.gmra.mxu1 %vm1314_vm0, %v11314_v56  ;;  %10084 = vmatprep.mubr.msk.f32.mxu0 %vm1314_vm0, %v11330_v62 }
  0x66   : > { %10140 = vmatprep.mubr.msk.f32.mxu1 %vm1314_vm0, %v11333_v63  ;;  %10183 = vmatpush3.msra.mxu0 %v8791_v34  ;;  %v15570_v34 = vld [vmem:[#allocation41_spill] sm:$0xff] }
  0x67   : > { %10239 = vmatpush3.msra.mxu1 %v8826_v52  ;;  %10288 = vmatprep.subr.mxu0 %v12001_v0  ;;  %v15571_v52 = vld [vmem:[#allocation46_spill] sm:$0xff] }
  0x68   : > { %10344 = vmatprep.subr.mxu1 %v12006_v27  ;;  %10085 = vmatmul.mubr.msk.f32.gmra.mxu0 %vm1314_vm0, %v11345_v4 }
  0x69   : > { %10141 = vmatmul.mubr.msk.f32.gmra.mxu1 %vm1314_vm0, %v11365_v13  ;;  %10087 = vmatprep.mubr.msk.f32.mxu0 %vm1314_vm0, %v11380_v23 }
  0x6a   : > { %10143 = vmatprep.mubr.msk.f32.mxu1 %vm1314_vm0, %v11383_v25 }
  0x6c   : > { %10088 = vmatmul.mubr.msk.f32.gmra.mxu0 %vm1314_vm0, %v11386_v26 }
  0x6d   : > { %10144 = vmatmul.mubr.msk.f32.gmra.mxu1 %vm1314_vm0, %v11404_v47  ;;  %10090 = vmatprep.mubr.msk.f32.mxu0 %vm1314_vm0, %v11423_v54 }
  0x6e   : > { %10146 = vmatprep.mubr.msk.f32.mxu1 %vm1314_vm0, %v11426_v57 }
  0x70   : > { %10091 = vmatmul.mubr.msk.f32.gmra.mxu0 %vm1314_vm0, %v11445_v28 }
  0x71   : > { %10147 = vmatmul.mubr.msk.f32.gmra.mxu1 %vm1314_vm0, %v11452_v37  ;;  %10093 = vmatprep.mubr.msk.f32.mxu0 %vm1314_vm0, %v11474_v17 }
  0x72   : > { %10149 = vmatprep.mubr.msk.f32.mxu1 %vm1314_vm0, %v11477_v30 }
  0x74   : > { %10094 = vmatmul.mubr.msk.f32.gmra.mxu0 %vm1314_vm0, %v11487_v50 }
  0x75   : > { %10150 = vmatmul.mubr.msk.f32.gmra.mxu1 %vm1314_vm0, %v11499_v15  ;;  %10096 = vmatprep.mubr.msk.f32.mxu0 %vm1314_vm0, %v11507_v20 }
  0x76   : > { %10152 = vmatprep.mubr.msk.f32.mxu1 %vm1314_vm0, %v11529_v21 }
  0x78   : > { %10097 = vmatmul.mubr.msk.f32.gmra.mxu0 %vm1314_vm0, %v11541_v10 }
  0x79   : > { %10153 = vmatmul.mubr.msk.f32.gmra.mxu1 %vm1314_vm0, %v15567_v39  ;;  %10099 = vmatprep.mubr.msk.f32.mxu0 %vm1314_vm0, %v15568_v38 }
  0x7a   : > { %10155 = vmatprep.mubr.msk.f32.mxu1 %vm1314_vm0, %v15569_v49 }
  0x7c   : > { %10100 = vmatmul.mubr.msk.f32.gmra.mxu0 %vm1314_vm0, %v15570_v34 }
  0x7d   : > { %10156 = vmatmul.mubr.msk.f32.gmra.mxu1 %vm1314_vm0, %v11599_v1  ;;  %10102 = vmatprep.mubr.msk.f32.mxu0 %vm1314_vm0, %v15571_v52 }
  0x7e   : > { %10158 = vmatprep.mubr.msk.f32.mxu1 %vm1314_vm0, %v15572_v61 }
  0x80   : > { %10103 = vmatmul.mubr.msk.f32.gmra.mxu0 %vm1314_vm0, %v15573_v45 }
  0x81   : > { %10159 = vmatmul.mubr.msk.f32.gmra.mxu1 %vm1314_vm0, %v15574_v8  ;;  %10105 = vmatprep.mubr.msk.f32.mxu0 %vm1314_vm0, %v15575_v43  ;;  %v2762_v43 = vrot.slane %v11240_v22, 1 }
  0x82   : > { %10161 = vmatprep.mubr.msk.f32.mxu1 %vm1314_vm0, %v15576_v58  ;;  %v15585_v58 = vld [vmem:[#allocation77_spill] sm:$0xff] }
  0x83   : > { %v2854_v22 = vsel %vm2667_vm4, 0.0, %v2762_v43 }
  0x84   : > { %10106 = vmatmul.mubr.msk.f32.gmra.mxu0 %vm1314_vm0, %v15577_v59  ;;  %v15584_v59 = vld [vmem:[#allocation74_spill] sm:$0xff] }
  0x85   : > { %10162 = vmatmul.mubr.msk.f32.gmra.mxu1 %vm1314_vm0, %v15578_v9  ;;  %10108 = vmatprep.mubr.msk.f32.mxu0 %vm1314_vm0, %v15579_v31  ;;  %v448_v9 = vand.u32 15, %v394_v33  ;;  %v396_v31 = vadd.s32 40, %v11195_v7 }
  0x86   : > { %10164 = vmatprep.mubr.msk.f32.mxu1 %vm1314_vm0, %v15580_v42  ;;  %v15586_v42 = vld [vmem:[#allocation78_spill] sm:$0xff] }
  0x87   : > { %v462_v33 = vand.u32 15, %v396_v31 }
  0x88   : > { %10109 = vmatmul.mubr.msk.f32.gmra.mxu0 %vm1314_vm0, %v15581_v32  ;;  %v2668_v32 = vrot.slane %v11221_v16, 1 }
  0x89   : > { %10165 = vmatmul.mubr.msk.f32.gmra.mxu1 %vm1314_vm0, %v15582_v53  ;;  %10111 = vmatprep.mubr.msk.f32.mxu0 %vm1314_vm0, %v15583_v51  ;;  %v15587_v53 = vld [vmem:[#allocation79_spill] sm:$0xff]  ;;  %v398_v51 = vadd.s32 56, %v11195_v7  ;;  %v2860_v31 = vadd.s32 1, %v462_v33  ;;  %v2769_v33 = vrot.slane %v11290_v46, 1  ;;  %v2677_v46 = vrot.slane %v11311_v55, 1  ;;  %v8899_v55 = vld [vmem:[%s15076_s3 + $0x70] sm:$0xff] }
  0x8a   : > { %10167 = vmatprep.mubr.msk.f32.mxu1 %vm1314_vm0, %v15584_v59  ;;  %v2858_v59 = vadd.s32 1, %v448_v9  ;;  %v2760_v16 = vsel %vm2667_vm4, 0.0, %v2668_v32 }
  0x8b   : > { %v476_v9 = vand.u32 15, %v398_v51  ;;  %vm2924_vm7 = vcmp.le.s32.totalorder %v2860_v31, 15 }
  0x8c   : > { %10112 = vmatmul.mubr.msk.f32.gmra.mxu0 %vm1314_vm0, %v15585_v58  ;;  %vm2922_vm6 = vcmp.le.s32.totalorder %v2858_v59, 15  ;;  %v2675_v59 = vrot.slane %v11275_v40, 1  ;;  %v15589_v40 = vrot.slane %v11244_v24, 1 }
  0x8d   : > { %10168 = vmatmul.mubr.msk.f32.gmra.mxu1 %vm1314_vm0, %v15586_v42  ;;  %10114 = vmatprep.mubr.msk.f32.mxu0 %vm1314_vm0, %v15587_v53  ;;  %v2767_v42 = vrot.slane %v11265_v36, 1  ;;  %v12127_v51 = vsel %vm2922_vm6, 1.0, %v15476_v6 }
  0x8e   : > { %10170 = vmatprep.mubr.msk.f32.mxu1 %vm1314_vm0, %v11784_v12  ;;  %v400_v12 = vadd.s32 72, %v11195_v7  ;;  %v3050_v24 = vmul.f32 %v12127_v51, %v11913_v14 }
  0x90   : > { %10115 = vmatmul.mubr.msk.f32.gmra.mxu0 %vm1314_vm0, %v11803_v3  ;;  %v2673_v3 = vrot.slane %v11262_v35, 1  ;;  %v15588_v35 = vrot.slane %v11230_v18, 1  ;;  %v15590_v18 = vrot.slane %v11233_v19, 1  ;;  %v3081_v19 = vmul.f32 %v12127_v51, %v11924_v48 }
  0x91   : > { %10171 = vmatmul.mubr.msk.f32.gmra.mxu1 %vm1314_vm0, %v11806_v60  ;;  %10117 = vmatprep.mubr.msk.f32.mxu0 %vm1314_vm0, %v11809_v41  ;;  %v3079_v60 = vmul.f32 %v11906_v44, %v2854_v22  ;;  %v402_v22 = vadd.s32 88, %v11195_v7 }
  0x92   : > { %10173 = vmatprep.mubr.msk.f32.mxu1 %vm1314_vm0, %v11826_v5  ;;  %v3048_v5 = vmul.f32 %v11906_v44, %v2760_v16  ;;  %v12124_v36 = vsel %vm2667_vm4, %v2668_v32, %v15588_v35  ;;  %v2862_v16 = vadd.s32 1, %v476_v9  ;;  %v12134_v44 = vsel %vm2667_vm4, %v2762_v43, %v15589_v40  ;;  %v8863_v43 = vld [vmem:[%s15075_s2 + $0x70] sm:$0xff] }
  0x93   : > { %v12139_v32 = vsel %vm2667_vm4, %v15590_v18, %v2673_v3  ;;  %v15591_v35 = vrot.slane %v11249_v29, 1  ;;  %v2771_v29 = vrot.slane %v11314_v56, 1  ;;  %v2679_v56 = vrot.slane %v11330_v62, 1 }
  0x94   : > { %10118 = vmatmul.mubr.msk.f32.gmra.mxu0 %vm1314_vm0, %v11869_v2  ;;  %vm2926_vm8 = vcmp.le.s32.totalorder %v2862_v16, 15  ;;  %v504_v48 = vand.u32 15, %v402_v22  ;;  %v2775_v62 = vrot.slane %v11365_v13, 1  ;;  %v2683_v9 = vrot.slane %v11380_v23, 1  ;;  %v8898_v13 = vld [vmem:[%s15076_s3 + $0x68] sm:$0xff] }
  0x95   : > { %10174 = vmatmul.mubr.msk.f32.gmra.mxu1 %vm1314_vm0, %v11872_v11  ;;  %10184 = vmatprep.mubr.f32.mxu0 %v15476_v6  ;;  %v490_v11 = vand.u32 15, %v400_v12  ;;  %v12144_v2 = vsel %vm2667_vm4, %v15591_v35, %v2767_v42  ;;  %v12154_v12 = vsel %vm2667_vm4, %v2673_v3, %v2675_v59  ;;  %v12170_v3 = vsel %vm2667_vm4, %v2767_v42, %v2769_v33 }
  0x96   : > { %10240 = vmatprep.mubr.f32.mxu1 %v15476_v6  ;;  %v2681_v42 = vrot.slane %v11345_v4, 1  ;;  %v12191_v31 = vsel %vm2667_vm4, %v2769_v33, %v2771_v29  ;;  %v8862_v4 = vld [vmem:[%s15075_s2 + $0x68] sm:$0xff]  ;;  %v12209_v23 = vsel %vm2926_vm8, 1.0, %v15476_v6  ;;  %v2777_v22 = vrot.slane %v11383_v25, 1 }
  0x97   : > { %v2864_v14 = vadd.s32 1, %v490_v11  ;;  %15593 = vst [vmem:[#allocation34_spill] sm:$0xff] %v12191_v31  ;;  %15594 = vst [vmem:[#allocation38_spill] sm:$0xff] %v12209_v23  ;;  %v2866_v40 = vadd.s32 1, %v504_v48  ;;  %v406_v35 = vadd.s32 120, %v11195_v7  ;;  %v2685_v16 = vrot.slane %v11386_v26, 1 }
  0x98   : > { %10185 = vmatmul.mubr.msk.f32.vlgmr.msra.gmra.mxu0 %vm1314_vm0, %v3048_v5  ;;  %v12167_v5 = vsel %vm2924_vm7, 1.0, %v15476_v6  ;;  %v8861_v26 = vld [vmem:[%s15075_s2 + $0x60] sm:$0xff]  ;;  %v2781_v48 = vrot.slane %v11426_v57, 1 }
  0x99   : > { %10241 = vmatmul.mubr.msk.f32.vlgmr.msra.gmra.mxu1 %vm1314_vm0, %v3079_v60  ;;  %10289 = vmatpush3.msra.mxu0 %v12001_v0  ;;  %15592 = vst [vmem:[#allocation37_spill] sm:$0xff] %v12167_v5  ;;  %v2773_v60 = vrot.slane %v11333_v63, 1  ;;  %v404_v0 = vadd.s32 104, %v11195_v7  ;;  %v3052_v63 = vmul.f32 %v12167_v5, %v12154_v12  ;;  %v3083_v11 = vmul.f32 %v12167_v5, %v12170_v3 }
  0x9a   : > { %10345 = vmatpush3.msra.mxu1 %v12006_v27  ;;  %10187 = vmatprep.mubr.msk.f32.mxu0 %vm1314_vm0, %v12124_v36  ;;  %v12180_v27 = vsel %vm2667_vm4, %v2675_v59, %v2677_v46  ;;  %v12205_v59 = vsel %vm2667_vm4, %v2677_v46, %v2679_v56  ;;  %vm2928_vm9 = vcmp.le.s32.totalorder %v2864_v14, 15  ;;  %vm2930_vm10 = vcmp.le.s32.totalorder %v2866_v40, 15 }
  0x9b   : > { %10243 = vmatprep.mubr.msk.f32.mxu1 %vm1314_vm0, %v12134_v44  ;;  %10290 = vmatprep.subr.mxu0 %v8863_v43  ;;  %v12212_v33 = vsel %vm2667_vm4, %v2771_v29, %v2773_v60  ;;  %v518_v18 = vand.u32 15, %v404_v0  ;;  %v12220_v46 = vsel %vm2667_vm4, %v2773_v60, %v2775_v62  ;;  %v3054_v25 = vmul.f32 %v12209_v23, %v12205_v59 }
  0x9c   : > { %10346 = vmatprep.subr.mxu1 %v8899_v55  ;;  %10188 = vmatmul.mubr.msk.f32.gmra.mxu0 %vm1314_vm0, %v3050_v24  ;;  %v12217_v24 = vsel %vm2667_vm4, %v2679_v56, %v2681_v42  ;;  %15596 = vst [vmem:[#allocation46_spill] sm:$0xff] %v12220_v46  ;;  %v12230_v29 = vsel %vm2667_vm4, %v2681_v42, %v2683_v9  ;;  %v12245_v56 = vsel %vm2928_vm9, 1.0, %v15476_v6  ;;  %v2687_v60 = vrot.slane %v11423_v54, 1 }
  0x9d   : > { %10244 = vmatmul.mubr.msk.f32.gmra.mxu1 %vm1314_vm0, %v3081_v19  ;;  %10190 = vmatprep.mubr.msk.f32.mxu0 %vm1314_vm0, %v12139_v32  ;;  %15595 = vst [vmem:[#allocation41_spill] sm:$0xff] %v12217_v24  ;;  %v3085_v19 = vmul.f32 %v12209_v23, %v12212_v33  ;;  %15597 = vst [vmem:[#allocation47_spill] sm:$0xff] %v12230_v29  ;;  %v2868_v0 = vadd.s32 1, %v518_v18  ;;  %v532_v42 = vand.u32 15, %v406_v35  ;;  %v2689_v14 = vrot.slane %v11445_v28, 1  ;;  %v12276_v28 = vld [vmem:[%s15076_s3 + $0x98] sm:$0xff] }
  0x9e   : > { %10246 = vmatprep.mubr.msk.f32.mxu1 %vm1314_vm0, %v12144_v2  ;;  %10291 = vmatpush3.msra.mxu0 %v8863_v43  ;;  %v2779_v43 = vrot.slane %v11404_v47, 1  ;;  %15598 = vst [vmem:[#allocation50_spill] sm:$0xff] %v12245_v56  ;;  %v12248_v47 = vsel %vm2667_vm4, %v2775_v62, %v2777_v22  ;;  %v2783_v23 = vrot.slane %v11452_v37, 1  ;;  %v3056_v54 = vmul.f32 %v12245_v56, %v12230_v29  ;;  %v12271_v37 = vld [vmem:[%s15075_s2 + $0x98] sm:$0xff] }
  0x9f   : > { %10347 = vmatpush3.msra.mxu1 %v8899_v55  ;;  %10292 = vmatprep.subr.mxu0 %v8862_v4  ;;  %v8897_v55 = vld [vmem:[%s15076_s3 + $0x60] sm:$0xff]  ;;  %15599 = vst [vmem:[#allocation52_spill] sm:$0xff] %v12248_v47  ;;  %v3087_v57 = vmul.f32 %v12245_v56, %v12248_v47  ;;  %vm2932_vm11 = vcmp.le.s32.totalorder %v2868_v0, 15  ;;  %v2870_v18 = vadd.s32 1, %v532_v42  ;;  %v2693_v40 = vrot.slane %v11487_v50, 1  ;;  %v15742_v56 = vld [vmem:[#allocation101_spill] sm:$0xff] }
  0xa0   : > { %10348 = vmatprep.subr.mxu1 %v8898_v13  ;;  %10191 = vmatmul.mubr.msk.f32.gmra.mxu0 %vm1314_vm0, %v3052_v63  ;;  %v408_v63 = vadd.s32 136, %v11195_v7  ;;  %v12265_v62 = vsel %vm2667_vm4, %v2777_v22, %v2779_v43  ;;  %v2785_v22 = vrot.slane %v11477_v30, 1  ;;  %v12319_v50 = vsel %vm2932_vm11, 1.0, %v15476_v6 }
  0xa1   : > { %10247 = vmatmul.mubr.msk.f32.gmra.mxu1 %vm1314_vm0, %v3083_v11  ;;  %10193 = vmatprep.mubr.msk.f32.mxu0 %vm1314_vm0, %v12180_v27  ;;  %v12254_v11 = vsel %vm2667_vm4, %v2683_v9, %v2685_v16  ;;  %15601 = vst [vmem:[#allocation79_spill] sm:$0xff] %v12265_v62  ;;  %v2691_v9 = vrot.slane %v11474_v17, 1  ;;  %v12287_v17 = vsel %vm2930_vm10, 1.0, %v15476_v6  ;;  %15608 = vst [vmem:[#allocation115_spill] sm:$0xff] %v12319_v50  ;;  %v2789_v42 = vrot.slane %v11529_v21, 1 }
  0xa2   : > { %10249 = vmatprep.mubr.msk.f32.mxu1 %vm1314_vm0, %v12191_v31  ;;  %10293 = vmatpush3.msra.mxu0 %v8862_v4  ;;  %15600 = vst [vmem:[#allocation77_spill] sm:$0xff] %v12254_v11  ;;  %v12283_v4 = vsel %vm2667_vm4, %v2685_v16, %v2687_v60  ;;  %15603 = vst [vmem:[#allocation110_spill] sm:$0xff] %v12287_v17  ;;  %v546_v35 = vand.u32 15, %v408_v63  ;;  %v12298_v16 = vsel %vm2667_vm4, %v2781_v48, %v2783_v23 }
  0xa3   : > { %10349 = vmatpush3.msra.mxu1 %v8898_v13  ;;  %10294 = vmatprep.subr.mxu0 %v8861_v26  ;;  %15602 = vst [vmem:[#allocation109_spill] sm:$0xff] %v12283_v4  ;;  %v12290_v13 = vsel %vm2667_vm4, %v2779_v43, %v2781_v48  ;;  %15606 = vst [vmem:[#allocation113_spill] sm:$0xff] %v12298_v16  ;;  %v3058_v30 = vmul.f32 %v12287_v17, %v12283_v4  ;;  %v2695_v48 = vrot.slane %v11507_v20, 1 }
  0xa4   : > { %10350 = vmatprep.subr.mxu1 %v8897_v55  ;;  %10194 = vmatmul.mubr.msk.f32.gmra.mxu0 %vm1314_vm0, %v3054_v25  ;;  %15604 = vst [vmem:[#allocation111_spill] sm:$0xff] %v12290_v13  ;;  %v410_v25 = vadd.s32 152, %v11195_v7  ;;  %v3089_v43 = vmul.f32 %v12287_v17, %v12290_v13  ;;  %vm2934_vm12 = vcmp.le.s32.totalorder %v2870_v18, 15  ;;  %v2872_v63 = vadd.s32 1, %v546_v35 }
  0xa5   : > { %10250 = vmatmul.mubr.msk.f32.gmra.mxu1 %vm1314_vm0, %v3085_v19  ;;  %10196 = vmatprep.mubr.msk.f32.mxu0 %vm1314_vm0, %v12217_v24  ;;  %v12295_v19 = vsel %vm2667_vm4, %v2687_v60, %v2689_v14  ;;  %v12322_v60 = vsel %vm2667_vm4, %v2783_v23, %v2785_v22  ;;  %v2791_v0 = vrot.slane %v15567_v39, 1  ;;  %v12351_v39 = vsel %vm2934_vm12, 1.0, %v15476_v6 }
  0xa6   : > { %10252 = vmatprep.mubr.msk.f32.mxu1 %vm1314_vm0, %v12220_v46  ;;  %10295 = vmatpush3.msra.mxu0 %v8861_v26  ;;  %15605 = vst [vmem:[#allocation112_spill] sm:$0xff] %v12295_v19  ;;  %v12310_v26 = vsel %vm2667_vm4, %v2689_v14, %v2691_v9  ;;  %15609 = vst [vmem:[#allocation116_spill] sm:$0xff] %v12322_v60  ;;  %v412_v14 = vadd.s32 168, %v11195_v7  ;;  %v3091_v21 = vmul.f32 %v12319_v50, %v12322_v60 }
  0xa7   : > { %10351 = vmatpush3.msra.mxu1 %v8897_v55  ;;  %10400 = vmatprep.subr.mxu0 %v12271_v37  ;;  %15607 = vst [vmem:[#allocation114_spill] sm:$0xff] %v12310_v26  ;;  %v2787_v55 = vrot.slane %v11499_v15, 1  ;;  %v560_v15 = vand.u32 15, %v410_v25  ;;  %v3060_v20 = vmul.f32 %v12319_v50, %v12310_v26  ;;  %15613 = vst [vmem:[#allocation120_spill] sm:$0xff] %v12351_v39  ;;  %vm2936_vm13 = vcmp.le.s32.totalorder %v2872_v63, 15 }
  0xa8   : > { %10456 = vmatprep.subr.mxu1 %v12276_v28  ;;  %10197 = vmatmul.mubr.msk.f32.gmra.mxu0 %vm1314_vm0, %v3056_v54  ;;  %v12328_v54 = vsel %vm2667_vm4, %v2691_v9, %v2693_v40  ;;  %v2699_v9 = vrot.slane %v15568_v38, 1  ;;  %v574_v25 = vand.u32 15, %v412_v14  ;;  %v2701_v18 = vrot.slane %v15570_v34, 1 }
  0xa9   : > { %10253 = vmatmul.mubr.msk.f32.gmra.mxu1 %vm1314_vm0, %v3087_v57  ;;  %10199 = vmatprep.mubr.msk.f32.mxu0 %vm1314_vm0, %v12254_v11  ;;  %15610 = vst [vmem:[#allocation117_spill] sm:$0xff] %v12328_v54  ;;  %v2697_v57 = vrot.slane %v11541_v10, 1  ;;  %v12339_v23 = vsel %vm2667_vm4, %v2785_v22, %v2787_v55  ;;  %v12347_v10 = vsel %vm2667_vm4, %v2693_v40, %v2695_v48  ;;  %v2793_v22 = vrot.slane %v15569_v49, 1 }
  0xaa   : > { %10255 = vmatprep.mubr.msk.f32.mxu1 %vm1314_vm0, %v12265_v62  ;;  %15611 = vst [vmem:[#allocation118_spill] sm:$0xff] %v12339_v23  ;;  %15612 = vst [vmem:[#allocation119_spill] sm:$0xff] %v12347_v10  ;;  %v12354_v35 = vsel %vm2667_vm4, %v2787_v55, %v2789_v42  ;;  %v2874_v38 = vadd.s32 1, %v560_v15  ;;  %v12362_v40 = vsel %vm2667_vm4, %v2789_v42, %v2791_v0  ;;  %v12380_v34 = vsel %vm2936_vm13, 1.0, %v15476_v6 }
  0xab   : > { %15614 = vst [vmem:[#allocation121_spill] sm:$0xff] %v12354_v35  ;;  %15616 = vst [vmem:[#allocation123_spill] sm:$0xff] %v12362_v40  ;;  %v3062_v49 = vmul.f32 %v12351_v39, %v12347_v10  ;;  %v3093_v55 = vmul.f32 %v12351_v39, %v12354_v35  ;;  %v12372_v63 = vsel %vm2667_vm4, %v2697_v57, %v2699_v9  ;;  %v2703_v15 = vrot.slane %v15571_v52, 1 }
  0xac   : > { %10200 = vmatmul.mubr.msk.f32.gmra.mxu0 %vm1314_vm0, %v3058_v30  ;;  %v414_v30 = vadd.s32 184, %v11195_v7  ;;  %15617 = vst [vmem:[#allocation124_spill] sm:$0xff] %v12372_v63  ;;  %15618 = vst [vmem:[#allocation125_spill] sm:$0xff] %v12380_v34  ;;  %v12383_v42 = vsel %vm2667_vm4, %v2791_v0, %v2793_v22  ;;  %v2797_v14 = vrot.slane %v15572_v61, 1  ;;  %vm2938_vm14 = vcmp.le.s32.totalorder %v2874_v38, 15 }
  0xad   : > { %10256 = vmatmul.mubr.msk.f32.gmra.mxu1 %vm1314_vm0, %v3089_v43  ;;  %10202 = vmatprep.mubr.msk.f32.mxu0 %vm1314_vm0, %v12295_v19  ;;  %v12359_v43 = vsel %vm2667_vm4, %v2695_v48, %v2697_v57  ;;  %v2795_v48 = vrot.slane %v11599_v1, 1  ;;  %15619 = vst [vmem:[#allocation126_spill] sm:$0xff] %v12383_v42  ;;  %v2876_v57 = vadd.s32 1, %v574_v25  ;;  %v416_v1 = vadd.s32 200, %v11195_v7  ;;  %v15622_v25 = vld [vmem:[#allocation51_spill] sm:$0xff] }
  0xae   : > { %10258 = vmatprep.mubr.msk.f32.mxu1 %vm1314_vm0, %v12298_v16  ;;  %15615 = vst [vmem:[#allocation122_spill] sm:$0xff] %v12359_v43  ;;  %v2705_v39 = vrot.slane %v15573_v45, 1  ;;  %v3064_v52 = vmul.f32 %v12380_v34, %v12372_v63  ;;  %v3095_v61 = vmul.f32 %v12380_v34, %v12383_v42  ;;  %v12408_v45 = vsel %vm2667_vm4, %v2701_v18, %v2703_v15  ;;  %v15638_v42 = vld [vmem:[#allocation71_spill] sm:$0xff] }
  0xaf   : > { %v12400_v0 = vsel %vm2667_vm4, %v2793_v22, %v2795_v48  ;;  %15623 = vst [vmem:[#allocation51_spill] sm:$0xff] %v12408_v45  ;;  %v15626_v22 = vld [vmem:[#allocation54_spill] sm:$0xff]  ;;  %vm2940_vm15 = vcmp.le.s32.totalorder %v2876_v57, 15  ;;  %v418_v34 = vadd.s32 216, %v11195_v7  ;;  %v2715_v63 = vrot.slane %v15638_v42, 1 }
  0xb0   : > { %10203 = vmatmul.mubr.msk.f32.gmra.mxu0 %vm1314_vm0, %v3060_v20  ;;  %v588_v20 = vand.u32 15, %v414_v30  ;;  %15621 = vst [vmem:[#allocation128_spill] sm:$0xff] %v12400_v0  ;;  %v12415_v30 = vsel %vm2667_vm4, %v2795_v48, %v2797_v14 }
  0xb1   : > { %10259 = vmatmul.mubr.msk.f32.gmra.mxu1 %vm1314_vm0, %v3091_v21  ;;  %10205 = vmatprep.mubr.msk.f32.mxu0 %vm1314_vm0, %v12328_v54  ;;  %v12389_v21 = vsel %vm2667_vm4, %v2699_v9, %v2701_v18  ;;  %v2707_v9 = vrot.slane %v15622_v25, 1  ;;  %15625 = vst [vmem:[#allocation130_spill] sm:$0xff] %v12415_v30  ;;  %v602_v25 = vand.u32 15, %v416_v1 }
  0xb2   : > { %10261 = vmatprep.mubr.msk.f32.mxu1 %vm1314_vm0, %v12339_v23  ;;  %15620 = vst [vmem:[#allocation127_spill] sm:$0xff] %v12389_v21  ;;  %v2799_v23 = vrot.slane %v15574_v8, 1  ;;  %v12412_v8 = vsel %vm2938_vm14, 1.0, %v15476_v6 }
  0xb3   : > { %15624 = vst [vmem:[#allocation129_spill] sm:$0xff] %v12412_v8  ;;  %v3066_v48 = vmul.f32 %v12412_v8, %v12408_v45  ;;  %v3097_v57 = vmul.f32 %v12412_v8, %v12415_v30  ;;  %v616_v30 = vand.u32 15, %v418_v34  ;;  %v15637_v45 = vld [vmem:[#allocation67_spill] sm:$0xff] }
  0xb4   : > { %10206 = vmatmul.mubr.msk.f32.gmra.mxu0 %vm1314_vm0, %v3062_v49  ;;  %v2801_v49 = vrot.slane %v15626_v22, 1  ;;  %v12423_v18 = vsel %vm2667_vm4, %v2797_v14, %v2799_v23  ;;  %v15635_v22 = vld [vmem:[#allocation66_spill] sm:$0xff] }
  0xb5   : > { %10262 = vmatmul.mubr.msk.f32.gmra.mxu1 %vm1314_vm0, %v3093_v55  ;;  %10208 = vmatprep.mubr.msk.f32.mxu0 %vm1314_vm0, %v12359_v43  ;;  %v2878_v55 = vadd.s32 1, %v588_v20  ;;  %v12420_v43 = vsel %vm2667_vm4, %v2703_v15, %v2705_v39  ;;  %15628 = vst [vmem:[#allocation131_spill] sm:$0xff] %v12423_v18  ;;  %v12433_v20 = vsel %vm2667_vm4, %v2705_v39, %v2707_v9  ;;  %v15631_v15 = vld [vmem:[#allocation59_spill] sm:$0xff]  ;;  %v2805_v8 = vrot.slane %v15635_v22, 1 }
  0xb6   : > { %10264 = vmatprep.mubr.msk.f32.mxu1 %vm1314_vm0, %v12362_v40  ;;  %15627 = vst [vmem:[#allocation54_spill] sm:$0xff] %v12420_v43  ;;  %v15629_v40 = vld [vmem:[#allocation58_spill] sm:$0xff]  ;;  %v2803_v1 = vrot.slane %v15631_v15, 1  ;;  %v12444_v14 = vsel %vm2667_vm4, %v2799_v23, %v2801_v49  ;;  %v2880_v39 = vadd.s32 1, %v602_v25  ;;  %v420_v15 = vadd.s32 232, %v11195_v7 }
  0xb7   : > { %v2709_v38 = vrot.slane %v15629_v40, 1  ;;  %15630 = vst [vmem:[#allocation58_spill] sm:$0xff] %v12433_v20  ;;  %v12441_v40 = vsel %vm2940_vm15, 1.0, %v15476_v6  ;;  %15633 = vst [vmem:[#allocation132_spill] sm:$0xff] %v12444_v14  ;;  %vm2942_vm2 = vcmp.le.s32.totalorder %v2878_v55, 15  ;;  %v2882_v22 = vadd.s32 1, %v616_v30 }
  0xb8   : > { %10209 = vmatmul.mubr.msk.f32.gmra.mxu0 %vm1314_vm0, %v3064_v52  ;;  %15632 = vst [vmem:[#allocation59_spill] sm:$0xff] %v12441_v40  ;;  %v15634_v52 = vld [vmem:[#allocation62_spill] sm:$0xff]  ;;  %v3068_v23 = vmul.f32 %v12441_v40, %v12433_v20  ;;  %v3099_v25 = vmul.f32 %v12441_v40, %v12444_v14  ;;  %v12461_v34 = vsel %vm2667_vm4, %v2801_v49, %v2803_v1  ;;  %vm2944_vm3 = vcmp.le.s32.totalorder %v2880_v39, 15 }
  0xb9   : > { %10265 = vmatmul.mubr.msk.f32.gmra.mxu1 %vm1314_vm0, %v3095_v61  ;;  %10211 = vmatprep.mubr.msk.f32.mxu0 %vm1314_vm0, %v12389_v21  ;;  %v2711_v61 = vrot.slane %v15634_v52, 1  ;;  %v12450_v21 = vsel %vm2667_vm4, %v2707_v9, %v2709_v38  ;;  %15639 = vst [vmem:[#allocation66_spill] sm:$0xff] %v12461_v34  ;;  %v15640_v52 = vld [vmem:[#allocation70_spill] sm:$0xff]  ;;  %v422_v40 = vadd.s32 248, %v11195_v7  ;;  %v2717_v30 = vrot.slane %v15585_v58, 1 }
  0xba   : > { %10267 = vmatprep.mubr.msk.f32.mxu1 %vm1314_vm0, %v12400_v0  ;;  %15636 = vst [vmem:[#allocation62_spill] sm:$0xff] %v12450_v21  ;;  %v2713_v0 = vrot.slane %v15637_v45, 1  ;;  %v2807_v9 = vrot.slane %v15640_v52, 1  ;;  %v12473_v45 = vsel %vm2942_vm2, 1.0, %v15476_v6  ;;  %v15644_v49 = vld [vmem:[#allocation74_spill] sm:$0xff]  ;;  %v630_v52 = vand.u32 15, %v420_v15 }
  0xbb   : > { %v12469_v42 = vsel %vm2667_vm4, %v2709_v38, %v2711_v61  ;;  %15642 = vst [vmem:[#allocation71_spill] sm:$0xff] %v12473_v45  ;;  %v2719_v39 = vrot.slane %v15587_v53, 1  ;;  %v15649_v15 = vld [vmem:[#allocation78_spill] sm:$0xff]  ;;  %vm2946_vm5 = vcmp.le.s32.totalorder %v2882_v22, 15  ;;  %v644_v7 = vand.u32 15, %v422_v40 }
  0xbc   : > { %10212 = vmatmul.mubr.msk.f32.gmra.mxu0 %vm1314_vm0, %v3066_v48  ;;  %15641 = vst [vmem:[#allocation67_spill] sm:$0xff] %v12469_v42  ;;  %v12476_v48 = vsel %vm2667_vm4, %v2803_v1, %v2805_v8  ;;  %v12484_v38 = vsel %vm2667_vm4, %v2713_v0, %v2715_v63  ;;  %v3070_v55 = vmul.f32 %v12473_v45, %v12469_v42  ;;  %v2884_v53 = vadd.s32 1, %v630_v52  ;;  %v15656_v22 = vld [vmem:[#allocation86_spill] sm:$0xff] }
  0xbd   : > { %10268 = vmatmul.mubr.msk.f32.gmra.mxu1 %vm1314_vm0, %v3097_v57  ;;  %10214 = vmatprep.mubr.msk.f32.mxu0 %vm1314_vm0, %v12420_v43  ;;  %15643 = vst [vmem:[#allocation70_spill] sm:$0xff] %v12476_v48  ;;  %v2809_v57 = vrot.slane %v15644_v49, 1  ;;  %v12481_v43 = vsel %vm2667_vm4, %v2711_v61, %v2713_v0  ;;  %15646 = vst [vmem:[#allocation133_spill] sm:$0xff] %v12484_v38  ;;  %v3101_v1 = vmul.f32 %v12473_v45, %v12476_v48  ;;  %v15652_v45 = vld [vmem:[#allocation85_spill] sm:$0xff] }
  0xbe   : > { %10270 = vmatprep.mubr.msk.f32.mxu1 %vm1314_vm0, %v12423_v18  ;;  %15645 = vst [vmem:[#allocation74_spill] sm:$0xff] %v12481_v43  ;;  %v12499_v0 = vsel %vm2944_vm3, 1.0, %v15476_v6  ;;  %v12507_v58 = vsel %vm2667_vm4, %v2805_v8, %v2807_v9  ;;  %v12517_v8 = vsel %vm2667_vm4, %v2717_v30, %v2719_v39  ;;  %v12525_v40 = vsel %vm2946_vm5, 1.0, %v15476_v6 }
  0xbf   : > { %15647 = vst [vmem:[#allocation134_spill] sm:$0xff] %v12499_v0  ;;  %v12502_v61 = vsel %vm2667_vm4, %v2807_v9, %v2809_v57  ;;  %15651 = vst [vmem:[#allocation78_spill] sm:$0xff] %v12507_v58  ;;  %v2723_v9 = vrot.slane %v11809_v41, 1  ;;  %v2815_v52 = vrot.slane %v15656_v22, 1  ;;  %vm2948_vm6 = vcmp.le.s32.totalorder %v2884_v53, 15 }
  0xc0   : > { %10215 = vmatmul.mubr.msk.f32.gmra.mxu0 %vm1314_vm0, %v3068_v23  ;;  %15648 = vst [vmem:[#allocation135_spill] sm:$0xff] %v12502_v61  ;;  %v2811_v23 = vrot.slane %v15649_v15, 1  ;;  %v3103_v15 = vmul.f32 %v12499_v0, %v12502_v61  ;;  %15654 = vst [vmem:[#allocation85_spill] sm:$0xff] %v12525_v40  ;;  %v15660_v61 = vld [vmem:[#allocation97_spill] sm:$0xff]  ;;  %v3074_v22 = vmul.f32 %v12525_v40, %v12517_v8 }
  0xc1   : > { %10271 = vmatmul.mubr.msk.f32.gmra.mxu1 %vm1314_vm0, %v3099_v25  ;;  %10217 = vmatprep.mubr.msk.f32.mxu0 %vm1314_vm0, %v12450_v21  ;;  %v15650_v25 = vld [vmem:[#allocation83_spill] sm:$0xff]  ;;  %v2721_v21 = vrot.slane %v15652_v45, 1 }
  0xc2   : > { %10273 = vmatprep.mubr.msk.f32.mxu1 %vm1314_vm0, %v12461_v34  ;;  %v2813_v49 = vrot.slane %v15650_v25, 1  ;;  %v3072_v34 = vmul.f32 %v12499_v0, %v12484_v38  ;;  %15653 = vst [vmem:[#allocation83_spill] sm:$0xff] %v12517_v8  ;;  %v12533_v25 = vsel %vm2667_vm4, %v2715_v63, %v2717_v30  ;;  %v12536_v41 = vsel %vm2667_vm4, %v2809_v57, %v2811_v23  ;;  %v12539_v0 = vld [vmem:[%s11218_s9 + $0xf0] sm:$0xff]  ;;  %v15662_v30 = vld [vmem:[#allocation98_spill] sm:$0xff] }
  0xc3   : > { %15658 = vst [vmem:[#allocation86_spill] sm:$0xff] %v12533_v25  ;;  %v2725_v38 = vrot.slane %v15660_v61, 1  ;;  %v12552_v57 = vsel %vm2667_vm4, %v2721_v21, %v2723_v9  ;;  %v15342_v53 = vrot.slane %v12539_v0, 1  ;;  %v15745_v24 = vrot.slane %v15662_v30, 7 }
  0xc4   : > { %10218 = vmatmul.mubr.msk.f32.gmra.mxu0 %vm1314_vm0, %v3070_v55  ;;  %v12528_v45 = vsel %vm2667_vm4, %v2811_v23, %v2813_v49  ;;  %v15657_v55 = vld [vmem:[#allocation91_spill] sm:$0xff]  ;;  %15661 = vst [vmem:[#allocation97_spill] sm:$0xff] %v12552_v57  ;;  %v2819_v23 = vrot.slane %v15662_v30, 1 }
  0xc5   : > { %10274 = vmatmul.mubr.msk.f32.gmra.mxu1 %vm1314_vm0, %v3101_v1  ;;  %10220 = vmatprep.mubr.msk.f32.mxu0 %vm1314_vm0, %v12481_v43  ;;  %15655 = vst [vmem:[#allocation136_spill] sm:$0xff] %v12528_v45  ;;  %v2817_v1 = vrot.slane %v15657_v55, 1  ;;  %15659 = vst [vmem:[#allocation91_spill] sm:$0xff] %v12536_v41  ;;  %v12542_v43 = vld [vmem:[%s11227_s12 + $0xf0] sm:$0xff]  ;;  %v3105_v63 = vmul.f32 %v12525_v40, %v12528_v45  ;;  %v12568_v55 = vsel %vm2667_vm4, %v2719_v39, %v2721_v21 }
  0xc6   : > { %10276 = vmatprep.mubr.msk.f32.mxu1 %vm1314_vm0, %v12507_v58  ;;  %v2886_v58 = vadd.s32 1, %v644_v7  ;;  %v12560_v7 = vsel %vm2948_vm6, 1.0, %v15476_v6  ;;  %15665 = vst [vmem:[#allocation138_spill] sm:$0xff] %v12568_v55  ;;  %v12571_v40 = vsel %vm2667_vm4, %v2813_v49, %v2815_v52  ;;  %v12586_v21 = vsel %vm2667_vm4, %v2725_v38, %v15342_v53  ;;  %v15676_v53 = vld [vmem:[#allocation6_spill] sm:$0xff] }
  0xc7   : > { %15663 = vst [vmem:[#allocation98_spill] sm:$0xff] %v12560_v7  ;;  %15666 = vst [vmem:[#allocation139_spill] sm:$0xff] %v12571_v40 }
  0xc8   : > { %10221 = vmatmul.mubr.msk.f32.gmra.mxu0 %vm1314_vm0, %v3072_v34  ;;  %v12563_v34 = vsel %vm2667_vm4, %v2815_v52, %v2817_v1  ;;  %vm2950_vm7 = vcmp.le.s32.totalorder %v2886_v58, 15  ;;  %15667 = vst [vmem:[#allocation140_spill] sm:$0xff] %v12586_v21  ;;  %v12597_v58 = vsel %vm2667_vm4, %v2723_v9, %v2725_v38  ;;  %v12600_v52 = vsel %vm2667_vm4, %v2817_v1, %v2819_v23  ;;  %v15672_v38 = vld [vmem:[#allocation4_spill] sm:$0xff]  ;;  %v15673_v9 = vld [vmem:[#allocation3_spill] sm:$0xff] }
  0xc9   : > { %10277 = vmatmul.mubr.msk.f32.gmra.mxu1 %vm1314_vm0, %v3103_v15  ;;  %10223 = vmatprep.mubr.msk.f32.mxu0 %vm1314_vm0, %v12533_v25  ;;  %15664 = vst [vmem:[#allocation137_spill] sm:$0xff] %v12563_v34  ;;  %v15341_v15 = vrot.slane %v12542_v43, 1  ;;  %v3107_v25 = vmul.f32 %v12560_v7, %v12563_v34  ;;  %v12589_v39 = vsel %vm2950_vm7, 1.0, %v15476_v6  ;;  %15670 = vst [vmem:[#allocation143_spill] sm:$0xff] %v12597_v58 }
  0xca   : > { %10279 = vmatprep.mubr.msk.f32.mxu1 %vm1314_vm0, %v12536_v41  ;;  %v3076_v41 = vmul.f32 %v12560_v7, %v12552_v57  ;;  %15668 = vst [vmem:[#allocation141_spill] sm:$0xff] %v12589_v39  ;;  %15671 = vst [vmem:[#allocation144_spill] sm:$0xff] %v12600_v52  ;;  %v3837_v1 = vmul.f32 %v15673_v9, %v15672_v38  ;;  %v15677_v38 = vld [vmem:[#allocation8_spill] sm:$0xff] }
  0xcb   : > { %v12594_v49 = vsel %vm2667_vm4, %v2819_v23, %v15341_v15  ;;  %v15674_v23 = vld [vmem:[#allocation5_spill] sm:$0xff]  ;;  %v15675_v15 = vld [vmem:[#allocation7_spill] sm:$0xff] }
  0xcc   : > { %10224 = vmatmul.mubr.msk.f32.gmra.mxu0 %vm1314_vm0, %v3074_v22  ;;  %15669 = vst [vmem:[#allocation142_spill] sm:$0xff] %v12594_v49  ;;  %v3078_v22 = vmul.f32 %v12589_v39, %v12586_v21  ;;  %v3839_v6 = vmul.f32 %v15676_v53, %v15675_v15  ;;  %v15683_v21 = vld [vmem:[#allocation14_spill] sm:$0xff] }
  0xcd   : > { %10280 = vmatmul.mubr.msk.f32.gmra.mxu1 %vm1314_vm0, %v3105_v63  ;;  %10226 = vmatprep.mubr.msk.f32.mxu0 %vm1314_vm0, %v12568_v55  ;;  %v3109_v63 = vmul.f32 %v12589_v39, %v12594_v49  ;;  %v3871_v39 = vmul.f32 %v15676_v53, %v15677_v38  ;;  %v15680_v53 = vld [vmem:[#allocation12_spill] sm:$0xff]  ;;  %v15681_v38 = vld [vmem:[#allocation11_spill] sm:$0xff] }
  0xce   : > { %10282 = vmatprep.mubr.msk.f32.mxu1 %vm1314_vm0, %v12571_v40 }
  0xd0   : > { %10227 = vmatmul.mubr.msk.f32.gmra.mxu0 %vm1314_vm0, %v3076_v41  ;;  %v3869_v41 = vmul.f32 %v15673_v9, %v15674_v23 }
  0xd1   : > { %10283 = vmatmul.mubr.msk.f32.gmra.mxu1 %vm1314_vm0, %v3107_v25  ;;  %10229 = vmatprep.mubr.msk.f32.mxu0 %vm1314_vm0, %v12597_v58  ;;  %v12623_v25 = vld [vmem:[%s15077_s4] ss:$0 sm:$0xff] }
  0xd2   : > { %10285 = vmatprep.mubr.msk.f32.mxu1 %vm1314_vm0, %v12600_v52  ;;  %v15682_v52 = vld [vmem:[#allocation13_spill] sm:$0xff] }
  0xd4   : > { %10230 = vmatmul.mubr.msk.f32.gmra.mxu0 %vm1314_vm0, %v3078_v22  ;;  %v15678_v22 = vld [vmem:[#allocation9_spill] sm:$0xff] }
  0xd5   : > { %10286 = vmatmul.mubr.msk.f32.gmra.mxu1 %vm1314_vm0, %v3109_v63  ;;  %10296 = vmatprep.mubr.msk.f32.mxu0 %vm1314_vm0, %v3837_v1  ;;  %v15679_v63 = vld [vmem:[#allocation10_spill] sm:$0xff]  ;;  %v8935_v1 = vld [vmem:[%s15075_s2 + $0x90] sm:$0xff] }
  0xd6   : > { %10352 = vmatprep.mubr.msk.f32.mxu1 %vm1314_vm0, %v3869_v41  ;;  %v8971_v41 = vld [vmem:[%s15076_s3 + $0x90] sm:$0xff] }
  0xd8   : > { %v9962_v23 = vpop.f32.mrf.mxu0  ;;  %v10018_v9 = vpop.f32.mrf.mxu1  ;;  %10297 = vmatmul.mubr.msk.f32.vlgmr.msra.gmra.mxu0 %vm1314_vm0, %v15678_v22  ;;  %v3841_v22 = vmul.f32 %v15681_v38, %v15680_v53  ;;  %v15684_v53 = vld [vmem:[#allocation15_spill] sm:$0xff] }
  0xd9   : > { %10353 = vmatmul.mubr.msk.f32.vlgmr.msra.gmra.mxu1 %vm1314_vm0, %v15679_v63  ;;  %v1637_v15 = vadd.f32 %v9962_v23, %v12623_v25  ;;  %10401 = vmatpush3.msra.mxu0 %v12271_v37  ;;  %v3873_v63 = vmul.f32 %v15681_v38, %v15682_v52  ;;  %v15685_v38 = vld [vmem:[#allocation17_spill] sm:$0xff]  ;;  %v15686_v52 = vld [vmem:[#allocation16_spill] sm:$0xff] }
  0xda   : > { %10457 = vmatpush3.msra.mxu1 %v12276_v28  ;;  %v1477_v58 = vpop.f32.mrf.mxu0  ;;  %v1828_v49 = vpop.f32.mrf.mxu1  ;;  %10299 = vmatprep.mubr.msk.f32.mxu0 %vm1314_vm0, %v3839_v6  ;;  %v3843_v40 = vmul.f32 %v15686_v52, %v15685_v38  ;;  %v8934_v6 = vld [vmem:[%s15075_s2 + $0x88] sm:$0xff] }
  0xdb   : > { %10355 = vmatprep.mubr.msk.f32.mxu1 %vm1314_vm0, %v3871_v39  ;;  %v12648_v7 = vadd.f32 %v10018_v9, %v1637_v15  ;;  %v1636_v23 = vadd.f32 %v12623_v25, %v1477_v58  ;;  %10402 = vmatprep.subr.mxu0 %v8935_v1  ;;  %v8970_v15 = vld [vmem:[%s15076_s3 + $0x88] sm:$0xff]  ;;  %v15687_v9 = vld [vmem:[#allocation18_spill] sm:$0xff] }
  0xdc   : > { %10458 = vmatprep.subr.mxu1 %v8971_v41  ;;  %v9965_v37 = vpop.f32.mrf.mxu0  ;;  %v10021_v28 = vpop.f32.mrf.mxu1  ;;  %10300 = vmatmul.mubr.msk.f32.gmra.mxu0 %vm1314_vm0, %v15683_v21 }
  0xdd   : > { %10356 = vmatmul.mubr.msk.f32.gmra.mxu1 %vm1314_vm0, %v15684_v53  ;;  %v12663_v39 = vadd.f32 %v1828_v49, %v1636_v23  ;;  %v1639_v58 = vadd.f32 %v9965_v37, %v12623_v25  ;;  %10302 = vmatprep.mubr.msk.f32.mxu0 %vm1314_vm0, %v3841_v22  ;;  %v3875_v53 = vmul.f32 %v15686_v52, %v15687_v9  ;;  %v15688_v37 = vld [vmem:[#allocation19_spill] sm:$0xff]  ;;  %v15689_v22 = vld [vmem:[#allocation21_spill] sm:$0xff]  ;;  %v15691_v52 = vld [vmem:[#allocation20_spill] sm:$0xff] }
  0xde   : > { %10358 = vmatprep.mubr.msk.f32.mxu1 %vm1314_vm0, %v3873_v63  ;;  %v1487_v38 = vpop.f32.mrf.mxu0  ;;  %v1838_v21 = vpop.f32.mrf.mxu1  ;;  %10403 = vmatpush3.msra.mxu0 %v8935_v1  ;;  %v15690_v63 = vld [vmem:[#allocation22_spill] sm:$0xff] }
  0xdf   : > { %10459 = vmatpush3.msra.mxu1 %v8971_v41  ;;  %v12670_v55 = vadd.f32 %v10021_v28, %v1639_v58  ;;  %v1638_v34 = vadd.f32 %v12623_v25, %v1487_v38  ;;  %10404 = vmatprep.subr.mxu0 %v8934_v6  ;;  %v3845_v9 = vmul.f32 %v15691_v52, %v15690_v63  ;;  %v8933_v1 = vld [vmem:[%s15075_s2 + $0x80] sm:$0xff]  ;;  %v15692_v58 = vld [vmem:[#allocation23_spill] sm:$0xff] }
  0xe0   : > { %10460 = vmatprep.subr.mxu1 %v8970_v15  ;;  %v9968_v49 = vpop.f32.mrf.mxu0  ;;  %v10024_v23 = vpop.f32.mrf.mxu1  ;;  %10303 = vmatmul.mubr.msk.f32.gmra.mxu0 %vm1314_vm0, %v15688_v37  ;;  %v8969_v38 = vld [vmem:[%s15076_s3 + $0x80] sm:$0xff] }
  0xe1   : > { %10359 = vmatmul.mubr.msk.f32.gmra.mxu1 %vm1314_vm0, %v15689_v22  ;;  %v12685_v41 = vadd.f32 %v1838_v21, %v1638_v34  ;;  %v1641_v28 = vadd.f32 %v9968_v49, %v12623_v25  ;;  %10305 = vmatprep.mubr.msk.f32.mxu0 %vm1314_vm0, %v3843_v40  ;;  %v3877_v22 = vmul.f32 %v15691_v52, %v15692_v58  ;;  %v15693_v49 = vld [vmem:[#allocation24_spill] sm:$0xff]  ;;  %v15694_v40 = vld [vmem:[#allocation25_spill] sm:$0xff]  ;;  %v15696_v52 = vld [vmem:[#allocation26_spill] sm:$0xff] }
  0xe2   : > { %10361 = vmatprep.mubr.msk.f32.mxu1 %vm1314_vm0, %v3875_v53  ;;  %v1497_v63 = vpop.f32.mrf.mxu0  ;;  %v1848_v37 = vpop.f32.mrf.mxu1  ;;  %10405 = vmatpush3.msra.mxu0 %v8934_v6  ;;  %v15695_v53 = vld [vmem:[#allocation28_spill] sm:$0xff]  ;;  %v12704_v6 = vld [vmem:[%s15075_s2 + $0xb8] sm:$0xff] }
  0xe3   : > { %10461 = vmatpush3.msra.mxu1 %v8970_v15  ;;  %v12692_v57 = vadd.f32 %v10024_v23, %v1641_v28  ;;  %v1640_v45 = vadd.f32 %v12623_v25, %v1497_v63  ;;  %10406 = vmatprep.subr.mxu0 %v8933_v1  ;;  %v3847_v58 = vmul.f32 %v15696_v52, %v15695_v53  ;;  %v12709_v15 = vld [vmem:[%s15076_s3 + $0xb8] sm:$0xff] }
  0xe4   : > { %10462 = vmatprep.subr.mxu1 %v8969_v38  ;;  %v9971_v34 = vpop.f32.mrf.mxu0  ;;  %v10027_v21 = vpop.f32.mrf.mxu1  ;;  %10306 = vmatmul.mubr.msk.f32.gmra.mxu0 %vm1314_vm0, %v15693_v49  ;;  %v15697_v28 = vld [vmem:[#allocation29_spill] sm:$0xff] }
  0xe5   : > { %10362 = vmatmul.mubr.msk.f32.gmra.mxu1 %vm1314_vm0, %v15694_v40  ;;  %v12711_v23 = vadd.f32 %v1848_v37, %v1640_v45  ;;  %v1643_v63 = vadd.f32 %v9971_v34, %v12623_v25  ;;  %10308 = vmatprep.mubr.msk.f32.mxu0 %vm1314_vm0, %v3845_v9  ;;  %v3879_v53 = vmul.f32 %v15696_v52, %v15697_v28  ;;  %v15698_v9 = vld [vmem:[#allocation27_spill] sm:$0xff]  ;;  %v15700_v34 = vld [vmem:[#allocation32_spill] sm:$0xff] }
  0xe6   : > { %10364 = vmatprep.mubr.msk.f32.mxu1 %vm1314_vm0, %v3877_v22  ;;  %v1507_v40 = vpop.f32.mrf.mxu0  ;;  %v1858_v49 = vpop.f32.mrf.mxu1  ;;  %10407 = vmatpush3.msra.mxu0 %v8933_v1  ;;  %v15699_v22 = vld [vmem:[#allocation30_spill] sm:$0xff]  ;;  %v15701_v52 = vld [vmem:[#allocation31_spill] sm:$0xff] }
  0xe7   : > { %10463 = vmatpush3.msra.mxu1 %v8969_v38  ;;  %v12718_v8 = vadd.f32 %v10027_v21, %v1643_v63  ;;  %v1642_v48 = vadd.f32 %v12623_v25, %v1507_v40  ;;  %10512 = vmatprep.subr.mxu0 %v12704_v6  ;;  %v3849_v1 = vmul.f32 %v15701_v52, %v15700_v34  ;;  %v15702_v40 = vld [vmem:[#allocation33_spill] sm:$0xff]  ;;  %v15703_v34 = vld [vmem:[#allocation35_spill] sm:$0xff] }
  0xe8   : > { %10568 = vmatprep.subr.mxu1 %v12709_v15  ;;  %v9974_v45 = vpop.f32.mrf.mxu0  ;;  %v10030_v37 = vpop.f32.mrf.mxu1  ;;  %10309 = vmatmul.mubr.msk.f32.gmra.mxu0 %vm1314_vm0, %v15698_v9  ;;  %v3881_v63 = vmul.f32 %v15701_v52, %v15702_v40 }
  0xe9   : > { %10365 = vmatmul.mubr.msk.f32.gmra.mxu1 %vm1314_vm0, %v15699_v22  ;;  %v12729_v38 = vadd.f32 %v1858_v49, %v1642_v48  ;;  %v1645_v21 = vadd.f32 %v9974_v45, %v12623_v25  ;;  %10311 = vmatprep.mubr.msk.f32.mxu0 %vm1314_vm0, %v3847_v58  ;;  %v15704_v48 = vld [vmem:[#allocation39_spill] sm:$0xff]  ;;  %v15705_v58 = vld [vmem:[#allocation42_spill] sm:$0xff]  ;;  %v15706_v49 = vld [vmem:[#allocation36_spill] sm:$0xff] }
  0xea   : > { %10367 = vmatprep.mubr.msk.f32.mxu1 %vm1314_vm0, %v3879_v53  ;;  %v1517_v28 = vpop.f32.mrf.mxu0  ;;  %v1868_v42 = vpop.f32.mrf.mxu1  ;;  %v3851_v53 = vmul.f32 %v15706_v49, %v15705_v58  ;;  %v15708_v58 = vld [vmem:[#allocation40_spill] sm:$0xff] }
  0xeb   : > { %v12736_v9 = vadd.f32 %v10030_v37, %v1645_v21  ;;  %v1644_v22 = vadd.f32 %v12623_v25, %v1517_v28  ;;  %v15707_v28 = vld [vmem:[#allocation43_spill] sm:$0xff] }
  0xec   : > { %v9977_v18 = vpop.f32.mrf.mxu0  ;;  %v10033_v14 = vpop.f32.mrf.mxu1  ;;  %10312 = vmatmul.mubr.msk.f32.gmra.mxu0 %vm1314_vm0, %v15703_v34  ;;  %v3883_v37 = vmul.f32 %v15706_v49, %v15707_v28 }
  0xed   : > { %10368 = vmatmul.mubr.msk.f32.gmra.mxu1 %vm1314_vm0, %v15704_v48  ;;  %v12745_v45 = vadd.f32 %v1868_v42, %v1644_v22  ;;  %v1647_v52 = vadd.f32 %v9977_v18, %v12623_v25  ;;  %10314 = vmatprep.mubr.msk.f32.mxu0 %vm1314_vm0, %v3849_v1  ;;  %v15709_v42 = vld [vmem:[#allocation44_spill] sm:$0xff]  ;;  %v15710_v18 = vld [vmem:[#allocation49_spill] sm:$0xff] }
  0xee   : > { %10370 = vmatprep.mubr.msk.f32.mxu1 %vm1314_vm0, %v3881_v63  ;;  %v1527_v21 = vpop.f32.mrf.mxu0  ;;  %v1878_v40 = vpop.f32.mrf.mxu1  ;;  %v15711_v22 = vld [vmem:[#allocation48_spill] sm:$0xff] }
  0xef   : > { %v12752_v34 = vadd.f32 %v10033_v14, %v1647_v52  ;;  %v1646_v48 = vadd.f32 %v12623_v25, %v1527_v21  ;;  %v3853_v1 = vmul.f32 %v15711_v22, %v15710_v18  ;;  %v15712_v14 = vld [vmem:[#allocation53_spill] sm:$0xff] }
  0xf0   : > { %v9980_v20 = vpop.f32.mrf.mxu0  ;;  %v10036_v54 = vpop.f32.mrf.mxu1  ;;  %10315 = vmatmul.mubr.msk.f32.gmra.mxu0 %vm1314_vm0, %v15708_v58  ;;  %v3885_v52 = vmul.f32 %v15711_v22, %v15712_v14  ;;  %v15713_v18 = vld [vmem:[#allocation45_spill] sm:$0xff] }
  0xf1   : > { %10371 = vmatmul.mubr.msk.f32.gmra.mxu1 %vm1314_vm0, %v15709_v42  ;;  %v12761_v63 = vadd.f32 %v1878_v40, %v1646_v48  ;;  %v1649_v49 = vadd.f32 %v9980_v20, %v12623_v25  ;;  %10317 = vmatprep.mubr.msk.f32.mxu0 %vm1314_vm0, %v3851_v53  ;;  %v15714_v40 = vld [vmem:[#allocation55_spill] sm:$0xff]  ;;  %v15715_v20 = vld [vmem:[#allocation57_spill] sm:$0xff]  ;;  %v15716_v48 = vld [vmem:[#allocation56_spill] sm:$0xff] }
  0xf2   : > { %10373 = vmatprep.mubr.msk.f32.mxu1 %vm1314_vm0, %v3883_v37  ;;  %v1537_v21 = vpop.f32.mrf.mxu0  ;;  %v1888_v28 = vpop.f32.mrf.mxu1  ;;  %v3855_v53 = vmul.f32 %v15716_v48, %v15715_v20  ;;  %v15718_v20 = vld [vmem:[#allocation60_spill] sm:$0xff] }
  0xf3   : > { %v12768_v58 = vadd.f32 %v10036_v54, %v1649_v49  ;;  %v1648_v42 = vadd.f32 %v12623_v25, %v1537_v21  ;;  %v15717_v54 = vld [vmem:[#allocation61_spill] sm:$0xff] }
  0xf4   : > { %v9983_v35 = vpop.f32.mrf.mxu0  ;;  %v10039_v50 = vpop.f32.mrf.mxu1  ;;  %10318 = vmatmul.mubr.msk.f32.gmra.mxu0 %vm1314_vm0, %v15713_v18  ;;  %v3887_v49 = vmul.f32 %v15716_v48, %v15717_v54 }
  0xf5   : > { %10374 = vmatmul.mubr.msk.f32.gmra.mxu1 %vm1314_vm0, %v15714_v40  ;;  %v12777_v37 = vadd.f32 %v1888_v28, %v1648_v42  ;;  %v1651_v22 = vadd.f32 %v9983_v35, %v12623_v25  ;;  %10320 = vmatprep.mubr.msk.f32.mxu0 %vm1314_vm0, %v3853_v1  ;;  %v15719_v28 = vld [vmem:[#allocation63_spill] sm:$0xff]  ;;  %v15720_v35 = vld [vmem:[#allocation65_spill] sm:$0xff]  ;;  %v15721_v42 = vld [vmem:[#allocation64_spill] sm:$0xff] }
  0xf6   : > { %10376 = vmatprep.mubr.msk.f32.mxu1 %vm1314_vm0, %v3885_v52  ;;  %v1547_v21 = vpop.f32.mrf.mxu0  ;;  %v1898_v14 = vpop.f32.mrf.mxu1  ;;  %v3857_v1 = vmul.f32 %v15721_v42, %v15720_v35  ;;  %v15723_v35 = vld [vmem:[#allocation72_spill] sm:$0xff] }
  0xf7   : > { %v12784_v18 = vadd.f32 %v10039_v50, %v1651_v22  ;;  %v1650_v40 = vadd.f32 %v12623_v25, %v1547_v21  ;;  %v15722_v50 = vld [vmem:[#allocation68_spill] sm:$0xff] }
  0xf8   : > { %v9986_v10 = vpop.f32.mrf.mxu0  ;;  %v10042_v16 = vpop.f32.mrf.mxu1  ;;  %10321 = vmatmul.mubr.msk.f32.gmra.mxu0 %vm1314_vm0, %v15718_v20  ;;  %v3889_v22 = vmul.f32 %v15721_v42, %v15722_v50 }
  0xf9   : > { %10377 = vmatmul.mubr.msk.f32.gmra.mxu1 %vm1314_vm0, %v15719_v28  ;;  %v12793_v52 = vadd.f32 %v1898_v14, %v1650_v40  ;;  %v1653_v48 = vadd.f32 %v9986_v10, %v12623_v25  ;;  %10323 = vmatprep.mubr.msk.f32.mxu0 %vm1314_vm0, %v3855_v53  ;;  %v15724_v14 = vld [vmem:[#allocation73_spill] sm:$0xff]  ;;  %v15725_v10 = vld [vmem:[#allocation75_spill] sm:$0xff] }
  0xfa   : > { %10379 = vmatprep.mubr.msk.f32.mxu1 %vm1314_vm0, %v3887_v49  ;;  %v1557_v21 = vpop.f32.mrf.mxu0  ;;  %v1908_v54 = vpop.f32.mrf.mxu1  ;;  %v15726_v40 = vld [vmem:[#allocation69_spill] sm:$0xff] }
  0xfb   : > { %v12800_v20 = vadd.f32 %v10042_v16, %v1653_v48  ;;  %v1652_v28 = vadd.f32 %v12623_v25, %v1557_v21  ;;  %v3859_v53 = vmul.f32 %v15726_v40, %v15725_v10  ;;  %v15727_v16 = vld [vmem:[#allocation76_spill] sm:$0xff] }
  0xfc   : > { %v9989_v19 = vpop.f32.mrf.mxu0  ;;  %v10045_v60 = vpop.f32.mrf.mxu1  ;;  %10324 = vmatmul.mubr.msk.f32.gmra.mxu0 %vm1314_vm0, %v15723_v35  ;;  %v3891_v48 = vmul.f32 %v15726_v40, %v15727_v16  ;;  %v15728_v10 = vld [vmem:[#allocation80_spill] sm:$0xff] }
  0xfd   : > { %10380 = vmatmul.mubr.msk.f32.gmra.mxu1 %vm1314_vm0, %v15724_v14  ;;  %v12809_v49 = vadd.f32 %v1908_v54, %v1652_v28  ;;  %v1655_v42 = vadd.f32 %v9989_v19, %v12623_v25  ;;  %10326 = vmatprep.mubr.msk.f32.mxu0 %vm1314_vm0, %v3857_v1  ;;  %v15729_v54 = vld [vmem:[#allocation81_spill] sm:$0xff]  ;;  %v15730_v19 = vld [vmem:[#allocation84_spill] sm:$0xff]  ;;  %v15731_v28 = vld [vmem:[#allocation82_spill] sm:$0xff] }
  0xfe   : > { %10382 = vmatprep.mubr.msk.f32.mxu1 %vm1314_vm0, %v3889_v22  ;;  %v1567_v21 = vpop.f32.mrf.mxu0  ;;  %v1918_v50 = vpop.f32.mrf.mxu1  ;;  %v3861_v1 = vmul.f32 %v15731_v28, %v15730_v19  ;;  %v15733_v19 = vld [vmem:[#allocation88_spill] sm:$0xff] }
  0xff   : > { %v12816_v35 = vadd.f32 %v10045_v60, %v1655_v42  ;;  %v1654_v14 = vadd.f32 %v12623_v25, %v1567_v21  ;;  %v15732_v60 = vld [vmem:[#allocation87_spill] sm:$0xff] }
 0x100   : > { %v9992_v17 = vpop.f32.mrf.mxu0  ;;  %v10048_v26 = vpop.f32.mrf.mxu1  ;;  %10327 = vmatmul.mubr.msk.f32.gmra.mxu0 %vm1314_vm0, %v15728_v10  ;;  %v3893_v42 = vmul.f32 %v15731_v28, %v15732_v60 }
 0x101   : > { %10383 = vmatmul.mubr.msk.f32.gmra.mxu1 %vm1314_vm0, %v15729_v54  ;;  %v12825_v22 = vadd.f32 %v1918_v50, %v1654_v14  ;;  %v1657_v40 = vadd.f32 %v9992_v17, %v12623_v25  ;;  %10329 = vmatprep.mubr.msk.f32.mxu0 %vm1314_vm0, %v3859_v53  ;;  %v15734_v50 = vld [vmem:[#allocation89_spill] sm:$0xff]  ;;  %v15735_v17 = vld [vmem:[#allocation92_spill] sm:$0xff]  ;;  %v15736_v14 = vld [vmem:[#allocation90_spill] sm:$0xff] }
 0x102   : > { %10385 = vmatprep.mubr.msk.f32.mxu1 %vm1314_vm0, %v3891_v48  ;;  %v1577_v21 = vpop.f32.mrf.mxu0  ;;  %v1928_v16 = vpop.f32.mrf.mxu1  ;;  %v3863_v53 = vmul.f32 %v15736_v14, %v15735_v17 }
 0x103   : > { %v12832_v10 = vadd.f32 %v10048_v26, %v1657_v40  ;;  %v1656_v54 = vadd.f32 %v12623_v25, %v1577_v21  ;;  %v15737_v26 = vld [vmem:[#allocation94_spill] sm:$0xff]  ;;  %v3824_v21 = vrot.slane %v12539_v0, 7 }
 0x104   : > { %v9995_v62 = vpop.f32.mrf.mxu0  ;;  %10330 = vmatmul.mubr.msk.f32.gmra.mxu0 %vm1314_vm0, %v15733_v19  ;;  %v3895_v40 = vmul.f32 %v15736_v14, %v15737_v26  ;;  %v15740_v14 = vld [vmem:[#allocation99_spill] sm:$0xff]  ;;  %v15741_v26 = vld [vmem:[#allocation93_spill] sm:$0xff] }
 0x105   : > { %v10051_v11 = vpop.f32.mrf.mxu1  ;;  %10386 = vmatmul.mubr.msk.f32.gmra.mxu1 %vm1314_vm0, %v15734_v50  ;;  %v12841_v48 = vadd.f32 %v1928_v16, %v1656_v54  ;;  %v1659_v28 = vadd.f32 %v9995_v62, %v12623_v25  ;;  %10332 = vmatprep.mubr.msk.f32.mxu0 %vm1314_vm0, %v3861_v1  ;;  %v3831_v50 = vrot.slane %v12542_v43, 7  ;;  %v15738_v1 = vld [vmem:[#allocation95_spill] sm:$0xff]  ;;  %v3865_v17 = vmul.f32 %v15741_v26, %v15740_v14 }
 0x106   : > { %10388 = vmatprep.mubr.msk.f32.mxu1 %vm1314_vm0, %v3893_v42  ;;  %v1587_v19 = vpop.f32.mrf.mxu0  ;;  %v15739_v42 = vld [vmem:[#allocation96_spill] sm:$0xff]  ;;  %v3897_v4 = vmul.f32 %v15741_v26, %v15742_v56  ;;  %v15747_v26 = vld [vmem:[#allocation102_spill] sm:$0xff] }
 0x107   : > { %v1938_v60 = vpop.f32.mrf.mxu1  ;;  %v12850_v13 = vadd.f32 %v10051_v11, %v1659_v28  ;;  %v1658_v16 = vadd.f32 %v12623_v25, %v1587_v19  ;;  %v15743_v19 = vrot.slane %v15660_v61, 7  ;;  %v15749_v56 = vld [vmem:[#allocation100_spill] sm:$0xff] }
 0x108   : > { %v9998_v62 = vpop.f32.mrf.mxu0  ;;  %10333 = vmatmul.mubr.msk.f32.gmra.mxu0 %vm1314_vm0, %v15738_v1 }
 0x109   : > { %v10054_v54 = vpop.f32.mrf.mxu1  ;;  %10389 = vmatmul.mubr.msk.f32.gmra.mxu1 %vm1314_vm0, %v15739_v42  ;;  %v12861_v46 = vadd.f32 %v1938_v60, %v1658_v16  ;;  %v1661_v11 = vadd.f32 %v9998_v62, %v12623_v25  ;;  %10335 = vmatprep.mubr.msk.f32.mxu0 %vm1314_vm0, %v3863_v53  ;;  %v12869_v28 = vsel %vm845_vm1, %v15743_v19, %v3824_v21  ;;  %v12872_v42 = vld [vmem:[%s11218_s9 + $0xf8] sm:$0xff]  ;;  %v15748_v19 = vld [vmem:[#allocation103_spill] sm:$0xff] }
 0x10a   : > { %10391 = vmatprep.mubr.msk.f32.mxu1 %vm1314_vm0, %v3895_v40  ;;  %15744 = vst [vmem:[#allocation4_spill] sm:$0xff] %v12869_v28  ;;  %v1597_v1 = vpop.f32.mrf.mxu0  ;;  %v12877_v60 = vsel %vm845_vm1, %v15745_v24, %v3831_v50  ;;  %v12880_v16 = vld [vmem:[%s11227_s12 + $0xf8] sm:$0xff]  ;;  %v3867_v30 = vmul.f32 %v15749_v56, %v12869_v28 }
 0x10b   : > { %v1948_v14 = vpop.f32.mrf.mxu1  ;;  %15746 = vst [vmem:[#allocation5_spill] sm:$0xff] %v12877_v60  ;;  %v12882_v62 = vadd.f32 %v10054_v54, %v1661_v11  ;;  %v1660_v53 = vadd.f32 %v12623_v25, %v1597_v1  ;;  %v3899_v1 = vmul.f32 %v15749_v56, %v12877_v60 }
 0x10c   : > { %v10001_v40 = vpop.f32.mrf.mxu0  ;;  %10336 = vmatmul.mubr.msk.f32.gmra.mxu0 %vm1314_vm0, %v15747_v26 }
 0x10d   : > { %v10057_v61 = vpop.f32.mrf.mxu1  ;;  %10392 = vmatmul.mubr.msk.f32.gmra.mxu1 %vm1314_vm0, %v15748_v19  ;;  %v12892_v47 = vadd.f32 %v1948_v14, %v1660_v53  ;;  %v1663_v54 = vadd.f32 %v10001_v40, %v12623_v25  ;;  %10338 = vmatprep.mubr.msk.f32.mxu0 %vm1314_vm0, %v3865_v17  ;;  %v15750_v53 = vld [vmem:[#allocation107_spill] sm:$0xff]  ;;  %v15751_v40 = vld [vmem:[#allocation108_spill] sm:$0xff] }
 0x10e   : > { %10394 = vmatprep.mubr.msk.f32.mxu1 %vm1314_vm0, %v3897_v4  ;;  %v1607_v26 = vpop.f32.mrf.mxu0  ;;  %v15752_v4 = vrot.slane %v12872_v42, 7 }
 0x10f   : > { %v1958_v19 = vpop.f32.mrf.mxu1  ;;  %v12900_v29 = vadd.f32 %v10057_v61, %v1663_v54  ;;  %v1662_v28 = vadd.f32 %v12623_v25, %v1607_v26  ;;  %v15754_v26 = vrot.slane %v12880_v16, 7 }
 0x110   : > { %v10004_v24 = vpop.f32.mrf.mxu0  ;;  %10339 = vmatmul.mubr.msk.f32.gmra.mxu0 %vm1314_vm0, %v15750_v53  ;;  %v12910_v17 = vsel %vm845_vm1, %v3824_v21, %v15752_v4 }
 0x111   : > { %v10060_v14 = vpop.f32.mrf.mxu1  ;;  %10395 = vmatmul.mubr.msk.f32.gmra.mxu1 %vm1314_vm0, %v15751_v40  ;;  %15753 = vst [vmem:[#allocation9_spill] sm:$0xff] %v12910_v17  ;;  %v12912_v11 = vadd.f32 %v1958_v19, %v1662_v28  ;;  %v1665_v61 = vadd.f32 %v10004_v24, %v12623_v25  ;;  %10341 = vmatprep.mubr.msk.f32.mxu0 %vm1314_vm0, %v3867_v30  ;;  %v10994_v24 = vld [vmem:[%s11218_s9] sm:$0xff] }
 0x112   : > { %10397 = vmatprep.mubr.msk.f32.mxu1 %vm1314_vm0, %v3899_v1  ;;  %v12920_v54 = vsel %vm845_vm1, %v3831_v50, %v15754_v26  ;;  %v1617_v56 = vpop.f32.mrf.mxu0  ;;  %v10995_v1 = vld [vmem:[%s11227_s12] sm:$0xff] }
 0x113   : > { %15755 = vst [vmem:[#allocation10_spill] sm:$0xff] %v12920_v54  ;;  %v1968_v40 = vpop.f32.mrf.mxu1  ;;  %v12922_v53 = vadd.f32 %v10060_v14, %v1665_v61  ;;  %v1664_v21 = vadd.f32 %v12623_v25, %v1617_v56 }
 0x114   : > { %v10007_v28 = vpop.f32.mrf.mxu0  ;;  %10342 = vmatmul.mubr.msk.f32.gmra.mxu0 %vm1314_vm0, %v12910_v17 }
 0x115   : > { %v10063_v19 = vpop.f32.mrf.mxu1  ;;  %10398 = vmatmul.mubr.msk.f32.gmra.mxu1 %vm1314_vm0, %v12920_v54  ;;  %v12929_v30 = vadd.f32 %v1968_v40, %v1664_v21  ;;  %v1667_v50 = vadd.f32 %v10007_v28, %v12623_v25  ;;  %10408 = vmatprep.mubr.msk.f32.mxu0 %vm1314_vm0, %v10994_v24  ;;  %v10996_v40 = vld [vmem:[%s11218_s9 + $0x8] sm:$0xff]  ;;  %v9007_v28 = vld [vmem:[%s15075_s2 + $0xb0] sm:$0xff] }
 0x116   : > { %10464 = vmatprep.mubr.msk.f32.mxu1 %vm1314_vm0, %v10995_v1  ;;  %v1627_v56 = vpop.f32.mrf.mxu0  ;;  %v10997_v21 = vld [vmem:[%s11227_s12 + $0x8] sm:$0xff] }
 0x117   : > { %v1978_v14 = vpop.f32.mrf.mxu1  ;;  %v12936_v4 = vadd.f32 %v10063_v19, %v1667_v50  ;;  %v1666_v61 = vadd.f32 %v12623_v25, %v1627_v56  ;;  %v9043_v19 = vld [vmem:[%s15076_s3 + $0xb0] sm:$0xff] }
 0x118   : > { %v10074_v26 = vpop.f32.mrf.mxu0  ;;  %10409 = vmatmul.mubr.msk.f32.vlgmr.msra.gmra.mxu0 %vm1314_vm0, %v10996_v40  ;;  %v10998_v56 = vld [vmem:[%s11218_s9 + $0x10] sm:$0xff] }
 0x119   : > { %v10130_v54 = vpop.f32.mrf.mxu1  ;;  %10465 = vmatmul.mubr.msk.f32.vlgmr.msra.gmra.mxu1 %vm1314_vm0, %v10997_v21  ;;  %v12949_v50 = vadd.f32 %v1978_v14, %v1666_v61  ;;  %v2313_v25 = vadd.f32 %v10074_v26, %v12648_v7  ;;  %10513 = vmatpush3.msra.mxu0 %v12704_v6  ;;  %v10999_v40 = vld [vmem:[%s11227_s12 + $0x10] sm:$0xff]  ;;  %v11000_v61 = vld [vmem:[%s11218_s9 + $0x18] sm:$0xff]  ;;  %v9006_v26 = vld [vmem:[%s15075_s2 + $0xa8] sm:$0xff] }
 0x11a   : > { %10569 = vmatpush3.msra.mxu1 %v12709_v15  ;;  %v2153_v24 = vpop.f32.mrf.mxu0  ;;  %10411 = vmatprep.mubr.msk.f32.mxu0 %vm1314_vm0, %v10998_v56  ;;  %v11001_v15 = vld [vmem:[%s11227_s12 + $0x18] sm:$0xff]  ;;  %v11003_v56 = vld [vmem:[%s11227_s12 + $0x20] sm:$0xff] }
 0x11b   : > { %v2475_v1 = vpop.f32.mrf.mxu1  ;;  %10467 = vmatprep.mubr.msk.f32.mxu1 %vm1314_vm0, %v10999_v40  ;;  %v12958_v21 = vadd.f32 %v10130_v54, %v2313_v25  ;;  %v2312_v14 = vadd.f32 %v2153_v24, %v12663_v39  ;;  %10514 = vmatprep.subr.mxu0 %v9007_v28  ;;  %v9042_v54 = vld [vmem:[%s15076_s3 + $0xa8] sm:$0xff]  ;;  %v11002_v24 = vld [vmem:[%s11218_s9 + $0x20] sm:$0xff] }
 0x11c   : > { %10570 = vmatprep.subr.mxu1 %v9043_v19  ;;  %v10077_v7 = vpop.f32.mrf.mxu0  ;;  %10412 = vmatmul.mubr.msk.f32.gmra.mxu0 %vm1314_vm0, %v11000_v61 }
 0x11d   : > { %v10133_v6 = vpop.f32.mrf.mxu1  ;;  %10468 = vmatmul.mubr.msk.f32.gmra.mxu1 %vm1314_vm0, %v11001_v15  ;;  %v12971_v25 = vadd.f32 %v2475_v1, %v2312_v14  ;;  %v2315_v39 = vadd.f32 %v10077_v7, %v12670_v55  ;;  %10414 = vmatprep.mubr.msk.f32.mxu0 %vm1314_vm0, %v11002_v24  ;;  %v11004_v7 = vld [vmem:[%s11218_s9 + $0x28] sm:$0xff] }
 0x11e   : > { %10470 = vmatprep.mubr.msk.f32.mxu1 %vm1314_vm0, %v11003_v56  ;;  %v2163_v40 = vpop.f32.mrf.mxu0  ;;  %10515 = vmatpush3.msra.mxu0 %v9007_v28  ;;  %v11005_v24 = vld [vmem:[%s11227_s12 + $0x28] sm:$0xff]  ;;  %v9005_v28 = vld [vmem:[%s15075_s2 + $0xa0] sm:$0xff]  ;;  %v11007_v56 = vld [vmem:[%s11227_s12 + $0x30] sm:$0xff] }
 0x11f   : > { %v2485_v61 = vpop.f32.mrf.mxu1  ;;  %10571 = vmatpush3.msra.mxu1 %v9043_v19  ;;  %v12978_v15 = vadd.f32 %v10133_v6, %v2315_v39  ;;  %v2314_v1 = vadd.f32 %v2163_v40, %v12685_v41  ;;  %10516 = vmatprep.subr.mxu0 %v9006_v26  ;;  %v9041_v19 = vld [vmem:[%s15076_s3 + $0xa0] sm:$0xff]  ;;  %v11006_v39 = vld [vmem:[%s11218_s9 + $0x30] sm:$0xff] }
 0x120   : > { %10572 = vmatprep.subr.mxu1 %v9042_v54  ;;  %v10080_v55 = vpop.f32.mrf.mxu0  ;;  %10415 = vmatmul.mubr.msk.f32.gmra.mxu0 %vm1314_vm0, %v11004_v7 }
 0x121   : > { %v10136_v14 = vpop.f32.mrf.mxu1  ;;  %10471 = vmatmul.mubr.msk.f32.gmra.mxu1 %vm1314_vm0, %v11005_v24  ;;  %v12991_v6 = vadd.f32 %v2485_v61, %v2314_v1  ;;  %v2317_v41 = vadd.f32 %v10080_v55, %v12692_v57  ;;  %10417 = vmatprep.mubr.msk.f32.mxu0 %vm1314_vm0, %v11006_v39  ;;  %v11008_v55 = vld [vmem:[%s11218_s9 + $0x38] sm:$0xff] }
 0x122   : > { %10473 = vmatprep.mubr.msk.f32.mxu1 %vm1314_vm0, %v11007_v56  ;;  %v2173_v40 = vpop.f32.mrf.mxu0  ;;  %10517 = vmatpush3.msra.mxu0 %v9006_v26  ;;  %v11009_v39 = vld [vmem:[%s11227_s12 + $0x38] sm:$0xff]  ;;  %v11011_v56 = vld [vmem:[%s11227_s12 + $0x40] sm:$0xff] }
 0x123   : > { %v2495_v7 = vpop.f32.mrf.mxu1  ;;  %10573 = vmatpush3.msra.mxu1 %v9042_v54  ;;  %v12998_v24 = vadd.f32 %v10136_v14, %v2317_v41  ;;  %v2316_v61 = vadd.f32 %v2173_v40, %v12711_v23  ;;  %10518 = vmatprep.subr.mxu0 %v9005_v28  ;;  %v13008_v26 = vld [vmem:[%s15075_s2 + $0xd8] sm:$0xff]  ;;  %v11010_v41 = vld [vmem:[%s11218_s9 + $0x40] sm:$0xff] }
 0x124   : > { %10574 = vmatprep.subr.mxu1 %v9041_v19  ;;  %v10083_v57 = vpop.f32.mrf.mxu0  ;;  %10418 = vmatmul.mubr.msk.f32.gmra.mxu0 %vm1314_vm0, %v11008_v55  ;;  %v13013_v54 = vld [vmem:[%s15076_s3 + $0xd8] sm:$0xff] }
 0x125   : > { %v10139_v1 = vpop.f32.mrf.mxu1  ;;  %10474 = vmatmul.mubr.msk.f32.gmra.mxu1 %vm1314_vm0, %v11009_v39  ;;  %v13015_v23 = vadd.f32 %v2495_v7, %v2316_v61  ;;  %v2319_v14 = vadd.f32 %v10083_v57, %v12718_v8  ;;  %10420 = vmatprep.mubr.msk.f32.mxu0 %vm1314_vm0, %v11010_v41  ;;  %v11012_v57 = vld [vmem:[%s11218_s9 + $0x48] sm:$0xff] }
 0x126   : > { %10476 = vmatprep.mubr.msk.f32.mxu1 %vm1314_vm0, %v11011_v56  ;;  %v2183_v40 = vpop.f32.mrf.mxu0  ;;  %10519 = vmatpush3.msra.mxu0 %v9005_v28  ;;  %v11013_v41 = vld [vmem:[%s11227_s12 + $0x48] sm:$0xff] }
 0x127   : > { %v2505_v55 = vpop.f32.mrf.mxu1  ;;  %10575 = vmatpush3.msra.mxu1 %v9041_v19  ;;  %v13022_v39 = vadd.f32 %v10139_v1, %v2319_v14  ;;  %v2318_v7 = vadd.f32 %v2183_v40, %v12729_v38  ;;  %10624 = vmatprep.subr.mxu0 %v13008_v26  ;;  %v11014_v1 = vld [vmem:[%s11218_s9 + $0x50] sm:$0xff] }
 0x128   : > { %10680 = vmatprep.subr.mxu1 %v13013_v54  ;;  %v10086_v8 = vpop.f32.mrf.mxu0  ;;  %10421 = vmatmul.mubr.msk.f32.gmra.mxu0 %vm1314_vm0, %v11012_v57  ;;  %v11015_v38 = vld [vmem:[%s11227_s12 + $0x50] sm:$0xff] }
 0x129   : > { %v10142_v61 = vpop.f32.mrf.mxu1  ;;  %10477 = vmatmul.mubr.msk.f32.gmra.mxu1 %vm1314_vm0, %v11013_v41  ;;  %v13031_v28 = vadd.f32 %v2505_v55, %v2318_v7  ;;  %v2321_v19 = vadd.f32 %v10086_v8, %v12736_v9  ;;  %10423 = vmatprep.mubr.msk.f32.mxu0 %vm1314_vm0, %v11014_v1  ;;  %v11016_v55 = vld [vmem:[%s11218_s9 + $0x58] sm:$0xff]  ;;  %v11018_v1 = vld [vmem:[%s11218_s9 + $0x60] sm:$0xff] }
 0x12a   : > { %10479 = vmatprep.mubr.msk.f32.mxu1 %vm1314_vm0, %v11015_v38  ;;  %v2193_v14 = vpop.f32.mrf.mxu0  ;;  %v11017_v9 = vld [vmem:[%s11227_s12 + $0x58] sm:$0xff] }
 0x12b   : > { %v2515_v56 = vpop.f32.mrf.mxu1  ;;  %v13038_v40 = vadd.f32 %v10142_v61, %v2321_v19  ;;  %v2320_v57 = vadd.f32 %v2193_v14, %v12745_v45  ;;  %v11019_v61 = vld [vmem:[%s11227_s12 + $0x60] sm:$0xff] }
 0x12c   : > { %v10089_v17 = vpop.f32.mrf.mxu0  ;;  %10424 = vmatmul.mubr.msk.f32.gmra.mxu0 %vm1314_vm0, %v11016_v55 }
 0x12d   : > { %v10145_v41 = vpop.f32.mrf.mxu1  ;;  %10480 = vmatmul.mubr.msk.f32.gmra.mxu1 %vm1314_vm0, %v11017_v9  ;;  %v13045_v7 = vadd.f32 %v2515_v56, %v2320_v57  ;;  %v2323_v8 = vadd.f32 %v10089_v17, %v12752_v34  ;;  %10426 = vmatprep.mubr.msk.f32.mxu0 %vm1314_vm0, %v11018_v1  ;;  %v11020_v56 = vld [vmem:[%s11218_s9 + $0x68] sm:$0xff]  ;;  %v11022_v1 = vld [vmem:[%s11218_s9 + $0x70] sm:$0xff] }
 0x12e   : > { %10482 = vmatprep.mubr.msk.f32.mxu1 %vm1314_vm0, %v11019_v61  ;;  %v2203_v45 = vpop.f32.mrf.mxu0  ;;  %v11021_v34 = vld [vmem:[%s11227_s12 + $0x68] sm:$0xff] }
 0x12f   : > { %v2525_v19 = vpop.f32.mrf.mxu1  ;;  %v13052_v38 = vadd.f32 %v10145_v41, %v2323_v8  ;;  %v2322_v14 = vadd.f32 %v2203_v45, %v12761_v63  ;;  %v11023_v41 = vld [vmem:[%s11227_s12 + $0x70] sm:$0xff] }
 0x130   : > { %v10092_v55 = vpop.f32.mrf.mxu0  ;;  %10427 = vmatmul.mubr.msk.f32.gmra.mxu0 %vm1314_vm0, %v11020_v56 }
 0x131   : > { %v10148_v9 = vpop.f32.mrf.mxu1  ;;  %10483 = vmatmul.mubr.msk.f32.gmra.mxu1 %vm1314_vm0, %v11021_v34  ;;  %v13059_v17 = vadd.f32 %v2525_v19, %v2322_v14  ;;  %v2325_v57 = vadd.f32 %v10092_v55, %v12768_v58  ;;  %10429 = vmatprep.mubr.msk.f32.mxu0 %vm1314_vm0, %v11022_v1  ;;  %v11024_v19 = vld [vmem:[%s11218_s9 + $0x78] sm:$0xff]  ;;  %v11026_v1 = vld [vmem:[%s11218_s9 + $0x80] sm:$0xff] }
 0x132   : > { %10485 = vmatprep.mubr.msk.f32.mxu1 %vm1314_vm0, %v11023_v41  ;;  %v2213_v63 = vpop.f32.mrf.mxu0  ;;  %v11025_v58 = vld [vmem:[%s11227_s12 + $0x78] sm:$0xff] }
 0x133   : > { %v2535_v8 = vpop.f32.mrf.mxu1  ;;  %v13066_v61 = vadd.f32 %v10148_v9, %v2325_v57  ;;  %v2324_v45 = vadd.f32 %v2213_v63, %v12777_v37  ;;  %v11027_v9 = vld [vmem:[%s11227_s12 + $0x80] sm:$0xff] }
 0x134   : > { %v10095_v56 = vpop.f32.mrf.mxu0  ;;  %10430 = vmatmul.mubr.msk.f32.gmra.mxu0 %vm1314_vm0, %v11024_v19 }
 0x135   : > { %v10151_v34 = vpop.f32.mrf.mxu1  ;;  %10486 = vmatmul.mubr.msk.f32.gmra.mxu1 %vm1314_vm0, %v11025_v58  ;;  %v13073_v14 = vadd.f32 %v2535_v8, %v2324_v45  ;;  %v2327_v55 = vadd.f32 %v10095_v56, %v12784_v18  ;;  %10432 = vmatprep.mubr.msk.f32.mxu0 %vm1314_vm0, %v11026_v1  ;;  %v11028_v8 = vld [vmem:[%s11218_s9 + $0x88] sm:$0xff]  ;;  %v11030_v1 = vld [vmem:[%s11218_s9 + $0x90] sm:$0xff] }
 0x136   : > { %10488 = vmatprep.mubr.msk.f32.mxu1 %vm1314_vm0, %v11027_v9  ;;  %v2223_v37 = vpop.f32.mrf.mxu0  ;;  %v11029_v18 = vld [vmem:[%s11227_s12 + $0x88] sm:$0xff] }
 0x137   : > { %v2545_v57 = vpop.f32.mrf.mxu1  ;;  %v13080_v41 = vadd.f32 %v10151_v34, %v2327_v55  ;;  %v2326_v63 = vadd.f32 %v2223_v37, %v12793_v52  ;;  %v11031_v34 = vld [vmem:[%s11227_s12 + $0x90] sm:$0xff] }
 0x138   : > { %v10098_v19 = vpop.f32.mrf.mxu0  ;;  %10433 = vmatmul.mubr.msk.f32.gmra.mxu0 %vm1314_vm0, %v11028_v8 }
 0x139   : > { %v10154_v58 = vpop.f32.mrf.mxu1  ;;  %10489 = vmatmul.mubr.msk.f32.gmra.mxu1 %vm1314_vm0, %v11029_v18  ;;  %v13087_v45 = vadd.f32 %v2545_v57, %v2326_v63  ;;  %v2329_v56 = vadd.f32 %v10098_v19, %v12800_v20  ;;  %10435 = vmatprep.mubr.msk.f32.mxu0 %vm1314_vm0, %v11030_v1  ;;  %v11032_v57 = vld [vmem:[%s11218_s9 + $0x98] sm:$0xff]  ;;  %v11034_v1 = vld [vmem:[%s11218_s9 + $0xa0] sm:$0xff] }
 0x13a   : > { %10491 = vmatprep.mubr.msk.f32.mxu1 %vm1314_vm0, %v11031_v34  ;;  %v2233_v52 = vpop.f32.mrf.mxu0  ;;  %v11033_v20 = vld [vmem:[%s11227_s12 + $0x98] sm:$0xff] }
 0x13b   : > { %v2555_v55 = vpop.f32.mrf.mxu1  ;;  %v13094_v9 = vadd.f32 %v10154_v58, %v2329_v56  ;;  %v2328_v37 = vadd.f32 %v2233_v52, %v12809_v49  ;;  %v11035_v58 = vld [vmem:[%s11227_s12 + $0xa0] sm:$0xff] }
 0x13c   : > { %v10101_v8 = vpop.f32.mrf.mxu0  ;;  %10436 = vmatmul.mubr.msk.f32.gmra.mxu0 %vm1314_vm0, %v11032_v57 }
 0x13d   : > { %v10157_v18 = vpop.f32.mrf.mxu1  ;;  %10492 = vmatmul.mubr.msk.f32.gmra.mxu1 %vm1314_vm0, %v11033_v20  ;;  %v13101_v63 = vadd.f32 %v2555_v55, %v2328_v37  ;;  %v2331_v19 = vadd.f32 %v10101_v8, %v12816_v35  ;;  %10438 = vmatprep.mubr.msk.f32.mxu0 %vm1314_vm0, %v11034_v1  ;;  %v11036_v55 = vld [vmem:[%s11218_s9 + $0xa8] sm:$0xff]  ;;  %v11038_v1 = vld [vmem:[%s11218_s9 + $0xb0] sm:$0xff] }
 0x13e   : > { %10494 = vmatprep.mubr.msk.f32.mxu1 %vm1314_vm0, %v11035_v58  ;;  %v2243_v49 = vpop.f32.mrf.mxu0  ;;  %v11037_v35 = vld [vmem:[%s11227_s12 + $0xa8] sm:$0xff] }
 0x13f   : > { %v2565_v56 = vpop.f32.mrf.mxu1  ;;  %v13108_v34 = vadd.f32 %v10157_v18, %v2331_v19  ;;  %v2330_v52 = vadd.f32 %v2243_v49, %v12825_v22  ;;  %v11039_v18 = vld [vmem:[%s11227_s12 + $0xb0] sm:$0xff] }
 0x140   : > { %v10104_v57 = vpop.f32.mrf.mxu0  ;;  %10439 = vmatmul.mubr.msk.f32.gmra.mxu0 %vm1314_vm0, %v11036_v55 }
 0x141   : > { %v10160_v20 = vpop.f32.mrf.mxu1  ;;  %10495 = vmatmul.mubr.msk.f32.gmra.mxu1 %vm1314_vm0, %v11037_v35  ;;  %v13115_v37 = vadd.f32 %v2565_v56, %v2330_v52  ;;  %v2333_v8 = vadd.f32 %v10104_v57, %v12832_v10  ;;  %10441 = vmatprep.mubr.msk.f32.mxu0 %vm1314_vm0, %v11038_v1  ;;  %v11040_v56 = vld [vmem:[%s11218_s9 + $0xb8] sm:$0xff]  ;;  %v11042_v1 = vld [vmem:[%s11218_s9 + $0xc0] sm:$0xff] }
 0x142   : > { %10497 = vmatprep.mubr.msk.f32.mxu1 %vm1314_vm0, %v11039_v18  ;;  %v2253_v22 = vpop.f32.mrf.mxu0  ;;  %v11041_v10 = vld [vmem:[%s11227_s12 + $0xb8] sm:$0xff] }
 0x143   : > { %v2575_v19 = vpop.f32.mrf.mxu1  ;;  %v13122_v58 = vadd.f32 %v10160_v20, %v2333_v8  ;;  %v2332_v49 = vadd.f32 %v2253_v22, %v12841_v48  ;;  %v11043_v20 = vld [vmem:[%s11227_s12 + $0xc0] sm:$0xff] }
 0x144   : > { %v10107_v55 = vpop.f32.mrf.mxu0  ;;  %10442 = vmatmul.mubr.msk.f32.gmra.mxu0 %vm1314_vm0, %v11040_v56 }
 0x145   : > { %v10163_v35 = vpop.f32.mrf.mxu1  ;;  %10498 = vmatmul.mubr.msk.f32.gmra.mxu1 %vm1314_vm0, %v11041_v10  ;;  %v13129_v52 = vadd.f32 %v2575_v19, %v2332_v49  ;;  %v2335_v57 = vadd.f32 %v10107_v55, %v12850_v13  ;;  %10444 = vmatprep.mubr.msk.f32.mxu0 %vm1314_vm0, %v11042_v1  ;;  %v11044_v19 = vld [vmem:[%s11218_s9 + $0xc8] sm:$0xff]  ;;  %v11046_v1 = vld [vmem:[%s11218_s9 + $0xd0] sm:$0xff] }
 0x146   : > { %10500 = vmatprep.mubr.msk.f32.mxu1 %vm1314_vm0, %v11043_v20  ;;  %v2263_v48 = vpop.f32.mrf.mxu0  ;;  %v11045_v13 = vld [vmem:[%s11227_s12 + $0xc8] sm:$0xff] }
 0x147   : > { %v2585_v8 = vpop.f32.mrf.mxu1  ;;  %v13136_v18 = vadd.f32 %v10163_v35, %v2335_v57  ;;  %v2334_v22 = vadd.f32 %v2263_v48, %v12861_v46  ;;  %v11047_v35 = vld [vmem:[%s11227_s12 + $0xd0] sm:$0xff] }
 0x148   : > { %v10110_v56 = vpop.f32.mrf.mxu0  ;;  %10445 = vmatmul.mubr.msk.f32.gmra.mxu0 %vm1314_vm0, %v11044_v19 }
 0x149   : > { %v10166_v10 = vpop.f32.mrf.mxu1  ;;  %10501 = vmatmul.mubr.msk.f32.gmra.mxu1 %vm1314_vm0, %v11045_v13  ;;  %v13143_v49 = vadd.f32 %v2585_v8, %v2334_v22  ;;  %v2337_v55 = vadd.f32 %v10110_v56, %v12882_v62  ;;  %10447 = vmatprep.mubr.msk.f32.mxu0 %vm1314_vm0, %v11046_v1  ;;  %v11048_v8 = vld [vmem:[%s11218_s9 + $0xd8] sm:$0xff]  ;;  %v11050_v1 = vld [vmem:[%s11218_s9 + $0xe0] sm:$0xff] }
 0x14a   : > { %10503 = vmatprep.mubr.msk.f32.mxu1 %vm1314_vm0, %v11047_v35  ;;  %v2273_v46 = vpop.f32.mrf.mxu0  ;;  %v11049_v62 = vld [vmem:[%s11227_s12 + $0xd8] sm:$0xff] }
 0x14b   : > { %v2595_v57 = vpop.f32.mrf.mxu1  ;;  %v13150_v20 = vadd.f32 %v10166_v10, %v2337_v55  ;;  %v2336_v48 = vadd.f32 %v2273_v46, %v12892_v47  ;;  %v11051_v10 = vld [vmem:[%s11227_s12 + $0xe0] sm:$0xff] }
 0x14c   : > { %v10113_v19 = vpop.f32.mrf.mxu0  ;;  %10448 = vmatmul.mubr.msk.f32.gmra.mxu0 %vm1314_vm0, %v11048_v8 }
 0x14d   : > { %15756 = vst [vmem:[#allocation145_spill] sm:$0xff] %v13150_v20  ;;  %v10169_v13 = vpop.f32.mrf.mxu1  ;;  %10504 = vmatmul.mubr.msk.f32.gmra.mxu1 %vm1314_vm0, %v11049_v62  ;;  %v13157_v22 = vadd.f32 %v2595_v57, %v2336_v48  ;;  %v2339_v56 = vadd.f32 %v10113_v19, %v12900_v29  ;;  %10450 = vmatprep.mubr.msk.f32.mxu0 %vm1314_vm0, %v11050_v1  ;;  %v11052_v20 = vld [vmem:[%s11218_s9 + $0xe8] sm:$0xff] }
 0x14e   : > { %10506 = vmatprep.mubr.msk.f32.mxu1 %vm1314_vm0, %v11051_v10  ;;  %v2283_v47 = vpop.f32.mrf.mxu0  ;;  %v11053_v57 = vld [vmem:[%s11227_s12 + $0xe8] sm:$0xff] }
 0x14f   : > { %v2605_v55 = vpop.f32.mrf.mxu1  ;;  %v13164_v35 = vadd.f32 %v10169_v13, %v2339_v56  ;;  %v2338_v46 = vadd.f32 %v2283_v47, %v12912_v11 }
 0x150   : > { %v10116_v8 = vpop.f32.mrf.mxu0  ;;  %10451 = vmatmul.mubr.msk.f32.gmra.mxu0 %vm1314_vm0, %v11052_v20 }
 0x151   : > { %v10172_v60 = vpop.f32.mrf.mxu1  ;;  %10507 = vmatmul.mubr.msk.f32.gmra.mxu1 %vm1314_vm0, %v11053_v57  ;;  %v13171_v29 = vadd.f32 %v2605_v55, %v2338_v46  ;;  %v2341_v48 = vadd.f32 %v10116_v8, %v12922_v53  ;;  %10453 = vmatprep.mubr.msk.f32.mxu0 %vm1314_vm0, %v12539_v0  ;;  %v15757_v8 = vld [vmem:[#allocation105_spill] sm:$0xff]  ;;  %v15758_v57 = vld [vmem:[#allocation106_spill] sm:$0xff] }
 0x152   : > { %10509 = vmatprep.mubr.msk.f32.mxu1 %vm1314_vm0, %v12542_v43  ;;  %v2293_v19 = vpop.f32.mrf.mxu0 }
 0x153   : > { %v2615_v11 = vpop.f32.mrf.mxu1  ;;  %v13178_v13 = vadd.f32 %v10172_v60, %v2341_v48  ;;  %v2340_v62 = vadd.f32 %v2293_v19, %v12929_v30 }
 0x154   : > { %v10119_v20 = vpop.f32.mrf.mxu0  ;;  %10454 = vmatmul.mubr.msk.f32.gmra.mxu0 %vm1314_vm0, %v12872_v42 }
 0x155   : > { %v10175_v56 = vpop.f32.mrf.mxu1  ;;  %10510 = vmatmul.mubr.msk.f32.gmra.mxu1 %vm1314_vm0, %v12880_v16  ;;  %v13185_v53 = vadd.f32 %v2615_v11, %v2340_v62  ;;  %v2343_v1 = vadd.f32 %v10119_v20, %v12936_v4  ;;  %10520 = vmatprep.mubr.msk.f32.mxu0 %vm1314_vm0, %v12124_v36  ;;  %v5162_v36 = vmul.f32 %v12127_v51, %v12154_v12  ;;  %v9079_v4 = vld [vmem:[%s15075_s2 + $0xd0] sm:$0xff] }
 0x156   : > { %10576 = vmatprep.mubr.msk.f32.mxu1 %vm1314_vm0, %v12134_v44  ;;  %v2303_v60 = vpop.f32.mrf.mxu0  ;;  %v5194_v44 = vmul.f32 %v12127_v51, %v12170_v3 }
 0x157   : > { %v2625_v30 = vpop.f32.mrf.mxu1  ;;  %v13192_v10 = vadd.f32 %v10175_v56, %v2343_v1  ;;  %v2342_v47 = vadd.f32 %v2303_v60, %v12949_v50  ;;  %v9114_v50 = vld [vmem:[%s15076_s3 + $0xd0] sm:$0xff]  ;;  %v9078_v60 = vld [vmem:[%s15075_s2 + $0xc8] sm:$0xff] }
 0x158   : > { %v10186_v55 = vpop.f32.mrf.mxu0  ;;  %10521 = vmatmul.mubr.msk.f32.vlgmr.msra.gmra.mxu0 %vm1314_vm0, %v15757_v8 }
 0x159   : > { %v10242_v46 = vpop.f32.mrf.mxu1  ;;  %10577 = vmatmul.mubr.msk.f32.vlgmr.msra.gmra.mxu1 %vm1314_vm0, %v15758_v57  ;;  %v13209_v48 = vadd.f32 %v2625_v30, %v2342_v47  ;;  %v3437_v19 = vadd.f32 %v10186_v55, %v12958_v21  ;;  %10625 = vmatpush3.msra.mxu0 %v13008_v26  ;;  %v5164_v26 = vmul.f32 %v12167_v5, %v12205_v59 }
 0x15a   : > { %10681 = vmatpush3.msra.mxu1 %v13013_v54  ;;  %v3277_v11 = vpop.f32.mrf.mxu0  ;;  %10523 = vmatprep.mubr.msk.f32.mxu0 %vm1314_vm0, %v12139_v32  ;;  %v5196_v54 = vmul.f32 %v12167_v5, %v12212_v33 }
 0x15b   : > { %v3632_v62 = vpop.f32.mrf.mxu1  ;;  %10579 = vmatprep.mubr.msk.f32.mxu1 %vm1314_vm0, %v12144_v2  ;;  %v13218_v20 = vadd.f32 %v10242_v46, %v3437_v19  ;;  %v3436_v56 = vadd.f32 %v3277_v11, %v12971_v25  ;;  %10626 = vmatprep.subr.mxu0 %v9079_v4  ;;  %v9113_v25 = vld [vmem:[%s15076_s3 + $0xc8] sm:$0xff]  ;;  %v15760_v19 = vld [vmem:[#allocation38_spill] sm:$0xff] }
 0x15c   : > { %10682 = vmatprep.subr.mxu1 %v9114_v50  ;;  %v10189_v1 = vpop.f32.mrf.mxu0  ;;  %10524 = vmatmul.mubr.msk.f32.gmra.mxu0 %vm1314_vm0, %v5162_v36 }
 0x15d   : > { %v10245_v21 = vpop.f32.mrf.mxu1  ;;  %10580 = vmatmul.mubr.msk.f32.gmra.mxu1 %vm1314_vm0, %v5194_v44  ;;  %v13233_v30 = vadd.f32 %v3632_v62, %v3436_v56  ;;  %v3439_v47 = vadd.f32 %v10189_v1, %v12978_v15  ;;  %10526 = vmatprep.mubr.msk.f32.mxu0 %vm1314_vm0, %v12180_v27  ;;  %v15759_v15 = vld [vmem:[#allocation47_spill] sm:$0xff]  ;;  %v15761_v62 = vld [vmem:[#allocation52_spill] sm:$0xff] }
 0x15e   : > { %10582 = vmatprep.mubr.msk.f32.mxu1 %vm1314_vm0, %v12191_v31  ;;  %v3287_v55 = vpop.f32.mrf.mxu0  ;;  %10627 = vmatpush3.msra.mxu0 %v9079_v4  ;;  %v5166_v11 = vmul.f32 %v15760_v19, %v15759_v15  ;;  %v5198_v56 = vmul.f32 %v15760_v19, %v15761_v62  ;;  %v9077_v4 = vld [vmem:[%s15075_s2 + $0xc0] sm:$0xff] }
 0x15f   : > { %v3642_v46 = vpop.f32.mrf.mxu1  ;;  %10683 = vmatpush3.msra.mxu1 %v9114_v50  ;;  %v13240_v8 = vadd.f32 %v10245_v21, %v3439_v47  ;;  %v3438_v57 = vadd.f32 %v3287_v55, %v12991_v6  ;;  %10628 = vmatprep.subr.mxu0 %v9078_v60  ;;  %v9112_v6 = vld [vmem:[%s15076_s3 + $0xc0] sm:$0xff]  ;;  %v15762_v21 = vld [vmem:[#allocation41_spill] sm:$0xff] }
 0x160   : > { %10684 = vmatprep.subr.mxu1 %v9113_v25  ;;  %v10192_v36 = vpop.f32.mrf.mxu0  ;;  %10527 = vmatmul.mubr.msk.f32.gmra.mxu0 %vm1314_vm0, %v5164_v26  ;;  %v15763_v26 = vld [vmem:[#allocation46_spill] sm:$0xff] }
 0x161   : > { %v10248_v44 = vpop.f32.mrf.mxu1  ;;  %10583 = vmatmul.mubr.msk.f32.gmra.mxu1 %vm1314_vm0, %v5196_v54  ;;  %v13255_v50 = vadd.f32 %v3642_v46, %v3438_v57  ;;  %v3441_v1 = vadd.f32 %v10192_v36, %v12998_v24  ;;  %10529 = vmatprep.mubr.msk.f32.mxu0 %vm1314_vm0, %v15762_v21  ;;  %v15764_v24 = vld [vmem:[#allocation109_spill] sm:$0xff]  ;;  %v15765_v36 = vld [vmem:[#allocation50_spill] sm:$0xff] }
 0x162   : > { %10585 = vmatprep.mubr.msk.f32.mxu1 %vm1314_vm0, %v15763_v26  ;;  %v3297_v54 = vpop.f32.mrf.mxu0  ;;  %10629 = vmatpush3.msra.mxu0 %v9078_v60  ;;  %v5168_v21 = vmul.f32 %v15765_v36, %v15764_v24  ;;  %v15766_v26 = vld [vmem:[#allocation111_spill] sm:$0xff]  ;;  %v13274_v60 = vld [vmem:[%s15075_s2 + $0xf8] sm:$0xff] }
 0x163   : > { %v3652_v47 = vpop.f32.mrf.mxu1  ;;  %10685 = vmatpush3.msra.mxu1 %v9113_v25  ;;  %v13262_v55 = vadd.f32 %v10248_v44, %v3441_v1  ;;  %v3440_v19 = vadd.f32 %v3297_v54, %v13015_v23  ;;  %10630 = vmatprep.subr.mxu0 %v9077_v4  ;;  %v5200_v62 = vmul.f32 %v15765_v36, %v15766_v26  ;;  %v13279_v23 = vld [vmem:[%s15076_s3 + $0xf8] sm:$0xff] }
 0x164   : > { %10686 = vmatprep.subr.mxu1 %v9112_v6  ;;  %v10195_v46 = vpop.f32.mrf.mxu0  ;;  %10530 = vmatmul.mubr.msk.f32.gmra.mxu0 %vm1314_vm0, %v5166_v11  ;;  %v15767_v11 = vld [vmem:[#allocation77_spill] sm:$0xff] }
 0x165   : > { %v10251_v57 = vpop.f32.mrf.mxu1  ;;  %10586 = vmatmul.mubr.msk.f32.gmra.mxu1 %vm1314_vm0, %v5198_v56  ;;  %v13281_v25 = vadd.f32 %v3652_v47, %v3440_v19  ;;  %v3443_v44 = vadd.f32 %v10195_v46, %v13022_v39  ;;  %10532 = vmatprep.mubr.msk.f32.mxu0 %vm1314_vm0, %v15767_v11  ;;  %v15768_v56 = vld [vmem:[#allocation79_spill] sm:$0xff]  ;;  %v15769_v47 = vld [vmem:[#allocation114_spill] sm:$0xff]  ;;  %v15771_v11 = vld [vmem:[#allocation116_spill] sm:$0xff] }
 0x166   : > { %10588 = vmatprep.mubr.msk.f32.mxu1 %vm1314_vm0, %v15768_v56  ;;  %v3307_v1 = vpop.f32.mrf.mxu0  ;;  %10631 = vmatpush3.msra.mxu0 %v9077_v4  ;;  %v15770_v46 = vld [vmem:[#allocation110_spill] sm:$0xff] }
 0x167   : > { %v3662_v54 = vpop.f32.mrf.mxu1  ;;  %10687 = vmatpush3.msra.mxu1 %v9112_v6  ;;  %v13288_v36 = vadd.f32 %v10251_v57, %v3443_v44  ;;  %v3442_v26 = vadd.f32 %v3307_v1, %v13031_v28  ;;  %10736 = vmatprep.subr.mxu0 %v13274_v60  ;;  %v5170_v56 = vmul.f32 %v15770_v46, %v15769_v47  ;;  %v15772_v57 = vld [vmem:[#allocation112_spill] sm:$0xff]  ;;  %v15773_v44 = vld [vmem:[#allocation113_spill] sm:$0xff] }
 0x168   : > { %10792 = vmatprep.subr.mxu1 %v13279_v23  ;;  %v10198_v19 = vpop.f32.mrf.mxu0  ;;  %10533 = vmatmul.mubr.msk.f32.gmra.mxu0 %vm1314_vm0, %v5168_v21  ;;  %v5202_v4 = vmul.f32 %v15770_v46, %v15771_v11 }
 0x169   : > { %v10254_v39 = vpop.f32.mrf.mxu1  ;;  %10589 = vmatmul.mubr.msk.f32.gmra.mxu1 %vm1314_vm0, %v5200_v62  ;;  %v13299_v6 = vadd.f32 %v3662_v54, %v3442_v26  ;;  %v3445_v28 = vadd.f32 %v10198_v19, %v13038_v40  ;;  %10535 = vmatprep.mubr.msk.f32.mxu0 %vm1314_vm0, %v15772_v57  ;;  %v15774_v26 = vld [vmem:[#allocation119_spill] sm:$0xff]  ;;  %v15776_v19 = vld [vmem:[#allocation121_spill] sm:$0xff] }
 0x16a   : > { %10591 = vmatprep.mubr.msk.f32.mxu1 %vm1314_vm0, %v15773_v44  ;;  %v3317_v1 = vpop.f32.mrf.mxu0  ;;  %v15775_v40 = vld [vmem:[#allocation115_spill] sm:$0xff] }
 0x16b   : > { %v3672_v21 = vpop.f32.mrf.mxu1  ;;  %v13306_v24 = vadd.f32 %v10254_v39, %v3445_v28  ;;  %v3444_v62 = vadd.f32 %v3317_v1, %v13045_v7  ;;  %v5172_v54 = vmul.f32 %v15775_v40, %v15774_v26  ;;  %v5204_v46 = vmul.f32 %v15775_v40, %v15776_v19  ;;  %v15777_v39 = vld [vmem:[#allocation117_spill] sm:$0xff]  ;;  %v15778_v7 = vld [vmem:[#allocation118_spill] sm:$0xff] }
 0x16c   : > { %v10201_v47 = vpop.f32.mrf.mxu0  ;;  %10536 = vmatmul.mubr.msk.f32.gmra.mxu0 %vm1314_vm0, %v5170_v56 }
 0x16d   : > { %v10257_v5 = vpop.f32.mrf.mxu1  ;;  %10592 = vmatmul.mubr.msk.f32.gmra.mxu1 %vm1314_vm0, %v5202_v4  ;;  %v13315_v57 = vadd.f32 %v3672_v21, %v3444_v62  ;;  %v3447_v44 = vadd.f32 %v10201_v47, %v13052_v38  ;;  %10538 = vmatprep.mubr.msk.f32.mxu0 %vm1314_vm0, %v15777_v39  ;;  %v15779_v21 = vld [vmem:[#allocation124_spill] sm:$0xff]  ;;  %v15781_v62 = vld [vmem:[#allocation126_spill] sm:$0xff] }
 0x16e   : > { %10594 = vmatprep.mubr.msk.f32.mxu1 %vm1314_vm0, %v15778_v7  ;;  %v3327_v28 = vpop.f32.mrf.mxu0  ;;  %v15780_v38 = vld [vmem:[#allocation120_spill] sm:$0xff] }
 0x16f   : > { %v3682_v56 = vpop.f32.mrf.mxu1  ;;  %v13322_v1 = vadd.f32 %v10257_v5, %v3447_v44  ;;  %v3446_v4 = vadd.f32 %v3327_v28, %v13059_v17  ;;  %v5174_v47 = vmul.f32 %v15780_v38, %v15779_v21  ;;  %v5206_v40 = vmul.f32 %v15780_v38, %v15781_v62  ;;  %v15782_v5 = vld [vmem:[#allocation122_spill] sm:$0xff]  ;;  %v15783_v17 = vld [vmem:[#allocation123_spill] sm:$0xff] }
 0x170   : > { %v10204_v26 = vpop.f32.mrf.mxu0  ;;  %10539 = vmatmul.mubr.msk.f32.gmra.mxu0 %vm1314_vm0, %v5172_v54 }
 0x171   : > { %v10260_v11 = vpop.f32.mrf.mxu1  ;;  %10595 = vmatmul.mubr.msk.f32.gmra.mxu1 %vm1314_vm0, %v5204_v46  ;;  %v13331_v39 = vadd.f32 %v3682_v56, %v3446_v4  ;;  %v3449_v7 = vadd.f32 %v10204_v26, %v13066_v61  ;;  %10541 = vmatprep.mubr.msk.f32.mxu0 %vm1314_vm0, %v15782_v5  ;;  %v15784_v56 = vld [vmem:[#allocation51_spill] sm:$0xff]  ;;  %v15785_v61 = vld [vmem:[#allocation125_spill] sm:$0xff]  ;;  %v15786_v4 = vld [vmem:[#allocation130_spill] sm:$0xff] }
 0x172   : > { %10597 = vmatprep.mubr.msk.f32.mxu1 %vm1314_vm0, %v15783_v17  ;;  %v3337_v44 = vpop.f32.mrf.mxu0  ;;  %v5176_v26 = vmul.f32 %v15785_v61, %v15784_v56  ;;  %v5208_v38 = vmul.f32 %v15785_v61, %v15786_v4 }
 0x173   : > { %v3692_v54 = vpop.f32.mrf.mxu1  ;;  %v13338_v28 = vadd.f32 %v10260_v11, %v3449_v7  ;;  %v3448_v46 = vadd.f32 %v3337_v44, %v13073_v14  ;;  %v15787_v11 = vld [vmem:[#allocation127_spill] sm:$0xff]  ;;  %v15788_v14 = vld [vmem:[#allocation128_spill] sm:$0xff] }
 0x174   : > { %v10207_v21 = vpop.f32.mrf.mxu0  ;;  %10542 = vmatmul.mubr.msk.f32.gmra.mxu0 %vm1314_vm0, %v5174_v47 }
 0x175   : > { %v10263_v19 = vpop.f32.mrf.mxu1  ;;  %10598 = vmatmul.mubr.msk.f32.gmra.mxu1 %vm1314_vm0, %v5206_v40  ;;  %v13347_v5 = vadd.f32 %v3692_v54, %v3448_v46  ;;  %v3451_v17 = vadd.f32 %v10207_v21, %v13080_v41  ;;  %10544 = vmatprep.mubr.msk.f32.mxu0 %vm1314_vm0, %v15787_v11  ;;  %v15789_v54 = vld [vmem:[#allocation58_spill] sm:$0xff]  ;;  %v15790_v41 = vld [vmem:[#allocation129_spill] sm:$0xff]  ;;  %v15791_v46 = vld [vmem:[#allocation132_spill] sm:$0xff] }
 0x176   : > { %10600 = vmatprep.mubr.msk.f32.mxu1 %vm1314_vm0, %v15788_v14  ;;  %v3347_v7 = vpop.f32.mrf.mxu0  ;;  %v5178_v21 = vmul.f32 %v15790_v41, %v15789_v54  ;;  %v5210_v61 = vmul.f32 %v15790_v41, %v15791_v46 }
 0x177   : > { %v3702_v47 = vpop.f32.mrf.mxu1  ;;  %v13354_v44 = vadd.f32 %v10263_v19, %v3451_v17  ;;  %v3450_v40 = vadd.f32 %v3347_v7, %v13087_v45  ;;  %v15792_v19 = vld [vmem:[#allocation54_spill] sm:$0xff]  ;;  %v15793_v45 = vld [vmem:[#allocation131_spill] sm:$0xff] }
 0x178   : > { %v10210_v56 = vpop.f32.mrf.mxu0  ;;  %10545 = vmatmul.mubr.msk.f32.gmra.mxu0 %vm1314_vm0, %v5176_v26 }
 0x179   : > { %v10266_v62 = vpop.f32.mrf.mxu1  ;;  %10601 = vmatmul.mubr.msk.f32.gmra.mxu1 %vm1314_vm0, %v5208_v38  ;;  %v13363_v11 = vadd.f32 %v3702_v47, %v3450_v40  ;;  %v3453_v14 = vadd.f32 %v10210_v56, %v13094_v9  ;;  %10547 = vmatprep.mubr.msk.f32.mxu0 %vm1314_vm0, %v15792_v19  ;;  %v15794_v47 = vld [vmem:[#allocation67_spill] sm:$0xff]  ;;  %v15796_v40 = vld [vmem:[#allocation70_spill] sm:$0xff] }
 0x17a   : > { %10603 = vmatprep.mubr.msk.f32.mxu1 %vm1314_vm0, %v15793_v45  ;;  %v3357_v17 = vpop.f32.mrf.mxu0  ;;  %v15795_v9 = vld [vmem:[#allocation59_spill] sm:$0xff] }
 0x17b   : > { %v3712_v26 = vpop.f32.mrf.mxu1  ;;  %v13370_v7 = vadd.f32 %v10266_v62, %v3453_v14  ;;  %v3452_v38 = vadd.f32 %v3357_v17, %v13101_v63  ;;  %v5180_v56 = vmul.f32 %v15795_v9, %v15794_v47  ;;  %v5212_v41 = vmul.f32 %v15795_v9, %v15796_v40  ;;  %v15797_v62 = vld [vmem:[#allocation62_spill] sm:$0xff] }
 0x17c   : > { %v10213_v54 = vpop.f32.mrf.mxu0  ;;  %10548 = vmatmul.mubr.msk.f32.gmra.mxu0 %vm1314_vm0, %v5178_v21  ;;  %v15798_v63 = vld [vmem:[#allocation66_spill] sm:$0xff] }
 0x17d   : > { %v10269_v4 = vpop.f32.mrf.mxu1  ;;  %10604 = vmatmul.mubr.msk.f32.gmra.mxu1 %vm1314_vm0, %v5210_v61  ;;  %v13379_v19 = vadd.f32 %v3712_v26, %v3452_v38  ;;  %v3455_v45 = vadd.f32 %v10213_v54, %v13108_v34  ;;  %10550 = vmatprep.mubr.msk.f32.mxu0 %vm1314_vm0, %v15797_v62  ;;  %v15799_v26 = vld [vmem:[#allocation133_spill] sm:$0xff]  ;;  %v15800_v34 = vld [vmem:[#allocation71_spill] sm:$0xff] }
 0x17e   : > { %10606 = vmatprep.mubr.msk.f32.mxu1 %vm1314_vm0, %v15798_v63  ;;  %v3367_v14 = vpop.f32.mrf.mxu0  ;;  %v5182_v54 = vmul.f32 %v15800_v34, %v15799_v26  ;;  %v15801_v38 = vld [vmem:[#allocation135_spill] sm:$0xff] }
 0x17f   : > { %v3722_v21 = vpop.f32.mrf.mxu1  ;;  %v13386_v17 = vadd.f32 %v10269_v4, %v3455_v45  ;;  %v3454_v61 = vadd.f32 %v3367_v14, %v13115_v37  ;;  %v5214_v9 = vmul.f32 %v15800_v34, %v15801_v38  ;;  %v15802_v4 = vld [vmem:[#allocation74_spill] sm:$0xff] }
 0x180   : > { %v10216_v47 = vpop.f32.mrf.mxu0  ;;  %10551 = vmatmul.mubr.msk.f32.gmra.mxu0 %vm1314_vm0, %v5180_v56  ;;  %v15803_v37 = vld [vmem:[#allocation78_spill] sm:$0xff] }
 0x181   : > { %v10272_v46 = vpop.f32.mrf.mxu1  ;;  %10607 = vmatmul.mubr.msk.f32.gmra.mxu1 %vm1314_vm0, %v5212_v41  ;;  %v13395_v62 = vadd.f32 %v3722_v21, %v3454_v61  ;;  %v3457_v63 = vadd.f32 %v10216_v47, %v13122_v58  ;;  %10553 = vmatprep.mubr.msk.f32.mxu0 %vm1314_vm0, %v15802_v4  ;;  %v15804_v21 = vld [vmem:[#allocation83_spill] sm:$0xff]  ;;  %v15805_v58 = vld [vmem:[#allocation134_spill] sm:$0xff]  ;;  %v15806_v61 = vld [vmem:[#allocation136_spill] sm:$0xff] }
 0x182   : > { %10609 = vmatprep.mubr.msk.f32.mxu1 %vm1314_vm0, %v15803_v37  ;;  %v3377_v45 = vpop.f32.mrf.mxu0  ;;  %v5184_v47 = vmul.f32 %v15805_v58, %v15804_v21  ;;  %v5216_v34 = vmul.f32 %v15805_v58, %v15806_v61 }
 0x183   : > { %v3732_v56 = vpop.f32.mrf.mxu1  ;;  %v13402_v14 = vadd.f32 %v10272_v46, %v3457_v63  ;;  %v3456_v41 = vadd.f32 %v3377_v45, %v13129_v52  ;;  %v15807_v46 = vld [vmem:[#allocation86_spill] sm:$0xff]  ;;  %v15808_v52 = vld [vmem:[#allocation91_spill] sm:$0xff] }
 0x184   : > { %v10219_v26 = vpop.f32.mrf.mxu0  ;;  %10554 = vmatmul.mubr.msk.f32.gmra.mxu0 %vm1314_vm0, %v5182_v54 }
 0x185   : > { %v10275_v40 = vpop.f32.mrf.mxu1  ;;  %10610 = vmatmul.mubr.msk.f32.gmra.mxu1 %vm1314_vm0, %v5214_v9  ;;  %v13411_v4 = vadd.f32 %v3732_v56, %v3456_v41  ;;  %v3459_v37 = vadd.f32 %v10219_v26, %v13136_v18  ;;  %10556 = vmatprep.mubr.msk.f32.mxu0 %vm1314_vm0, %v15807_v46  ;;  %v15809_v56 = vld [vmem:[#allocation97_spill] sm:$0xff] }
 0x186   : > { %10612 = vmatprep.mubr.msk.f32.mxu1 %vm1314_vm0, %v15808_v52  ;;  %v3387_v63 = vpop.f32.mrf.mxu0  ;;  %v15810_v18 = vld [vmem:[#allocation85_spill] sm:$0xff] }
 0x187   : > { %v3742_v54 = vpop.f32.mrf.mxu1  ;;  %v13418_v45 = vadd.f32 %v10275_v40, %v3459_v37  ;;  %v3458_v9 = vadd.f32 %v3387_v63, %v13143_v49  ;;  %v5186_v26 = vmul.f32 %v15810_v18, %v15809_v56  ;;  %v15811_v41 = vld [vmem:[#allocation137_spill] sm:$0xff]  ;;  %v15813_v40 = vld [vmem:[#allocation138_spill] sm:$0xff]  ;;  %v15814_v49 = vld [vmem:[#allocation139_spill] sm:$0xff]  ;;  %v5149_v37 = vrot.slane %v12872_v42, 1 }
 0x188   : > { %v10222_v21 = vpop.f32.mrf.mxu0  ;;  %10557 = vmatmul.mubr.msk.f32.gmra.mxu0 %vm1314_vm0, %v5184_v47  ;;  %v5218_v58 = vmul.f32 %v15810_v18, %v15811_v41  ;;  %v15812_v52 = vld [vmem:[#allocation145_spill] sm:$0xff] }
 0x189   : > { %v10278_v38 = vpop.f32.mrf.mxu1  ;;  %10613 = vmatmul.mubr.msk.f32.gmra.mxu1 %vm1314_vm0, %v5216_v34  ;;  %v13427_v46 = vadd.f32 %v3742_v54, %v3458_v9  ;;  %v3461_v61 = vadd.f32 %v10222_v21, %v15812_v52  ;;  %10559 = vmatprep.mubr.msk.f32.mxu0 %vm1314_vm0, %v15813_v40  ;;  %v5154_v34 = vrot.slane %v12880_v16, 1  ;;  %v15815_v21 = vld [vmem:[#allocation140_spill] sm:$0xff]  ;;  %v15816_v52 = vld [vmem:[#allocation98_spill] sm:$0xff] }
 0x18a   : > { %10615 = vmatprep.mubr.msk.f32.mxu1 %vm1314_vm0, %v15814_v49  ;;  %v3397_v47 = vpop.f32.mrf.mxu0  ;;  %v5188_v40 = vmul.f32 %v15816_v52, %v15815_v21  ;;  %v15817_v49 = vld [vmem:[#allocation142_spill] sm:$0xff] }
 0x18b   : > { %v3752_v63 = vpop.f32.mrf.mxu1  ;;  %v13436_v56 = vadd.f32 %v10278_v38, %v3461_v61  ;;  %v3460_v18 = vadd.f32 %v3397_v47, %v13157_v22  ;;  %v5220_v41 = vmul.f32 %v15816_v52, %v15817_v49  ;;  %v15818_v38 = vld [vmem:[#allocation143_spill] sm:$0xff]  ;;  %v15819_v22 = vld [vmem:[#allocation144_spill] sm:$0xff]  ;;  %v13453_v61 = vsel %vm2667_vm4, %v5149_v37, 0.0 }
 0x18c   : > { %v10225_v54 = vpop.f32.mrf.mxu0  ;;  %10560 = vmatmul.mubr.msk.f32.gmra.mxu0 %vm1314_vm0, %v5186_v26  ;;  %v15820_v52 = vrot.slane %v12539_v0, 1  ;;  %v15824_v0 = vld [vmem:[#allocation141_spill] sm:$0xff] }
 0x18d   : > { %v10281_v9 = vpop.f32.mrf.mxu1  ;;  %10616 = vmatmul.mubr.msk.f32.gmra.mxu1 %vm1314_vm0, %v5218_v58  ;;  %v13445_v15 = vadd.f32 %v3752_v63, %v3460_v18  ;;  %v3463_v31 = vadd.f32 %v10225_v54, %v13164_v35  ;;  %10562 = vmatprep.mubr.msk.f32.mxu0 %vm1314_vm0, %v15818_v38  ;;  %v13456_v58 = vsel %vm2667_vm4, %v5154_v34, 0.0  ;;  %v15822_v35 = vrot.slane %v12542_v43, 1  ;;  %v15825_v43 = vld [vmem:[#allocation7_spill] sm:$0xff] }
 0x18e   : > { %10618 = vmatprep.mubr.msk.f32.mxu1 %vm1314_vm0, %v15819_v22  ;;  %v3407_v26 = vpop.f32.mrf.mxu0  ;;  %v13461_v18 = vsel %vm2667_vm4, %v15820_v52, %v5149_v37  ;;  %v5190_v21 = vmul.f32 %v15824_v0, %v13453_v61  ;;  %v5222_v37 = vmul.f32 %v15824_v0, %v13456_v58  ;;  %v15826_v52 = vld [vmem:[#allocation3_spill] sm:$0xff] }
 0x18f   : > { %v3762_v47 = vpop.f32.mrf.mxu1  ;;  %15821 = vst [vmem:[#allocation105_spill] sm:$0xff] %v13461_v18  ;;  %v13466_v63 = vsel %vm2667_vm4, %v15822_v35, %v5154_v34  ;;  %v13468_v54 = vadd.f32 %v10281_v9, %v3463_v31  ;;  %v3462_v22 = vadd.f32 %v3407_v26, %v13171_v29  ;;  %v5943_v34 = vmul.f32 %v15826_v52, %v15825_v43  ;;  %v15827_v29 = vld [vmem:[#allocation8_spill] sm:$0xff] }
 0x190   : > { %15823 = vst [vmem:[#allocation106_spill] sm:$0xff] %v13466_v63  ;;  %v10228_v38 = vpop.f32.mrf.mxu0  ;;  %10563 = vmatmul.mubr.msk.f32.gmra.mxu0 %vm1314_vm0, %v5188_v40 }
 0x191   : > { %v10284_v49 = vpop.f32.mrf.mxu1  ;;  %10619 = vmatmul.mubr.msk.f32.gmra.mxu1 %vm1314_vm0, %v5220_v41  ;;  %v13479_v35 = vadd.f32 %v3762_v47, %v3462_v22  ;;  %v3465_v31 = vadd.f32 %v10228_v38, %v13178_v13  ;;  %10565 = vmatprep.mubr.msk.f32.mxu0 %vm1314_vm0, %v13461_v18  ;;  %v5975_v41 = vmul.f32 %v15826_v52, %v15827_v29 }
 0x192   : > { %10621 = vmatprep.mubr.msk.f32.mxu1 %vm1314_vm0, %v13466_v63  ;;  %v3417_v40 = vpop.f32.mrf.mxu0 }
 0x193   : > { %v3772_v9 = vpop.f32.mrf.mxu1  ;;  %v13488_v26 = vadd.f32 %v10284_v49, %v3465_v31  ;;  %v3464_v0 = vadd.f32 %v3417_v40, %v13185_v53  ;;  %v15828_v49 = vld [vmem:[#allocation12_spill] sm:$0xff]  ;;  %v15829_v31 = vld [vmem:[#allocation6_spill] sm:$0xff]  ;;  %v15830_v53 = vld [vmem:[#allocation13_spill] sm:$0xff] }
 0x194   : > { %v10231_v43 = vpop.f32.mrf.mxu0  ;;  %10566 = vmatmul.mubr.msk.f32.gmra.mxu0 %vm1314_vm0, %v5190_v21  ;;  %v5945_v29 = vmul.f32 %v15829_v31, %v15828_v49  ;;  %v5977_v40 = vmul.f32 %v15829_v31, %v15830_v53  ;;  %v9149_v49 = vld [vmem:[%s15075_s2 + $0xf0] sm:$0xff] }
 0x195   : > { %v10287_v22 = vpop.f32.mrf.mxu1  ;;  %10622 = vmatmul.mubr.msk.f32.gmra.mxu1 %vm1314_vm0, %v5222_v37  ;;  %v13493_v13 = vadd.f32 %v3772_v9, %v3464_v0  ;;  %v3467_v38 = vadd.f32 %v10231_v43, %v13192_v10  ;;  %10632 = vmatprep.mubr.msk.f32.mxu0 %vm1314_vm0, %v5943_v34  ;;  %v15831_v9 = vld [vmem:[#allocation14_spill] sm:$0xff]  ;;  %v15832_v10 = vld [vmem:[#allocation15_spill] sm:$0xff]  ;;  %v15833_v34 = vld [vmem:[#allocation17_spill] sm:$0xff] }
 0x196   : > { %10688 = vmatprep.mubr.msk.f32.mxu1 %vm1314_vm0, %v5975_v41  ;;  %v3427_v47 = vpop.f32.mrf.mxu0  ;;  %v15834_v41 = vld [vmem:[#allocation11_spill] sm:$0xff] }
 0x197   : > { %v3782_v52 = vpop.f32.mrf.mxu1  ;;  %v13502_v63 = vadd.f32 %v10287_v22, %v3467_v38  ;;  %v3466_v21 = vadd.f32 %v3427_v47, %v13209_v48  ;;  %v5947_v43 = vmul.f32 %v15834_v41, %v15833_v34  ;;  %v9183_v22 = vld [vmem:[%s15076_s3 + $0xf0] sm:$0xff]  ;;  %v15835_v47 = vld [vmem:[#allocation18_spill] sm:$0xff] }
 0x198   : > { %v10298_v0 = vpop.f32.mrf.mxu0  ;;  %10633 = vmatmul.mubr.msk.f32.vlgmr.msra.gmra.mxu0 %vm1314_vm0, %v15831_v9  ;;  %v5979_v31 = vmul.f32 %v15834_v41, %v15835_v47  ;;  %v15839_v34 = vld [vmem:[#allocation16_spill] sm:$0xff] }
 0x199   : > { %v10354_v37 = vpop.f32.mrf.mxu1  ;;  %10689 = vmatmul.mubr.msk.f32.vlgmr.msra.gmra.mxu1 %vm1314_vm0, %v15832_v10  ;;  %v13517_v48 = vadd.f32 %v3782_v52, %v3466_v21  ;;  %v4228_v38 = vadd.f32 %v10298_v0, %v13218_v20  ;;  %10737 = vmatpush3.msra.mxu0 %v13274_v60  ;;  %v15836_v60 = vld [vmem:[#allocation19_spill] sm:$0xff]  ;;  %v15838_v0 = vld [vmem:[#allocation22_spill] sm:$0xff] }
 0x19a   : > { %10793 = vmatpush3.msra.mxu1 %v13279_v23  ;;  %v4068_v53 = vpop.f32.mrf.mxu0  ;;  %10635 = vmatprep.mubr.msk.f32.mxu0 %vm1314_vm0, %v5945_v29  ;;  %v15837_v23 = vld [vmem:[#allocation21_spill] sm:$0xff]  ;;  %v5949_v41 = vmul.f32 %v15839_v34, %v15838_v0  ;;  %v9148_v29 = vld [vmem:[%s15075_s2 + $0xe8] sm:$0xff] }
 0x19b   : > { %v4426_v9 = vpop.f32.mrf.mxu1  ;;  %10691 = vmatprep.mubr.msk.f32.mxu1 %vm1314_vm0, %v5977_v40  ;;  %v13526_v10 = vadd.f32 %v10354_v37, %v4228_v38  ;;  %v4227_v52 = vadd.f32 %v4068_v53, %v13233_v30  ;;  %10738 = vmatprep.subr.mxu0 %v9149_v49  ;;  %v9182_v30 = vld [vmem:[%s15076_s3 + $0xe8] sm:$0xff] }
 0x19c   : > { %10794 = vmatprep.subr.mxu1 %v9183_v22  ;;  %v10301_v20 = vpop.f32.mrf.mxu0  ;;  %10636 = vmatmul.mubr.msk.f32.gmra.mxu0 %vm1314_vm0, %v15836_v60  ;;  %v15840_v38 = vld [vmem:[#allocation23_spill] sm:$0xff] }
 0x19d   : > { %v10357_v21 = vpop.f32.mrf.mxu1  ;;  %10692 = vmatmul.mubr.msk.f32.gmra.mxu1 %vm1314_vm0, %v15837_v23  ;;  %v13541_v40 = vadd.f32 %v4426_v9, %v4227_v52  ;;  %v4230_v37 = vadd.f32 %v10301_v20, %v13240_v8  ;;  %10638 = vmatprep.mubr.msk.f32.mxu0 %vm1314_vm0, %v5947_v43  ;;  %v5981_v47 = vmul.f32 %v15839_v34, %v15840_v38  ;;  %v15841_v8 = vld [vmem:[#allocation24_spill] sm:$0xff]  ;;  %v15842_v43 = vld [vmem:[#allocation25_spill] sm:$0xff] }
 0x19e   : > { %10694 = vmatprep.mubr.msk.f32.mxu1 %vm1314_vm0, %v5979_v31  ;;  %v4078_v53 = vpop.f32.mrf.mxu0  ;;  %10739 = vmatpush3.msra.mxu0 %v9149_v49  ;;  %v15843_v31 = vld [vmem:[#allocation28_spill] sm:$0xff]  ;;  %v9147_v49 = vld [vmem:[%s15075_s2 + $0xe0] sm:$0xff] }
 0x19f   : > { %v4436_v60 = vpop.f32.mrf.mxu1  ;;  %10795 = vmatpush3.msra.mxu1 %v9183_v22  ;;  %v13548_v23 = vadd.f32 %v10357_v21, %v4230_v37  ;;  %v4229_v0 = vadd.f32 %v4078_v53, %v13255_v50  ;;  %10740 = vmatprep.subr.mxu0 %v9148_v29  ;;  %v15844_v20 = vld [vmem:[#allocation20_spill] sm:$0xff]  ;;  %v9181_v50 = vld [vmem:[%s15076_s3 + $0xe0] sm:$0xff]  ;;  %v15845_v37 = vld [vmem:[#allocation29_spill] sm:$0xff] }
 0x1a0   : > { %10796 = vmatprep.subr.mxu1 %v9182_v30  ;;  %v10304_v9 = vpop.f32.mrf.mxu0  ;;  %10639 = vmatmul.mubr.msk.f32.gmra.mxu0 %vm1314_vm0, %v15841_v8  ;;  %v5951_v34 = vmul.f32 %v15844_v20, %v15843_v31  ;;  %v5983_v38 = vmul.f32 %v15844_v20, %v15845_v37 }
 0x1a1   : > { %v10360_v52 = vpop.f32.mrf.mxu1  ;;  %10695 = vmatmul.mubr.msk.f32.gmra.mxu1 %vm1314_vm0, %v15842_v43  ;;  %v13563_v22 = vadd.f32 %v4436_v60, %v4229_v0  ;;  %v4232_v21 = vadd.f32 %v10304_v9, %v13262_v55  ;;  %10641 = vmatprep.mubr.msk.f32.mxu0 %vm1314_vm0, %v5949_v41  ;;  %v15846_v55 = vld [vmem:[#allocation27_spill] sm:$0xff]  ;;  %v15847_v41 = vld [vmem:[#allocation30_spill] sm:$0xff] }
 0x1a2   : > { %10697 = vmatprep.mubr.msk.f32.mxu1 %vm1314_vm0, %v5981_v47  ;;  %v4088_v53 = vpop.f32.mrf.mxu0  ;;  %10741 = vmatpush3.msra.mxu0 %v9148_v29  ;;  %v15848_v47 = vld [vmem:[#allocation32_spill] sm:$0xff]  ;;  %v15849_v9 = vld [vmem:[#allocation26_spill] sm:$0xff]  ;;  %v13582_v29 = vld [vmem:[%s15075_s2 + $0x118] sm:$0xff] }
 0x1a3   : > { %v4446_v8 = vpop.f32.mrf.mxu1  ;;  %10797 = vmatpush3.msra.mxu1 %v9182_v30  ;;  %v13570_v43 = vadd.f32 %v10360_v52, %v4232_v21  ;;  %v4231_v31 = vadd.f32 %v4088_v53, %v13281_v25  ;;  %10742 = vmatprep.subr.mxu0 %v9147_v49  ;;  %v5953_v20 = vmul.f32 %v15849_v9, %v15848_v47  ;;  %v13587_v25 = vld [vmem:[%s15076_s3 + $0x118] sm:$0xff] }
 0x1a4   : > { %10798 = vmatprep.subr.mxu1 %v9181_v50  ;;  %v10307_v60 = vpop.f32.mrf.mxu0  ;;  %10642 = vmatmul.mubr.msk.f32.gmra.mxu0 %vm1314_vm0, %v15846_v55  ;;  %v15850_v21 = vld [vmem:[#allocation33_spill] sm:$0xff] }
 0x1a5   : > { %v10363_v0 = vpop.f32.mrf.mxu1  ;;  %10698 = vmatmul.mubr.msk.f32.gmra.mxu1 %vm1314_vm0, %v15847_v41  ;;  %v13589_v30 = vadd.f32 %v4446_v8, %v4231_v31  ;;  %v4234_v52 = vadd.f32 %v10307_v60, %v13288_v36  ;;  %10644 = vmatprep.mubr.msk.f32.mxu0 %vm1314_vm0, %v5951_v34  ;;  %v5985_v37 = vmul.f32 %v15849_v9, %v15850_v21  ;;  %v15851_v34 = vld [vmem:[#allocation35_spill] sm:$0xff]  ;;  %v15853_v31 = vld [vmem:[#allocation42_spill] sm:$0xff] }
 0x1a6   : > { %10700 = vmatprep.mubr.msk.f32.mxu1 %vm1314_vm0, %v5983_v38  ;;  %v4098_v53 = vpop.f32.mrf.mxu0  ;;  %10743 = vmatpush3.msra.mxu0 %v9147_v49  ;;  %v15852_v38 = vld [vmem:[#allocation39_spill] sm:$0xff] }
 0x1a7   : > { %v4456_v55 = vpop.f32.mrf.mxu1  ;;  %10799 = vmatpush3.msra.mxu1 %v9181_v50  ;;  %v13596_v41 = vadd.f32 %v10363_v0, %v4234_v52  ;;  %v4233_v47 = vadd.f32 %v4098_v53, %v13299_v6  ;;  %10848 = vmatprep.subr.mxu0 %v13582_v29  ;;  %v15854_v60 = vld [vmem:[#allocation31_spill] sm:$0xff] }
 0x1a8   : > { %10904 = vmatprep.subr.mxu1 %v13587_v25  ;;  %v10310_v36 = vpop.f32.mrf.mxu0  ;;  %10645 = vmatmul.mubr.msk.f32.gmra.mxu0 %vm1314_vm0, %v15851_v34  ;;  %v5955_v49 = vmul.f32 %v15854_v60, %v15853_v31  ;;  %v15855_v6 = vld [vmem:[#allocation43_spill] sm:$0xff]  ;;  %v15856_v31 = vld [vmem:[#allocation40_spill] sm:$0xff] }
 0x1a9   : > { %v10366_v8 = vpop.f32.mrf.mxu1  ;;  %10701 = vmatmul.mubr.msk.f32.gmra.mxu1 %vm1314_vm0, %v15852_v38  ;;  %v13607_v50 = vadd.f32 %v4456_v55, %v4233_v47  ;;  %v4236_v0 = vadd.f32 %v10310_v36, %v13306_v24  ;;  %10647 = vmatprep.mubr.msk.f32.mxu0 %vm1314_vm0, %v5953_v20  ;;  %v5987_v9 = vmul.f32 %v15854_v60, %v15855_v6  ;;  %v15857_v55 = vld [vmem:[#allocation44_spill] sm:$0xff]  ;;  %v15858_v24 = vld [vmem:[#allocation49_spill] sm:$0xff] }
 0x1aa   : > { %10703 = vmatprep.mubr.msk.f32.mxu1 %vm1314_vm0, %v5985_v37  ;;  %v4108_v52 = vpop.f32.mrf.mxu0  ;;  %v15859_v20 = vld [vmem:[#allocation36_spill] sm:$0xff] }
 0x1ab   : > { %v4466_v21 = vpop.f32.mrf.mxu1  ;;  %v13614_v53 = vadd.f32 %v10366_v8, %v4236_v0  ;;  %v4235_v34 = vadd.f32 %v4108_v52, %v13315_v57  ;;  %v5957_v37 = vmul.f32 %v15859_v20, %v15858_v24  ;;  %v15860_v57 = vld [vmem:[#allocation53_spill] sm:$0xff] }
 0x1ac   : > { %v10313_v38 = vpop.f32.mrf.mxu0  ;;  %10648 = vmatmul.mubr.msk.f32.gmra.mxu0 %vm1314_vm0, %v15856_v31  ;;  %v5989_v8 = vmul.f32 %v15859_v20, %v15860_v57  ;;  %v15861_v24 = vld [vmem:[#allocation45_spill] sm:$0xff] }
 0x1ad   : > { %v10369_v18 = vpop.f32.mrf.mxu1  ;;  %10704 = vmatmul.mubr.msk.f32.gmra.mxu1 %vm1314_vm0, %v15857_v55  ;;  %v13623_v47 = vadd.f32 %v4466_v21, %v4235_v34  ;;  %v4238_v36 = vadd.f32 %v10313_v38, %v13322_v1  ;;  %10650 = vmatprep.mubr.msk.f32.mxu0 %vm1314_vm0, %v5955_v49  ;;  %v15862_v21 = vld [vmem:[#allocation55_spill] sm:$0xff]  ;;  %v15863_v1 = vld [vmem:[#allocation57_spill] sm:$0xff]  ;;  %v15864_v49 = vld [vmem:[#allocation48_spill] sm:$0xff] }
 0x1ae   : > { %10706 = vmatprep.mubr.msk.f32.mxu1 %vm1314_vm0, %v5987_v9  ;;  %v4118_v60 = vpop.f32.mrf.mxu0  ;;  %v5959_v9 = vmul.f32 %v15864_v49, %v15863_v1  ;;  %v15866_v1 = vld [vmem:[#allocation60_spill] sm:$0xff] }
 0x1af   : > { %v4476_v0 = vpop.f32.mrf.mxu1  ;;  %v13630_v6 = vadd.f32 %v10369_v18, %v4238_v36  ;;  %v4237_v52 = vadd.f32 %v4118_v60, %v13331_v39  ;;  %v15865_v39 = vld [vmem:[#allocation61_spill] sm:$0xff] }
 0x1b0   : > { %v10316_v31 = vpop.f32.mrf.mxu0  ;;  %10651 = vmatmul.mubr.msk.f32.gmra.mxu0 %vm1314_vm0, %v15861_v24  ;;  %v5991_v18 = vmul.f32 %v15864_v49, %v15865_v39 }
 0x1b1   : > { %v10372_v55 = vpop.f32.mrf.mxu1  ;;  %10707 = vmatmul.mubr.msk.f32.gmra.mxu1 %vm1314_vm0, %v15862_v21  ;;  %v13639_v34 = vadd.f32 %v4476_v0, %v4237_v52  ;;  %v4240_v38 = vadd.f32 %v10316_v31, %v13338_v28  ;;  %10653 = vmatprep.mubr.msk.f32.mxu0 %vm1314_vm0, %v5957_v37  ;;  %v15867_v0 = vld [vmem:[#allocation63_spill] sm:$0xff]  ;;  %v15868_v28 = vld [vmem:[#allocation65_spill] sm:$0xff]  ;;  %v15869_v37 = vld [vmem:[#allocation56_spill] sm:$0xff] }
 0x1b2   : > { %10709 = vmatprep.mubr.msk.f32.mxu1 %vm1314_vm0, %v5989_v8  ;;  %v4128_v20 = vpop.f32.mrf.mxu0  ;;  %v5961_v8 = vmul.f32 %v15869_v37, %v15868_v28  ;;  %v15871_v28 = vld [vmem:[#allocation72_spill] sm:$0xff] }
 0x1b3   : > { %v4486_v36 = vpop.f32.mrf.mxu1  ;;  %v13646_v57 = vadd.f32 %v10372_v55, %v4240_v38  ;;  %v4239_v60 = vadd.f32 %v4128_v20, %v13347_v5  ;;  %v15870_v5 = vld [vmem:[#allocation68_spill] sm:$0xff] }
 0x1b4   : > { %v10319_v24 = vpop.f32.mrf.mxu0  ;;  %10654 = vmatmul.mubr.msk.f32.gmra.mxu0 %vm1314_vm0, %v15866_v1  ;;  %v5993_v55 = vmul.f32 %v15869_v37, %v15870_v5 }
 0x1b5   : > { %v10375_v21 = vpop.f32.mrf.mxu1  ;;  %10710 = vmatmul.mubr.msk.f32.gmra.mxu1 %vm1314_vm0, %v15867_v0  ;;  %v13655_v52 = vadd.f32 %v4486_v36, %v4239_v60  ;;  %v4242_v31 = vadd.f32 %v10319_v24, %v13354_v44  ;;  %10656 = vmatprep.mubr.msk.f32.mxu0 %vm1314_vm0, %v5959_v9  ;;  %v15872_v36 = vld [vmem:[#allocation73_spill] sm:$0xff]  ;;  %v15873_v44 = vld [vmem:[#allocation75_spill] sm:$0xff]  ;;  %v15874_v9 = vld [vmem:[#allocation64_spill] sm:$0xff] }
 0x1b6   : > { %10712 = vmatprep.mubr.msk.f32.mxu1 %vm1314_vm0, %v5991_v18  ;;  %v4138_v49 = vpop.f32.mrf.mxu0  ;;  %v5963_v18 = vmul.f32 %v15874_v9, %v15873_v44  ;;  %v15876_v44 = vld [vmem:[#allocation80_spill] sm:$0xff] }
 0x1b7   : > { %v4496_v38 = vpop.f32.mrf.mxu1  ;;  %v13662_v39 = vadd.f32 %v10375_v21, %v4242_v31  ;;  %v4241_v20 = vadd.f32 %v4138_v49, %v13363_v11  ;;  %v15875_v11 = vld [vmem:[#allocation76_spill] sm:$0xff] }
 0x1b8   : > { %v10322_v1 = vpop.f32.mrf.mxu0  ;;  %10657 = vmatmul.mubr.msk.f32.gmra.mxu0 %vm1314_vm0, %v15871_v28  ;;  %v5995_v21 = vmul.f32 %v15874_v9, %v15875_v11 }
 0x1b9   : > { %v10378_v0 = vpop.f32.mrf.mxu1  ;;  %10713 = vmatmul.mubr.msk.f32.gmra.mxu1 %vm1314_vm0, %v15872_v36  ;;  %v13671_v60 = vadd.f32 %v4496_v38, %v4241_v20  ;;  %v4244_v24 = vadd.f32 %v10322_v1, %v13370_v7  ;;  %10659 = vmatprep.mubr.msk.f32.mxu0 %vm1314_vm0, %v5961_v8  ;;  %v15877_v38 = vld [vmem:[#allocation81_spill] sm:$0xff]  ;;  %v15878_v7 = vld [vmem:[#allocation84_spill] sm:$0xff] }
 0x1ba   : > { %10715 = vmatprep.mubr.msk.f32.mxu1 %vm1314_vm0, %v5993_v55  ;;  %v4148_v37 = vpop.f32.mrf.mxu0  ;;  %v15879_v8 = vld [vmem:[#allocation69_spill] sm:$0xff] }
 0x1bb   : > { %v4506_v31 = vpop.f32.mrf.mxu1  ;;  %v13678_v5 = vadd.f32 %v10378_v0, %v4244_v24  ;;  %v4243_v49 = vadd.f32 %v4148_v37, %v13379_v19  ;;  %v5965_v55 = vmul.f32 %v15879_v8, %v15878_v7  ;;  %v15880_v19 = vld [vmem:[#allocation87_spill] sm:$0xff]  ;;  %v15881_v7 = vld [vmem:[#allocation88_spill] sm:$0xff] }
 0x1bc   : > { %v10325_v28 = vpop.f32.mrf.mxu0  ;;  %10660 = vmatmul.mubr.msk.f32.gmra.mxu0 %vm1314_vm0, %v15876_v44  ;;  %v5997_v0 = vmul.f32 %v15879_v8, %v15880_v19 }
 0x1bd   : > { %v10381_v36 = vpop.f32.mrf.mxu1  ;;  %10716 = vmatmul.mubr.msk.f32.gmra.mxu1 %vm1314_vm0, %v15877_v38  ;;  %v13687_v20 = vadd.f32 %v4506_v31, %v4243_v49  ;;  %v4246_v1 = vadd.f32 %v10325_v28, %v13386_v17  ;;  %10662 = vmatprep.mubr.msk.f32.mxu0 %vm1314_vm0, %v5963_v18  ;;  %v15882_v31 = vld [vmem:[#allocation89_spill] sm:$0xff]  ;;  %v15883_v17 = vld [vmem:[#allocation92_spill] sm:$0xff]  ;;  %v15884_v18 = vld [vmem:[#allocation82_spill] sm:$0xff] }
 0x1be   : > { %10718 = vmatprep.mubr.msk.f32.mxu1 %vm1314_vm0, %v5995_v21  ;;  %v4158_v9 = vpop.f32.mrf.mxu0  ;;  %v5967_v21 = vmul.f32 %v15884_v18, %v15883_v17  ;;  %v15886_v17 = vld [vmem:[#allocation95_spill] sm:$0xff] }
 0x1bf   : > { %v4516_v24 = vpop.f32.mrf.mxu1  ;;  %v13694_v11 = vadd.f32 %v10381_v36, %v4246_v1  ;;  %v4245_v37 = vadd.f32 %v4158_v9, %v13395_v62  ;;  %v15885_v62 = vld [vmem:[#allocation94_spill] sm:$0xff] }
 0x1c0   : > { %v10328_v44 = vpop.f32.mrf.mxu0  ;;  %10663 = vmatmul.mubr.msk.f32.gmra.mxu0 %vm1314_vm0, %v15881_v7  ;;  %v5999_v36 = vmul.f32 %v15884_v18, %v15885_v62 }
 0x1c1   : > { %v10384_v38 = vpop.f32.mrf.mxu1  ;;  %10719 = vmatmul.mubr.msk.f32.gmra.mxu1 %vm1314_vm0, %v15882_v31  ;;  %v13703_v49 = vadd.f32 %v4516_v24, %v4245_v37  ;;  %v4248_v28 = vadd.f32 %v10328_v44, %v13402_v14  ;;  %10665 = vmatprep.mubr.msk.f32.mxu0 %vm1314_vm0, %v5965_v55  ;;  %v15887_v24 = vld [vmem:[#allocation96_spill] sm:$0xff]  ;;  %v15888_v14 = vld [vmem:[#allocation99_spill] sm:$0xff]  ;;  %v15889_v55 = vld [vmem:[#allocation90_spill] sm:$0xff] }
 0x1c2   : > { %10721 = vmatprep.mubr.msk.f32.mxu1 %vm1314_vm0, %v5997_v0  ;;  %v4168_v8 = vpop.f32.mrf.mxu0  ;;  %v5969_v0 = vmul.f32 %v15889_v55, %v15888_v14  ;;  %v15891_v14 = vld [vmem:[#allocation102_spill] sm:$0xff] }
 0x1c3   : > { %v4526_v1 = vpop.f32.mrf.mxu1  ;;  %v13710_v19 = vadd.f32 %v10384_v38, %v4248_v28  ;;  %v4247_v9 = vadd.f32 %v4168_v8, %v13411_v4  ;;  %v15890_v4 = vld [vmem:[#allocation101_spill] sm:$0xff] }
 0x1c4   : > { %v10331_v7 = vpop.f32.mrf.mxu0  ;;  %10666 = vmatmul.mubr.msk.f32.gmra.mxu0 %vm1314_vm0, %v15886_v17  ;;  %v6001_v38 = vmul.f32 %v15889_v55, %v15890_v4  ;;  %v15896_v55 = vrot.slane %v12872_v42, 7  ;;  %v15900_v42 = vld [vmem:[#allocation100_spill] sm:$0xff] }
 0x1c5   : > { %v10387_v31 = vpop.f32.mrf.mxu1  ;;  %10722 = vmatmul.mubr.msk.f32.gmra.mxu1 %vm1314_vm0, %v15887_v24  ;;  %v13719_v37 = vadd.f32 %v4526_v1, %v4247_v9  ;;  %v4250_v44 = vadd.f32 %v10331_v7, %v13418_v45  ;;  %10668 = vmatprep.mubr.msk.f32.mxu0 %vm1314_vm0, %v5967_v21  ;;  %v15892_v1 = vld [vmem:[#allocation103_spill] sm:$0xff]  ;;  %v15893_v45 = vld [vmem:[#allocation4_spill] sm:$0xff]  ;;  %v15894_v21 = vld [vmem:[#allocation93_spill] sm:$0xff] }
 0x1c6   : > { %10724 = vmatprep.mubr.msk.f32.mxu1 %vm1314_vm0, %v5999_v36  ;;  %v4178_v18 = vpop.f32.mrf.mxu0  ;;  %v5971_v36 = vmul.f32 %v15894_v21, %v15893_v45 }
 0x1c7   : > { %v4536_v28 = vpop.f32.mrf.mxu1  ;;  %v13726_v62 = vadd.f32 %v10387_v31, %v4250_v44  ;;  %v4249_v8 = vadd.f32 %v4178_v18, %v13427_v46  ;;  %v15895_v46 = vld [vmem:[#allocation5_spill] sm:$0xff]  ;;  %v5940_v44 = vsel %vm845_vm1, %v15896_v55, 0.0 }
 0x1c8   : > { %v10334_v17 = vpop.f32.mrf.mxu0  ;;  %10669 = vmatmul.mubr.msk.f32.gmra.mxu0 %vm1314_vm0, %v15891_v14  ;;  %v6003_v31 = vmul.f32 %v15894_v21, %v15895_v46  ;;  %v15897_v14 = vrot.slane %v12880_v16, 7  ;;  %v5973_v45 = vmul.f32 %v15900_v42, %v5940_v44  ;;  %v15902_v44 = vld [vmem:[#allocation10_spill] sm:$0xff] }
 0x1c9   : > { %v10390_v24 = vpop.f32.mrf.mxu1  ;;  %10725 = vmatmul.mubr.msk.f32.gmra.mxu1 %vm1314_vm0, %v15892_v1  ;;  %v13735_v9 = vadd.f32 %v4536_v28, %v4249_v8  ;;  %v4252_v7 = vadd.f32 %v10334_v17, %v13436_v56  ;;  %10671 = vmatprep.mubr.msk.f32.mxu0 %vm1314_vm0, %v5969_v0  ;;  %v15899_v1 = vld [vmem:[#allocation108_spill] sm:$0xff] }
 0x1ca   : > { %10727 = vmatprep.mubr.msk.f32.mxu1 %vm1314_vm0, %v6001_v38  ;;  %v4188_v4 = vpop.f32.mrf.mxu0  ;;  %v5942_v28 = vsel %vm845_vm1, %v15897_v14, 0.0  ;;  %v15898_v38 = vld [vmem:[#allocation107_spill] sm:$0xff]  ;;  %vm11123_vm1 = vmmov 0  }
 0x1cb   : > { %v4546_v18 = vpop.f32.mrf.mxu1  ;;  %v13748_v8 = vadd.f32 %v10390_v24, %v4252_v7  ;;  %v4251_v56 = vadd.f32 %v4188_v4, %v13445_v15  ;;  %v6005_v15 = vmul.f32 %v15900_v42, %v5942_v28  ;;  %v11054_v42 = vld [vmem:[%s11218_s9 + $0x10] sm:$0xff] }
 0x1cc   : > { %v10337_v0 = vpop.f32.mrf.mxu0  ;;  %10672 = vmatmul.mubr.msk.f32.gmra.mxu0 %vm1314_vm0, %v15898_v38  ;;  %v15901_v38 = vld [vmem:[#allocation9_spill] sm:$0xff] }
 0x1cd   : > { %v10393_v17 = vpop.f32.mrf.mxu1  ;;  %10728 = vmatmul.mubr.msk.f32.gmra.mxu1 %vm1314_vm0, %v15899_v1  ;;  %v13756_v21 = vadd.f32 %v4546_v18, %v4251_v56  ;;  %v4254_v16 = vadd.f32 %v10337_v0, %v13468_v54  ;;  %10674 = vmatprep.mubr.msk.f32.mxu0 %vm1314_vm0, %v5971_v36 }
 0x1ce   : > { %10730 = vmatprep.mubr.msk.f32.mxu1 %vm1314_vm0, %v6003_v31  ;;  %v4198_v24 = vpop.f32.mrf.mxu0 }
 0x1cf   : > { %v4556_v7 = vpop.f32.mrf.mxu1  ;;  %v13762_v46 = vadd.f32 %v10393_v17, %v4254_v16  ;;  %v4253_v55 = vadd.f32 %v4198_v24, %v13479_v35  ;;  %v15903_v17 = vmov 0.0  }
 0x1d0   : > { %v10340_v4 = vpop.f32.mrf.mxu0  ;;  %10675 = vmatmul.mubr.msk.f32.gmra.mxu0 %vm1314_vm0, %v15901_v38  ;;  %v9252_v38 = vld [vmem:[%s15076_s3 + $0x110] sm:$0xff] }
 0x1d1   : > { %v10396_v14 = vpop.f32.mrf.mxu1  ;;  %10731 = vmatmul.mubr.msk.f32.gmra.mxu1 %vm1314_vm0, %v15902_v44  ;;  %v13769_v54 = vadd.f32 %v4556_v7, %v4253_v55  ;;  %v4256_v36 = vadd.f32 %v10340_v4, %v13488_v26  ;;  %10677 = vmatprep.mubr.msk.f32.mxu0 %vm1314_vm0, %v5973_v45  ;;  %v11055_v45 = vld [vmem:[%s11227_s12 + $0x10] sm:$0xff]  ;;  %v11056_v4 = vld [vmem:[%s11218_s9 + $0x18] sm:$0xff] }
 0x1d2   : > { %10733 = vmatprep.mubr.msk.f32.mxu1 %vm1314_vm0, %v6005_v15  ;;  %v4208_v31 = vpop.f32.mrf.mxu0 }
 0x1d3   : > { %v4566_v35 = vpop.f32.mrf.mxu1  ;;  %v13774_v18 = vadd.f32 %v10396_v14, %v4256_v36  ;;  %v4255_v28 = vadd.f32 %v4208_v31, %v13493_v13  ;;  %v9217_v14 = vld [vmem:[%s15075_s2 + $0x110] sm:$0xff] }
 0x1d4   : > { %v10343_v56 = vpop.f32.mrf.mxu0  ;;  %10678 = vmatmul.mubr.f32.gmra.mxu0 %v15903_v17 }
 0x1d5   : > { %v10399_v0 = vpop.f32.mrf.mxu1  ;;  %10734 = vmatmul.mubr.f32.gmra.mxu1 %v15903_v17  ;;  %v13779_v1 = vadd.f32 %v4566_v35, %v4255_v28  ;;  %v4258_v26 = vadd.f32 %v10343_v56, %v13502_v63  ;;  %10744 = vmatprep.mubr.msk.f32.mxu0 %vm1314_vm0, %v11054_v42  ;;  %v11057_v63 = vld [vmem:[%s11227_s12 + $0x18] sm:$0xff]  ;;  %v11058_v35 = vld [vmem:[%s11218_s9 + $0x20] sm:$0xff]  ;;  %v9216_v42 = vld [vmem:[%s15075_s2 + $0x108] sm:$0xff] }
 0x1d6   : > { %10800 = vmatprep.mubr.msk.f32.mxu1 %vm1314_vm0, %v11055_v45  ;;  %v4218_v16 = vpop.f32.mrf.mxu0  ;;  %v11059_v28 = vld [vmem:[%s11227_s12 + $0x20] sm:$0xff]  ;;  %v9251_v45 = vld [vmem:[%s15076_s3 + $0x108] sm:$0xff] }
 0x1d7   : > { %v4576_v13 = vpop.f32.mrf.mxu1  ;;  %v13786_v15 = vadd.f32 %v10399_v0, %v4258_v26  ;;  %v4257_v24 = vadd.f32 %v4218_v16, %v13517_v48  ;;  %v11060_v26 = vld [vmem:[%s11218_s9 + $0x28] sm:$0xff] }
 0x1d8   : > { %v10410_v7 = vpop.f32.mrf.mxu0  ;;  %10745 = vmatmul.mubr.msk.f32.vlgmr.msra.gmra.mxu0 %vm1314_vm0, %v11056_v4 }
 0x1d9   : > { %v10466_v55 = vpop.f32.mrf.mxu1  ;;  %10801 = vmatmul.mubr.msk.f32.vlgmr.msra.gmra.mxu1 %vm1314_vm0, %v11057_v63  ;;  %v13799_v44 = vadd.f32 %v4576_v13, %v4257_v24  ;;  %v4852_v48 = vadd.f32 %v10410_v7, %v13526_v10  ;;  %10849 = vmatpush3.msra.mxu0 %v13582_v29  ;;  %v11062_v13 = vld [vmem:[%s11218_s9 + $0x30] sm:$0xff] }
 0x1da   : > { %10905 = vmatpush3.msra.mxu1 %v13587_v25  ;;  %v4692_v36 = vpop.f32.mrf.mxu0  ;;  %10747 = vmatprep.mubr.msk.f32.mxu0 %vm1314_vm0, %v11058_v35  ;;  %v11061_v25 = vld [vmem:[%s11227_s12 + $0x28] sm:$0xff]  ;;  %v11063_v24 = vld [vmem:[%s11227_s12 + $0x30] sm:$0xff] }
 0x1db   : > { %v4958_v31 = vpop.f32.mrf.mxu1  ;;  %10803 = vmatprep.mubr.msk.f32.mxu1 %vm1314_vm0, %v11059_v28  ;;  %v13808_v56 = vadd.f32 %v10466_v55, %v4852_v48  ;;  %v4851_v0 = vadd.f32 %v4692_v36, %v13541_v40  ;;  %10850 = vmatprep.subr.mxu0 %v9217_v14  ;;  %v11064_v36 = vld [vmem:[%s11218_s9 + $0x38] sm:$0xff]  ;;  %v11066_v28 = vld [vmem:[%s11218_s9 + $0x40] sm:$0xff] }
 0x1dc   : > { %10906 = vmatprep.subr.mxu1 %v9252_v38  ;;  %v10413_v10 = vpop.f32.mrf.mxu0  ;;  %10748 = vmatmul.mubr.msk.f32.gmra.mxu0 %vm1314_vm0, %v11060_v26 }
 0x1dd   : > { %v10469_v29 = vpop.f32.mrf.mxu1  ;;  %10804 = vmatmul.mubr.msk.f32.gmra.mxu1 %vm1314_vm0, %v11061_v25  ;;  %v13821_v16 = vadd.f32 %v4958_v31, %v4851_v0  ;;  %v4854_v40 = vadd.f32 %v10413_v10, %v13548_v23  ;;  %10750 = vmatprep.mubr.msk.f32.mxu0 %vm1314_vm0, %v11062_v13  ;;  %v11065_v31 = vld [vmem:[%s11227_s12 + $0x38] sm:$0xff]  ;;  %v11067_v0 = vld [vmem:[%s11227_s12 + $0x40] sm:$0xff]  ;;  %v11068_v13 = vld [vmem:[%s11218_s9 + $0x48] sm:$0xff] }
 0x1de   : > { %10806 = vmatprep.mubr.msk.f32.mxu1 %vm1314_vm0, %v11063_v24  ;;  %v4702_v7 = vpop.f32.mrf.mxu0  ;;  %10851 = vmatpush3.msra.mxu0 %v9217_v14  ;;  %v9215_v14 = vld [vmem:[%s15075_s2 + $0x100] sm:$0xff]  ;;  %v11069_v24 = vld [vmem:[%s11227_s12 + $0x48] sm:$0xff] }
 0x1df   : > { %v4968_v55 = vpop.f32.mrf.mxu1  ;;  %10907 = vmatpush3.msra.mxu1 %v9252_v38  ;;  %v13828_v4 = vadd.f32 %v10469_v29, %v4854_v40  ;;  %v4853_v63 = vadd.f32 %v4702_v7, %v13563_v22  ;;  %10852 = vmatprep.subr.mxu0 %v9216_v42  ;;  %v9250_v38 = vld [vmem:[%s15076_s3 + $0x100] sm:$0xff] }
 0x1e0   : > { %10908 = vmatprep.subr.mxu1 %v9251_v45  ;;  %v10416_v23 = vpop.f32.mrf.mxu0  ;;  %10751 = vmatmul.mubr.msk.f32.gmra.mxu0 %vm1314_vm0, %v11064_v36 }
 0x1e1   : > { %v10472_v48 = vpop.f32.mrf.mxu1  ;;  %10807 = vmatmul.mubr.msk.f32.gmra.mxu1 %vm1314_vm0, %v11065_v31  ;;  %v13841_v35 = vadd.f32 %v4968_v55, %v4853_v63  ;;  %v4856_v22 = vadd.f32 %v10416_v23, %v13570_v43  ;;  %10753 = vmatprep.mubr.msk.f32.mxu0 %vm1314_vm0, %v11066_v28  ;;  %v11072_v31 = vld [vmem:[%s11218_s9 + $0x58] sm:$0xff]  ;;  %v11074_v28 = vld [vmem:[%s11218_s9 + $0x60] sm:$0xff] }
 0x1e2   : > { %10809 = vmatprep.mubr.msk.f32.mxu1 %vm1314_vm0, %v11067_v0  ;;  %v4712_v10 = vpop.f32.mrf.mxu0  ;;  %10853 = vmatpush3.msra.mxu0 %v9216_v42 }
 0x1e3   : > { %v4978_v29 = vpop.f32.mrf.mxu1  ;;  %10909 = vmatpush3.msra.mxu1 %v9251_v45  ;;  %v13848_v26 = vadd.f32 %v10472_v48, %v4856_v22  ;;  %v4855_v25 = vadd.f32 %v4712_v10, %v13589_v30  ;;  %10854 = vmatprep.subr.mxu0 %v9215_v14  ;;  %v11070_v45 = vld [vmem:[%s11218_s9 + $0x50] sm:$0xff]  ;;  %v11073_v22 = vld [vmem:[%s11227_s12 + $0x58] sm:$0xff] }
 0x1e4   : > { %10910 = vmatprep.subr.mxu1 %v9250_v38  ;;  %v10419_v43 = vpop.f32.mrf.mxu0  ;;  %10754 = vmatmul.mubr.msk.f32.gmra.mxu0 %vm1314_vm0, %v11068_v13  ;;  %v11071_v30 = vld [vmem:[%s11227_s12 + $0x50] sm:$0xff]  ;;  %v11076_v13 = vld [vmem:[%s11218_s9 + $0x68] sm:$0xff] }
 0x1e5   : > { %v10475_v40 = vpop.f32.mrf.mxu1  ;;  %10810 = vmatmul.mubr.msk.f32.gmra.mxu1 %vm1314_vm0, %v11069_v24  ;;  %v13855_v7 = vadd.f32 %v4978_v29, %v4855_v25  ;;  %v4858_v42 = vadd.f32 %v10419_v43, %v13596_v41  ;;  %10756 = vmatprep.mubr.msk.f32.mxu0 %vm1314_vm0, %v11070_v45  ;;  %v11078_v45 = vld [vmem:[%s11218_s9 + $0x70] sm:$0xff] }
 0x1e6   : > { %10812 = vmatprep.mubr.msk.f32.mxu1 %vm1314_vm0, %v11071_v30  ;;  %v4722_v55 = vpop.f32.mrf.mxu0  ;;  %10855 = vmatpush3.msra.mxu0 %v9215_v14  ;;  %v11079_v30 = vld [vmem:[%s11227_s12 + $0x70] sm:$0xff] }
 0x1e7   : > { %v4988_v63 = vpop.f32.mrf.mxu1  ;;  %10911 = vmatpush3.msra.mxu1 %v9250_v38  ;;  %v13862_v23 = vadd.f32 %v10475_v40, %v4858_v42  ;;  %v4857_v48 = vadd.f32 %v4722_v55, %v13607_v50  ;;  %10960 = vmatprep.subr.mxu0 %v15903_v17  ;;  %v11075_v50 = vld [vmem:[%s11227_s12 + $0x60] sm:$0xff] }
 0x1e8   : > { %10971 = vmatprep.subr.mxu1 %v15903_v17  ;;  %v10422_v41 = vpop.f32.mrf.mxu0  ;;  %10757 = vmatmul.mubr.msk.f32.gmra.mxu0 %vm1314_vm0, %v11072_v31  ;;  %v11080_v31 = vld [vmem:[%s11218_s9 + $0x78] sm:$0xff] }
 0x1e9   : > { %v10478_v36 = vpop.f32.mrf.mxu1  ;;  %10813 = vmatmul.mubr.msk.f32.gmra.mxu1 %vm1314_vm0, %v11073_v22  ;;  %v13871_v14 = vadd.f32 %v4988_v63, %v4857_v48  ;;  %v4860_v38 = vadd.f32 %v10422_v41, %v13614_v53  ;;  %10759 = vmatprep.mubr.msk.f32.mxu0 %vm1314_vm0, %v11074_v28  ;;  %v11077_v53 = vld [vmem:[%s11227_s12 + $0x68] sm:$0xff]  ;;  %v11082_v28 = vld [vmem:[%s11218_s9 + $0x80] sm:$0xff] }
 0x1ea   : > { %10815 = vmatprep.mubr.msk.f32.mxu1 %vm1314_vm0, %v11075_v50  ;;  %v4732_v0 = vpop.f32.mrf.mxu0  ;;  %v11083_v50 = vld [vmem:[%s11227_s12 + $0x80] sm:$0xff] }
 0x1eb   : > { %v4998_v10 = vpop.f32.mrf.mxu1  ;;  %v13878_v29 = vadd.f32 %v10478_v36, %v4860_v38  ;;  %v4859_v25 = vadd.f32 %v4732_v0, %v13623_v47 }
 0x1ec   : > { %v10425_v43 = vpop.f32.mrf.mxu0  ;;  %10760 = vmatmul.mubr.msk.f32.gmra.mxu0 %vm1314_vm0, %v11076_v13  ;;  %v11084_v13 = vld [vmem:[%s11218_s9 + $0x88] sm:$0xff] }
 0x1ed   : > { %v10481_v40 = vpop.f32.mrf.mxu1  ;;  %10816 = vmatmul.mubr.msk.f32.gmra.mxu1 %vm1314_vm0, %v11077_v53  ;;  %v13885_v24 = vadd.f32 %v4998_v10, %v4859_v25  ;;  %v4862_v42 = vadd.f32 %v10425_v43, %v13630_v6  ;;  %10762 = vmatprep.mubr.msk.f32.mxu0 %vm1314_vm0, %v11078_v45  ;;  %v11081_v6 = vld [vmem:[%s11227_s12 + $0x78] sm:$0xff]  ;;  %v11086_v45 = vld [vmem:[%s11218_s9 + $0x90] sm:$0xff] }
 0x1ee   : > { %10818 = vmatprep.mubr.msk.f32.mxu1 %vm1314_vm0, %v11079_v30  ;;  %v4742_v47 = vpop.f32.mrf.mxu0  ;;  %v11087_v30 = vld [vmem:[%s11227_s12 + $0x90] sm:$0xff] }
 0x1ef   : > { %v5008_v55 = vpop.f32.mrf.mxu1  ;;  %v13892_v63 = vadd.f32 %v10481_v40, %v4862_v42  ;;  %v4861_v48 = vadd.f32 %v4742_v47, %v13639_v34 }
 0x1f0   : > { %v10428_v41 = vpop.f32.mrf.mxu0  ;;  %10763 = vmatmul.mubr.msk.f32.gmra.mxu0 %vm1314_vm0, %v11080_v31  ;;  %v11088_v31 = vld [vmem:[%s11218_s9 + $0x98] sm:$0xff] }
 0x1f1   : > { %v10484_v36 = vpop.f32.mrf.mxu1  ;;  %10819 = vmatmul.mubr.msk.f32.gmra.mxu1 %vm1314_vm0, %v11081_v6  ;;  %v13899_v22 = vadd.f32 %v5008_v55, %v4861_v48  ;;  %v4864_v38 = vadd.f32 %v10428_v41, %v13646_v57  ;;  %10765 = vmatprep.mubr.msk.f32.mxu0 %vm1314_vm0, %v11082_v28  ;;  %v11085_v57 = vld [vmem:[%s11227_s12 + $0x88] sm:$0xff]  ;;  %v11090_v28 = vld [vmem:[%s11218_s9 + $0xa0] sm:$0xff] }
 0x1f2   : > { %10821 = vmatprep.mubr.msk.f32.mxu1 %vm1314_vm0, %v11083_v50  ;;  %v4752_v34 = vpop.f32.mrf.mxu0  ;;  %v11091_v50 = vld [vmem:[%s11227_s12 + $0xa0] sm:$0xff] }
 0x1f3   : > { %v5018_v0 = vpop.f32.mrf.mxu1  ;;  %v13906_v10 = vadd.f32 %v10484_v36, %v4864_v38  ;;  %v4863_v25 = vadd.f32 %v4752_v34, %v13655_v52 }
 0x1f4   : > { %v10431_v43 = vpop.f32.mrf.mxu0  ;;  %10766 = vmatmul.mubr.msk.f32.gmra.mxu0 %vm1314_vm0, %v11084_v13  ;;  %v11092_v13 = vld [vmem:[%s11218_s9 + $0xa8] sm:$0xff] }
 0x1f5   : > { %v10487_v40 = vpop.f32.mrf.mxu1  ;;  %10822 = vmatmul.mubr.msk.f32.gmra.mxu1 %vm1314_vm0, %v11085_v57  ;;  %v13913_v53 = vadd.f32 %v5018_v0, %v4863_v25  ;;  %v4866_v42 = vadd.f32 %v10431_v43, %v13662_v39  ;;  %10768 = vmatprep.mubr.msk.f32.mxu0 %vm1314_vm0, %v11086_v45  ;;  %v11089_v39 = vld [vmem:[%s11227_s12 + $0x98] sm:$0xff]  ;;  %v11094_v45 = vld [vmem:[%s11218_s9 + $0xb0] sm:$0xff] }
 0x1f6   : > { %10824 = vmatprep.mubr.msk.f32.mxu1 %vm1314_vm0, %v11087_v30  ;;  %v4762_v52 = vpop.f32.mrf.mxu0  ;;  %v11095_v30 = vld [vmem:[%s11227_s12 + $0xb0] sm:$0xff] }
 0x1f7   : > { %v5028_v47 = vpop.f32.mrf.mxu1  ;;  %v13920_v55 = vadd.f32 %v10487_v40, %v4866_v42  ;;  %v4865_v48 = vadd.f32 %v4762_v52, %v13671_v60 }
 0x1f8   : > { %v10434_v41 = vpop.f32.mrf.mxu0  ;;  %10769 = vmatmul.mubr.msk.f32.gmra.mxu0 %vm1314_vm0, %v11088_v31  ;;  %v11096_v31 = vld [vmem:[%s11218_s9 + $0xb8] sm:$0xff] }
 0x1f9   : > { %v10490_v36 = vpop.f32.mrf.mxu1  ;;  %10825 = vmatmul.mubr.msk.f32.gmra.mxu1 %vm1314_vm0, %v11089_v39  ;;  %v13927_v6 = vadd.f32 %v5028_v47, %v4865_v48  ;;  %v4868_v38 = vadd.f32 %v10434_v41, %v13678_v5  ;;  %10771 = vmatprep.mubr.msk.f32.mxu0 %vm1314_vm0, %v11090_v28  ;;  %v11093_v5 = vld [vmem:[%s11227_s12 + $0xa8] sm:$0xff]  ;;  %v11098_v28 = vld [vmem:[%s11218_s9 + $0xc0] sm:$0xff] }
 0x1fa   : > { %10827 = vmatprep.mubr.msk.f32.mxu1 %vm1314_vm0, %v11091_v50  ;;  %v4772_v60 = vpop.f32.mrf.mxu0  ;;  %v11099_v50 = vld [vmem:[%s11227_s12 + $0xc0] sm:$0xff] }
 0x1fb   : > { %v5038_v34 = vpop.f32.mrf.mxu1  ;;  %v13934_v0 = vadd.f32 %v10490_v36, %v4868_v38  ;;  %v4867_v25 = vadd.f32 %v4772_v60, %v13687_v20 }
 0x1fc   : > { %v10437_v43 = vpop.f32.mrf.mxu0  ;;  %10772 = vmatmul.mubr.msk.f32.gmra.mxu0 %vm1314_vm0, %v11092_v13  ;;  %v11100_v13 = vld [vmem:[%s11218_s9 + $0xc8] sm:$0xff] }
 0x1fd   : > { %v10493_v40 = vpop.f32.mrf.mxu1  ;;  %10828 = vmatmul.mubr.msk.f32.gmra.mxu1 %vm1314_vm0, %v11093_v5  ;;  %v13941_v57 = vadd.f32 %v5038_v34, %v4867_v25  ;;  %v4870_v42 = vadd.f32 %v10437_v43, %v13694_v11  ;;  %10774 = vmatprep.mubr.msk.f32.mxu0 %vm1314_vm0, %v11094_v45  ;;  %v11097_v11 = vld [vmem:[%s11227_s12 + $0xb8] sm:$0xff]  ;;  %v11102_v45 = vld [vmem:[%s11218_s9 + $0xd0] sm:$0xff] }
 0x1fe   : > { %10830 = vmatprep.mubr.msk.f32.mxu1 %vm1314_vm0, %v11095_v30  ;;  %v4782_v20 = vpop.f32.mrf.mxu0  ;;  %v11103_v30 = vld [vmem:[%s11227_s12 + $0xd0] sm:$0xff] }
 0x1ff   : > { %v5048_v52 = vpop.f32.mrf.mxu1  ;;  %v13948_v47 = vadd.f32 %v10493_v40, %v4870_v42  ;;  %v4869_v48 = vadd.f32 %v4782_v20, %v13703_v49 }
 0x200   : > { %v10440_v41 = vpop.f32.mrf.mxu0  ;;  %10775 = vmatmul.mubr.msk.f32.gmra.mxu0 %vm1314_vm0, %v11096_v31  ;;  %v11104_v31 = vld [vmem:[%s11218_s9 + $0xd8] sm:$0xff] }
 0x201   : > { %v10496_v36 = vpop.f32.mrf.mxu1  ;;  %10831 = vmatmul.mubr.msk.f32.gmra.mxu1 %vm1314_vm0, %v11097_v11  ;;  %v13955_v39 = vadd.f32 %v5048_v52, %v4869_v48  ;;  %v4872_v38 = vadd.f32 %v10440_v41, %v13710_v19  ;;  %10777 = vmatprep.mubr.msk.f32.mxu0 %vm1314_vm0, %v11098_v28  ;;  %v11101_v19 = vld [vmem:[%s11227_s12 + $0xc8] sm:$0xff]  ;;  %v11106_v28 = vld [vmem:[%s11218_s9 + $0xe0] sm:$0xff] }
 0x202   : > { %10833 = vmatprep.mubr.msk.f32.mxu1 %vm1314_vm0, %v11099_v50  ;;  %v4792_v49 = vpop.f32.mrf.mxu0  ;;  %v11107_v50 = vld [vmem:[%s11227_s12 + $0xe0] sm:$0xff] }
 0x203   : > { %v5058_v60 = vpop.f32.mrf.mxu1  ;;  %v13962_v34 = vadd.f32 %v10496_v36, %v4872_v38  ;;  %v4871_v25 = vadd.f32 %v4792_v49, %v13719_v37 }
 0x204   : > { %v10443_v43 = vpop.f32.mrf.mxu0  ;;  %10778 = vmatmul.mubr.msk.f32.gmra.mxu0 %vm1314_vm0, %v11100_v13  ;;  %v11108_v13 = vld [vmem:[%s11218_s9 + $0xe8] sm:$0xff] }
 0x205   : > { %v10499_v40 = vpop.f32.mrf.mxu1  ;;  %10834 = vmatmul.mubr.msk.f32.gmra.mxu1 %vm1314_vm0, %v11101_v19  ;;  %v13969_v5 = vadd.f32 %v5058_v60, %v4871_v25  ;;  %v4874_v42 = vadd.f32 %v10443_v43, %v13726_v62  ;;  %10780 = vmatprep.mubr.msk.f32.mxu0 %vm1314_vm0, %v11102_v45  ;;  %v11105_v62 = vld [vmem:[%s11227_s12 + $0xd8] sm:$0xff]  ;;  %v11110_v45 = vld [vmem:[%s11218_s9 + $0xf0] sm:$0xff] }
 0x206   : > { %10836 = vmatprep.mubr.msk.f32.mxu1 %vm1314_vm0, %v11103_v30  ;;  %v4802_v37 = vpop.f32.mrf.mxu0  ;;  %v11111_v30 = vld [vmem:[%s11227_s12 + $0xf0] sm:$0xff] }
 0x207   : > { %v5068_v20 = vpop.f32.mrf.mxu1  ;;  %v13976_v52 = vadd.f32 %v10499_v40, %v4874_v42  ;;  %v4873_v48 = vadd.f32 %v4802_v37, %v13735_v9 }
 0x208   : > { %v10446_v41 = vpop.f32.mrf.mxu0  ;;  %10781 = vmatmul.mubr.msk.f32.gmra.mxu0 %vm1314_vm0, %v11104_v31  ;;  %v11112_v31 = vld [vmem:[%s11218_s9 + $0xf8] sm:$0xff] }
 0x209   : > { %v10502_v36 = vpop.f32.mrf.mxu1  ;;  %10837 = vmatmul.mubr.msk.f32.gmra.mxu1 %vm1314_vm0, %v11105_v62  ;;  %v13983_v11 = vadd.f32 %v5068_v20, %v4873_v48  ;;  %v4876_v38 = vadd.f32 %v10446_v41, %v13748_v8  ;;  %10783 = vmatprep.mubr.msk.f32.mxu0 %vm1314_vm0, %v11106_v28  ;;  %v11109_v8 = vld [vmem:[%s11227_s12 + $0xe8] sm:$0xff]  ;;  %v11113_v62 = vld [vmem:[%s11227_s12 + $0xf8] sm:$0xff] }
 0x20a   : > { %10839 = vmatprep.mubr.msk.f32.mxu1 %vm1314_vm0, %v11107_v50  ;;  %v4812_v9 = vpop.f32.mrf.mxu0 }
 0x20b   : > { %v5078_v49 = vpop.f32.mrf.mxu1  ;;  %v13990_v60 = vadd.f32 %v10502_v36, %v4876_v38  ;;  %v4875_v25 = vadd.f32 %v4812_v9, %v13756_v21 }
 0x20c   : > { %v10449_v43 = vpop.f32.mrf.mxu0  ;;  %10784 = vmatmul.mubr.msk.f32.gmra.mxu0 %vm1314_vm0, %v11108_v13 }
 0x20d   : > { %v10505_v40 = vpop.f32.mrf.mxu1  ;;  %10840 = vmatmul.mubr.msk.f32.gmra.mxu1 %vm1314_vm0, %v11109_v8  ;;  %v13997_v19 = vadd.f32 %v5078_v49, %v4875_v25  ;;  %v4878_v42 = vadd.f32 %v10449_v43, %v13762_v46  ;;  %10786 = vmatprep.mubr.msk.f32.mxu0 %vm1314_vm0, %v11110_v45  ;;  %v15904_v49 = vld [vmem:[#allocation104_spill] sm:$0xff] }
 0x20e   : > { %10842 = vmatprep.mubr.msk.f32.mxu1 %vm1314_vm0, %v11111_v30  ;;  %v4822_v21 = vpop.f32.mrf.mxu0  ;;  %v7244_v25 = vmul.f32 %v15904_v49, %v12154_v12  ;;  %v7276_v43 = vmul.f32 %v15904_v49, %v12170_v3 }
 0x20f   : > { %v5088_v37 = vpop.f32.mrf.mxu1  ;;  %v14004_v20 = vadd.f32 %v10505_v40, %v4878_v42  ;;  %v4877_v48 = vadd.f32 %v4822_v21, %v13769_v54 }
 0x210   : > { %v10452_v41 = vpop.f32.mrf.mxu0  ;;  %10787 = vmatmul.mubr.msk.f32.gmra.mxu0 %vm1314_vm0, %v11112_v31 }
 0x211   : > { %v10508_v36 = vpop.f32.mrf.mxu1  ;;  %10843 = vmatmul.mubr.msk.f32.gmra.mxu1 %vm1314_vm0, %v11113_v62  ;;  %v14011_v46 = vadd.f32 %v5088_v37, %v4877_v48  ;;  %v4880_v38 = vadd.f32 %v10452_v41, %v13774_v18  ;;  %10789 = vmatprep.mubr.f32.mxu0 %v15903_v17  ;;  %v15908_v62 = vld [vmem:[#allocation52_spill] sm:$0xff] }
 0x212   : > { %10845 = vmatprep.mubr.f32.mxu1 %v15903_v17  ;;  %v4832_v28 = vpop.f32.mrf.mxu0 }
 0x213   : > { %v5098_v50 = vpop.f32.mrf.mxu1  ;;  %v14016_v9 = vadd.f32 %v10508_v36, %v4880_v38  ;;  %v4879_v54 = vadd.f32 %v4832_v28, %v13779_v1 }
 0x214   : > { %v10455_v40 = vpop.f32.mrf.mxu0  ;;  %10790 = vmatmul.mubr.f32.gmra.mxu0 %v15903_v17 }
 0x215   : > { %v10511_v13 = vpop.f32.mrf.mxu1  ;;  %10846 = vmatmul.mubr.f32.gmra.mxu1 %v15903_v17  ;;  %v14025_v18 = vadd.f32 %v5098_v50, %v4879_v54  ;;  %v4882_v8 = vadd.f32 %v10455_v40, %v13786_v15  ;;  %10856 = vmatprep.mubr.msk.f32.mxu0 %vm1314_vm0, %v12139_v32  ;;  %v7246_v15 = vmul.f32 %v12127_v51, %v12205_v59  ;;  %v15909_v50 = vld [vmem:[#allocation41_spill] sm:$0xff] }
 0x216   : > { %10912 = vmatprep.mubr.msk.f32.mxu1 %vm1314_vm0, %v12144_v2  ;;  %v4842_v12 = vpop.f32.mrf.mxu0  ;;  %v7278_v32 = vmul.f32 %v12127_v51, %v12212_v33  ;;  %v15906_v51 = vld [vmem:[#allocation47_spill] sm:$0xff]  ;;  %v15907_v33 = vld [vmem:[#allocation37_spill] sm:$0xff] }
 0x217   : > { %v5108_v1 = vpop.f32.mrf.mxu1  ;;  %v14032_v42 = vadd.f32 %v10511_v13, %v4882_v8  ;;  %v4881_v3 = vadd.f32 %v4842_v12, %v13799_v44  ;;  %v15905_v44 = vld [vmem:[#allocation34_spill] sm:$0xff]  ;;  %v15911_v8 = vld [vmem:[#allocation109_spill] sm:$0xff] }
 0x218   : > { %v10522_v45 = vpop.f32.mrf.mxu0  ;;  %10857 = vmatmul.mubr.msk.f32.vlgmr.msra.gmra.mxu0 %vm1314_vm0, %v7244_v25 }
 0x219   : > { %v10578_v30 = vpop.f32.mrf.mxu1  ;;  %10913 = vmatmul.mubr.msk.f32.vlgmr.msra.gmra.mxu1 %vm1314_vm0, %v7276_v43  ;;  %v14041_v21 = vadd.f32 %v5108_v1, %v4881_v3  ;;  %v5550_v2 = vadd.f32 %v10522_v45, %v13808_v56  ;;  %10859 = vmatprep.mubr.msk.f32.mxu0 %vm1314_vm0, %v12180_v27  ;;  %v7248_v56 = vmul.f32 %v15907_v33, %v15906_v51  ;;  %v15913_v1 = vld [vmem:[#allocation111_spill] sm:$0xff]  ;;  %v15918_v51 = vld [vmem:[#allocation116_spill] sm:$0xff] }
 0x21a   : > { %10915 = vmatprep.mubr.msk.f32.mxu1 %vm1314_vm0, %v15905_v44  ;;  %v5390_v37 = vpop.f32.mrf.mxu0  ;;  %v7280_v27 = vmul.f32 %v15907_v33, %v15908_v62 }
 0x21b   : > { %v5748_v48 = vpop.f32.mrf.mxu1  ;;  %v14048_v41 = vadd.f32 %v10578_v30, %v5550_v2  ;;  %v5549_v36 = vadd.f32 %v5390_v37, %v13821_v16  ;;  %v15910_v16 = vld [vmem:[#allocation46_spill] sm:$0xff] }
 0x21c   : > { %v10525_v59 = vpop.f32.mrf.mxu0  ;;  %10860 = vmatmul.mubr.msk.f32.gmra.mxu0 %vm1314_vm0, %v7246_v15  ;;  %v15914_v15 = vld [vmem:[#allocation77_spill] sm:$0xff] }
 0x21d   : > { %v10581_v31 = vpop.f32.mrf.mxu1  ;;  %10916 = vmatmul.mubr.msk.f32.gmra.mxu1 %vm1314_vm0, %v7278_v32  ;;  %v14057_v38 = vadd.f32 %v5748_v48, %v5549_v36  ;;  %v5552_v28 = vadd.f32 %v10525_v59, %v13828_v4  ;;  %10862 = vmatprep.mubr.msk.f32.mxu0 %vm1314_vm0, %v15909_v50  ;;  %v15912_v4 = vld [vmem:[#allocation38_spill] sm:$0xff] }
 0x21e   : > { %10918 = vmatprep.mubr.msk.f32.mxu1 %vm1314_vm0, %v15910_v16  ;;  %v5400_v54 = vpop.f32.mrf.mxu0  ;;  %v7250_v12 = vmul.f32 %v15912_v4, %v15911_v8  ;;  %v7282_v3 = vmul.f32 %v15912_v4, %v15913_v1  ;;  %v15916_v59 = vld [vmem:[#allocation114_spill] sm:$0xff]  ;;  %v15923_v8 = vld [vmem:[#allocation121_spill] sm:$0xff] }
 0x21f   : > { %v5758_v49 = vpop.f32.mrf.mxu1  ;;  %v14064_v25 = vadd.f32 %v10581_v31, %v5552_v28  ;;  %v5551_v43 = vadd.f32 %v5400_v54, %v13841_v35  ;;  %v15915_v35 = vld [vmem:[#allocation79_spill] sm:$0xff] }
 0x220   : > { %v10528_v40 = vpop.f32.mrf.mxu0  ;;  %10863 = vmatmul.mubr.msk.f32.gmra.mxu0 %vm1314_vm0, %v7248_v56 }
 0x221   : > { %v10584_v13 = vpop.f32.mrf.mxu1  ;;  %10919 = vmatmul.mubr.msk.f32.gmra.mxu1 %vm1314_vm0, %v7280_v27  ;;  %v14073_v45 = vadd.f32 %v5758_v49, %v5551_v43  ;;  %v5554_v30 = vadd.f32 %v10528_v40, %v13848_v26  ;;  %10865 = vmatprep.mubr.msk.f32.mxu0 %vm1314_vm0, %v15914_v15  ;;  %v15917_v26 = vld [vmem:[#allocation50_spill] sm:$0xff]  ;;  %v15919_v27 = vld [vmem:[#allocation112_spill] sm:$0xff]  ;;  %v15921_v40 = vld [vmem:[#allocation119_spill] sm:$0xff] }
 0x222   : > { %10921 = vmatprep.mubr.msk.f32.mxu1 %vm1314_vm0, %v15915_v35  ;;  %v5410_v32 = vpop.f32.mrf.mxu0  ;;  %v7252_v31 = vmul.f32 %v15917_v26, %v15916_v59  ;;  %v7284_v33 = vmul.f32 %v15917_v26, %v15918_v51  ;;  %v15928_v59 = vld [vmem:[#allocation126_spill] sm:$0xff] }
 0x223   : > { %v5768_v2 = vpop.f32.mrf.mxu1  ;;  %v14080_v44 = vadd.f32 %v10584_v13, %v5554_v30  ;;  %v5553_v37 = vadd.f32 %v5410_v32, %v13855_v7  ;;  %v15920_v7 = vld [vmem:[#allocation113_spill] sm:$0xff] }
 0x224   : > { %v10531_v48 = vpop.f32.mrf.mxu0  ;;  %10866 = vmatmul.mubr.msk.f32.gmra.mxu0 %vm1314_vm0, %v7250_v12 }
 0x225   : > { %v10587_v36 = vpop.f32.mrf.mxu1  ;;  %10922 = vmatmul.mubr.msk.f32.gmra.mxu1 %vm1314_vm0, %v7282_v3  ;;  %v14089_v56 = vadd.f32 %v5768_v2, %v5553_v37  ;;  %v5556_v62 = vadd.f32 %v10531_v48, %v13862_v23  ;;  %10868 = vmatprep.mubr.msk.f32.mxu0 %vm1314_vm0, %v15919_v27  ;;  %v15922_v23 = vld [vmem:[#allocation110_spill] sm:$0xff]  ;;  %v15924_v3 = vld [vmem:[#allocation117_spill] sm:$0xff]  ;;  %v15926_v48 = vld [vmem:[#allocation124_spill] sm:$0xff] }
 0x226   : > { %10924 = vmatprep.mubr.msk.f32.mxu1 %vm1314_vm0, %v15920_v7  ;;  %v5420_v28 = vpop.f32.mrf.mxu0  ;;  %v7254_v13 = vmul.f32 %v15922_v23, %v15921_v40  ;;  %v7286_v4 = vmul.f32 %v15922_v23, %v15923_v8  ;;  %v15933_v40 = vld [vmem:[#allocation130_spill] sm:$0xff] }
 0x227   : > { %v5778_v50 = vpop.f32.mrf.mxu1  ;;  %v14096_v16 = vadd.f32 %v10587_v36, %v5556_v62  ;;  %v5555_v54 = vadd.f32 %v5420_v28, %v13871_v14  ;;  %v15925_v14 = vld [vmem:[#allocation118_spill] sm:$0xff] }
 0x228   : > { %v10534_v49 = vpop.f32.mrf.mxu0  ;;  %10869 = vmatmul.mubr.msk.f32.gmra.mxu0 %vm1314_vm0, %v7252_v31 }
 0x229   : > { %v10590_v43 = vpop.f32.mrf.mxu1  ;;  %10925 = vmatmul.mubr.msk.f32.gmra.mxu1 %vm1314_vm0, %v7284_v33  ;;  %v14105_v12 = vadd.f32 %v5778_v50, %v5555_v54  ;;  %v5558_v1 = vadd.f32 %v10534_v49, %v13878_v29  ;;  %10871 = vmatprep.mubr.msk.f32.mxu0 %vm1314_vm0, %v15924_v3  ;;  %v15927_v29 = vld [vmem:[#allocation115_spill] sm:$0xff]  ;;  %v15929_v33 = vld [vmem:[#allocation122_spill] sm:$0xff] }
 0x22a   : > { %10927 = vmatprep.mubr.msk.f32.mxu1 %vm1314_vm0, %v15925_v14  ;;  %v5430_v30 = vpop.f32.mrf.mxu0  ;;  %v7256_v36 = vmul.f32 %v15927_v29, %v15926_v48  ;;  %v7288_v26 = vmul.f32 %v15927_v29, %v15928_v59  ;;  %v15931_v49 = vld [vmem:[#allocation51_spill] sm:$0xff]  ;;  %v15938_v48 = vld [vmem:[#allocation132_spill] sm:$0xff] }
 0x22b   : > { %v5788_v15 = vpop.f32.mrf.mxu1  ;;  %v14112_v35 = vadd.f32 %v10590_v43, %v5558_v1  ;;  %v5557_v32 = vadd.f32 %v5430_v30, %v13885_v24  ;;  %v15930_v24 = vld [vmem:[#allocation123_spill] sm:$0xff] }
 0x22c   : > { %v10537_v2 = vpop.f32.mrf.mxu0  ;;  %10872 = vmatmul.mubr.msk.f32.gmra.mxu0 %vm1314_vm0, %v7254_v13 }
 0x22d   : > { %v10593_v37 = vpop.f32.mrf.mxu1  ;;  %10928 = vmatmul.mubr.msk.f32.gmra.mxu1 %vm1314_vm0, %v7286_v4  ;;  %v14121_v31 = vadd.f32 %v5788_v15, %v5557_v32  ;;  %v5560_v51 = vadd.f32 %v10537_v2, %v13892_v63  ;;  %10874 = vmatprep.mubr.msk.f32.mxu0 %vm1314_vm0, %v15929_v33  ;;  %v15932_v63 = vld [vmem:[#allocation120_spill] sm:$0xff]  ;;  %v15934_v4 = vld [vmem:[#allocation127_spill] sm:$0xff]  ;;  %v15936_v2 = vld [vmem:[#allocation58_spill] sm:$0xff] }
 0x22e   : > { %10930 = vmatprep.mubr.msk.f32.mxu1 %vm1314_vm0, %v15930_v24  ;;  %v5440_v62 = vpop.f32.mrf.mxu0  ;;  %v7258_v43 = vmul.f32 %v15932_v63, %v15931_v49  ;;  %v7290_v23 = vmul.f32 %v15932_v63, %v15933_v40  ;;  %v15943_v49 = vld [vmem:[#allocation70_spill] sm:$0xff] }
 0x22f   : > { %v5798_v27 = vpop.f32.mrf.mxu1  ;;  %v14128_v7 = vadd.f32 %v10593_v37, %v5560_v51  ;;  %v5559_v28 = vadd.f32 %v5440_v62, %v13899_v22  ;;  %v15935_v22 = vld [vmem:[#allocation128_spill] sm:$0xff] }
 0x230   : > { %v10540_v50 = vpop.f32.mrf.mxu0  ;;  %10875 = vmatmul.mubr.msk.f32.gmra.mxu0 %vm1314_vm0, %v7256_v36 }
 0x231   : > { %v10596_v54 = vpop.f32.mrf.mxu1  ;;  %10931 = vmatmul.mubr.msk.f32.gmra.mxu1 %vm1314_vm0, %v7288_v26  ;;  %v14137_v13 = vadd.f32 %v5798_v27, %v5559_v28  ;;  %v5562_v8 = vadd.f32 %v10540_v50, %v13906_v10  ;;  %10877 = vmatprep.mubr.msk.f32.mxu0 %vm1314_vm0, %v15934_v4  ;;  %v15937_v10 = vld [vmem:[#allocation125_spill] sm:$0xff]  ;;  %v15939_v26 = vld [vmem:[#allocation54_spill] sm:$0xff]  ;;  %v15941_v50 = vld [vmem:[#allocation67_spill] sm:$0xff] }
 0x232   : > { %10933 = vmatprep.mubr.msk.f32.mxu1 %vm1314_vm0, %v15935_v22  ;;  %v5450_v1 = vpop.f32.mrf.mxu0  ;;  %v7260_v37 = vmul.f32 %v15937_v10, %v15936_v2  ;;  %v7292_v29 = vmul.f32 %v15937_v10, %v15938_v48  ;;  %v15950_v48 = vld [vmem:[#allocation78_spill] sm:$0xff] }
 0x233   : > { %v5808_v3 = vpop.f32.mrf.mxu1  ;;  %v14144_v14 = vadd.f32 %v10596_v54, %v5562_v8  ;;  %v5561_v30 = vadd.f32 %v5450_v1, %v13913_v53  ;;  %v15940_v53 = vld [vmem:[#allocation131_spill] sm:$0xff] }
 0x234   : > { %v10543_v15 = vpop.f32.mrf.mxu0  ;;  %10878 = vmatmul.mubr.msk.f32.gmra.mxu0 %vm1314_vm0, %v7258_v43 }
 0x235   : > { %v10599_v32 = vpop.f32.mrf.mxu1  ;;  %10934 = vmatmul.mubr.msk.f32.gmra.mxu1 %vm1314_vm0, %v7290_v23  ;;  %v14153_v36 = vadd.f32 %v5808_v3, %v5561_v30  ;;  %v5564_v59 = vadd.f32 %v10543_v15, %v13920_v55  ;;  %10880 = vmatprep.mubr.msk.f32.mxu0 %vm1314_vm0, %v15939_v26  ;;  %v15942_v55 = vld [vmem:[#allocation129_spill] sm:$0xff]  ;;  %v15944_v23 = vld [vmem:[#allocation62_spill] sm:$0xff] }
 0x236   : > { %10936 = vmatprep.mubr.msk.f32.mxu1 %vm1314_vm0, %v15940_v53  ;;  %v5460_v51 = vpop.f32.mrf.mxu0  ;;  %v7262_v54 = vmul.f32 %v15942_v55, %v15941_v50  ;;  %v7294_v63 = vmul.f32 %v15942_v55, %v15943_v49  ;;  %v15946_v30 = vld [vmem:[#allocation133_spill] sm:$0xff]  ;;  %v15954_v49 = vld [vmem:[#allocation86_spill] sm:$0xff] }
 0x237   : > { %v5818_v33 = vpop.f32.mrf.mxu1  ;;  %v14160_v24 = vadd.f32 %v10599_v32, %v5564_v59  ;;  %v5563_v62 = vadd.f32 %v5460_v51, %v13927_v6  ;;  %v15945_v6 = vld [vmem:[#allocation66_spill] sm:$0xff]  ;;  %v15948_v32 = vld [vmem:[#allocation135_spill] sm:$0xff] }
 0x238   : > { %v10546_v27 = vpop.f32.mrf.mxu0  ;;  %10881 = vmatmul.mubr.msk.f32.gmra.mxu0 %vm1314_vm0, %v7260_v37  ;;  %v15949_v37 = vld [vmem:[#allocation74_spill] sm:$0xff] }
 0x239   : > { %v10602_v28 = vpop.f32.mrf.mxu1  ;;  %10937 = vmatmul.mubr.msk.f32.gmra.mxu1 %vm1314_vm0, %v7292_v29  ;;  %v14169_v43 = vadd.f32 %v5818_v33, %v5563_v62  ;;  %v5566_v40 = vadd.f32 %v10546_v27, %v13934_v0  ;;  %10883 = vmatprep.mubr.msk.f32.mxu0 %vm1314_vm0, %v15944_v23  ;;  %v15947_v0 = vld [vmem:[#allocation59_spill] sm:$0xff] }
 0x23a   : > { %10939 = vmatprep.mubr.msk.f32.mxu1 %vm1314_vm0, %v15945_v6  ;;  %v14176_v8 = vpop.f32.mrf.mxu0  ;;  %v7264_v15 = vmul.f32 %v15947_v0, %v15946_v30  ;;  %v7296_v2 = vmul.f32 %v15947_v0, %v15948_v32  ;;  %v15951_v62 = vld [vmem:[#allocation83_spill] sm:$0xff]  ;;  %v15956_v30 = vld [vmem:[#allocation97_spill] sm:$0xff] }
 0x23b   : > { %v14178_v4 = vpop.f32.mrf.mxu1  ;;  %v14180_v22 = vadd.f32 %v10602_v28, %v5566_v40  ;;  %v15953_v28 = vld [vmem:[#allocation136_spill] sm:$0xff] }
 0x23c   : > { %v10549_v1 = vpop.f32.mrf.mxu0  ;;  %10884 = vmatmul.mubr.msk.f32.gmra.mxu0 %vm1314_vm0, %v7262_v54 }
 0x23d   : > { %v10605_v3 = vpop.f32.mrf.mxu1  ;;  %10940 = vmatmul.mubr.msk.f32.gmra.mxu1 %vm1314_vm0, %v7294_v63  ;;  %v5568_v10 = vadd.f32 %v10549_v1, %v13948_v47  ;;  %10886 = vmatprep.mubr.msk.f32.mxu0 %vm1314_vm0, %v15949_v37  ;;  %v15952_v47 = vld [vmem:[#allocation71_spill] sm:$0xff]  ;;  %v15959_v37 = vld [vmem:[#allocation138_spill] sm:$0xff] }
 0x23e   : > { %10942 = vmatprep.mubr.msk.f32.mxu1 %vm1314_vm0, %v15950_v48  ;;  %v5480_v29 = vpop.f32.mrf.mxu0  ;;  %v7266_v27 = vmul.f32 %v15952_v47, %v15951_v62  ;;  %v7298_v50 = vmul.f32 %v15952_v47, %v15953_v28  ;;  %v15961_v62 = vld [vmem:[#allocation140_spill] sm:$0xff] }
 0x23f   : > { %v5838_v59 = vpop.f32.mrf.mxu1  ;;  %v14193_v26 = vadd.f32 %v10605_v3, %v5568_v10  ;;  %v5567_v53 = vadd.f32 %v5480_v29, %v13955_v39  ;;  %v15955_v39 = vld [vmem:[#allocation91_spill] sm:$0xff] }
 0x240   : > { %v10552_v51 = vpop.f32.mrf.mxu0  ;;  %10887 = vmatmul.mubr.msk.f32.gmra.mxu0 %vm1314_vm0, %v7264_v15  ;;  %v15958_v15 = vld [vmem:[#allocation137_spill] sm:$0xff] }
 0x241   : > { %v10608_v33 = vpop.f32.mrf.mxu1  ;;  %10943 = vmatmul.mubr.msk.f32.gmra.mxu1 %vm1314_vm0, %v7296_v2  ;;  %v14202_v55 = vadd.f32 %v5838_v59, %v5567_v53  ;;  %v5570_v54 = vadd.f32 %v10552_v51, %v13962_v34  ;;  %10889 = vmatprep.mubr.msk.f32.mxu0 %vm1314_vm0, %v15954_v49  ;;  %v15957_v34 = vld [vmem:[#allocation134_spill] sm:$0xff]  ;;  %v15964_v49 = vld [vmem:[#allocation143_spill] sm:$0xff] }
 0x242   : > { %10945 = vmatprep.mubr.msk.f32.mxu1 %vm1314_vm0, %v15955_v39  ;;  %v5490_v63 = vpop.f32.mrf.mxu0  ;;  %v7268_v0 = vmul.f32 %v15957_v34, %v15956_v30  ;;  %v7300_v32 = vmul.f32 %v15957_v34, %v15958_v15 }
 0x243   : > { %v5848_v40 = vpop.f32.mrf.mxu1  ;;  %v14209_v23 = vadd.f32 %v10608_v33, %v5570_v54  ;;  %v5569_v6 = vadd.f32 %v5490_v63, %v13969_v5  ;;  %v15960_v5 = vld [vmem:[#allocation139_spill] sm:$0xff] }
 0x244   : > { %v10555_v1 = vpop.f32.mrf.mxu0  ;;  %10890 = vmatmul.mubr.msk.f32.gmra.mxu0 %vm1314_vm0, %v7266_v27  ;;  %v15963_v27 = vld [vmem:[#allocation142_spill] sm:$0xff] }
 0x245   : > { %v10611_v3 = vpop.f32.mrf.mxu1  ;;  %10946 = vmatmul.mubr.msk.f32.gmra.mxu1 %vm1314_vm0, %v7298_v50  ;;  %v14218_v2 = vadd.f32 %v5848_v40, %v5569_v6  ;;  %v5572_v10 = vadd.f32 %v10555_v1, %v13976_v52  ;;  %10892 = vmatprep.mubr.msk.f32.mxu0 %vm1314_vm0, %v15959_v37  ;;  %v15962_v52 = vld [vmem:[#allocation85_spill] sm:$0xff]  ;;  %v15966_v1 = vld [vmem:[#allocation98_spill] sm:$0xff] }
 0x246   : > { %10948 = vmatprep.mubr.msk.f32.mxu1 %vm1314_vm0, %v15960_v5  ;;  %v5500_v48 = vpop.f32.mrf.mxu0  ;;  %v7270_v47 = vmul.f32 %v15962_v52, %v15961_v62  ;;  %v7302_v28 = vmul.f32 %v15962_v52, %v15963_v27  ;;  %v7304_v30 = vmul.f32 %v15966_v1, %v13456_v58 }
 0x247   : > { %v5858_v29 = vpop.f32.mrf.mxu1  ;;  %v14225_v59 = vadd.f32 %v10611_v3, %v5572_v10  ;;  %v5571_v53 = vadd.f32 %v5500_v48, %v13983_v11  ;;  %v15965_v11 = vld [vmem:[#allocation144_spill] sm:$0xff]  ;;  %v7272_v3 = vmul.f32 %v15966_v1, %v13453_v61 }
 0x248   : > { %v10558_v51 = vpop.f32.mrf.mxu0  ;;  %10893 = vmatmul.mubr.msk.f32.gmra.mxu0 %vm1314_vm0, %v7268_v0 }
 0x249   : > { %v10614_v33 = vpop.f32.mrf.mxu1  ;;  %10949 = vmatmul.mubr.msk.f32.gmra.mxu1 %vm1314_vm0, %v7300_v32  ;;  %v14234_v50 = vadd.f32 %v5858_v29, %v5571_v53  ;;  %v5574_v54 = vadd.f32 %v10558_v51, %v13990_v60  ;;  %10895 = vmatprep.mubr.msk.f32.mxu0 %vm1314_vm0, %v15964_v49  ;;  %v15967_v32 = vld [vmem:[#allocation105_spill] sm:$0xff] }
 0x24a   : > { %10951 = vmatprep.mubr.msk.f32.mxu1 %vm1314_vm0, %v15965_v11  ;;  %v5510_v39 = vpop.f32.mrf.mxu0  ;;  %v15969_v29 = vld [vmem:[#allocation141_spill] sm:$0xff] }
 0x24b   : > { %v5868_v63 = vpop.f32.mrf.mxu1  ;;  %v14241_v40 = vadd.f32 %v10614_v33, %v5574_v54  ;;  %v5573_v6 = vadd.f32 %v5510_v39, %v13997_v19  ;;  %v15968_v19 = vld [vmem:[#allocation106_spill] sm:$0xff] }
 0x24c   : > { %v10561_v34 = vpop.f32.mrf.mxu0  ;;  %10896 = vmatmul.mubr.msk.f32.gmra.mxu0 %vm1314_vm0, %v7270_v47 }
 0x24d   : > { %v10617_v60 = vpop.f32.mrf.mxu1  ;;  %10952 = vmatmul.mubr.msk.f32.gmra.mxu1 %vm1314_vm0, %v7302_v28  ;;  %v14250_v0 = vadd.f32 %v5868_v63, %v5573_v6  ;;  %v5576_v15 = vadd.f32 %v10561_v34, %v14004_v20  ;;  %10898 = vmatprep.mubr.msk.f32.mxu0 %vm1314_vm0, %v15967_v32  ;;  %v7274_v20 = vmul.f32 0.0, %v15969_v29 }
 0x24e   : > { %10954 = vmatprep.mubr.msk.f32.mxu1 %vm1314_vm0, %v15968_v19  ;;  %v5520_v61 = vpop.f32.mrf.mxu0 }
 0x24f   : > { %v5878_v10 = vpop.f32.mrf.mxu1  ;;  %v14257_v37 = vadd.f32 %v10617_v60, %v5576_v15  ;;  %v5575_v58 = vadd.f32 %v5520_v61, %v14011_v46 }
 0x250   : > { %v10564_v5 = vpop.f32.mrf.mxu0  ;;  %10899 = vmatmul.mubr.msk.f32.gmra.mxu0 %vm1314_vm0, %v7272_v3 }
 0x251   : > { %v10620_v48 = vpop.f32.mrf.mxu1  ;;  %10955 = vmatmul.mubr.msk.f32.gmra.mxu1 %vm1314_vm0, %v7304_v30  ;;  %v14263_v53 = vadd.f32 %v5878_v10, %v5575_v58  ;;  %v5578_v51 = vadd.f32 %v10564_v5, %v14016_v9  ;;  %10901 = vmatprep.mubr.f32.mxu0 %v15903_v17 }
 0x252   : > { %10957 = vmatprep.mubr.f32.mxu1 %v15903_v17  ;;  %v5530_v33 = vpop.f32.mrf.mxu0 }
 0x253   : > { %v5888_v62 = vpop.f32.mrf.mxu1  ;;  %v14268_v52 = vadd.f32 %v10620_v48, %v5578_v51  ;;  %v5577_v46 = vadd.f32 %v5530_v33, %v14025_v18 }
 0x254   : > { %v10567_v47 = vpop.f32.mrf.mxu0  ;;  %10902 = vmatmul.mubr.msk.f32.gmra.mxu0 %vm1314_vm0, %v7274_v20 }
 0x255   : > { %v10623_v27 = vpop.f32.mrf.mxu1  ;;  %10958 = vmatmul.mubr.msk.f32.gmra.mxu1 %vm1314_vm0, %v7274_v20  ;;  %v14273_v28 = vadd.f32 %v5888_v62, %v5577_v46  ;;  %v5580_v9 = vadd.f32 %v10567_v47, %v14032_v42  ;;  %10968 = vmatprep.mubr.msk.f32.mxu0 %vm11123_vm1, %v15903_v17 }
 0x256   : > { %v5540_v54 = vpop.f32.mrf.mxu0  ;;  %10979 = vmatprep.mubr.msk.f32.mxu1 %vm11123_vm1, %v15903_v17 }
 0x257   : > { %v5898_v49 = vpop.f32.mrf.mxu1  ;;  %v14276_v11 = vadd.f32 %v10623_v27, %v5580_v9  ;;  %v5579_v39 = vadd.f32 %v5540_v54, %v14041_v21 }
 0x258   : > { %v10634_v63 = vpop.f32.mrf.mxu0 }
 0x259   : > { %v10690_v6 = vpop.f32.mrf.mxu1  ;;  %v14279_v1 = vadd.f32 %v5898_v49, %v5579_v39  ;;  %v6333_v18 = vadd.f32 %v10634_v63, %v14048_v41 }
 0x25a   : > { %v6173_v3 = vpop.f32.mrf.mxu0 }
 0x25b   : > { %v6528_v30 = vpop.f32.mrf.mxu1  ;;  %v14282_v34 = vadd.f32 %v10690_v6, %v6333_v18  ;;  %v6332_v60 = vadd.f32 %v6173_v3, %v14057_v38 }
 0x25c   : > { %v10637_v15 = vpop.f32.mrf.mxu0 }
 0x25d   : > { %v10693_v42 = vpop.f32.mrf.mxu1  ;;  %v14285_v32 = vadd.f32 %v6528_v30, %v6332_v60  ;;  %v6335_v19 = vadd.f32 %v10637_v15, %v14064_v25 }
 0x25e   : > { %v6183_v61 = vpop.f32.mrf.mxu0 }
 0x25f   : > { %v6538_v21 = vpop.f32.mrf.mxu1  ;;  %v14288_v10 = vadd.f32 %v10693_v42, %v6335_v19  ;;  %v6334_v58 = vadd.f32 %v6183_v61, %v14073_v45 }
 0x260   : > { %v10640_v5 = vpop.f32.mrf.mxu0 }
 0x261   : > { %v10696_v41 = vpop.f32.mrf.mxu1  ;;  %v14291_v48 = vadd.f32 %v6538_v21, %v6334_v58  ;;  %v6337_v29 = vadd.f32 %v10640_v5, %v14080_v44 }
 0x262   : > { %v6193_v20 = vpop.f32.mrf.mxu0 }
 0x263   : > { %v6548_v38 = vpop.f32.mrf.mxu1  ;;  %v14294_v51 = vadd.f32 %v10696_v41, %v6337_v29  ;;  %v6336_v33 = vadd.f32 %v6193_v20, %v14089_v56 }
 0x264   : > { %v10643_v62 = vpop.f32.mrf.mxu0 }
 0x265   : > { %v10699_v25 = vpop.f32.mrf.mxu1  ;;  %v14297_v46 = vadd.f32 %v6548_v38, %v6336_v33  ;;  %v6339_v47 = vadd.f32 %v10643_v62, %v14096_v16 }
 0x266   : > { %v6203_v27 = vpop.f32.mrf.mxu0 }
 0x267   : > { %v6558_v45 = vpop.f32.mrf.mxu1  ;;  %v14300_v9 = vadd.f32 %v10699_v25, %v6339_v47  ;;  %v6338_v54 = vadd.f32 %v6203_v27, %v14105_v12 }
 0x268   : > { %v10646_v49 = vpop.f32.mrf.mxu0 }
 0x269   : > { %v10702_v44 = vpop.f32.mrf.mxu1  ;;  %v14303_v39 = vadd.f32 %v6558_v45, %v6338_v54  ;;  %v6341_v63 = vadd.f32 %v10646_v49, %v14112_v35 }
 0x26a   : > { %v6213_v6 = vpop.f32.mrf.mxu0 }
 0x26b   : > { %v6568_v56 = vpop.f32.mrf.mxu1  ;;  %v14306_v18 = vadd.f32 %v10702_v44, %v6341_v63  ;;  %v6340_v3 = vadd.f32 %v6213_v6, %v14121_v31  ;;  %v8087_v31 = vld [vmem:[%s15080_s7 + $0x18] sm:$0xff] }
 0x26c   : > { %v10649_v30 = vpop.f32.mrf.mxu0  ;;  %10961 = vmatpush3.msra.mxu0 %v8087_v31  ;;  %10972 = vmatpush3.msra.mxu1 %v8087_v31 }
 0x26d   : > { %v10705_v16 = vpop.f32.mrf.mxu1  ;;  %v14309_v60 = vadd.f32 %v6568_v56, %v6340_v3  ;;  %v6343_v15 = vadd.f32 %v10649_v30, %v14128_v7  ;;  %10962 = vmatprep.subr.mxu0 %v15903_v17  ;;  %10973 = vmatprep.subr.mxu1 %v15903_v17 }
 0x26e   : > { %v6223_v42 = vpop.f32.mrf.mxu0 }
 0x26f   : > { %v6578_v12 = vpop.f32.mrf.mxu1  ;;  %v14312_v19 = vadd.f32 %v10705_v16, %v6343_v15  ;;  %v6342_v61 = vadd.f32 %v6223_v42, %v14137_v13 }
 0x270   : > { %v10652_v21 = vpop.f32.mrf.mxu0 }
 0x271   : > { %v10708_v35 = vpop.f32.mrf.mxu1  ;;  %v14315_v58 = vadd.f32 %v6578_v12, %v6342_v61  ;;  %v6345_v5 = vadd.f32 %v10652_v21, %v14144_v14  ;;  %v5565_v14 = vadd.f32 %v14176_v8, %v13941_v57 }
 0x272   : > { %v6233_v41 = vpop.f32.mrf.mxu0 }
 0x273   : > { %v6588_v29 = vpop.f32.mrf.mxu1  ;;  %v14321_v7 = vadd.f32 %v10708_v35, %v6345_v5  ;;  %v6344_v20 = vadd.f32 %v6233_v41, %v14153_v36  ;;  %v5923_v49 = vadd.f32 %v14178_v4, %v5565_v14  ;;  %v8086_v35 = vld [vmem:[%s15080_s7 + $0x10] sm:$0xff] }
 0x274   : > { %v10655_v13 = vpop.f32.mrf.mxu0  ;;  %10963 = vmatpush3.msra.mxu0 %v8086_v35  ;;  %10974 = vmatpush3.msra.mxu1 %v8086_v35 }
 0x275   : > { %v10711_v38 = vpop.f32.mrf.mxu1  ;;  %v14328_v33 = vadd.f32 %v6588_v29, %v6344_v20  ;;  %v6347_v62 = vadd.f32 %v10655_v13, %v14160_v24  ;;  %10964 = vmatprep.subr.mxu0 %v15903_v17  ;;  %10975 = vmatprep.subr.mxu1 %v15903_v17 }
 0x276   : > { %v6243_v25 = vpop.f32.mrf.mxu0 }
 0x277   : > { %v6598_v47 = vpop.f32.mrf.mxu1  ;;  %v14331_v27 = vadd.f32 %v10711_v38, %v6347_v62  ;;  %v6346_v45 = vadd.f32 %v6243_v25, %v14169_v43 }
 0x278   : > { %v10658_v36 = vpop.f32.mrf.mxu0 }
 0x279   : > { %v10714_v54 = vpop.f32.mrf.mxu1  ;;  %v14335_v44 = vadd.f32 %v6598_v47, %v6346_v45  ;;  %v6349_v63 = vadd.f32 %v10658_v36, %v14180_v22 }
 0x27a   : > { %v6253_v6 = vpop.f32.mrf.mxu0 }
 0x27b   : > { %v6608_v57 = vpop.f32.mrf.mxu1  ;;  %v14338_v8 = vadd.f32 %v10714_v54, %v6349_v63  ;;  %v6348_v56 = vadd.f32 %v6253_v6, %v5923_v49 }
 0x27c   : > { %v10661_v24 = vpop.f32.mrf.mxu0 }
 0x27d   : > { %v10717_v3 = vpop.f32.mrf.mxu1  ;;  %v14340_v30 = vadd.f32 %v6608_v57, %v6348_v56  ;;  %v6351_v16 = vadd.f32 %v10661_v24, %v14193_v26 }
 0x27e   : > { %v6263_v43 = vpop.f32.mrf.mxu0 }
 0x27f   : > { %v6618_v15 = vpop.f32.mrf.mxu1  ;;  %v14343_v42 = vadd.f32 %v10717_v3, %v6351_v16  ;;  %v6350_v4 = vadd.f32 %v6263_v43, %v14202_v55 }
 0x280   : > { %v10664_v12 = vpop.f32.mrf.mxu0 }
 0x281   : > { %v10720_v61 = vpop.f32.mrf.mxu1  ;;  %v14346_v22 = vadd.f32 %v6618_v15, %v6350_v4  ;;  %v6353_v21 = vadd.f32 %v10664_v12, %v14209_v23 }
 0x282   : > { %v6273_v5 = vpop.f32.mrf.mxu0 }
 0x283   : > { %v6628_v31 = vpop.f32.mrf.mxu1  ;;  %v14352_v26 = vadd.f32 %v10720_v61, %v6353_v21  ;;  %v6352_v41 = vadd.f32 %v6273_v5, %v14218_v2 }
 0x284   : > { %v10667_v55 = vpop.f32.mrf.mxu0 }
 0x285   : > { %v10723_v29 = vpop.f32.mrf.mxu1  ;;  %v14357_v20 = vadd.f32 %v6628_v31, %v6352_v41  ;;  %v6355_v23 = vadd.f32 %v10667_v55, %v14225_v59 }
 0x286   : > { %v6283_v13 = vpop.f32.mrf.mxu0 }
 0x287   : > { %v6638_v38 = vpop.f32.mrf.mxu1  ;;  %v14360_v14 = vadd.f32 %v10723_v29, %v6355_v23  ;;  %v6354_v62 = vadd.f32 %v6283_v13, %v14234_v50 }
 0x288   : > { %v10670_v25 = vpop.f32.mrf.mxu0 }
 0x289   : > { %v10726_v47 = vpop.f32.mrf.mxu1  ;;  %v14363_v45 = vadd.f32 %v6638_v38, %v6354_v62  ;;  %v6357_v2 = vadd.f32 %v10670_v25, %v14241_v40 }
 0x28a   : > { %v6293_v36 = vpop.f32.mrf.mxu0 }
 0x28b   : > { %v6648_v54 = vpop.f32.mrf.mxu1  ;;  %v14366_v49 = vadd.f32 %v10726_v47, %v6357_v2  ;;  %v6356_v63 = vadd.f32 %v6293_v36, %v14250_v0  ;;  %v8085_v0 = vld [vmem:[%s15080_s7 + $0x8] sm:$0xff] }
 0x28c   : > { %v10673_v6 = vpop.f32.mrf.mxu0  ;;  %10965 = vmatpush3.msra.mxu0 %v8085_v0  ;;  %10976 = vmatpush3.msra.mxu1 %v8085_v0 }
 0x28d   : > { %v10729_v59 = vpop.f32.mrf.mxu1  ;;  %v14369_v57 = vadd.f32 %v6648_v54, %v6356_v63  ;;  %v6359_v56 = vadd.f32 %v10673_v6, %v14257_v37  ;;  %10966 = vmatprep.subr.mxu0 %v15903_v17  ;;  %10977 = vmatprep.subr.mxu1 %v15903_v17 }
 0x28e   : > { %v6303_v24 = vpop.f32.mrf.mxu0 }
 0x28f   : > { %15970 = vst [vmem:[#allocation145_spill] sm:$0xff] %v14369_v57  ;;  %v6658_v50 = vpop.f32.mrf.mxu1  ;;  %v14372_v3 = vadd.f32 %v10729_v59, %v6359_v56  ;;  %v6358_v16 = vadd.f32 %v6303_v24, %v14263_v53 }
 0x290   : > { %v10676_v43 = vpop.f32.mrf.mxu0 }
 0x291   : > { %v10732_v40 = vpop.f32.mrf.mxu1  ;;  %v14375_v15 = vadd.f32 %v6658_v50, %v6358_v16  ;;  %v6361_v4 = vadd.f32 %v10676_v43, %v14268_v52 }
 0x292   : > { %v6313_v12 = vpop.f32.mrf.mxu0 }
 0x293   : > { %15971 = vst [vmem:[#allocation7_spill] sm:$0xff] %v14375_v15  ;;  %v6668_v61 = vpop.f32.mrf.mxu1  ;;  %v14381_v37 = vadd.f32 %v10732_v40, %v6361_v4  ;;  %v6360_v21 = vadd.f32 %v6313_v12, %v14273_v28 }
 0x294   : > { %v10679_v53 = vpop.f32.mrf.mxu0 }
 0x295   : > { %v10735_v35 = vpop.f32.mrf.mxu1  ;;  %v14386_v5 = vadd.f32 %v6668_v61, %v6360_v21  ;;  %v6363_v52 = vadd.f32 %v10679_v53, %v14276_v11 }
 0x296   : > { %v6323_v31 = vpop.f32.mrf.mxu0 }
 0x297   : > { %15972 = vst [vmem:[#allocation3_spill] sm:$0xff] %v14386_v5  ;;  %v6678_v41 = vpop.f32.mrf.mxu1  ;;  %v14389_v55 = vadd.f32 %v10735_v35, %v6363_v52  ;;  %v6362_v29 = vadd.f32 %v6323_v31, %v14279_v1  ;;  %v8084_v35 = vld [vmem:[%s15080_s7] sm:$0xff] }
 0x298   : > { %v10746_v23 = vpop.f32.mrf.mxu0  ;;  %10967 = vmatpush3.msra.mxu0 %v8084_v35  ;;  %10978 = vmatpush3.msra.mxu1 %v8084_v35 }
 0x299   : > { %v10802_v13 = vpop.f32.mrf.mxu1  ;;  %v14392_v38 = vadd.f32 %v6678_v41, %v6362_v29  ;;  %v6950_v28 = vadd.f32 %v10746_v23, %v14282_v34 }
 0x29a   : > { %v14395_v62 = vpop.f32.mrf.mxu0 }
 0x29b   : > { %15973 = vst [vmem:[#allocation8_spill] sm:$0xff] %v14392_v38  ;;  %v14397_v25 = vpop.f32.mrf.mxu1  ;;  %v14399_v47 = vadd.f32 %v10802_v13, %v6950_v28 }
 0x29c   : > { %v10749_v2 = vpop.f32.mrf.mxu0 }
 0x29d   : > { %v10805_v11 = vpop.f32.mrf.mxu1  ;;  %v6952_v36 = vadd.f32 %v10749_v2, %v14288_v10 }
 0x29e   : > { %v14402_v54 = vpop.f32.mrf.mxu0 }
 0x29f   : > { %v14404_v63 = vpop.f32.mrf.mxu1  ;;  %v14406_v1 = vadd.f32 %v10805_v11, %v6952_v36 }
 0x2a0   : > { %v10752_v6 = vpop.f32.mrf.mxu0 }
 0x2a1   : > { %v10808_v59 = vpop.f32.mrf.mxu1  ;;  %v6954_v34 = vadd.f32 %v10752_v6, %v14294_v51 }
 0x2a2   : > { %v14409_v56 = vpop.f32.mrf.mxu0 }
 0x2a3   : > { %v14411_v24 = vpop.f32.mrf.mxu1  ;;  %v14413_v50 = vadd.f32 %v10808_v59, %v6954_v34 }
 0x2a4   : > { %v10755_v16 = vpop.f32.mrf.mxu0 }
 0x2a5   : > { %v10811_v43 = vpop.f32.mrf.mxu1  ;;  %v6956_v10 = vadd.f32 %v10755_v16, %v14300_v9 }
 0x2a6   : > { %v14416_v40 = vpop.f32.mrf.mxu0 }
 0x2a7   : > { %v14418_v4 = vpop.f32.mrf.mxu1  ;;  %v14420_v0 = vadd.f32 %v10811_v43, %v6956_v10 }
 0x2a8   : > { %v10758_v12 = vpop.f32.mrf.mxu0 }
 0x2a9   : > { %v10814_v61 = vpop.f32.mrf.mxu1  ;;  %v6958_v51 = vadd.f32 %v10758_v12, %v14306_v18 }
 0x2aa   : > { %v14423_v21 = vpop.f32.mrf.mxu0 }
 0x2ab   : > { %v14425_v53 = vpop.f32.mrf.mxu1  ;;  %v14430_v52 = vadd.f32 %v10814_v61, %v6958_v51 }
 0x2ac   : > { %v10761_v9 = vpop.f32.mrf.mxu0 }
 0x2ad   : > { %v10817_v31 = vpop.f32.mrf.mxu1  ;;  %v6960_v18 = vadd.f32 %v10761_v9, %v14312_v19 }
 0x2ae   : > { %v14435_v41 = vpop.f32.mrf.mxu0 }
 0x2af   : > { %v14437_v29 = vpop.f32.mrf.mxu1  ;;  %v14439_v23 = vadd.f32 %v10817_v31, %v6960_v18 }
 0x2b0   : > { %v10764_v13 = vpop.f32.mrf.mxu0 }
 0x2b1   : > { %v10820_v28 = vpop.f32.mrf.mxu1  ;;  %v6962_v2 = vadd.f32 %v10764_v13, %v14321_v7 }
 0x2b2   : > { %v14442_v11 = vpop.f32.mrf.mxu0 }
 0x2b3   : > { %v14444_v36 = vpop.f32.mrf.mxu1  ;;  %v14446_v6 = vadd.f32 %v10820_v28, %v6962_v2 }
 0x2b4   : > { %v10767_v59 = vpop.f32.mrf.mxu0 }
 0x2b5   : > { %v10823_v17 = vpop.f32.mrf.mxu1  ;;  %v6964_v19 = vadd.f32 %v10767_v59, %v14331_v27 }
 0x2b6   : > { %v14449_v34 = vpop.f32.mrf.mxu0 }
 0x2b7   : > { %v14451_v16 = vpop.f32.mrf.mxu1  ;;  %v14453_v43 = vadd.f32 %v10823_v17, %v6964_v19 }
 0x2b8   : > { %v10770_v10 = vpop.f32.mrf.mxu0 }
 0x2b9   : > { %v10826_v12 = vpop.f32.mrf.mxu1  ;;  %v6966_v7 = vadd.f32 %v10770_v10, %v14338_v8 }
 0x2ba   : > { %v14456_v61 = vpop.f32.mrf.mxu0 }
 0x2bb   : > { %v14458_v51 = vpop.f32.mrf.mxu1  ;;  %v14460_v35 = vadd.f32 %v10826_v12, %v6966_v7 }
 0x2bc   : > { %v10773_v9 = vpop.f32.mrf.mxu0 }
 0x2bd   : > { %v10829_v31 = vpop.f32.mrf.mxu1  ;;  %v6968_v27 = vadd.f32 %v10773_v9, %v14343_v42 }
 0x2be   : > { %v14463_v18 = vpop.f32.mrf.mxu0 }
 0x2bf   : > { %v14465_v13 = vpop.f32.mrf.mxu1  ;;  %v14467_v28 = vadd.f32 %v10829_v31, %v6968_v27 }
 0x2c0   : > { %v10776_v2 = vpop.f32.mrf.mxu0 }
 0x2c1   : > { %v10832_v59 = vpop.f32.mrf.mxu1  ;;  %v6970_v8 = vadd.f32 %v10776_v2, %v14352_v26 }
 0x2c2   : > { %v14470_v17 = vpop.f32.mrf.mxu0 }
 0x2c3   : > { %v14472_v19 = vpop.f32.mrf.mxu1  ;;  %v14474_v10 = vadd.f32 %v10832_v59, %v6970_v8 }
 0x2c4   : > { %v10779_v12 = vpop.f32.mrf.mxu0 }
 0x2c5   : > { %15974 = vst [vmem:[#allocation12_spill] sm:$0xff] %v14474_v10  ;;  %v10835_v7 = vpop.f32.mrf.mxu1  ;;  %v6972_v42 = vadd.f32 %v10779_v12, %v14360_v14 }
 0x2c6   : > { %v14477_v9 = vpop.f32.mrf.mxu0 }
 0x2c7   : > { %v14479_v38 = vpop.f32.mrf.mxu1  ;;  %v14481_v31 = vadd.f32 %v10835_v7, %v6972_v42 }
 0x2c8   : > { %v10782_v27 = vpop.f32.mrf.mxu0 }
 0x2c9   : > { %15975 = vst [vmem:[#allocation6_spill] sm:$0xff] %v14481_v31  ;;  %v10838_v5 = vpop.f32.mrf.mxu1  ;;  %v6974_v26 = vadd.f32 %v10782_v27, %v14366_v49 }
 0x2ca   : > { %v14484_v2 = vpop.f32.mrf.mxu0 }
 0x2cb   : > { %15976 = vst [vmem:[#allocation13_spill] sm:$0xff] %v14484_v2  ;;  %v14486_v15 = vpop.f32.mrf.mxu1  ;;  %v14488_v59 = vadd.f32 %v10838_v5, %v6974_v26 }
 0x2cc   : > { %v10785_v8 = vpop.f32.mrf.mxu0 }
 0x2cd   : > { %15977 = vst [vmem:[#allocation14_spill] sm:$0xff] %v14488_v59  ;;  %v10841_v57 = vpop.f32.mrf.mxu1  ;;  %v6976_v14 = vadd.f32 %v10785_v8, %v14372_v3  ;;  %v6949_v3 = vadd.f32 %v14395_v62, %v14285_v32 }
 0x2ce   : > { %v14491_v12 = vpop.f32.mrf.mxu0 }
 0x2cf   : > { %v14493_v10 = vpop.f32.mrf.mxu1  ;;  %v14495_v7 = vadd.f32 %v10841_v57, %v6976_v14 }
 0x2d0   : > { %15978 = vst [vmem:[#allocation15_spill] sm:$0xff] %v14493_v10  ;;  %v10788_v42 = vpop.f32.mrf.mxu0 }
 0x2d1   : > { %15979 = vst [vmem:[#allocation17_spill] sm:$0xff] %v14495_v7  ;;  %v10844_v31 = vpop.f32.mrf.mxu1  ;;  %v6978_v49 = vadd.f32 %v10788_v42, %v14381_v37  ;;  %v7211_v7 = vadd.f32 %v14397_v25, %v6949_v3 }
 0x2d2   : > { %v14498_v27 = vpop.f32.mrf.mxu0 }
 0x2d3   : > { %v14500_v2 = vpop.f32.mrf.mxu1  ;;  %v14502_v5 = vadd.f32 %v10844_v31, %v6978_v49  ;;  %v6951_v31 = vadd.f32 %v14402_v54, %v14291_v48 }
 0x2d4   : > { %15980 = vst [vmem:[#allocation11_spill] sm:$0xff] %v14500_v2  ;;  %v10791_v26 = vpop.f32.mrf.mxu0 }
 0x2d5   : > { %15981 = vst [vmem:[#allocation18_spill] sm:$0xff] %v14502_v5  ;;  %v10847_v59 = vpop.f32.mrf.mxu1  ;;  %v6980_v8 = vadd.f32 %v10791_v26, %v14389_v55  ;;  %v6953_v55 = vadd.f32 %v14409_v56, %v14297_v46  ;;  %v6955_v46 = vadd.f32 %v14416_v40, %v14303_v39  ;;  %v6957_v40 = vadd.f32 %v14423_v21, %v14309_v60 }
 0x2d6   : > { %v14507_v10 = vpop.f32.mrf.mxu0  ;;  %v6959_v21 = vadd.f32 %v14435_v41, %v14315_v58  ;;  %v6961_v41 = vadd.f32 %v14442_v11, %v14328_v33  ;;  %v6963_v11 = vadd.f32 %v14449_v34, %v14335_v44  ;;  %v6965_v34 = vadd.f32 %v14456_v61, %v14340_v30 }
 0x2d7   : > { %v14509_v57 = vpop.f32.mrf.mxu1  ;;  %v14511_v14 = vadd.f32 %v10847_v59, %v6980_v8  ;;  %v7213_v59 = vadd.f32 %v14404_v63, %v6951_v31  ;;  %v7217_v39 = vadd.f32 %v14418_v4, %v6955_v46  ;;  %v7219_v60 = vadd.f32 %v14425_v53, %v6957_v40 }
 0x2d8   : > { %v10858_v37 = vpop.f32.mrf.mxu0  ;;  %v7221_v58 = vadd.f32 %v14437_v29, %v6959_v21  ;;  %v7223_v33 = vadd.f32 %v14444_v36, %v6961_v41  ;;  %v7225_v44 = vadd.f32 %v14451_v16, %v6963_v11  ;;  %v7227_v30 = vadd.f32 %v14458_v51, %v6965_v34 }
 0x2d9   : > { %15982 = vst [vmem:[#allocation19_spill] sm:$0xff] %v14511_v14  ;;  %v10914_v42 = vpop.f32.mrf.mxu1  ;;  %v7632_v49 = vadd.f32 %v10858_v37, %v14399_v47  ;;  %v6967_v61 = vadd.f32 %v14463_v18, %v14346_v22  ;;  %v6969_v18 = vadd.f32 %v14470_v17, %v14357_v20  ;;  %v6971_v17 = vadd.f32 %v14477_v9, %v14363_v45  ;;  %v15984_v9 = vld [vmem:[#allocation145_spill] sm:$0xff] }
 0x2da   : > { %v7472_v5 = vpop.f32.mrf.mxu0 }
 0x2db   : > { %v7824_v2 = vpop.f32.mrf.mxu1  ;;  %v7631_v32 = vadd.f32 %v7472_v5, %v7211_v7  ;;  %v14520_v8 = vadd.f32 %v10914_v42, %v7632_v49  ;;  %v7215_v7 = vadd.f32 %v14411_v24, %v6953_v55  ;;  %v7229_v22 = vadd.f32 %v14465_v13, %v6967_v61  ;;  %v15985_v61 = vld [vmem:[#allocation13_spill] sm:$0xff] }
 0x2dc   : > { %v10861_v62 = vpop.f32.mrf.mxu0  ;;  %v7231_v20 = vadd.f32 %v14472_v19, %v6969_v18  ;;  %v7233_v45 = vadd.f32 %v14479_v38, %v6971_v17 }
 0x2dd   : > { %v10917_v26 = vpop.f32.mrf.mxu1  ;;  %v14522_v14 = vadd.f32 %v7824_v2, %v7631_v32  ;;  %v7634_v25 = vadd.f32 %v10861_v62, %v14406_v1  ;;  %v8016_v63 = vsel %vm1314_vm0, %v14520_v8, 0.0 }
 0x2de   : > { %v7482_v3 = vpop.f32.mrf.mxu0 }
 0x2df   : > { %v7834_v48 = vpop.f32.mrf.mxu1  ;;  %v8015_v47 = vsel %vm1314_vm0, %v14522_v14, 0.0  ;;  %v7633_v54 = vadd.f32 %v7482_v3, %v7213_v59  ;;  %v14532_v2 = vadd.f32 %v10917_v26, %v7634_v25 }
 0x2e0   : > { %v10864_v56 = vpop.f32.mrf.mxu0  ;;  %v8017_v42 = vadd.f32 %v8016_v63, %v8015_v47 }
 0x2e1   : > { %v10920_v5 = vpop.f32.mrf.mxu1  ;;  %v14534_v37 = vadd.f32 %v7834_v48, %v7633_v54  ;;  %v7636_v1 = vadd.f32 %v10864_v56, %v14413_v50  ;;  %v8020_v59 = vsel %vm1314_vm0, %v14532_v2, 0.0 }
 0x2e2   : > { %v7492_v31 = vpop.f32.mrf.mxu0 }
 0x2e3   : > { %v7844_v49 = vpop.f32.mrf.mxu1  ;;  %v8018_v24 = vsel %vm1314_vm0, %v14534_v37, 0.0  ;;  %v7635_v32 = vadd.f32 %v7492_v31, %v7215_v7  ;;  %v14544_v25 = vadd.f32 %v10920_v5, %v7636_v1 }
 0x2e4   : > { %v8019_v55 = vadd.f32 %v8018_v24, %v8017_v42  ;;  %v10867_v62 = vpop.f32.mrf.mxu0 }
 0x2e5   : > { %v10923_v26 = vpop.f32.mrf.mxu1  ;;  %v14546_v50 = vadd.f32 %v7844_v49, %v7635_v32  ;;  %v7638_v3 = vadd.f32 %v10867_v62, %v14420_v0  ;;  %v8024_v63 = vsel %vm1314_vm0, %v14544_v25, 0.0 }
 0x2e6   : > { %v8021_v48 = vadd.f32 %v8020_v59, %v8019_v55  ;;  %v7502_v47 = vpop.f32.mrf.mxu0 }
 0x2e7   : > { %v7854_v54 = vpop.f32.mrf.mxu1  ;;  %v8022_v4 = vsel %vm1314_vm0, %v14546_v50, 0.0  ;;  %v7637_v7 = vadd.f32 %v7502_v47, %v7217_v39  ;;  %v14556_v1 = vadd.f32 %v10923_v26, %v7638_v3 }
 0x2e8   : > { %v8023_v46 = vadd.f32 %v8022_v4, %v8021_v48  ;;  %v10870_v56 = vpop.f32.mrf.mxu0 }
 0x2e9   : > { %v10926_v5 = vpop.f32.mrf.mxu1  ;;  %v14558_v0 = vadd.f32 %v7854_v54, %v7637_v7  ;;  %v7640_v42 = vadd.f32 %v10870_v56, %v14430_v52  ;;  %v8028_v62 = vsel %vm1314_vm0, %v14556_v1, 0.0 }
 0x2ea   : > { %v8025_v31 = vadd.f32 %v8024_v63, %v8023_v46  ;;  %v7512_v49 = vpop.f32.mrf.mxu0 }
 0x2eb   : > { %v7864_v24 = vpop.f32.mrf.mxu1  ;;  %v8026_v53 = vsel %vm1314_vm0, %v14558_v0, 0.0  ;;  %v7639_v32 = vadd.f32 %v7512_v49, %v7219_v60  ;;  %v14568_v26 = vadd.f32 %v10926_v5, %v7640_v42 }
 0x2ec   : > { %v8027_v39 = vadd.f32 %v8026_v53, %v8025_v31  ;;  %v10873_v40 = vpop.f32.mrf.mxu0 }
 0x2ed   : > { %v10929_v55 = vpop.f32.mrf.mxu1  ;;  %v14570_v52 = vadd.f32 %v7864_v24, %v7639_v32  ;;  %v7642_v59 = vadd.f32 %v10873_v40, %v14439_v23  ;;  %v8032_v21 = vsel %vm1314_vm0, %v14568_v26, 0.0 }
 0x2ee   : > { %v8029_v3 = vadd.f32 %v8028_v62, %v8027_v39  ;;  %v7522_v48 = vpop.f32.mrf.mxu0 }
 0x2ef   : > { %v7874_v47 = vpop.f32.mrf.mxu1  ;;  %v8030_v29 = vsel %vm1314_vm0, %v14570_v52, 0.0  ;;  %v7641_v54 = vadd.f32 %v7522_v48, %v7221_v58  ;;  %v14580_v46 = vadd.f32 %v10929_v55, %v7642_v59 }
 0x2f0   : > { %v8031_v4 = vadd.f32 %v8030_v29, %v8029_v3  ;;  %v10876_v7 = vpop.f32.mrf.mxu0 }
 0x2f1   : > { %v10932_v60 = vpop.f32.mrf.mxu1  ;;  %v14582_v23 = vadd.f32 %v7874_v47, %v7641_v54  ;;  %v7644_v56 = vadd.f32 %v10876_v7, %v14446_v6  ;;  %v8036_v32 = vsel %vm1314_vm0, %v14580_v46, 0.0 }
 0x2f2   : > { %v8033_v5 = vadd.f32 %v8032_v21, %v8031_v4  ;;  %v7532_v63 = vpop.f32.mrf.mxu0 }
 0x2f3   : > { %v7884_v42 = vpop.f32.mrf.mxu1  ;;  %v8034_v36 = vsel %vm1314_vm0, %v14582_v23, 0.0  ;;  %v7643_v31 = vadd.f32 %v7532_v63, %v7223_v33  ;;  %v14592_v58 = vadd.f32 %v10932_v60, %v7644_v56 }
 0x2f4   : > { %v8035_v49 = vadd.f32 %v8034_v36, %v8033_v5  ;;  %v10879_v24 = vpop.f32.mrf.mxu0 }
 0x2f5   : > { %v10935_v53 = vpop.f32.mrf.mxu1  ;;  %v14594_v6 = vadd.f32 %v7884_v42, %v7643_v31  ;;  %v7646_v41 = vadd.f32 %v10879_v24, %v14453_v43  ;;  %v8040_v47 = vsel %vm1314_vm0, %v14592_v58, 0.0 }
 0x2f6   : > { %v8037_v39 = vadd.f32 %v8036_v32, %v8035_v49  ;;  %v7542_v40 = vpop.f32.mrf.mxu0 }
 0x2f7   : > { %v7894_v55 = vpop.f32.mrf.mxu1  ;;  %v8038_v16 = vsel %vm1314_vm0, %v14594_v6, 0.0  ;;  %v7645_v62 = vadd.f32 %v7542_v40, %v7225_v44  ;;  %v14604_v29 = vadd.f32 %v10935_v53, %v7646_v41 }
 0x2f8   : > { %v8039_v59 = vadd.f32 %v8038_v16, %v8037_v39  ;;  %v10882_v3 = vpop.f32.mrf.mxu0  ;;  %v15983_v39 = vld [vmem:[#allocation12_spill] sm:$0xff] }
 0x2f9   : > { %v10938_v48 = vpop.f32.mrf.mxu1  ;;  %v14606_v43 = vadd.f32 %v7894_v55, %v7645_v62  ;;  %v7648_v54 = vadd.f32 %v10882_v3, %v14460_v35  ;;  %v8044_v5 = vsel %vm1314_vm0, %v14604_v29, 0.0 }
 0x2fa   : > { %v8041_v33 = vadd.f32 %v8040_v47, %v8039_v59  ;;  %v7552_v11 = vpop.f32.mrf.mxu0  ;;  %v6973_v59 = vadd.f32 %v15985_v61, %v15984_v9  ;;  %v15991_v61 = vld [vmem:[#allocation17_spill] sm:$0xff] }
 0x2fb   : > { %v7904_v4 = vpop.f32.mrf.mxu1  ;;  %v8042_v51 = vsel %vm1314_vm0, %v14606_v43, 0.0  ;;  %v7647_v7 = vadd.f32 %v7552_v11, %v7227_v30  ;;  %v14616_v63 = vadd.f32 %v10938_v48, %v7648_v54 }
 0x2fc   : > { %v8043_v60 = vadd.f32 %v8042_v51, %v8041_v33  ;;  %v10885_v21 = vpop.f32.mrf.mxu0 }
 0x2fd   : > { %v10941_v56 = vpop.f32.mrf.mxu1  ;;  %v14618_v35 = vadd.f32 %v7904_v4, %v7647_v7  ;;  %v7650_v42 = vadd.f32 %v10885_v21, %v14467_v28  ;;  %v8048_v32 = vsel %vm1314_vm0, %v14616_v63, 0.0  ;;  %v15986_v4 = vld [vmem:[#allocation6_spill] sm:$0xff]  ;;  %v7235_v21 = vadd.f32 %v14486_v15, %v6973_v59 }
 0x2fe   : > { %v8045_v36 = vadd.f32 %v8044_v5, %v8043_v60  ;;  %v7562_v31 = vpop.f32.mrf.mxu0 }
 0x2ff   : > { %v7914_v44 = vpop.f32.mrf.mxu1  ;;  %v8046_v13 = vsel %vm1314_vm0, %v14618_v35, 0.0  ;;  %v7649_v34 = vadd.f32 %v7562_v31, %v7229_v22  ;;  %v14628_v41 = vadd.f32 %v10941_v56, %v7650_v42  ;;  %v15987_v56 = vld [vmem:[#allocation7_spill] sm:$0xff] }
 0x300   : > { %v8047_v49 = vadd.f32 %v8046_v13, %v8045_v36  ;;  %v10888_v24 = vpop.f32.mrf.mxu0  ;;  %v6975_v5 = vadd.f32 %v14491_v12, %v15987_v56  ;;  %v15989_v12 = vld [vmem:[#allocation15_spill] sm:$0xff] }
 0x301   : > { %v10944_v53 = vpop.f32.mrf.mxu1  ;;  %v14630_v28 = vadd.f32 %v7914_v44, %v7649_v34  ;;  %v7652_v40 = vadd.f32 %v10888_v24, %v15983_v39  ;;  %v8052_v54 = vsel %vm1314_vm0, %v14628_v41, 0.0 }
 0x302   : > { %v8049_v55 = vadd.f32 %v8048_v32, %v8047_v49  ;;  %v7572_v16 = vpop.f32.mrf.mxu0  ;;  %v7237_v39 = vadd.f32 %v15989_v12, %v6975_v5 }
 0x303   : > { %v7924_v62 = vpop.f32.mrf.mxu1  ;;  %v8050_v19 = vsel %vm1314_vm0, %v14630_v28, 0.0  ;;  %v7651_v30 = vadd.f32 %v7572_v16, %v7231_v20  ;;  %v14640_v33 = vadd.f32 %v10944_v53, %v7652_v40  ;;  %v15988_v20 = vld [vmem:[#allocation14_spill] sm:$0xff]  ;;  %v15990_v40 = vld [vmem:[#allocation3_spill] sm:$0xff] }
 0x304   : > { %v8051_v3 = vadd.f32 %v8050_v19, %v8049_v55  ;;  %v10891_v48 = vpop.f32.mrf.mxu0  ;;  %v6977_v55 = vadd.f32 %v14498_v27, %v15990_v40  ;;  %v15992_v27 = vld [vmem:[#allocation11_spill] sm:$0xff] }
 0x305   : > { %v10947_v47 = vpop.f32.mrf.mxu1  ;;  %v14642_v11 = vadd.f32 %v7924_v62, %v7651_v30  ;;  %v7654_v51 = vadd.f32 %v10891_v48, %v15986_v4  ;;  %v8056_v44 = vsel %vm1314_vm0, %v14640_v33, 0.0  ;;  %v15995_v40 = vld [vmem:[#allocation19_spill] sm:$0xff] }
 0x306   : > { %v8053_v7 = vadd.f32 %v8052_v54, %v8051_v3  ;;  %v7582_v22 = vpop.f32.mrf.mxu0 }
 0x307   : > { %v7934_v18 = vpop.f32.mrf.mxu1  ;;  %v8054_v38 = vsel %vm1314_vm0, %v14642_v11, 0.0  ;;  %v7653_v60 = vadd.f32 %v7582_v22, %v7233_v45  ;;  %v14652_v13 = vadd.f32 %v10947_v47, %v7654_v51  ;;  %v7239_v51 = vadd.f32 %v15992_v27, %v6977_v55 }
 0x308   : > { %v8055_v42 = vadd.f32 %v8054_v38, %v8053_v7  ;;  %v10894_v36 = vpop.f32.mrf.mxu0  ;;  %v15993_v7 = vld [vmem:[#allocation8_spill] sm:$0xff] }
 0x309   : > { %v10950_v31 = vpop.f32.mrf.mxu1  ;;  %v14654_v34 = vadd.f32 %v7934_v18, %v7653_v60  ;;  %v7656_v17 = vadd.f32 %v10894_v36, %v15988_v20  ;;  %v8060_v30 = vsel %vm1314_vm0, %v14652_v13, 0.0  ;;  %v6979_v22 = vadd.f32 %v14507_v10, %v15993_v7 }
 0x30a   : > { %v8057_v49 = vadd.f32 %v8056_v44, %v8055_v42  ;;  %v7592_v24 = vpop.f32.mrf.mxu0  ;;  %v15994_v42 = vld [vmem:[#allocation18_spill] sm:$0xff] }
 0x30b   : > { %v7944_v53 = vpop.f32.mrf.mxu1  ;;  %v8058_v15 = vsel %vm1314_vm0, %v14654_v34, 0.0  ;;  %v7655_v32 = vadd.f32 %v7592_v24, %v7235_v21  ;;  %v14664_v45 = vadd.f32 %v10950_v31, %v7656_v17  ;;  %v7241_v10 = vadd.f32 %v14509_v57, %v6979_v22 }
 0x30c   : > { %v8059_v16 = vadd.f32 %v8058_v15, %v8057_v49  ;;  %v10897_v62 = vpop.f32.mrf.mxu0 }
 0x30d   : > { %v10953_v19 = vpop.f32.mrf.mxu1  ;;  %v14666_v9 = vadd.f32 %v7944_v53, %v7655_v32  ;;  %v7658_v59 = vadd.f32 %v10897_v62, %v15991_v61  ;;  %v8064_v21 = vsel %vm1314_vm0, %v14664_v45, 0.0 }
 0x30e   : > { %v8061_v3 = vadd.f32 %v8060_v30, %v8059_v16  ;;  %v7602_v48 = vpop.f32.mrf.mxu0 }
 0x30f   : > { %v7954_v47 = vpop.f32.mrf.mxu1  ;;  %v8062_v54 = vsel %vm1314_vm0, %v14666_v9, 0.0  ;;  %v7657_v4 = vadd.f32 %v7602_v48, %v7237_v39  ;;  %v14676_v56 = vadd.f32 %v10953_v19, %v7658_v59 }
 0x310   : > { %v8063_v18 = vadd.f32 %v8062_v54, %v8061_v3  ;;  %v10900_v38 = vpop.f32.mrf.mxu0 }
 0x311   : > { %v10956_v60 = vpop.f32.mrf.mxu1  ;;  %v14678_v5 = vadd.f32 %v7954_v47, %v7657_v4  ;;  %v7660_v36 = vadd.f32 %v10900_v38, %v15994_v42  ;;  %v8068_v32 = vsel %vm1314_vm0, %v14676_v56, 0.0 }
 0x312   : > { %v8065_v31 = vadd.f32 %v8064_v21, %v8063_v18  ;;  %v7612_v44 = vpop.f32.mrf.mxu0 }
 0x313   : > { %v7964_v20 = vpop.f32.mrf.mxu1  ;;  %v8066_v17 = vsel %vm1314_vm0, %v14678_v5, 0.0  ;;  %v7659_v49 = vadd.f32 %v7612_v44, %v7239_v51  ;;  %v14686_v12 = vadd.f32 %v10956_v60, %v7660_v36 }
 0x314   : > { %v8067_v24 = vadd.f32 %v8066_v17, %v8065_v31  ;;  %v10903_v53 = vpop.f32.mrf.mxu0  ;;  %v15996_v31 = vld [vmem:[#allocation2_spill] sm:$0xff] }
 0x315   : > { %v10959_v15 = vpop.f32.mrf.mxu1  ;;  %v14688_v39 = vadd.f32 %v7964_v20, %v7659_v49  ;;  %v7662_v55 = vadd.f32 %v10903_v53, %v15995_v40  ;;  %v8072_v59 = vsel %vm1314_vm0, %v14686_v12, 0.0  ;;  %v8163_v44 = vsub.s32 0, %v15996_v31 }
 0x316   : > { %v8069_v16 = vadd.f32 %v8068_v32, %v8067_v24  ;;  %v7622_v62 = vpop.f32.mrf.mxu0 }
 0x317   : > { %v8070_v19 = vsel %vm1314_vm0, %v14688_v39, 0.0  ;;  %v7661_v30 = vadd.f32 %v7622_v62, %v7241_v10  ;;  %v7974_v57 = vpop.f32.mrf.mxu1  ;;  %v14695_v3 = vadd.f32 %v10959_v15, %v7662_v55 }
 0x318   : > { %v8071_v61 = vadd.f32 %v8070_v19, %v8069_v16 }
 0x319   : > { %v14697_v48 = vadd.f32 %v7974_v57, %v7661_v30  ;;  %v8076_v27 = vsel %vm1314_vm0, %v14695_v3, 0.0 }
 0x31a   : > { %v8073_v47 = vadd.f32 %v8072_v59, %v8071_v61 }
 0x31b   : > { %v8074_v54 = vsel %vm1314_vm0, %v14697_v48, 0.0 }
 0x31c   : > { %v8075_v4 = vadd.f32 %v8074_v54, %v8073_v47 }
 0x31e   : > { %v8077_v51 = vadd.f32 %v8076_v27, %v8075_v4 }
 0x320   : > { %v8078_v7 = vrot.slane %v8077_v51, 4 }
 0x322   : > { %v8079_v22 = vadd.f32 %v8078_v7, %v8077_v51 }
 0x324   : > { %v8080_v18 = vrot.slane %v8079_v22, 2 }
 0x326   : > { %v8081_v38 = vadd.f32 %v8080_v18, %v8079_v22 }
 0x328   : > { %v8082_v60 = vrot.slane %v8081_v38, 1 }
 0x32a   : > { %v8083_v21 = vadd.f32 %v8082_v60, %v8081_v38 }
 0x32c   : > { %10969 = vmatmul.mubr.msk.f32.vlgmr.msra.gmra.mxu0 %vm1314_vm0, %v8083_v21 }
 0x3ec   : > { %v8157_v42 = vpop.f32.mrf.mxu0 }
 0x3ed   : > { %v14707_v20 = vrot.slane %v8157_v42, %v8163_v44 }
 0x3ee   : > { %v10970_v36 = vpop.f32.mrf.mxu0 }
 0x3ef   : > { %v14711_v17 = vsub.f32 %v14522_v14, %v14707_v20  ;;  %v14715_v49 = vsub.f32 %v14520_v8, %v14707_v20  ;;  %v14719_v10 = vsub.f32 %v14534_v37, %v14707_v20  ;;  %v14723_v24 = vsub.f32 %v14532_v2, %v14707_v20 }
 0x3f0   : > { %v14731_v14 = vsub.f32 %v14546_v50, %v14707_v20  ;;  %v14737_v37 = vsub.f32 %v14544_v25, %v14707_v20  ;;  %v14745_v16 = vsub.f32 %v14558_v0, %v14707_v20  ;;  %v14752_v25 = vsub.f32 %v14556_v1, %v14707_v20 }
 0x3f1   : > { %v8197_v53 = vmul.f32 %v14711_v17, %v14711_v17  ;;  %v8198_v15 = vmul.f32 %v14715_v49, %v14715_v49  ;;  %v8199_v8 = vmul.f32 %v14719_v10, %v14719_v10  ;;  %v8200_v2 = vmul.f32 %v14723_v24, %v14723_v24 }
 0x3f2   : > { %v8201_v50 = vmul.f32 %v14731_v14, %v14731_v14  ;;  %v8202_v30 = vmul.f32 %v14737_v37, %v14737_v37  ;;  %v14759_v0 = vsub.f32 %v14570_v52, %v14707_v20  ;;  %v8203_v59 = vmul.f32 %v14745_v16, %v14745_v16 }
 0x3f3   : > { %v8229_v32 = vsel %vm1314_vm0, %v8197_v53, 0.0  ;;  %v8230_v40 = vsel %vm1314_vm0, %v8198_v15, 0.0  ;;  %v8232_v62 = vsel %vm1314_vm0, %v8199_v8, 0.0  ;;  %v8234_v61 = vsel %vm1314_vm0, %v8200_v2, 0.0 }
 0x3f4   : > { %v8231_v55 = vadd.f32 %v8230_v40, %v8229_v32  ;;  %v8236_v47 = vsel %vm1314_vm0, %v8201_v50, 0.0  ;;  %v14766_v1 = vsub.f32 %v14568_v26, %v14707_v20  ;;  %v8204_v4 = vmul.f32 %v14752_v25, %v14752_v25 }
 0x3f5   : > { %v8238_v27 = vsel %vm1314_vm0, %v8202_v30, 0.0  ;;  %v14773_v52 = vsub.f32 %v14582_v23, %v14707_v20  ;;  %v8205_v7 = vmul.f32 %v14759_v0, %v14759_v0  ;;  %v8240_v22 = vsel %vm1314_vm0, %v8203_v59, 0.0 }
 0x3f6   : > { %v8233_v19 = vadd.f32 %v8232_v62, %v8231_v55  ;;  %v14780_v26 = vsub.f32 %v14580_v46, %v14707_v20  ;;  %v8206_v38 = vmul.f32 %v14766_v1, %v14766_v1  ;;  %v8242_v60 = vsel %vm1314_vm0, %v8204_v4, 0.0 }
 0x3f7   : > { %v14787_v23 = vsub.f32 %v14594_v6, %v14707_v20  ;;  %v8207_v42 = vmul.f32 %v14773_v52, %v14773_v52  ;;  %v8244_v36 = vsel %vm1314_vm0, %v8205_v7, 0.0  ;;  %v14794_v46 = vsub.f32 %v14592_v58, %v14707_v20 }
 0x3f8   : > { %v8235_v57 = vadd.f32 %v8234_v61, %v8233_v19  ;;  %v8208_v15 = vmul.f32 %v14780_v26, %v14780_v26  ;;  %v8246_v8 = vsel %vm1314_vm0, %v8206_v38, 0.0  ;;  %v14801_v6 = vsub.f32 %v14606_v43, %v14707_v20 }
 0x3f9   : > { %v8209_v32 = vmul.f32 %v14787_v23, %v14787_v23  ;;  %v8248_v40 = vsel %vm1314_vm0, %v8207_v42, 0.0  ;;  %v14808_v58 = vsub.f32 %v14604_v29, %v14707_v20  ;;  %v8210_v50 = vmul.f32 %v14794_v46, %v14794_v46 }
 0x3fa   : > { %v8237_v54 = vadd.f32 %v8236_v47, %v8235_v57  ;;  %v8250_v62 = vsel %vm1314_vm0, %v8208_v15, 0.0  ;;  %v14815_v43 = vsub.f32 %v14618_v35, %v14707_v20  ;;  %v8211_v30 = vmul.f32 %v14801_v6, %v14801_v6 }
 0x3fb   : > { %v8252_v61 = vsel %vm1314_vm0, %v8209_v32, 0.0  ;;  %v14822_v29 = vsub.f32 %v14616_v63, %v14707_v20  ;;  %v8212_v59 = vmul.f32 %v14808_v58, %v14808_v58  ;;  %v8254_v47 = vsel %vm1314_vm0, %v8210_v50, 0.0 }
 0x3fc   : > { %v8239_v51 = vadd.f32 %v8238_v27, %v8237_v54  ;;  %v14829_v35 = vsub.f32 %v14630_v28, %v14707_v20  ;;  %v8213_v4 = vmul.f32 %v14815_v43, %v14815_v43  ;;  %v8256_v27 = vsel %vm1314_vm0, %v8211_v30, 0.0 }
 0x3fd   : > { %v14836_v63 = vsub.f32 %v14628_v41, %v14707_v20  ;;  %v8214_v7 = vmul.f32 %v14822_v29, %v14822_v29  ;;  %v14843_v28 = vsub.f32 %v14642_v11, %v14707_v20  ;;  %v14850_v41 = vsub.f32 %v14640_v33, %v14707_v20 }
 0x3fe   : > { %v8241_v18 = vadd.f32 %v8240_v22, %v8239_v51  ;;  %v8258_v22 = vsel %vm1314_vm0, %v8212_v59, 0.0  ;;  %v8215_v38 = vmul.f32 %v14829_v35, %v14829_v35  ;;  %v14857_v11 = vsub.f32 %v14654_v34, %v14707_v20 }
 0x3ff   : > { %v8216_v42 = vmul.f32 %v14836_v63, %v14836_v63  ;;  %v8217_v15 = vmul.f32 %v14843_v28, %v14843_v28  ;;  %v14864_v33 = vsub.f32 %v14652_v13, %v14707_v20  ;;  %v8218_v32 = vmul.f32 %v14850_v41, %v14850_v41 }
 0x400   : > { %v8243_v21 = vadd.f32 %v8242_v60, %v8241_v18  ;;  %v8260_v60 = vsel %vm1314_vm0, %v8213_v4, 0.0  ;;  %v14871_v34 = vsub.f32 %v14666_v9, %v14707_v20  ;;  %v8219_v50 = vmul.f32 %v14857_v11, %v14857_v11 }
 0x401   : > { %v14878_v13 = vsub.f32 %v14664_v45, %v14707_v20  ;;  %v8220_v30 = vmul.f32 %v14864_v33, %v14864_v33  ;;  %v14885_v9 = vsub.f32 %v14678_v5, %v14707_v20  ;;  %v14892_v45 = vsub.f32 %v14676_v56, %v14707_v20 }
 0x402   : > { %v8245_v53 = vadd.f32 %v8244_v36, %v8243_v21  ;;  %v8262_v36 = vsel %vm1314_vm0, %v8214_v7, 0.0  ;;  %v8221_v59 = vmul.f32 %v14871_v34, %v14871_v34  ;;  %v14899_v5 = vsub.f32 %v14688_v39, %v14707_v20 }
 0x403   : > { %v8222_v4 = vmul.f32 %v14878_v13, %v14878_v13  ;;  %v8223_v7 = vmul.f32 %v14885_v9, %v14885_v9  ;;  %v14906_v56 = vsub.f32 %v14686_v12, %v14707_v20  ;;  %v8195_v39 = vsub.f32 %v14697_v48, %v14707_v20 }
 0x404   : > { %v8247_v2 = vadd.f32 %v8246_v8, %v8245_v53  ;;  %v8264_v8 = vsel %vm1314_vm0, %v8215_v38, 0.0  ;;  %v8224_v38 = vmul.f32 %v14892_v45, %v14892_v45 }
 0x405   : > { %v8226_v12 = vmul.f32 %v14906_v56, %v14906_v56 }
 0x406   : > { %v8249_v55 = vadd.f32 %v8248_v40, %v8247_v2  ;;  %v8266_v40 = vsel %vm1314_vm0, %v8216_v42, 0.0  ;;  %v8225_v42 = vmul.f32 %v14899_v5, %v14899_v5 }
 0x408   : > { %v8251_v19 = vadd.f32 %v8250_v62, %v8249_v55  ;;  %v8268_v62 = vsel %vm1314_vm0, %v8217_v15, 0.0  ;;  %v8196_v15 = vsub.f32 %v14695_v3, %v14707_v20 }
 0x40a   : > { %v8253_v57 = vadd.f32 %v8252_v61, %v8251_v19  ;;  %v8270_v61 = vsel %vm1314_vm0, %v8218_v32, 0.0  ;;  %v8227_v32 = vmul.f32 %v8195_v39, %v8195_v39  ;;  %v8228_v48 = vmul.f32 %v8196_v15, %v8196_v15 }
 0x40c   : > { %v8255_v54 = vadd.f32 %v8254_v47, %v8253_v57  ;;  %v8272_v47 = vsel %vm1314_vm0, %v8219_v50, 0.0  ;;  %v8286_v50 = vsel %vm1314_vm0, %v8226_v12, 0.0 }
 0x40e   : > { %v8257_v51 = vadd.f32 %v8256_v27, %v8255_v54  ;;  %v8274_v27 = vsel %vm1314_vm0, %v8220_v30, 0.0 }
 0x410   : > { %v8259_v18 = vadd.f32 %v8258_v22, %v8257_v51  ;;  %v8276_v22 = vsel %vm1314_vm0, %v8221_v59, 0.0 }
 0x412   : > { %v8261_v21 = vadd.f32 %v8260_v60, %v8259_v18  ;;  %v8278_v60 = vsel %vm1314_vm0, %v8222_v4, 0.0 }
 0x414   : > { %v8263_v53 = vadd.f32 %v8262_v36, %v8261_v21  ;;  %v8280_v36 = vsel %vm1314_vm0, %v8223_v7, 0.0 }
 0x416   : > { %v8265_v2 = vadd.f32 %v8264_v8, %v8263_v53  ;;  %v8282_v8 = vsel %vm1314_vm0, %v8224_v38, 0.0 }
 0x418   : > { %v8267_v55 = vadd.f32 %v8266_v40, %v8265_v2  ;;  %v8284_v40 = vsel %vm1314_vm0, %v8225_v42, 0.0 }
 0x41a   : > { %v8269_v19 = vadd.f32 %v8268_v62, %v8267_v55 }
 0x41c   : > { %v8271_v57 = vadd.f32 %v8270_v61, %v8269_v19  ;;  %v8288_v19 = vsel %vm1314_vm0, %v8227_v32, 0.0  ;;  %v8290_v61 = vsel %vm1314_vm0, %v8228_v48, 0.0 }
 0x41e   : > { %v8273_v54 = vadd.f32 %v8272_v47, %v8271_v57 }
 0x420   : > { %v8275_v51 = vadd.f32 %v8274_v27, %v8273_v54 }
 0x422   : > { %v8277_v18 = vadd.f32 %v8276_v22, %v8275_v51 }
 0x424   : > { %v8279_v21 = vadd.f32 %v8278_v60, %v8277_v18 }
 0x426   : > { %v8281_v53 = vadd.f32 %v8280_v36, %v8279_v21 }
 0x428   : > { %v8283_v2 = vadd.f32 %v8282_v8, %v8281_v53 }
 0x42a   : > { %v8285_v55 = vadd.f32 %v8284_v40, %v8283_v2 }
 0x42c   : > { %v8287_v62 = vadd.f32 %v8286_v50, %v8285_v55 }
 0x42e   : > { %v8289_v30 = vadd.f32 %v8288_v19, %v8287_v62 }
 0x430   : > { %v8291_v3 = vadd.f32 %v8290_v61, %v8289_v30 }
 0x432   : > { %v8292_v20 = vrot.slane %v8291_v3, 4 }
 0x434   : > { %v8293_v57 = vadd.f32 %v8292_v20, %v8291_v3 }
 0x436   : > { %v8294_v59 = vrot.slane %v8293_v57, 2 }
 0x438   : > { %v8295_v47 = vadd.f32 %v8294_v59, %v8293_v57 }
 0x43a   : > { %v8296_v54 = vrot.slane %v8295_v47, 1 }
 0x43c   : > { %v8297_v4 = vadd.f32 %v8296_v54, %v8295_v47  ;;  %v9288_v54 = vld [vmem:[%s15079_s6] ss:$0 sm:$0xff] }
 0x43e   : > { %10980 = vmatmul.mubr.msk.f32.vlgmr.msra.gmra.mxu1 %vm1314_vm0, %v8297_v4 }
 0x4fe   : > { %v8367_v27 = vpop.f32.mrf.mxu1 }
 0x4ff   : > { %v8368_v51 = vadd.f32 1e-05, %v8367_v27 }
 0x500   : > { %v10981_v7 = vpop.f32.mrf.mxu1 }
 0x501   : > { %10992 = vrsqrt.f32 %v8368_v51 }
 0x50e   : > { %v10993_v22 = vpop.eup %10992 }
 0x50f   : > { %v8375_v18 = vrot.slane %v10993_v22, %v8163_v44 }
 0x511   : > { %v8376_v38 = vmul.f32 %v8375_v18, %v14711_v17  ;;  %v8377_v60 = vmul.f32 %v8375_v18, %v14715_v49  ;;  %v8378_v21 = vmul.f32 %v8375_v18, %v14719_v10  ;;  %v8379_v42 = vmul.f32 %v8375_v18, %v14723_v24 }
 0x512   : > { %v8380_v36 = vmul.f32 %v8375_v18, %v14731_v14  ;;  %v8381_v53 = vmul.f32 %v8375_v18, %v14737_v37  ;;  %v8382_v12 = vmul.f32 %v8375_v18, %v14745_v16  ;;  %v8383_v8 = vmul.f32 %v8375_v18, %v14752_v25 }
 0x513   : > { %v8384_v2 = vmul.f32 %v8375_v18, %v14759_v0  ;;  %v8385_v31 = vmul.f32 %v8375_v18, %v14766_v1  ;;  %v8386_v44 = vmul.f32 %v8375_v18, %v14773_v52  ;;  %v8387_v17 = vmul.f32 %v8375_v18, %v14780_v26 }
 0x514   : > { %v8388_v49 = vmul.f32 %v8375_v18, %v14787_v23  ;;  %v8389_v10 = vmul.f32 %v8375_v18, %v14794_v46  ;;  %v8390_v24 = vmul.f32 %v8375_v18, %v14801_v6  ;;  %v8391_v14 = vmul.f32 %v8375_v18, %v14808_v58  ;;  %v9287_v46 = vld [vmem:[%s15078_s5] ss:$0 sm:$0xff] }
 0x515   : > { %v8392_v37 = vmul.f32 %v8375_v18, %v14815_v43  ;;  %v8393_v16 = vmul.f32 %v8375_v18, %v14822_v29  ;;  %v8394_v25 = vmul.f32 %v8375_v18, %v14829_v35  ;;  %v8395_v0 = vmul.f32 %v8375_v18, %v14836_v63 }
 0x516   : > { %v8396_v1 = vmul.f32 %v8375_v18, %v14843_v28  ;;  %v8397_v52 = vmul.f32 %v8375_v18, %v14850_v41  ;;  %v8398_v26 = vmul.f32 %v8375_v18, %v14857_v11  ;;  %v8399_v23 = vmul.f32 %v8375_v18, %v14864_v33 }
 0x517   : > { %v8400_v6 = vmul.f32 %v8375_v18, %v14871_v34  ;;  %v8401_v58 = vmul.f32 %v8375_v18, %v14878_v13  ;;  %v8402_v43 = vmul.f32 %v8375_v18, %v14885_v9  ;;  %v8403_v29 = vmul.f32 %v8375_v18, %v14892_v45 }
 0x518   : > { %v8404_v35 = vmul.f32 %v8375_v18, %v14899_v5  ;;  %v8405_v63 = vmul.f32 %v8375_v18, %v14906_v56  ;;  %v8406_v28 = vmul.f32 %v8375_v18, %v8195_v39  ;;  %v8407_v41 = vmul.f32 %v8375_v18, %v8196_v15 }
 0x519   : > { %v8415_v11 = vmul.f32 %v9287_v46, %v8376_v38  ;;  %v8416_v33 = vmul.f32 %v9287_v46, %v8377_v60  ;;  %v8417_v32 = vmul.f32 %v9287_v46, %v8378_v21  ;;  %v8418_v40 = vmul.f32 %v9287_v46, %v8379_v42 }
 0x51a   : > { %v8419_v55 = vmul.f32 %v9287_v46, %v8380_v36  ;;  %v8420_v48 = vmul.f32 %v9287_v46, %v8381_v53  ;;  %v8421_v50 = vmul.f32 %v9287_v46, %v8382_v12  ;;  %v8422_v34 = vmul.f32 %v9287_v46, %v8383_v8 }
 0x51b   : > { %v8423_v62 = vmul.f32 %v9287_v46, %v8384_v2  ;;  %v8424_v13 = vmul.f32 %v9287_v46, %v8385_v31  ;;  %v8425_v19 = vmul.f32 %v9287_v46, %v8386_v44  ;;  %v8426_v9 = vmul.f32 %v9287_v46, %v8387_v17 }
 0x51c   : > { %v8427_v30 = vmul.f32 %v9287_v46, %v8388_v49  ;;  %v8428_v45 = vmul.f32 %v9287_v46, %v8389_v10  ;;  %v8429_v61 = vmul.f32 %v9287_v46, %v8390_v24  ;;  %v8430_v5 = vmul.f32 %v9287_v46, %v8391_v14 }
 0x51d   : > { %v8431_v3 = vmul.f32 %v9287_v46, %v8392_v37  ;;  %v8432_v56 = vmul.f32 %v9287_v46, %v8393_v16  ;;  %v8433_v39 = vmul.f32 %v9287_v46, %v8394_v25  ;;  %v8434_v15 = vmul.f32 %v9287_v46, %v8395_v0 }
 0x51e   : > { %v8435_v20 = vmul.f32 %v9287_v46, %v8396_v1  ;;  %v8436_v57 = vmul.f32 %v9287_v46, %v8397_v52  ;;  %v8437_v59 = vmul.f32 %v9287_v46, %v8398_v26  ;;  %v8438_v47 = vmul.f32 %v9287_v46, %v8399_v23 }
 0x51f   : > { %v8439_v4 = vmul.f32 %v9287_v46, %v8400_v6  ;;  %v8440_v27 = vmul.f32 %v9287_v46, %v8401_v58  ;;  %v8441_v51 = vmul.f32 %v9287_v46, %v8402_v43  ;;  %v8442_v7 = vmul.f32 %v9287_v46, %v8403_v29 }
 0x520   : > { %v8443_v22 = vmul.f32 %v9287_v46, %v8404_v35  ;;  %v8444_v18 = vmul.f32 %v9287_v46, %v8405_v63  ;;  %v8445_v38 = vmul.f32 %v9287_v46, %v8406_v28  ;;  %v8446_v60 = vmul.f32 %v9287_v46, %v8407_v41 }
 0x521   : > { %v8454_v21 = vadd.f32 %v9288_v54, %v8415_v11  ;;  %v8455_v42 = vadd.f32 %v9288_v54, %v8416_v33  ;;  %v8456_v36 = vadd.f32 %v9288_v54, %v8417_v32  ;;  %v8457_v53 = vadd.f32 %v9288_v54, %v8418_v40 }
 0x522   : > { %v8458_v12 = vadd.f32 %v9288_v54, %v8419_v55  ;;  %v8459_v8 = vadd.f32 %v9288_v54, %v8420_v48  ;;  %v8460_v2 = vadd.f32 %v9288_v54, %v8421_v50  ;;  %v8461_v31 = vadd.f32 %v9288_v54, %v8422_v34 }
 0x523   : > { %v8462_v44 = vadd.f32 %v9288_v54, %v8423_v62  ;;  %v8463_v17 = vadd.f32 %v9288_v54, %v8424_v13  ;;  %v8464_v49 = vadd.f32 %v9288_v54, %v8425_v19  ;;  %v8465_v10 = vadd.f32 %v9288_v54, %v8426_v9 }
 0x524   : > { %v8466_v24 = vadd.f32 %v9288_v54, %v8427_v30  ;;  %v8467_v14 = vadd.f32 %v9288_v54, %v8428_v45  ;;  %v8468_v37 = vadd.f32 %v9288_v54, %v8429_v61  ;;  %v8469_v16 = vadd.f32 %v9288_v54, %v8430_v5 }
 0x525   : > { %v8470_v25 = vadd.f32 %v9288_v54, %v8431_v3  ;;  %v8471_v0 = vadd.f32 %v9288_v54, %v8432_v56  ;;  %v8472_v1 = vadd.f32 %v9288_v54, %v8433_v39  ;;  %v8473_v52 = vadd.f32 %v9288_v54, %v8434_v15 }
 0x526   : > { %v14964_v26 = vadd.f32 %v9288_v54, %v8435_v20  ;;  %v14966_v23 = vadd.f32 %v9288_v54, %v8436_v57  ;;  %v14968_v46 = vadd.f32 %v9288_v54, %v8437_v59  ;;  %v14970_v6 = vadd.f32 %v9288_v54, %v8438_v47 }
 0x527   : > { %v14972_v58 = vadd.f32 %v9288_v54, %v8439_v4  ;;  %v14974_v43 = vadd.f32 %v9288_v54, %v8440_v27  ;;  %v14976_v29 = vadd.f32 %v9288_v54, %v8441_v51  ;;  %v14978_v35 = vadd.f32 %v9288_v54, %v8442_v7 }
 0x528   : > { %v14986_v63 = vadd.f32 %v9288_v54, %v8443_v22  ;;  %v14988_v28 = vadd.f32 %v9288_v54, %v8444_v18  ;;  %v14990_v41 = vadd.f32 %v9288_v54, %v8445_v38  ;;  %v14992_v11 = vadd.f32 %v9288_v54, %v8446_v60 }
 0x529   : > { %v8486_v33 = vmax.f32 %v8454_v21, 0.0  ;;  %v8487_v32 = vmax.f32 %v8455_v42, 0.0  ;;  %v8488_v40 = vmax.f32 %v8456_v36, 0.0  ;;  %v8489_v55 = vmax.f32 %v8457_v53, 0.0 }
 0x52a   : > { %v8490_v48 = vmax.f32 %v8458_v12, 0.0  ;;  %v8491_v50 = vmax.f32 %v8459_v8, 0.0  ;;  %v8492_v34 = vmax.f32 %v8460_v2, 0.0  ;;  %v8493_v62 = vmax.f32 %v8461_v31, 0.0 }
 0x52b   : > { %v8494_v13 = vmax.f32 %v8462_v44, 0.0  ;;  %v8495_v19 = vmax.f32 %v8463_v17, 0.0  ;;  %v8496_v9 = vmax.f32 %v8464_v49, 0.0  ;;  %v8497_v30 = vmax.f32 %v8465_v10, 0.0  ;;  %8518 = vst.msk [vmem:[%s14984_s26] sm:$0xff] %vm1314_vm0, %v8486_v33  ;;  %8519 = vst.msk [vmem:[%s14984_s26 + $0x8] sm:$0xff] %vm1314_vm0, %v8487_v32 }
 0x52c   : > { %8520 = vst.msk [vmem:[%s14984_s26 + $0x10] sm:$0xff] %vm1314_vm0, %v8488_v40  ;;  %8521 = vst.msk [vmem:[%s14984_s26 + $0x18] sm:$0xff] %vm1314_vm0, %v8489_v55  ;;  %v8498_v45 = vmax.f32 %v8466_v24, 0.0  ;;  %v8499_v61 = vmax.f32 %v8467_v14, 0.0  ;;  %v8500_v5 = vmax.f32 %v8468_v37, 0.0  ;;  %v8501_v3 = vmax.f32 %v8469_v16, 0.0 }
 0x52d   : > { %8522 = vst.msk [vmem:[%s14984_s26 + $0x20] sm:$0xff] %vm1314_vm0, %v8490_v48  ;;  %8523 = vst.msk [vmem:[%s14984_s26 + $0x28] sm:$0xff] %vm1314_vm0, %v8491_v50  ;;  %v8502_v56 = vmax.f32 %v8470_v25, 0.0  ;;  %v8503_v39 = vmax.f32 %v8471_v0, 0.0  ;;  %v8504_v15 = vmax.f32 %v8472_v1, 0.0  ;;  %v8505_v20 = vmax.f32 %v8473_v52, 0.0 }
 0x52e   : > { %8524 = vst.msk [vmem:[%s14984_s26 + $0x30] sm:$0xff] %vm1314_vm0, %v8492_v34  ;;  %8525 = vst.msk [vmem:[%s14984_s26 + $0x38] sm:$0xff] %vm1314_vm0, %v8493_v62  ;;  %v8506_v57 = vmax.f32 %v14964_v26, 0.0  ;;  %v8507_v59 = vmax.f32 %v14966_v23, 0.0  ;;  %v8508_v47 = vmax.f32 %v14968_v46, 0.0  ;;  %v8509_v54 = vmax.f32 %v14970_v6, 0.0 }
 0x52f   : > { %8526 = vst.msk [vmem:[%s14984_s26 + $0x40] sm:$0xff] %vm1314_vm0, %v8494_v13  ;;  %8527 = vst.msk [vmem:[%s14984_s26 + $0x48] sm:$0xff] %vm1314_vm0, %v8495_v19  ;;  %v8510_v4 = vmax.f32 %v14972_v58, 0.0  ;;  %v8511_v27 = vmax.f32 %v14974_v43, 0.0  ;;  %v8512_v51 = vmax.f32 %v14976_v29, 0.0  ;;  %v8513_v7 = vmax.f32 %v14978_v35, 0.0 }
 0x530   : > { %8528 = vst.msk [vmem:[%s14984_s26 + $0x50] sm:$0xff] %vm1314_vm0, %v8496_v9  ;;  %8529 = vst.msk [vmem:[%s14984_s26 + $0x58] sm:$0xff] %vm1314_vm0, %v8497_v30  ;;  %v8514_v22 = vmax.f32 %v14986_v63, 0.0  ;;  %v8515_v18 = vmax.f32 %v14988_v28, 0.0  ;;  %v8516_v38 = vmax.f32 %v14990_v41, 0.0  ;;  %v8517_v60 = vmax.f32 %v14992_v11, 0.0 }
 0x531   : > { %8530 = vst.msk [vmem:[%s14984_s26 + $0x60] sm:$0xff] %vm1314_vm0, %v8498_v45  ;;  %8531 = vst.msk [vmem:[%s14984_s26 + $0x68] sm:$0xff] %vm1314_vm0, %v8499_v61 }
 0x532   : > { %8532 = vst.msk [vmem:[%s14984_s26 + $0x70] sm:$0xff] %vm1314_vm0, %v8500_v5  ;;  %8533 = vst.msk [vmem:[%s14984_s26 + $0x78] sm:$0xff] %vm1314_vm0, %v8501_v3 }
 0x533   : > { %8534 = vst.msk [vmem:[%s14984_s26 + $0x80] sm:$0xff] %vm1314_vm0, %v8502_v56  ;;  %8535 = vst.msk [vmem:[%s14984_s26 + $0x88] sm:$0xff] %vm1314_vm0, %v8503_v39 }
 0x534   : > { %8536 = vst.msk [vmem:[%s14984_s26 + $0x90] sm:$0xff] %vm1314_vm0, %v8504_v15  ;;  %8537 = vst.msk [vmem:[%s14984_s26 + $0x98] sm:$0xff] %vm1314_vm0, %v8505_v20 }
 0x535   : > { %8538 = vst.msk [vmem:[%s14984_s26 + $0xa0] sm:$0xff] %vm1314_vm0, %v8506_v57  ;;  %8539 = vst.msk [vmem:[%s14984_s26 + $0xa8] sm:$0xff] %vm1314_vm0, %v8507_v59 }
 0x536   : > { %8540 = vst.msk [vmem:[%s14984_s26 + $0xb0] sm:$0xff] %vm1314_vm0, %v8508_v47  ;;  %8541 = vst.msk [vmem:[%s14984_s26 + $0xb8] sm:$0xff] %vm1314_vm0, %v8509_v54 }
 0x537   : > { %8542 = vst.msk [vmem:[%s14984_s26 + $0xc0] sm:$0xff] %vm1314_vm0, %v8510_v4  ;;  %8543 = vst.msk [vmem:[%s14984_s26 + $0xc8] sm:$0xff] %vm1314_vm0, %v8511_v27 }
 0x538   : > { %8544 = vst.msk [vmem:[%s14984_s26 + $0xd0] sm:$0xff] %vm1314_vm0, %v8512_v51  ;;  %8545 = vst.msk [vmem:[%s14984_s26 + $0xd8] sm:$0xff] %vm1314_vm0, %v8513_v7 }
 0x539   : > { %8546 = vst.msk [vmem:[%s14984_s26 + $0xe0] sm:$0xff] %vm1314_vm0, %v8514_v22  ;;  %8547 = vst.msk [vmem:[%s14984_s26 + $0xe8] sm:$0xff] %vm1314_vm0, %v8515_v18 }
 0x53a   : > { %8548 = vst.msk [vmem:[%s14984_s26 + $0xf0] sm:$0xff] %vm1314_vm0, %v8516_v38  ;;  %8549 = vst.msk [vmem:[%s14984_s26 + $0xf8] sm:$0xff] %vm1314_vm0, %v8517_v60 }
 0x53b PF: > { %s18_s27 = sadd.s32 1, %s11120_s27  }
 0x53c   : > { %p15_p4 = scmp.ge.s32.totalorder %s18_s27, 4  }
 0x53e   :  { %17 = sbr.rel (!%p15_p4) target bundleno = 1 (0x1), region = 101 }

</bundles_post_ra>
